<compile_context>
chip_gen: v6e
topology: v6e:2x2x1
jax: 0.10.0
libtpu: 0.0.40
codegen_flags: <defaults>
</compile_context>

<pallas_src>
import functools

import jax
import jax.numpy as jnp
from jax.experimental import pallas as pl
from jax.experimental.pallas import tpu as pltpu


# ---------------------------------------------------------------------------
# Conv layer: lane-dense GEMM kernel (one grid step per batch image).
# ---------------------------------------------------------------------------
def _conv_gemm_kernel(p_ref, w_ref, b_ref, o_ref):
    # p_ref: (1, K, Mhw) bf16   w_ref: (Cout, K) bf16   b_ref: (Cout, 1) f32
    acc = jnp.dot(w_ref[...], p_ref[0], preferred_element_type=jnp.float32)
    acc = acc + b_ref[...]                      # (Cout, Mhw) + (Cout, 1)
    o_ref[0] = jnp.maximum(acc, 0.0).astype(o_ref.dtype)


def _im2col_nchw(x, k, s):
    """(B,C,H,W) -> (B, C*k*k, Ho*Wo).  Feature order (c, i, j) matches
    PyTorch weight.reshape(Cout, -1).  (Ho, Wo) stay minor: no minor-dim
    transpose, just strided slices + stack + reshape."""
    B, C, H, W = x.shape
    Ho = (H - k) // s + 1
    Wo = (W - k) // s + 1
    cols = []
    for i in range(k):
        for j in range(k):
            cols.append(x[:, :, i:i + s * Ho:s, j:j + s * Wo:s])  # (B,C,Ho,Wo)
    p = jnp.stack(cols, axis=2)                 # (B, C, k*k, Ho, Wo)
    return p.reshape(B, C * k * k, Ho * Wo), Ho, Wo


def conv2d_relu(x, w2, b2, *, k, s):
    """PyTorch-semantics Conv2d (valid padding, stride s) + ReLU.
    x: (B,C,H,W) bf16; w2: (Cout, C*k*k) bf16; b2: (Cout,1) f32."""
    B = x.shape[0]
    patches, Ho, Wo = _im2col_nchw(x, k, s)     # (B, K, Mhw) bf16
    K = patches.shape[1]
    Mhw = Ho * Wo
    Cout = w2.shape[0]
    out = pl.pallas_call(
        _conv_gemm_kernel,
        out_shape=jax.ShapeDtypeStruct((B, Cout, Mhw), jnp.bfloat16),
        grid_spec=pltpu.PrefetchScalarGridSpec(
            num_scalar_prefetch=0,
            grid=(B,),
            in_specs=[
                pl.BlockSpec((1, K, Mhw), lambda b: (b, 0, 0)),
                pl.BlockSpec((Cout, K), lambda b: (0, 0)),
                pl.BlockSpec((Cout, 1), lambda b: (0, 0)),
            ],
            out_specs=pl.BlockSpec((1, Cout, Mhw), lambda b: (b, 0, 0)),
        ),
        compiler_params=pltpu.CompilerParams(
            dimension_semantics=("parallel",)),   # v7x: shard batch on 2 TCs
    )(patches, w2, b2)
    return out.reshape(B, Cout, Ho, Wo)           # NCHW, bf16


# ---------------------------------------------------------------------------
# Fused FC tail: linear_1 (K tiled over the 9216 contraction) + linear_2 +
# actor head, all inside one pallas_call.  Output block (M, Npad) is resident
# across the K axis (accumulator in VMEM scratch, axis "arbitrary").
# ---------------------------------------------------------------------------
def _fc_tail_kernel(x_ref, w1_ref, b1_ref, w2_ref, b2_ref, wa_ref, ba_ref,
                    o_ref, acc_ref):
    k = pl.program_id(0)

    @pl.when(k == 0)
    def _():
        acc_ref[...] = jnp.zeros_like(acc_ref)

    acc_ref[...] += jnp.dot(x_ref[...], w1_ref[...],
                            preferred_element_type=jnp.float32)

    @pl.when(k == pl.num_programs(0) - 1)
    def _():
        h1 = acc_ref[...] + b1_ref[...]                       # linear_1 (no act)
        h2 = jnp.dot(h1.astype(w2_ref.dtype), w2_ref[...],
                     preferred_element_type=jnp.float32) + b2_ref[...]
        out = jnp.dot(h2.astype(wa_ref.dtype), wa_ref[...],
                      preferred_element_type=jnp.float32) + ba_ref[...]
        o_ref[...] = out.astype(o_ref.dtype)


def fc_tail(x, w1, b1, w2, b2, wa, ba, *, tk=4608):
    """((x @ w1 + b1) @ w2 + b2) @ wa + ba   in one pallas_call.
    x: (M, 9216) bf16; w1: (9216, 512) bf16; w2: (512, 512) bf16;
    wa: (512, Npad) bf16 (actor head pre-padded to a 128-lane multiple)."""
    M, K = x.shape
    H = w1.shape[1]
    Npad = wa.shape[1]
    assert K % tk == 0, "tk must divide the lin1 contraction dim"
    nk = K // tk

    flops = 2 * M * (K * H + H * H + H * Npad)
    bytes_accessed = (x.size * x.dtype.itemsize
                      + w1.size * w1.dtype.itemsize
                      + w2.size * w2.dtype.itemsize
                      + wa.size * wa.dtype.itemsize
                      + (b1.size + b2.size + ba.size) * 4
                      + M * Npad * 4)

    return pl.pallas_call(
        _fc_tail_kernel,
        out_shape=jax.ShapeDtypeStruct((M, Npad), jnp.float32),
        grid_spec=pltpu.PrefetchScalarGridSpec(
            num_scalar_prefetch=0,
            grid=(nk,),
            in_specs=[
                pl.BlockSpec((M, tk), lambda k: (0, k)),
                pl.BlockSpec((tk, H), lambda k: (k, 0)),
                pl.BlockSpec((1, H), lambda k: (0, 0)),
                pl.BlockSpec((H, H), lambda k: (0, 0)),
                pl.BlockSpec((1, H), lambda k: (0, 0)),
                pl.BlockSpec((H, Npad), lambda k: (0, 0)),
                pl.BlockSpec((1, Npad), lambda k: (0, 0)),
            ],
            out_specs=pl.BlockSpec((M, Npad), lambda k: (0, 0)),
            scratch_shapes=[pltpu.VMEM((M, H), jnp.float32)],
        ),
        compiler_params=pltpu.CompilerParams(
            dimension_semantics=("arbitrary",)),
        cost_estimate=pl.CostEstimate(
            flops=flops, transcendentals=0, bytes_accessed=bytes_accessed),
    )(x, w1, b1, w2, b2, wa, ba)


# ---------------------------------------------------------------------------
# Parameters.
# ---------------------------------------------------------------------------
def init_params(key, num_actions):
    """f32 parameters in PyTorch layout (linear weights stored (in, out))."""
    keys = jax.random.split(key, 6)

    def w_init(k, shape, fan_in):
        # TODO(synk): scaled-normal stand-in for nn.init.orthogonal_(gain=sqrt(2));
        # the exact orthogonal init of the reference is not replicated.
        return jax.random.normal(k, shape, jnp.float32) * jnp.sqrt(2.0 / fan_in)

    return {
        "conv1_w": w_init(keys[0], (32, 4, 8, 8), 4 * 8 * 8),
        "conv1_b": jnp.zeros((32,), jnp.float32),
        "conv2_w": w_init(keys[1], (64, 32, 4, 4), 32 * 4 * 4),
        "conv2_b": jnp.zeros((64,), jnp.float32),
        "conv3_w": w_init(keys[2], (64, 64, 3, 3), 64 * 3 * 3),
        "conv3_b": jnp.zeros((64,), jnp.float32),
        "lin1_w": w_init(keys[3], (9216, 512), 9216),
        "lin1_b": jnp.zeros((512,), jnp.float32),
        "lin2_w": w_init(keys[4], (512, 512), 512),
        "lin2_b": jnp.zeros((512,), jnp.float32),
        "actor_w": w_init(keys[5], (512, num_actions), 512),
        "actor_b": jnp.zeros((num_actions,), jnp.float32),
    }


def prepare_params(params, num_actions):
    """One-time layout/dtype transform for the kernels: conv weights flattened
    to (Cout, Cin*k*k), all matmul weights in bf16, biases kept f32, actor
    head zero-padded to a 128-lane multiple."""
    bf = jnp.bfloat16
    na_pad = ((num_actions + 127) // 128) * 128
    wa = jnp.zeros((512, na_pad), jnp.float32).at[:, :num_actions].set(
        params["actor_w"])
    ba = jnp.zeros((1, na_pad), jnp.float32).at[0, :num_actions].set(
        params["actor_b"])
    return {
        "c1_w": params["conv1_w"].reshape(32, -1).astype(bf),
        "c1_b": params["conv1_b"].reshape(-1, 1),
        "c2_w": params["conv2_w"].reshape(64, -1).astype(bf),
        "c2_b": params["conv2_b"].reshape(-1, 1),
        "c3_w": params["conv3_w"].reshape(64, -1).astype(bf),
        "c3_b": params["conv3_b"].reshape(-1, 1),
        "l1_w": params["lin1_w"].astype(bf),
        "l1_b": params["lin1_b"].reshape(1, -1),
        "l2_w": params["lin2_w"].astype(bf),
        "l2_b": params["lin2_b"].reshape(1, -1),
        "a_w": wa.astype(bf),
        "a_b": ba,
    }


# ---------------------------------------------------------------------------
# Forward pass (mirrors CNNActor.forward).
# ---------------------------------------------------------------------------
@functools.partial(jax.jit, static_argnames=("num_actions",))
def cnn_actor_forward(p, x, *, num_actions):
    x = x.astype(jnp.bfloat16)
    out = conv2d_relu(x, p["c1_w"], p["c1_b"], k=8, s=4)
    out = conv2d_relu(out, p["c2_w"], p["c2_b"], k=4, s=2)
    out = conv2d_relu(out, p["c3_w"], p["c3_b"], k=3, s=1)
    B = out.shape[0]
    flat = out.reshape(B, -1)          # == PyTorch .view(B, -1) on NCHW
    logits = fc_tail(flat, p["l1_w"], p["l1_b"], p["l2_w"], p["l2_b"],
                     p["a_w"], p["a_b"])
    return logits[:, :num_actions]


# Plain-JAX f32 reference for the correctness check.
def reference_forward(params, x):
    def conv(y, w, b, s):
        y = jax.lax.conv_general_dilated(
            y, w, window_strides=(s, s), padding="VALID",
            dimension_numbers=("NCHW", "OIHW", "NCHW"))
        return jax.nn.relu(y + b.reshape(1, -1, 1, 1))

    out = conv(x, params["conv1_w"], params["conv1_b"], 4)
    out = conv(out, params["conv2_w"], params["conv2_b"], 2)
    out = conv(out, params["conv3_w"], params["conv3_b"], 1)
    flat = out.reshape(out.shape[0], -1)
    out = flat @ params["lin1_w"] + params["lin1_b"]
    out = out @ params["lin2_w"] + params["lin2_b"]
    return out @ params["actor_w"] + params["actor_b"]


if __name__ == "__main__":
    num_actions = 6
    batch = 2
    # flat_size = 9216 = 64*12*12 forces a 124x124 spatial input.
    key = jax.random.PRNGKey(0)
    pkey, xkey = jax.random.split(key)
    params = init_params(pkey, num_actions)
    kparams = prepare_params(params, num_actions)
    x = jax.random.normal(xkey, (batch, 4, 124, 124), jnp.float32)

    logits = cnn_actor_forward(kparams, x, num_actions=num_actions)
    jax.block_until_ready(logits)
    assert logits.shape == (batch, num_actions)
    assert logits.dtype == jnp.float32

    ref = reference_forward(params, x)
    err = float(jnp.max(jnp.abs(logits - ref)))
    scale = float(jnp.max(jnp.abs(ref))) + 1.0
    # bf16 storage (f32 accumulation) gives a small, bounded drift vs f32.
    assert err <= 5e-2 * scale, f"mismatch: max|diff|={err}, scale={scale}"

    print("KERNEL_OK")
</pallas_src>

<mosaic_0001>
module attributes {stable_mosaic.version = 11 : i64} {
  func.func @_conv_gemm_kernel(%arg0: i32, %arg1: memref<1x256x900xbf16, #tpu.memory_space<vmem>>, %arg2: memref<32x256xbf16, #tpu.memory_space<vmem>>, %arg3: memref<32x1xf32, #tpu.memory_space<vmem>>, %arg4: memref<1x32x900xbf16, #tpu.memory_space<vmem>>) attributes {dimension_semantics = [#tpu.dimension_semantics<parallel>], iteration_bounds = array<i64: 2>, scalar_prefetch = 0 : i64, scratch_operands = 0 : i64, tpu.core_type = #tpu.core_type<tc>, window_params = [{transform_indices = @transform_0, window_bounds = array<i64: 1, 256, 900>}, {pipeline_mode = #tpu.pipeline_mode<synchronous>, transform_indices = @transform_1, window_bounds = array<i64: 32, 256>}, {pipeline_mode = #tpu.pipeline_mode<synchronous>, transform_indices = @transform_2, window_bounds = array<i64: 32, 1>}, {transform_indices = @transform_3, window_bounds = array<i64: 1, 32, 900>}]} {
    %c0 = arith.constant 0 : index
    %c0_0 = arith.constant 0 : index
    %0 = vector.load %arg2[%c0, %c0_0] : memref<32x256xbf16, #tpu.memory_space<vmem>>, vector<32x256xbf16>
    %c0_1 = arith.constant 0 : index
    %c0_2 = arith.constant 0 : index
    %c0_3 = arith.constant 0 : index
    %1 = vector.load %arg1[%c0_1, %c0_2, %c0_3] : memref<1x256x900xbf16, #tpu.memory_space<vmem>>, vector<1x256x900xbf16>
    %2 = vector.shape_cast %1 : vector<1x256x900xbf16> to vector<256x900xbf16>
    %cst = arith.constant dense<0.000000e+00> : vector<32x900xf32>
    %3 = tpu.matmul %0, %2, %cst {dimension_numbers = #tpu.dot_dimension_numbers<[1], [0], [0], [1], [0, 0, 1, 1], [], []>} : vector<32x256xbf16>, vector<256x900xbf16>, vector<32x900xf32> -> vector<32x900xf32>
    %c0_4 = arith.constant 0 : index
    %c0_5 = arith.constant 0 : index
    %4 = vector.load %arg3[%c0_4, %c0_5] : memref<32x1xf32, #tpu.memory_space<vmem>>, vector<32x1xf32>
    %5 = vector.broadcast %4 : vector<32x1xf32> to vector<32x900xf32>
    %6 = arith.addf %3, %5 : vector<32x900xf32>
    %cst_6 = arith.constant 0.000000e+00 : f32
    %7 = vector.broadcast %cst_6 : f32 to vector<32x900xf32>
    %8 = arith.maximumf %6, %7 : vector<32x900xf32>
    %9 = arith.truncf %8 : vector<32x900xf32> to vector<32x900xbf16>
    %c0_7 = arith.constant 0 : index
    %c0_8 = arith.constant 0 : index
    %c0_9 = arith.constant 0 : index
    %10 = vector.load %arg4[%c0_7, %c0_8, %c0_9] : memref<1x32x900xbf16, #tpu.memory_space<vmem>>, vector<1x32x900xbf16>
    %11 = vector.shape_cast %10 : vector<1x32x900xbf16> to vector<32x900xbf16>
    %12 = vector.shape_cast %9 : vector<32x900xbf16> to vector<1x32x900xbf16>
    tpu.vector_store %arg4[%c0_7, %c0_8, %c0_9], %12 {strides = array<i32>} : memref<1x32x900xbf16, #tpu.memory_space<vmem>>, vector<1x32x900xbf16>,
    return
  }
  func.func @transform_0(%arg0: i32) -> (i32, i32, i32) {
    %c0_i32 = arith.constant 0 : i32
    %c0_i32_0 = arith.constant 0 : i32
    %c0_i32_1 = arith.constant 0 : i32
    return %arg0, %c0_i32, %c0_i32_0 : i32, i32, i32
  }
  func.func @transform_1(%arg0: i32) -> (i32, i32) {
    %c0_i32 = arith.constant 0 : i32
    %c0_i32_0 = arith.constant 0 : i32
    %c0_i32_1 = arith.constant 0 : i32
    return %c0_i32, %c0_i32_0 : i32, i32
  }
  func.func @transform_2(%arg0: i32) -> (i32, i32) {
    %c0_i32 = arith.constant 0 : i32
    %c0_i32_0 = arith.constant 0 : i32
    %c0_i32_1 = arith.constant 0 : i32
    return %c0_i32, %c0_i32_0 : i32, i32
  }
  func.func @transform_3(%arg0: i32) -> (i32, i32, i32) {
    %c0_i32 = arith.constant 0 : i32
    %c0_i32_0 = arith.constant 0 : i32
    %c0_i32_1 = arith.constant 0 : i32
    return %arg0, %c0_i32, %c0_i32_0 : i32, i32, i32
  }
}

module attributes {stable_mosaic.version = 11 : i64} {
  func.func @_conv_gemm_kernel(%arg0: i32, %arg1: memref<1x512x196xbf16, #tpu.memory_space<vmem>>, %arg2: memref<64x512xbf16, #tpu.memory_space<vmem>>, %arg3: memref<64x1xf32, #tpu.memory_space<vmem>>, %arg4: memref<1x64x196xbf16, #tpu.memory_space<vmem>>) attributes {dimension_semantics = [#tpu.dimension_semantics<parallel>], iteration_bounds = array<i64: 2>, scalar_prefetch = 0 : i64, scratch_operands = 0 : i64, tpu.core_type = #tpu.core_type<tc>, window_params = [{transform_indices = @transform_0, window_bounds = array<i64: 1, 512, 196>}, {pipeline_mode = #tpu.pipeline_mode<synchronous>, transform_indices = @transform_1, window_bounds = array<i64: 64, 512>}, {pipeline_mode = #tpu.pipeline_mode<synchronous>, transform_indices = @transform_2, window_bounds = array<i64: 64, 1>}, {transform_indices = @transform_3, window_bounds = array<i64: 1, 64, 196>}]} {
    %c0 = arith.constant 0 : index
    %c0_0 = arith.constant 0 : index
    %0 = vector.load %arg2[%c0, %c0_0] : memref<64x512xbf16, #tpu.memory_space<vmem>>, vector<64x512xbf16>
    %c0_1 = arith.constant 0 : index
    %c0_2 = arith.constant 0 : index
    %c0_3 = arith.constant 0 : index
    %1 = vector.load %arg1[%c0_1, %c0_2, %c0_3] : memref<1x512x196xbf16, #tpu.memory_space<vmem>>, vector<1x512x196xbf16>
    %2 = vector.shape_cast %1 : vector<1x512x196xbf16> to vector<512x196xbf16>
    %cst = arith.constant dense<0.000000e+00> : vector<64x196xf32>
    %3 = tpu.matmul %0, %2, %cst {dimension_numbers = #tpu.dot_dimension_numbers<[1], [0], [0], [1], [0, 0, 1, 1], [], []>} : vector<64x512xbf16>, vector<512x196xbf16>, vector<64x196xf32> -> vector<64x196xf32>
    %c0_4 = arith.constant 0 : index
    %c0_5 = arith.constant 0 : index
    %4 = vector.load %arg3[%c0_4, %c0_5] : memref<64x1xf32, #tpu.memory_space<vmem>>, vector<64x1xf32>
    %5 = vector.broadcast %4 : vector<64x1xf32> to vector<64x196xf32>
    %6 = arith.addf %3, %5 : vector<64x196xf32>
    %cst_6 = arith.constant 0.000000e+00 : f32
    %7 = vector.broadcast %cst_6 : f32 to vector<64x196xf32>
    %8 = arith.maximumf %6, %7 : vector<64x196xf32>
    %9 = arith.truncf %8 : vector<64x196xf32> to vector<64x196xbf16>
    %c0_7 = arith.constant 0 : index
    %c0_8 = arith.constant 0 : index
    %c0_9 = arith.constant 0 : index
    %10 = vector.load %arg4[%c0_7, %c0_8, %c0_9] : memref<1x64x196xbf16, #tpu.memory_space<vmem>>, vector<1x64x196xbf16>
    %11 = vector.shape_cast %10 : vector<1x64x196xbf16> to vector<64x196xbf16>
    %12 = vector.shape_cast %9 : vector<64x196xbf16> to vector<1x64x196xbf16>
    tpu.vector_store %arg4[%c0_7, %c0_8, %c0_9], %12 {strides = array<i32>} : memref<1x64x196xbf16, #tpu.memory_space<vmem>>, vector<1x64x196xbf16>,
    return
  }
  func.func @transform_0(%arg0: i32) -> (i32, i32, i32) {
    %c0_i32 = arith.constant 0 : i32
    %c0_i32_0 = arith.constant 0 : i32
    %c0_i32_1 = arith.constant 0 : i32
    return %arg0, %c0_i32, %c0_i32_0 : i32, i32, i32
  }
  func.func @transform_1(%arg0: i32) -> (i32, i32) {
    %c0_i32 = arith.constant 0 : i32
    %c0_i32_0 = arith.constant 0 : i32
    %c0_i32_1 = arith.constant 0 : i32
    return %c0_i32, %c0_i32_0 : i32, i32
  }
  func.func @transform_2(%arg0: i32) -> (i32, i32) {
    %c0_i32 = arith.constant 0 : i32
    %c0_i32_0 = arith.constant 0 : i32
    %c0_i32_1 = arith.constant 0 : i32
    return %c0_i32, %c0_i32_0 : i32, i32
  }
  func.func @transform_3(%arg0: i32) -> (i32, i32, i32) {
    %c0_i32 = arith.constant 0 : i32
    %c0_i32_0 = arith.constant 0 : i32
    %c0_i32_1 = arith.constant 0 : i32
    return %arg0, %c0_i32, %c0_i32_0 : i32, i32, i32
  }
}

module attributes {stable_mosaic.version = 11 : i64} {
  func.func @_conv_gemm_kernel(%arg0: i32, %arg1: memref<1x576x144xbf16, #tpu.memory_space<vmem>>, %arg2: memref<64x576xbf16, #tpu.memory_space<vmem>>, %arg3: memref<64x1xf32, #tpu.memory_space<vmem>>, %arg4: memref<1x64x144xbf16, #tpu.memory_space<vmem>>) attributes {dimension_semantics = [#tpu.dimension_semantics<parallel>], iteration_bounds = array<i64: 2>, scalar_prefetch = 0 : i64, scratch_operands = 0 : i64, tpu.core_type = #tpu.core_type<tc>, window_params = [{transform_indices = @transform_0, window_bounds = array<i64: 1, 576, 144>}, {pipeline_mode = #tpu.pipeline_mode<synchronous>, transform_indices = @transform_1, window_bounds = array<i64: 64, 576>}, {pipeline_mode = #tpu.pipeline_mode<synchronous>, transform_indices = @transform_2, window_bounds = array<i64: 64, 1>}, {transform_indices = @transform_3, window_bounds = array<i64: 1, 64, 144>}]} {
    %c0 = arith.constant 0 : index
    %c0_0 = arith.constant 0 : index
    %0 = vector.load %arg2[%c0, %c0_0] : memref<64x576xbf16, #tpu.memory_space<vmem>>, vector<64x576xbf16>
    %c0_1 = arith.constant 0 : index
    %c0_2 = arith.constant 0 : index
    %c0_3 = arith.constant 0 : index
    %1 = vector.load %arg1[%c0_1, %c0_2, %c0_3] : memref<1x576x144xbf16, #tpu.memory_space<vmem>>, vector<1x576x144xbf16>
    %2 = vector.shape_cast %1 : vector<1x576x144xbf16> to vector<576x144xbf16>
    %cst = arith.constant dense<0.000000e+00> : vector<64x144xf32>
    %3 = tpu.matmul %0, %2, %cst {dimension_numbers = #tpu.dot_dimension_numbers<[1], [0], [0], [1], [0, 0, 1, 1], [], []>} : vector<64x576xbf16>, vector<576x144xbf16>, vector<64x144xf32> -> vector<64x144xf32>
    %c0_4 = arith.constant 0 : index
    %c0_5 = arith.constant 0 : index
    %4 = vector.load %arg3[%c0_4, %c0_5] : memref<64x1xf32, #tpu.memory_space<vmem>>, vector<64x1xf32>
    %5 = vector.broadcast %4 : vector<64x1xf32> to vector<64x144xf32>
    %6 = arith.addf %3, %5 : vector<64x144xf32>
    %cst_6 = arith.constant 0.000000e+00 : f32
    %7 = vector.broadcast %cst_6 : f32 to vector<64x144xf32>
    %8 = arith.maximumf %6, %7 : vector<64x144xf32>
    %9 = arith.truncf %8 : vector<64x144xf32> to vector<64x144xbf16>
    %c0_7 = arith.constant 0 : index
    %c0_8 = arith.constant 0 : index
    %c0_9 = arith.constant 0 : index
    %10 = vector.load %arg4[%c0_7, %c0_8, %c0_9] : memref<1x64x144xbf16, #tpu.memory_space<vmem>>, vector<1x64x144xbf16>
    %11 = vector.shape_cast %10 : vector<1x64x144xbf16> to vector<64x144xbf16>
    %12 = vector.shape_cast %9 : vector<64x144xbf16> to vector<1x64x144xbf16>
    tpu.vector_store %arg4[%c0_7, %c0_8, %c0_9], %12 {strides = array<i32>} : memref<1x64x144xbf16, #tpu.memory_space<vmem>>, vector<1x64x144xbf16>,
    return
  }
  func.func @transform_0(%arg0: i32) -> (i32, i32, i32) {
    %c0_i32 = arith.constant 0 : i32
    %c0_i32_0 = arith.constant 0 : i32
    %c0_i32_1 = arith.constant 0 : i32
    return %arg0, %c0_i32, %c0_i32_0 : i32, i32, i32
  }
  func.func @transform_1(%arg0: i32) -> (i32, i32) {
    %c0_i32 = arith.constant 0 : i32
    %c0_i32_0 = arith.constant 0 : i32
    %c0_i32_1 = arith.constant 0 : i32
    return %c0_i32, %c0_i32_0 : i32, i32
  }
  func.func @transform_2(%arg0: i32) -> (i32, i32) {
    %c0_i32 = arith.constant 0 : i32
    %c0_i32_0 = arith.constant 0 : i32
    %c0_i32_1 = arith.constant 0 : i32
    return %c0_i32, %c0_i32_0 : i32, i32
  }
  func.func @transform_3(%arg0: i32) -> (i32, i32, i32) {
    %c0_i32 = arith.constant 0 : i32
    %c0_i32_0 = arith.constant 0 : i32
    %c0_i32_1 = arith.constant 0 : i32
    return %arg0, %c0_i32, %c0_i32_0 : i32, i32, i32
  }
}

module attributes {stable_mosaic.version = 11 : i64} {
  func.func @_fc_tail_kernel(%arg0: i32, %arg1: memref<2x4608xbf16, #tpu.memory_space<vmem>>, %arg2: memref<4608x512xbf16, #tpu.memory_space<vmem>>, %arg3: memref<1x512xf32, #tpu.memory_space<vmem>>, %arg4: memref<512x512xbf16, #tpu.memory_space<vmem>>, %arg5: memref<1x512xf32, #tpu.memory_space<vmem>>, %arg6: memref<512x128xbf16, #tpu.memory_space<vmem>>, %arg7: memref<1x128xf32, #tpu.memory_space<vmem>>, %arg8: memref<2x128xf32, #tpu.memory_space<vmem>>, %arg9: memref<2x512xf32, #tpu.memory_space<vmem>>) attributes {dimension_semantics = [#tpu.dimension_semantics<arbitrary>], iteration_bounds = array<i64: 2>, scalar_prefetch = 0 : i64, scratch_operands = 1 : i64, tpu.core_type = #tpu.core_type<tc>, window_params = [{transform_indices = @transform_0, window_bounds = array<i64: 2, 4608>}, {transform_indices = @transform_1, window_bounds = array<i64: 4608, 512>}, {pipeline_mode = #tpu.pipeline_mode<synchronous>, transform_indices = @transform_2, window_bounds = array<i64: 1, 512>}, {pipeline_mode = #tpu.pipeline_mode<synchronous>, transform_indices = @transform_3, window_bounds = array<i64: 512, 512>}, {pipeline_mode = #tpu.pipeline_mode<synchronous>, transform_indices = @transform_4, window_bounds = array<i64: 1, 512>}, {pipeline_mode = #tpu.pipeline_mode<synchronous>, transform_indices = @transform_5, window_bounds = array<i64: 512, 128>}, {pipeline_mode = #tpu.pipeline_mode<synchronous>, transform_indices = @transform_6, window_bounds = array<i64: 1, 128>}, {pipeline_mode = #tpu.pipeline_mode<synchronous>, transform_indices = @transform_7, window_bounds = array<i64: 2, 128>}]} {
    %c0_i32 = arith.constant 0 : i32
    %0 = arith.cmpi eq, %arg0, %c0_i32 : i32
    %1 = arith.extui %0 : i1 to i32
    %c0_i32_0 = arith.constant 0 : i32
    %2 = arith.cmpi ne, %1, %c0_i32_0 : i32
    scf.if %2 {
      %cst_9 = arith.constant 0.000000e+00 : f32
      %12 = vector.broadcast %cst_9 : f32 to vector<2x512xf32>
      %c0_10 = arith.constant 0 : index
      %c0_11 = arith.constant 0 : index
      %13 = vector.load %arg9[%c0_10, %c0_11] : memref<2x512xf32, #tpu.memory_space<vmem>>, vector<2x512xf32>
      tpu.vector_store %arg9[%c0_10, %c0_11], %12 {strides = array<i32>} : memref<2x512xf32, #tpu.memory_space<vmem>>, vector<2x512xf32>,
    } else {
    }
    %c0 = arith.constant 0 : index
    %c0_1 = arith.constant 0 : index
    %3 = vector.load %arg9[%c0, %c0_1] : memref<2x512xf32, #tpu.memory_space<vmem>>, vector<2x512xf32>
    %c0_2 = arith.constant 0 : index
    %c0_3 = arith.constant 0 : index
    %4 = vector.load %arg1[%c0_2, %c0_3] : memref<2x4608xbf16, #tpu.memory_space<vmem>>, vector<2x4608xbf16>
    %c0_4 = arith.constant 0 : index
    %c0_5 = arith.constant 0 : index
    %5 = vector.load %arg2[%c0_4, %c0_5] : memref<4608x512xbf16, #tpu.memory_space<vmem>>, vector<4608x512xbf16>
    %cst = arith.constant dense<0.000000e+00> : vector<2x512xf32>
    %6 = tpu.matmul %4, %5, %cst {dimension_numbers = #tpu.dot_dimension_numbers<[1], [0], [0], [1], [0, 0, 1, 1], [], []>} : vector<2x4608xbf16>, vector<4608x512xbf16>, vector<2x512xf32> -> vector<2x512xf32>
    %7 = arith.addf %3, %6 : vector<2x512xf32>
    %c0_6 = arith.constant 0 : index
    %c0_7 = arith.constant 0 : index
    %8 = vector.load %arg9[%c0_6, %c0_7] : memref<2x512xf32, #tpu.memory_space<vmem>>, vector<2x512xf32>
    tpu.vector_store %arg9[%c0_6, %c0_7], %7 {strides = array<i32>} : memref<2x512xf32, #tpu.memory_space<vmem>>, vector<2x512xf32>,
    %c1_i32 = arith.constant 1 : i32
    %9 = arith.cmpi eq, %arg0, %c1_i32 : i32
    %10 = arith.extui %9 : i1 to i32
    %c0_i32_8 = arith.constant 0 : i32
    %11 = arith.cmpi ne, %10, %c0_i32_8 : i32
    scf.if %11 {
      %c0_9 = arith.constant 0 : index
      %c0_10 = arith.constant 0 : index
      %12 = vector.load %arg9[%c0_9, %c0_10] : memref<2x512xf32, #tpu.memory_space<vmem>>, vector<2x512xf32>
      %c0_11 = arith.constant 0 : index
      %c0_12 = arith.constant 0 : index
      %13 = vector.load %arg3[%c0_11, %c0_12] : memref<1x512xf32, #tpu.memory_space<vmem>>, vector<1x512xf32>
      %14 = vector.broadcast %13 : vector<1x512xf32> to vector<2x512xf32>
      %15 = arith.addf %12, %14 : vector<2x512xf32>
      %16 = arith.truncf %15 : vector<2x512xf32> to vector<2x512xbf16>
      %c0_13 = arith.constant 0 : index
      %c0_14 = arith.constant 0 : index
      %17 = vector.load %arg4[%c0_13, %c0_14] : memref<512x512xbf16, #tpu.memory_space<vmem>>, vector<512x512xbf16>
      %cst_15 = arith.constant dense<0.000000e+00> : vector<2x512xf32>
      %18 = tpu.matmul %16, %17, %cst_15 {dimension_numbers = #tpu.dot_dimension_numbers<[1], [0], [0], [1], [0, 0, 1, 1], [], []>} : vector<2x512xbf16>, vector<512x512xbf16>, vector<2x512xf32> -> vector<2x512xf32>
      %c0_16 = arith.constant 0 : index
      %c0_17 = arith.constant 0 : index
      %19 = vector.load %arg5[%c0_16, %c0_17] : memref<1x512xf32, #tpu.memory_space<vmem>>, vector<1x512xf32>
      %20 = vector.broadcast %19 : vector<1x512xf32> to vector<2x512xf32>
      %21 = arith.addf %18, %20 : vector<2x512xf32>
      %22 = arith.truncf %21 : vector<2x512xf32> to vector<2x512xbf16>
      %c0_18 = arith.constant 0 : index
      %c0_19 = arith.constant 0 : index
      %23 = vector.load %arg6[%c0_18, %c0_19] : memref<512x128xbf16, #tpu.memory_space<vmem>>, vector<512x128xbf16>
      %cst_20 = arith.constant dense<0.000000e+00> : vector<2x128xf32>
      %24 = tpu.matmul %22, %23, %cst_20 {dimension_numbers = #tpu.dot_dimension_numbers<[1], [0], [0], [1], [0, 0, 1, 1], [], []>} : vector<2x512xbf16>, vector<512x128xbf16>, vector<2x128xf32> -> vector<2x128xf32>
      %c0_21 = arith.constant 0 : index
      %c0_22 = arith.constant 0 : index
      %25 = vector.load %arg7[%c0_21, %c0_22] : memref<1x128xf32, #tpu.memory_space<vmem>>, vector<1x128xf32>
      %26 = vector.broadcast %25 : vector<1x128xf32> to vector<2x128xf32>
      %27 = arith.addf %24, %26 : vector<2x128xf32>
      %c0_23 = arith.constant 0 : index
      %c0_24 = arith.constant 0 : index
      %28 = vector.load %arg8[%c0_23, %c0_24] : memref<2x128xf32, #tpu.memory_space<vmem>>, vector<2x128xf32>
      tpu.vector_store %arg8[%c0_23, %c0_24], %27 {strides = array<i32>} : memref<2x128xf32, #tpu.memory_space<vmem>>, vector<2x128xf32>,
    } else {
    }
    return
  }
  func.func @transform_0(%arg0: i32) -> (i32, i32) {
    %c0_i32 = arith.constant 0 : i32
    %c0_i32_0 = arith.constant 0 : i32
    return %c0_i32, %arg0 : i32, i32
  }
  func.func @transform_1(%arg0: i32) -> (i32, i32) {
    %c0_i32 = arith.constant 0 : i32
    %c0_i32_0 = arith.constant 0 : i32
    return %arg0, %c0_i32 : i32, i32
  }
  func.func @transform_2(%arg0: i32) -> (i32, i32) {
    %c0_i32 = arith.constant 0 : i32
    %c0_i32_0 = arith.constant 0 : i32
    %c0_i32_1 = arith.constant 0 : i32
    return %c0_i32, %c0_i32_0 : i32, i32
  }
  func.func @transform_3(%arg0: i32) -> (i32, i32) {
    %c0_i32 = arith.constant 0 : i32
    %c0_i32_0 = arith.constant 0 : i32
    %c0_i32_1 = arith.constant 0 : i32
    return %c0_i32, %c0_i32_0 : i32, i32
  }
  func.func @transform_4(%arg0: i32) -> (i32, i32) {
    %c0_i32 = arith.constant 0 : i32
    %c0_i32_0 = arith.constant 0 : i32
    %c0_i32_1 = arith.constant 0 : i32
    return %c0_i32, %c0_i32_0 : i32, i32
  }
  func.func @transform_5(%arg0: i32) -> (i32, i32) {
    %c0_i32 = arith.constant 0 : i32
    %c0_i32_0 = arith.constant 0 : i32
    %c0_i32_1 = arith.constant 0 : i32
    return %c0_i32, %c0_i32_0 : i32, i32
  }
  func.func @transform_6(%arg0: i32) -> (i32, i32) {
    %c0_i32 = arith.constant 0 : i32
    %c0_i32_0 = arith.constant 0 : i32
    %c0_i32_1 = arith.constant 0 : i32
    return %c0_i32, %c0_i32_0 : i32, i32
  }
  func.func @transform_7(%arg0: i32) -> (i32, i32) {
    %c0_i32 = arith.constant 0 : i32
    %c0_i32_0 = arith.constant 0 : i32
    %c0_i32_1 = arith.constant 0 : i32
    return %c0_i32, %c0_i32_0 : i32, i32
  }
}

</mosaic_0001>

<bundles_post_ra>
// kernel: cnn_actor_forward.4
= control target key start
LH: loop header
LB: loop body
LE: loop exit
PB: predicated region body
PF: predicated region fallthrough
CT: control target
= control target key end

     0   :  { %s1624_s12 = smov 0   ;;  %s1893_s0 = inlined_call_operand.vmem [shape: bf16[2,256,900], index: 0, kind: input, shape index: {}]   ;;  %s1894_s1 = inlined_call_operand.vmem [shape: bf16[32,256], index: 1, kind: input, shape index: {}]   ;;  %s1895_s2 = inlined_call_operand.vmem [shape: f32[32,1], index: 2, kind: input, shape index: {}]   ;;  %s1896_s3 = inlined_call_operand.vmem [shape: bf16[2,32,900], index: 3, kind: output, shape index: {}]  }
   0x1 LB: > { %s1401_s13 = sadd.s32 4294967295, %s1601_s12   ;;  %p1405_p0 = scmp.ge.s32.totalorder %s1601_s12, 1  ;;  %s1601_s12 = sphi %s1624_s12, %s13_s12  }
   0x2   : > { %p137_p1 = scmp.lt.s32.totalorder %s1601_s12, 3 }
   0x4   : > { %p138_p2 = pnand %p1405_p0, %p137_p1 }
   0x5   : > { %p161_p3 = scmp.lt.s32.totalorder (!%p138_p2), %s1401_s13, 1 }
   0x6   : > { %141 = sbr.rel (%p138_p2) target bundleno = 360 (0x168), region = 32 }
   0xb   : > { %v1635_v0 = vld [vmem:[%s1894_s1 + $0x4] ss:$8 sps:$4 sm:$0xff]   ;;  %s1900_s13 = smov (!%p161_p3, %s1401_s13), 1  ;;  %v1603_v27 = vmov 0   ;;  %vm1330_vm0 = vcmask 1043456   ;;  %vm1331_vm1 = vcmask 31748  }
   0xc   : > { %1019 = vmatprep.mubr.bf16.mxu0 %v1635_v0  ;;  %1072 = vmatprep.mubr.bf16.mxu1 %v1635_v0  ;;  %s1560_s16 = sshll.u32 %s1900_s13, 10  ;;  %s1561_s7 = sshll.u32 %s1900_s13, 7  ;;  %vm1860_vm2 = vmor %vm1331_vm1, %vm1330_vm0 }
   0xd   : > { %s1645_s19 = scalar_lea.vmem %s1893_s0, %s1560_s16  ;;  %1587 = vset.pattern.permute.xlu0 %v1603_v27  ;;  %1588 = vset.pattern.permute.xlu1 %v1603_v27  ;;  %s1831_s10 = scalar_lea.vmem %s1896_s3, %s1561_s7 }
   0xe   : > { %v231_v1 = vld [vmem:[%s1645_s19 + $0x1c0] sm:$0xff]  ;;  %v232_v3 = vld [vmem:[%s1645_s19 + $0x1c8] sm:$0xff] }
   0xf   : > { %v235_v2 = vld [vmem:[%s1645_s19 + $0x1e0] sm:$0xff]  ;;  %v236_v5 = vld [vmem:[%s1645_s19 + $0x1e8] sm:$0xff] }
  0x10   : > { %v1471_v4 = vcombine.high %v231_v1, %v235_v2  ;;  %v1470_v6 = vcombine.low %v231_v1, %v235_v2  ;;  %v223_v7 = vld [vmem:[%s1645_s19 + $0x180] sm:$0xff]  ;;  %v1473_v9 = vcombine.high %v232_v3, %v236_v5  ;;  %v1472_v10 = vcombine.low %v232_v3, %v236_v5  ;;  %v224_v12 = vld [vmem:[%s1645_s19 + $0x188] sm:$0xff] }
  0x11   : > { %v227_v8 = vld [vmem:[%s1645_s19 + $0x1a0] sm:$0xff]  ;;  %v228_v13 = vld [vmem:[%s1645_s19 + $0x1a8] sm:$0xff] }
  0x12   : > { %v1463_v11 = vcombine.high %v223_v7, %v227_v8  ;;  %v215_v14 = vld [vmem:[%s1645_s19 + $0x140] sm:$0xff]  ;;  %987 = vmatprep.subr.bf16.mxu0 %v1471_v4  ;;  %v1465_v15 = vcombine.high %v224_v12, %v228_v13  ;;  %v216_v17 = vld [vmem:[%s1645_s19 + $0x148] sm:$0xff]  ;;  %1040 = vmatprep.subr.bf16.mxu1 %v1473_v9  ;;  %v1462_v19 = vcombine.low %v223_v7, %v227_v8 }
  0x13   : > { %v219_v16 = vld [vmem:[%s1645_s19 + $0x160] sm:$0xff]  ;;  %v220_v18 = vld [vmem:[%s1645_s19 + $0x168] sm:$0xff]  ;;  %988 = vmatpush1.bf16.msra.mxu0 %v1470_v6  ;;  %1041 = vmatpush1.bf16.msra.mxu1 %v1472_v10  ;;  %v1464_v20 = vcombine.low %v224_v12, %v228_v13 }
  0x14   : > { %989 = vmatprep.subr.bf16.mxu0 %v1463_v11  ;;  %v1455_v21 = vcombine.high %v215_v14, %v219_v16  ;;  %1042 = vmatprep.subr.bf16.mxu1 %v1465_v15  ;;  %v1457_v22 = vcombine.high %v216_v17, %v220_v18  ;;  %v207_v23 = vld [vmem:[%s1645_s19 + $0x100] sm:$0xff]  ;;  %v208_v25 = vld [vmem:[%s1645_s19 + $0x108] sm:$0xff]  ;;  %v1454_v28 = vcombine.low %v215_v14, %v219_v16 }
  0x15   : > { %v211_v24 = vld [vmem:[%s1645_s19 + $0x120] sm:$0xff]  ;;  %v212_v26 = vld [vmem:[%s1645_s19 + $0x128] sm:$0xff]  ;;  %v1456_v29 = vcombine.low %v216_v17, %v220_v18 }
  0x16   : > { %v1447_v30 = vcombine.high %v207_v23, %v211_v24  ;;  %v1449_v31 = vcombine.high %v208_v25, %v212_v26  ;;  %v199_v32 = vld [vmem:[%s1645_s19 + $0xc0] sm:$0xff]  ;;  %v200_v34 = vld [vmem:[%s1645_s19 + $0xc8] sm:$0xff]  ;;  %v1446_v36 = vcombine.low %v207_v23, %v211_v24  ;;  %v1448_v37 = vcombine.low %v208_v25, %v212_v26 }
  0x17   : > { %990 = vmatpush1.bf16.msra.mxu0 %v1462_v19  ;;  %1043 = vmatpush1.bf16.msra.mxu1 %v1464_v20  ;;  %v203_v33 = vld [vmem:[%s1645_s19 + $0xe0] sm:$0xff]  ;;  %v204_v35 = vld [vmem:[%s1645_s19 + $0xe8] sm:$0xff] }
  0x18   : > { %991 = vmatprep.subr.bf16.mxu0 %v1455_v21  ;;  %1044 = vmatprep.subr.bf16.mxu1 %v1457_v22  ;;  %v1439_v38 = vcombine.high %v199_v32, %v203_v33  ;;  %v1441_v39 = vcombine.high %v200_v34, %v204_v35  ;;  %v191_v40 = vld [vmem:[%s1645_s19 + $0x80] sm:$0xff]  ;;  %v192_v42 = vld [vmem:[%s1645_s19 + $0x88] sm:$0xff]  ;;  %v1438_v44 = vcombine.low %v199_v32, %v203_v33 }
  0x19   : > { %v195_v41 = vld [vmem:[%s1645_s19 + $0xa0] sm:$0xff]  ;;  %v196_v43 = vld [vmem:[%s1645_s19 + $0xa8] sm:$0xff]  ;;  %v1440_v45 = vcombine.low %v200_v34, %v204_v35 }
  0x1a   : > { %v1431_v46 = vcombine.high %v191_v40, %v195_v41  ;;  %v1433_v47 = vcombine.high %v192_v42, %v196_v43  ;;  %v183_v48 = vld [vmem:[%s1645_s19 + $0x40] sm:$0xff]  ;;  %v184_v50 = vld [vmem:[%s1645_s19 + $0x48] sm:$0xff]  ;;  %v1430_v52 = vcombine.low %v191_v40, %v195_v41  ;;  %v1432_v53 = vcombine.low %v192_v42, %v196_v43  ;;  %v306_v43 = vld [vmem:[%s1895_s2 + $0x18] sm:$0xff] }
  0x1b   : > { %992 = vmatpush1.bf16.msra.mxu0 %v1454_v28  ;;  %1045 = vmatpush1.bf16.msra.mxu1 %v1456_v29  ;;  %v187_v49 = vld [vmem:[%s1645_s19 + $0x60] sm:$0xff]  ;;  %v188_v51 = vld [vmem:[%s1645_s19 + $0x68] sm:$0xff] }
  0x1c   : > { %993 = vmatprep.subr.bf16.mxu0 %v1447_v30  ;;  %1046 = vmatprep.subr.bf16.mxu1 %v1449_v31  ;;  %v1423_v54 = vcombine.high %v183_v48, %v187_v49  ;;  %v1425_v55 = vcombine.high %v184_v50, %v188_v51  ;;  %v175_v56 = vld [vmem:[%s1645_s19] sm:$0xff]  ;;  %v176_v58 = vld [vmem:[%s1645_s19 + $0x8] sm:$0xff]  ;;  %v1422_v60 = vcombine.low %v183_v48, %v187_v49 }
  0x1d   : > { %v179_v57 = vld [vmem:[%s1645_s19 + $0x20] sm:$0xff]  ;;  %v180_v59 = vld [vmem:[%s1645_s19 + $0x28] sm:$0xff]  ;;  %v1424_v61 = vcombine.low %v184_v50, %v188_v51 }
  0x1e   : > { %v1415_v62 = vcombine.high %v175_v56, %v179_v57  ;;  %v1417_v63 = vcombine.high %v176_v58, %v180_v59  ;;  %v295_v1 = vld [vmem:[%s1645_s19 + $0x3c0] sm:$0xff]  ;;  %v296_v3 = vld [vmem:[%s1645_s19 + $0x3c8] sm:$0xff]  ;;  %v1414_v5 = vcombine.low %v175_v56, %v179_v57  ;;  %v1416_v6 = vcombine.low %v176_v58, %v180_v59 }
  0x1f   : > { %994 = vmatpush1.bf16.msra.mxu0 %v1446_v36  ;;  %1047 = vmatpush1.bf16.msra.mxu1 %v1448_v37  ;;  %v299_v2 = vld [vmem:[%s1645_s19 + $0x3e0] sm:$0xff]  ;;  %v300_v4 = vld [vmem:[%s1645_s19 + $0x3e8] sm:$0xff] }
  0x20   : > { %995 = vmatprep.subr.bf16.mxu0 %v1439_v38  ;;  %1048 = vmatprep.subr.bf16.mxu1 %v1441_v39  ;;  %v1535_v7 = vcombine.high %v295_v1, %v299_v2  ;;  %v1537_v8 = vcombine.high %v296_v3, %v300_v4  ;;  %v287_v9 = vld [vmem:[%s1645_s19 + $0x380] sm:$0xff]  ;;  %v288_v11 = vld [vmem:[%s1645_s19 + $0x388] sm:$0xff]  ;;  %v1534_v13 = vcombine.low %v295_v1, %v299_v2  ;;  %v305_v38 = vld [vmem:[%s1895_s2 + $0x10] sm:$0xff] }
  0x21   : > { %v291_v10 = vld [vmem:[%s1645_s19 + $0x3a0] sm:$0xff]  ;;  %v292_v12 = vld [vmem:[%s1645_s19 + $0x3a8] sm:$0xff]  ;;  %v1536_v14 = vcombine.low %v296_v3, %v300_v4  ;;  %319 = vperm.xlu1 %1588, %v305_v38  }
  0x22   : > { %v1527_v15 = vcombine.high %v287_v9, %v291_v10  ;;  %v1529_v16 = vcombine.high %v288_v11, %v292_v12  ;;  %v279_v17 = vld [vmem:[%s1645_s19 + $0x340] sm:$0xff]  ;;  %v280_v19 = vld [vmem:[%s1645_s19 + $0x348] sm:$0xff]  ;;  %v1526_v21 = vcombine.low %v287_v9, %v291_v10  ;;  %v1528_v22 = vcombine.low %v288_v11, %v292_v12  ;;  %v238_v9 = vld [vmem:[%s1645_s19 + $0x1f8] sm:$0xff] }
  0x23   : > { %996 = vmatpush1.bf16.msra.mxu0 %v1438_v44  ;;  %1049 = vmatpush1.bf16.msra.mxu1 %v1440_v45  ;;  %v283_v18 = vld [vmem:[%s1645_s19 + $0x360] sm:$0xff]  ;;  %v284_v20 = vld [vmem:[%s1645_s19 + $0x368] sm:$0xff] }
  0x24   : > { %997 = vmatprep.subr.bf16.mxu0 %v1431_v46  ;;  %1050 = vmatprep.subr.bf16.mxu1 %v1433_v47  ;;  %v1519_v23 = vcombine.high %v279_v17, %v283_v18  ;;  %v1521_v24 = vcombine.high %v280_v19, %v284_v20  ;;  %v271_v25 = vld [vmem:[%s1645_s19 + $0x300] sm:$0xff]  ;;  %v272_v27 = vld [vmem:[%s1645_s19 + $0x308] sm:$0xff]  ;;  %v1518_v29 = vcombine.low %v279_v17, %v283_v18  ;;  %v226_v17 = vld [vmem:[%s1645_s19 + $0x198] sm:$0xff] }
  0x25   : > { %v275_v26 = vld [vmem:[%s1645_s19 + $0x320] sm:$0xff]  ;;  %v276_v28 = vld [vmem:[%s1645_s19 + $0x328] sm:$0xff]  ;;  %v1520_v30 = vcombine.low %v280_v19, %v284_v20  ;;  %324 = vperm.xlu1 %1588, %v306_v43   ;;  %v230_v18 = vld [vmem:[%s1645_s19 + $0x1b8] sm:$0xff] }
  0x26   : > { %v1511_v31 = vcombine.high %v271_v25, %v275_v26  ;;  %v1513_v32 = vcombine.high %v272_v27, %v276_v28  ;;  %v263_v33 = vld [vmem:[%s1645_s19 + $0x2c0] sm:$0xff]  ;;  %v264_v36 = vld [vmem:[%s1645_s19 + $0x2c8] sm:$0xff]  ;;  %v1510_v39 = vcombine.low %v271_v25, %v275_v26  ;;  %v1512_v41 = vcombine.low %v272_v27, %v276_v28  ;;  %v1741_v25 = vld [vmem:[%s1894_s1 + $0x14] ss:$8 sps:$4 sm:$0xff]  }
  0x27   : > { %998 = vmatpush1.bf16.msra.mxu0 %v1430_v52  ;;  %1051 = vmatpush1.bf16.msra.mxu1 %v1432_v53  ;;  %v267_v34 = vld [vmem:[%s1645_s19 + $0x2e0] sm:$0xff]  ;;  %v268_v37 = vld [vmem:[%s1645_s19 + $0x2e8] sm:$0xff]  ;;  %v218_v26 = vld [vmem:[%s1645_s19 + $0x158] sm:$0xff] }
  0x28   : > { %999 = vmatprep.subr.bf16.mxu0 %v1423_v54  ;;  %1052 = vmatprep.subr.bf16.mxu1 %v1425_v55  ;;  %v303_v35 = vld [vmem:[%s1895_s2] sm:$0xff]  ;;  %v304_v40 = vld [vmem:[%s1895_s2 + $0x8] sm:$0xff]  ;;  %v1503_v42 = vcombine.high %v263_v33, %v267_v34  ;;  %v1505_v44 = vcombine.high %v264_v36, %v268_v37  ;;  %v1502_v49 = vcombine.low %v263_v33, %v267_v34  ;;  %v222_v27 = vld [vmem:[%s1645_s19 + $0x178] sm:$0xff] }
  0x29   : > { %309 = vperm.xlu0 %1587, %v303_v35   ;;  %v255_v45 = vld [vmem:[%s1645_s19 + $0x280] sm:$0xff]  ;;  %v256_v47 = vld [vmem:[%s1645_s19 + $0x288] sm:$0xff]  ;;  %v1504_v50 = vcombine.low %v264_v36, %v268_v37  ;;  %v213_v33 = vld [vmem:[%s1645_s19 + $0x130] sm:$0xff]  ;;  %v1460_v38 = vcombine.low %v218_v26, %v222_v27 }
  0x2a   : > { %v259_v46 = vld [vmem:[%s1645_s19 + $0x2a0] sm:$0xff]  ;;  %v260_v48 = vld [vmem:[%s1645_s19 + $0x2a8] sm:$0xff]  ;;  %v210_v34 = vld [vmem:[%s1645_s19 + $0x118] sm:$0xff] }
  0x2b   : > { %1000 = vmatpush1.bf16.msra.mxu0 %v1422_v60  ;;  %1053 = vmatpush1.bf16.msra.mxu1 %v1424_v61  ;;  %v1495_v51 = vcombine.high %v255_v45, %v259_v46  ;;  %v1497_v52 = vcombine.high %v256_v47, %v260_v48  ;;  %v247_v53 = vld [vmem:[%s1645_s19 + $0x240] sm:$0xff]  ;;  %v248_v55 = vld [vmem:[%s1645_s19 + $0x248] sm:$0xff]  ;;  %v1494_v57 = vcombine.low %v255_v45, %v259_v46  ;;  %v214_v35 = vld [vmem:[%s1645_s19 + $0x138] sm:$0xff] }
  0x2c   : > { %1001 = vmatprep.subr.bf16.mxu0 %v1415_v62  ;;  %1054 = vmatprep.subr.bf16.mxu1 %v1417_v63  ;;  %v251_v54 = vld [vmem:[%s1645_s19 + $0x260] sm:$0xff]  ;;  %v252_v56 = vld [vmem:[%s1645_s19 + $0x268] sm:$0xff]  ;;  %v1496_v58 = vcombine.low %v256_v47, %v260_v48  ;;  %v1756_v36 = vld [vmem:[%s1894_s1 + $0x10] ss:$8 sps:$4 sm:$0xff]   ;;  %v1452_v46 = vcombine.low %v210_v34, %v214_v35 }
  0x2d   : > { %314 = vperm.xlu0 %1587, %v304_v40   ;;  %v1487_v59 = vcombine.high %v247_v53, %v251_v54  ;;  %v1489_v60 = vcombine.high %v248_v55, %v252_v56  ;;  %v239_v61 = vld [vmem:[%s1645_s19 + $0x200] sm:$0xff]  ;;  %v240_v63 = vld [vmem:[%s1645_s19 + $0x208] sm:$0xff]  ;;  %v1486_v2 = vcombine.low %v247_v53, %v251_v54  ;;  %v1488_v3 = vcombine.low %v248_v55, %v252_v56  ;;  %v202_v43 = vld [vmem:[%s1645_s19 + $0xd8] sm:$0xff] }
  0x2e   : > { %v243_v62 = vld [vmem:[%s1645_s19 + $0x220] sm:$0xff]  ;;  %v244_v1 = vld [vmem:[%s1645_s19 + $0x228] sm:$0xff]  ;;  %v1453_v40 = vcombine.high %v210_v34, %v214_v35  ;;  %v273_v35 = vld [vmem:[%s1645_s19 + $0x310] sm:$0xff] }
  0x2f   : > { %1002 = vmatpush1.bf16.msra.mxu0 %v1414_v5  ;;  %1055 = vmatpush1.bf16.msra.mxu1 %v1416_v6  ;;  %v1479_v4 = vcombine.high %v239_v61, %v243_v62  ;;  %v1481_v5 = vcombine.high %v240_v63, %v244_v1  ;;  %v233_v6 = vld [vmem:[%s1645_s19 + $0x1d0] sm:$0xff]  ;;  %v1478_v10 = vcombine.low %v239_v61, %v243_v62 }
  0x30   : > { %1003 = vmatprep.subr.bf16.mxu0 %v1535_v7  ;;  %1056 = vmatprep.subr.bf16.mxu1 %v1537_v8  ;;  %v237_v7 = vld [vmem:[%s1645_s19 + $0x1f0] sm:$0xff]  ;;  %v234_v8 = vld [vmem:[%s1645_s19 + $0x1d8] sm:$0xff]  ;;  %v1480_v11 = vcombine.low %v240_v63, %v244_v1 }
  0x31   : > { %v1475_v12 = vcombine.high %v233_v6, %v237_v7  ;;  %v1474_v19 = vcombine.low %v233_v6, %v237_v7  ;;  %v1476_v20 = vcombine.low %v234_v8, %v238_v9  ;;  %v177_v1 = vld [vmem:[%s1645_s19 + $0x10] sm:$0xff] }
  0x33   : > { %1004 = vmatpush2.bf16.msra.mxu0 %v1534_v13  ;;  %1057 = vmatpush2.bf16.msra.mxu1 %v1536_v14  ;;  %v1477_v13 = vcombine.high %v234_v8, %v238_v9  ;;  %v225_v14 = vld [vmem:[%s1645_s19 + $0x190] sm:$0xff] }
  0x34   : > { %1005 = vmatprep.subr.bf16.mxu0 %v1527_v15  ;;  %1058 = vmatprep.subr.bf16.mxu1 %v1529_v16  ;;  %v229_v15 = vld [vmem:[%s1645_s19 + $0x1b0] sm:$0xff]  ;;  %v1732_v16 = vld [vmem:[%s1894_s1] ss:$8 sps:$4 sm:$0xff]  }
  0x35   : > { %v1466_v28 = vcombine.low %v225_v14, %v229_v15  ;;  %v297_v9 = vld [vmem:[%s1645_s19 + $0x3d0] sm:$0xff] }
  0x37   : > { %1006 = vmatpush2.bf16.msra.mxu0 %v1526_v21  ;;  %1059 = vmatpush2.bf16.msra.mxu1 %v1528_v22  ;;  %v1467_v21 = vcombine.high %v225_v14, %v229_v15  ;;  %v1469_v22 = vcombine.high %v226_v17, %v230_v18 }
  0x38   : > { %1007 = vmatprep.subr.bf16.mxu0 %v1519_v23  ;;  %1060 = vmatprep.subr.bf16.mxu1 %v1521_v24  ;;  %v217_v23 = vld [vmem:[%s1645_s19 + $0x150] sm:$0xff] }
  0x39   : > { %v221_v24 = vld [vmem:[%s1645_s19 + $0x170] sm:$0xff] }
  0x3a   : > { %v1458_v37 = vcombine.low %v217_v23, %v221_v24 }
  0x3b   : > { %1008 = vmatpush2.bf16.msra.mxu0 %v1518_v29  ;;  %1061 = vmatpush2.bf16.msra.mxu1 %v1520_v30  ;;  %v1468_v29 = vcombine.low %v226_v17, %v230_v18  ;;  %v1459_v30 = vcombine.high %v217_v23, %v221_v24  ;;  %v289_v18 = vld [vmem:[%s1645_s19 + $0x390] sm:$0xff] }
  0x3c   : > { %1009 = vmatprep.subr.bf16.mxu0 %v1511_v31  ;;  %1062 = vmatprep.subr.bf16.mxu1 %v1513_v32  ;;  %v1461_v31 = vcombine.high %v218_v26, %v222_v27  ;;  %v209_v32 = vld [vmem:[%s1645_s19 + $0x110] sm:$0xff] }
  0x3d   : > { %v1450_v45 = vcombine.low %v209_v32, %v213_v33  ;;  %v281_v27 = vld [vmem:[%s1645_s19 + $0x350] sm:$0xff] }
  0x3f   : > { %1010 = vmatpush2.bf16.msra.mxu0 %v1510_v39  ;;  %1063 = vmatpush2.bf16.msra.mxu1 %v1512_v41  ;;  %v1451_v39 = vcombine.high %v209_v32, %v213_v33  ;;  %v201_v41 = vld [vmem:[%s1645_s19 + $0xd0] sm:$0xff] }
  0x40   : > { %1011 = vmatprep.subr.bf16.mxu0 %v1503_v42  ;;  %1064 = vmatprep.subr.bf16.mxu1 %v1505_v44  ;;  %v205_v42 = vld [vmem:[%s1645_s19 + $0xf0] sm:$0xff]  ;;  %v206_v44 = vld [vmem:[%s1645_s19 + $0xf8] sm:$0xff] }
  0x41   : > { %v1443_v47 = vcombine.high %v201_v41, %v205_v42  ;;  %v1445_v48 = vcombine.high %v202_v43, %v206_v44  ;;  %v1442_v53 = vcombine.low %v201_v41, %v205_v42  ;;  %v1444_v54 = vcombine.low %v202_v43, %v206_v44  ;;  %v265_v44 = vld [vmem:[%s1645_s19 + $0x2d0] sm:$0xff] }
  0x43   : > { %1012 = vmatpush2.bf16.msra.mxu0 %v1502_v49  ;;  %1065 = vmatpush2.bf16.msra.mxu1 %v1504_v50  ;;  %v193_v49 = vld [vmem:[%s1645_s19 + $0x90] sm:$0xff] }
  0x44   : > { %1013 = vmatprep.subr.bf16.mxu0 %v1495_v51  ;;  %1066 = vmatprep.subr.bf16.mxu1 %v1497_v52  ;;  %v197_v50 = vld [vmem:[%s1645_s19 + $0xb0] sm:$0xff]  ;;  %v194_v51 = vld [vmem:[%s1645_s19 + $0x98] sm:$0xff] }
  0x45   : > { %v198_v52 = vld [vmem:[%s1645_s19 + $0xb8] sm:$0xff]  ;;  %v1435_v55 = vcombine.high %v193_v49, %v197_v50  ;;  %v1434_v61 = vcombine.low %v193_v49, %v197_v50 }
  0x46   : > { %v1437_v56 = vcombine.high %v194_v51, %v198_v52 }
  0x47   : > { %1014 = vmatpush2.bf16.msra.mxu0 %v1494_v57  ;;  %1067 = vmatpush2.bf16.msra.mxu1 %v1496_v58  ;;  %v185_v57 = vld [vmem:[%s1645_s19 + $0x50] sm:$0xff] }
  0x48   : > { %1015 = vmatprep.subr.bf16.mxu0 %v1487_v59  ;;  %1068 = vmatprep.subr.bf16.mxu1 %v1489_v60  ;;  %v189_v58 = vld [vmem:[%s1645_s19 + $0x70] sm:$0xff]  ;;  %v186_v59 = vld [vmem:[%s1645_s19 + $0x58] sm:$0xff] }
  0x49   : > { %v190_v60 = vld [vmem:[%s1645_s19 + $0x78] sm:$0xff]  ;;  %v1427_v62 = vcombine.high %v185_v57, %v189_v58 }
  0x4a   : > { %v1429_v63 = vcombine.high %v186_v59, %v190_v60  ;;  %v1428_v6 = vcombine.low %v186_v59, %v190_v60  ;;  %v249_v60 = vld [vmem:[%s1645_s19 + $0x250] sm:$0xff] }
  0x4b   : > { %1016 = vmatpush2.bf16.msra.mxu0 %v1486_v2  ;;  %1069 = vmatpush2.bf16.msra.mxu1 %v1488_v3  ;;  %v181_v2 = vld [vmem:[%s1645_s19 + $0x30] sm:$0xff]  ;;  %v178_v3 = vld [vmem:[%s1645_s19 + $0x18] sm:$0xff] }
  0x4c   : > { %1017 = vmatprep.subr.bf16.mxu0 %v1479_v4  ;;  %1070 = vmatprep.subr.bf16.mxu1 %v1481_v5  ;;  %v182_v4 = vld [vmem:[%s1645_s19 + $0x38] sm:$0xff]  ;;  %v1426_v5 = vcombine.low %v185_v57, %v189_v58  ;;  %v1419_v7 = vcombine.high %v177_v1, %v181_v2 }
  0x4d   : > { %v1421_v8 = vcombine.high %v178_v3, %v182_v4  ;;  %v1420_v14 = vcombine.low %v178_v3, %v182_v4  ;;  %v241_v4 = vld [vmem:[%s1645_s19 + $0x210] sm:$0xff] }
  0x4f   : > { %1018 = vmatpush2.bf16.msra.mxu0 %v1478_v10  ;;  %1071 = vmatpush2.bf16.msra.mxu1 %v1480_v11  ;;  %v301_v10 = vld [vmem:[%s1645_s19 + $0x3f0] sm:$0xff]  ;;  %v298_v11 = vld [vmem:[%s1645_s19 + $0x3d8] sm:$0xff] }
  0x50   : > { %1093 = vmatprep.subr.bf16.mxu0 %v1475_v12  ;;  %1146 = vmatprep.subr.bf16.mxu1 %v1477_v13  ;;  %v302_v12 = vld [vmem:[%s1645_s19 + $0x3f8] sm:$0xff]  ;;  %v1418_v13 = vcombine.low %v177_v1, %v181_v2  ;;  %v1539_v15 = vcombine.high %v297_v9, %v301_v10 }
  0x51   : > { %v1541_v17 = vcombine.high %v298_v11, %v302_v12  ;;  %v1540_v23 = vcombine.low %v298_v11, %v302_v12 }
  0x52   : > { %1020 = vmatmul.mubr.bf16.vlgmr.msra.gmra.mxu0 %v1732_v16  ;;  %1073 = vmatmul.mubr.bf16.vlgmr.msra.gmra.mxu1 %v1732_v16 }
  0x53   : > { %1094 = vmatpush1.bf16.msra.mxu0 %v1474_v19  ;;  %1147 = vmatpush1.bf16.msra.mxu1 %v1476_v20  ;;  %v293_v19 = vld [vmem:[%s1645_s19 + $0x3b0] sm:$0xff]  ;;  %v290_v20 = vld [vmem:[%s1645_s19 + $0x398] sm:$0xff] }
  0x54   : > { %1095 = vmatprep.subr.bf16.mxu0 %v1467_v21  ;;  %1148 = vmatprep.subr.bf16.mxu1 %v1469_v22  ;;  %v294_v21 = vld [vmem:[%s1645_s19 + $0x3b8] sm:$0xff]  ;;  %v1538_v22 = vcombine.low %v297_v9, %v301_v10  ;;  %v1531_v24 = vcombine.high %v289_v18, %v293_v19 }
  0x55   : > { %1029 = vmatprep.mubr.bf16.mxu0 %v1741_v25  ;;  %1082 = vmatprep.mubr.bf16.mxu1 %v1741_v25  ;;  %v1533_v26 = vcombine.high %v290_v20, %v294_v21  ;;  %v1532_v32 = vcombine.low %v290_v20, %v294_v21 }
  0x57   : > { %1096 = vmatpush1.bf16.msra.mxu0 %v1466_v28  ;;  %1149 = vmatpush1.bf16.msra.mxu1 %v1468_v29  ;;  %v285_v28 = vld [vmem:[%s1645_s19 + $0x370] sm:$0xff]  ;;  %v282_v29 = vld [vmem:[%s1645_s19 + $0x358] sm:$0xff] }
  0x58   : > { %1097 = vmatprep.subr.bf16.mxu0 %v1459_v30  ;;  %1150 = vmatprep.subr.bf16.mxu1 %v1461_v31  ;;  %v286_v30 = vld [vmem:[%s1645_s19 + $0x378] sm:$0xff]  ;;  %v1530_v31 = vcombine.low %v289_v18, %v293_v19  ;;  %v1523_v33 = vcombine.high %v281_v27, %v285_v28 }
  0x59   : > { %v1525_v34 = vcombine.high %v282_v29, %v286_v30  ;;  %v1524_v41 = vcombine.low %v282_v29, %v286_v30 }
  0x5a   : > { %1030 = vmatmul.mubr.bf16.gmra.mxu0 %v1756_v36  ;;  %1083 = vmatmul.mubr.bf16.gmra.mxu1 %v1756_v36 }
  0x5b   : > { %1098 = vmatpush1.bf16.msra.mxu0 %v1458_v37  ;;  %1151 = vmatpush1.bf16.msra.mxu1 %v1460_v38  ;;  %v277_v37 = vld [vmem:[%s1645_s19 + $0x330] sm:$0xff]  ;;  %v274_v38 = vld [vmem:[%s1645_s19 + $0x318] sm:$0xff] }
  0x5c   : > { %1099 = vmatprep.subr.bf16.mxu0 %v1451_v39  ;;  %1152 = vmatprep.subr.bf16.mxu1 %v1453_v40  ;;  %v278_v39 = vld [vmem:[%s1645_s19 + $0x338] sm:$0xff]  ;;  %v1522_v40 = vcombine.low %v281_v27, %v285_v28  ;;  %v1515_v42 = vcombine.high %v273_v35, %v277_v37 }
  0x5d   : > { %1125 = vmatprep.mubr.bf16.mxu0 %v1635_v0  ;;  %1178 = vmatprep.mubr.bf16.mxu1 %v1635_v0  ;;  %v1436_v0 = vcombine.low %v194_v51, %v198_v52  ;;  %v1517_v43 = vcombine.high %v274_v38, %v278_v39  ;;  %v1516_v49 = vcombine.low %v274_v38, %v278_v39  ;;  %v257_v52 = vld [vmem:[%s1645_s19 + $0x290] sm:$0xff] }
  0x5f   : > { %1100 = vmatpush1.bf16.msra.mxu0 %v1450_v45  ;;  %1153 = vmatpush1.bf16.msra.mxu1 %v1452_v46  ;;  %v269_v45 = vld [vmem:[%s1645_s19 + $0x2f0] sm:$0xff]  ;;  %v266_v46 = vld [vmem:[%s1645_s19 + $0x2d8] sm:$0xff] }
  0x60   : > { %1101 = vmatprep.subr.bf16.mxu0 %v1443_v47  ;;  %1154 = vmatprep.subr.bf16.mxu1 %v1445_v48  ;;  %v270_v47 = vld [vmem:[%s1645_s19 + $0x2f8] sm:$0xff]  ;;  %v1514_v48 = vcombine.low %v273_v35, %v277_v37  ;;  %v1507_v50 = vcombine.high %v265_v44, %v269_v45 }
  0x61   : > { %v1509_v51 = vcombine.high %v266_v46, %v270_v47  ;;  %v1508_v57 = vcombine.low %v266_v46, %v270_v47 }
  0x63   : > { %1102 = vmatpush1.bf16.msra.mxu0 %v1442_v53  ;;  %1155 = vmatpush1.bf16.msra.mxu1 %v1444_v54  ;;  %v261_v53 = vld [vmem:[%s1645_s19 + $0x2b0] sm:$0xff]  ;;  %v258_v54 = vld [vmem:[%s1645_s19 + $0x298] sm:$0xff] }
  0x64   : > { %1103 = vmatprep.subr.bf16.mxu0 %v1435_v55  ;;  %1156 = vmatprep.subr.bf16.mxu1 %v1437_v56  ;;  %v262_v55 = vld [vmem:[%s1645_s19 + $0x2b8] sm:$0xff]  ;;  %v1506_v56 = vcombine.low %v265_v44, %v269_v45  ;;  %v1499_v58 = vcombine.high %v257_v52, %v261_v53 }
  0x65   : > { %v1501_v59 = vcombine.high %v258_v54, %v262_v55  ;;  %v1500_v1 = vcombine.low %v258_v54, %v262_v55 }
  0x67   : > { %1104 = vmatpush1.bf16.msra.mxu0 %v1434_v61  ;;  %1157 = vmatpush1.bf16.msra.mxu1 %v1436_v0  ;;  %v253_v61 = vld [vmem:[%s1645_s19 + $0x270] sm:$0xff]  ;;  %v250_v0 = vld [vmem:[%s1645_s19 + $0x258] sm:$0xff] }
  0x68   : > { %1105 = vmatprep.subr.bf16.mxu0 %v1427_v62  ;;  %1158 = vmatprep.subr.bf16.mxu1 %v1429_v63  ;;  %v254_v62 = vld [vmem:[%s1645_s19 + $0x278] sm:$0xff]  ;;  %v1498_v63 = vcombine.low %v257_v52, %v261_v53  ;;  %v1491_v2 = vcombine.high %v249_v60, %v253_v61 }
  0x69   : > { %v1493_v3 = vcombine.high %v250_v0, %v254_v62  ;;  %v1492_v9 = vcombine.low %v250_v0, %v254_v62 }
  0x6b   : > { %1106 = vmatpush1.bf16.msra.mxu0 %v1426_v5  ;;  %1159 = vmatpush1.bf16.msra.mxu1 %v1428_v6  ;;  %v245_v5 = vld [vmem:[%s1645_s19 + $0x230] sm:$0xff]  ;;  %v242_v6 = vld [vmem:[%s1645_s19 + $0x218] sm:$0xff] }
  0x6c   : > { %1107 = vmatprep.subr.bf16.mxu0 %v1419_v7  ;;  %1160 = vmatprep.subr.bf16.mxu1 %v1421_v8  ;;  %v246_v7 = vld [vmem:[%s1645_s19 + $0x238] sm:$0xff]  ;;  %v1490_v8 = vcombine.low %v249_v60, %v253_v61  ;;  %v1483_v10 = vcombine.high %v241_v4, %v245_v5  ;;  %v1482_v12 = vcombine.low %v241_v4, %v245_v5 }
  0x6d   : > { %v1485_v11 = vcombine.high %v242_v6, %v246_v7 }
  0x6f   : > { %1108 = vmatpush1.bf16.msra.mxu0 %v1418_v13  ;;  %1161 = vmatpush1.bf16.msra.mxu1 %v1420_v14  ;;  %v1484_v13 = vcombine.low %v242_v6, %v246_v7 }
  0x70   : > { %1109 = vmatprep.subr.bf16.mxu0 %v1539_v15  ;;  %1162 = vmatprep.subr.bf16.mxu1 %v1541_v17 }
  0x73   : > { %1110 = vmatpush2.bf16.msra.mxu0 %v1538_v22  ;;  %1163 = vmatpush2.bf16.msra.mxu1 %v1540_v23 }
  0x74   : > { %1111 = vmatprep.subr.bf16.mxu0 %v1531_v24  ;;  %1164 = vmatprep.subr.bf16.mxu1 %v1533_v26 }
  0x77   : > { %1112 = vmatpush2.bf16.msra.mxu0 %v1530_v31  ;;  %1165 = vmatpush2.bf16.msra.mxu1 %v1532_v32 }
  0x78   : > { %1113 = vmatprep.subr.bf16.mxu0 %v1523_v33  ;;  %1166 = vmatprep.subr.bf16.mxu1 %v1525_v34 }
  0x7b   : > { %1114 = vmatpush2.bf16.msra.mxu0 %v1522_v40  ;;  %1167 = vmatpush2.bf16.msra.mxu1 %v1524_v41 }
  0x7c   : > { %1115 = vmatprep.subr.bf16.mxu0 %v1515_v42  ;;  %1168 = vmatprep.subr.bf16.mxu1 %v1517_v43 }
  0x7f   : > { %1116 = vmatpush2.bf16.msra.mxu0 %v1514_v48  ;;  %1169 = vmatpush2.bf16.msra.mxu1 %v1516_v49 }
  0x80   : > { %1117 = vmatprep.subr.bf16.mxu0 %v1507_v50  ;;  %1170 = vmatprep.subr.bf16.mxu1 %v1509_v51 }
  0x83   : > { %1118 = vmatpush2.bf16.msra.mxu0 %v1506_v56  ;;  %1171 = vmatpush2.bf16.msra.mxu1 %v1508_v57 }
  0x84   : > { %1119 = vmatprep.subr.bf16.mxu0 %v1499_v58  ;;  %1172 = vmatprep.subr.bf16.mxu1 %v1501_v59 }
  0x87   : > { %1120 = vmatpush2.bf16.msra.mxu0 %v1498_v63  ;;  %1173 = vmatpush2.bf16.msra.mxu1 %v1500_v1 }
  0x88   : > { %1121 = vmatprep.subr.bf16.mxu0 %v1491_v2  ;;  %1174 = vmatprep.subr.bf16.mxu1 %v1493_v3 }
  0x8b   : > { %1122 = vmatpush2.bf16.msra.mxu0 %v1490_v8  ;;  %1175 = vmatpush2.bf16.msra.mxu1 %v1492_v9 }
  0x8c   : > { %1123 = vmatprep.subr.bf16.mxu0 %v1483_v10  ;;  %1176 = vmatprep.subr.bf16.mxu1 %v1485_v11 }
  0x8f   : > { %1124 = vmatpush2.bf16.msra.mxu0 %v1482_v12  ;;  %1177 = vmatpush2.bf16.msra.mxu1 %v1484_v13 }
  0x92   : > { %1126 = vmatmul.mubr.bf16.vlgmr.msra.gmra.mxu0 %v1732_v16  ;;  %1179 = vmatmul.mubr.bf16.vlgmr.msra.gmra.mxu1 %v1732_v16 }
  0x93   : > { %1135 = vmatprep.mubr.bf16.mxu0 %v1741_v25  ;;  %1188 = vmatprep.mubr.bf16.mxu1 %v1741_v25 }
  0x9a   : > { %1136 = vmatmul.mubr.bf16.gmra.mxu0 %v1756_v36  ;;  %1189 = vmatmul.mubr.bf16.gmra.mxu1 %v1756_v36 }
  0x9c   : > { %v1825_v26 = vpop.permute.xlu1 %319 }
  0xa0   : > { %v1840_v48 = vpop.permute.xlu1 %324 }
  0xa4   : > { %v1816_v14 = vpop.permute.xlu0 %309 }
  0xa8   : > { %v1820_v21 = vpop.permute.xlu0 %314 }
 0x112   : > { %v1021_v15 = vpop.f32.mrf.mxu0  ;;  %v1074_v18 = vpop.f32.mrf.mxu1 }
 0x113   : > { %v1022_v17 = vadd.f32 %v1021_v15, %v1816_v14  ;;  %v1075_v19 = vadd.f32 %v1074_v18, %v1816_v14 }
 0x114   : > { %v1023_v20 = vpop.f32.mrf.mxu0  ;;  %v1076_v25 = vpop.f32.mrf.mxu1 }
 0x115   : > { %v1199_v16 = vmax.f32 %v1022_v17, 0.0  ;;  %v1024_v22 = vadd.f32 %v1023_v20, %v1816_v14  ;;  %v1201_v23 = vmax.f32 %v1075_v19, 0.0  ;;  %v1077_v24 = vadd.f32 %v1076_v25, %v1816_v14 }
 0x116   : > { %v1025_v36 = vpop.f32.mrf.mxu0  ;;  %v1078_v29 = vpop.f32.mrf.mxu1 }
 0x117   : > { %v1200_v27 = vmax.f32 %v1024_v22, 0.0  ;;  %v1026_v28 = vadd.f32 %v1025_v36, %v1820_v21  ;;  %v1202_v30 = vmax.f32 %v1077_v24, 0.0  ;;  %v1079_v31 = vadd.f32 %v1078_v29, %v1820_v21 }
 0x118   : > { %v1027_v32 = vpop.f32.mrf.mxu0  ;;  %v1080_v35 = vpop.f32.mrf.mxu1 }
 0x119   : > { %v1562_v33 = vpack.c.bf16 %v1200_v27, %v1199_v16  ;;  %v1028_v34 = vadd.f32 %v1027_v32, %v1820_v21  ;;  %v1563_v37 = vpack.c.bf16 %v1202_v30, %v1201_v23  ;;  %v1081_v38 = vadd.f32 %v1080_v35, %v1820_v21 }
 0x11a   : > { %v1031_v39 = vpop.f32.mrf.mxu0  ;;  %v1207_v40 = vmax.f32 %v1026_v28, 0.0  ;;  %v1084_v42 = vpop.f32.mrf.mxu1  ;;  %v1209_v44 = vmax.f32 %v1079_v31, 0.0 }
 0x11b   : > { %1327 = vst [vmem:[%s1831_s10] sm:$0xff] %v1562_v33  ;;  %v1208_v41 = vmax.f32 %v1028_v34, 0.0  ;;  %v1032_v43 = vadd.f32 %v1031_v39, %v1825_v26  ;;  %1328 = vst [vmem:[%s1831_s10 + $0x8] sm:$0xff] %v1563_v37  ;;  %v1210_v45 = vmax.f32 %v1081_v38, 0.0  ;;  %v1085_v47 = vadd.f32 %v1084_v42, %v1825_v26 }
 0x11c   : > { %v1033_v46 = vpop.f32.mrf.mxu0  ;;  %v1086_v52 = vpop.f32.mrf.mxu1 }
 0x11d   : > { %v1566_v49 = vpack.c.bf16 %v1208_v41, %v1207_v40  ;;  %v1034_v50 = vadd.f32 %v1033_v46, %v1825_v26  ;;  %v1215_v51 = vmax.f32 %v1032_v43, 0.0  ;;  %v1567_v53 = vpack.c.bf16 %v1210_v45, %v1209_v44 }
 0x11e   : > { %v1087_v54 = vadd.f32 %v1086_v52, %v1825_v26  ;;  %v1217_v55 = vmax.f32 %v1085_v47, 0.0  ;;  %v1035_v56 = vpop.f32.mrf.mxu0  ;;  %v1088_v58 = vpop.f32.mrf.mxu1 }
 0x11f   : > { %1334 = vst [vmem:[%s1831_s10 + $0x20] sm:$0xff] %v1566_v49  ;;  %v1216_v57 = vmax.f32 %v1034_v50, 0.0  ;;  %v1036_v59 = vadd.f32 %v1035_v56, %v1840_v48  ;;  %1335 = vst [vmem:[%s1831_s10 + $0x28] sm:$0xff] %v1567_v53  ;;  %v1089_v0 = vadd.f32 %v1088_v58, %v1840_v48 }
 0x120   : > { %v1218_v60 = vmax.f32 %v1087_v54, 0.0  ;;  %v1037_v61 = vpop.f32.mrf.mxu0  ;;  %v1090_v2 = vpop.f32.mrf.mxu1 }
 0x121   : > { %v1570_v62 = vpack.c.bf16 %v1216_v57, %v1215_v51  ;;  %v1038_v63 = vadd.f32 %v1037_v61, %v1840_v48  ;;  %v1223_v1 = vmax.f32 %v1036_v59, 0.0  ;;  %v1091_v4 = vadd.f32 %v1090_v2, %v1840_v48 }
 0x122   : > { %v1571_v3 = vpack.c.bf16 %v1218_v60, %v1217_v55  ;;  %v1225_v5 = vmax.f32 %v1089_v0, 0.0 }
 0x123   : > { %1338 = vst [vmem:[%s1831_s10 + $0x40] sm:$0xff] %v1570_v62  ;;  %v1224_v6 = vmax.f32 %v1038_v63, 0.0  ;;  %v1226_v7 = vmax.f32 %v1091_v4, 0.0 }
 0x124   : > { %1339 = vst [vmem:[%s1831_s10 + $0x48] sm:$0xff] %v1571_v3 }
 0x125   : > { %v1574_v8 = vpack.c.bf16 %v1224_v6, %v1223_v1  ;;  %v1575_v9 = vpack.c.bf16 %v1226_v7, %v1225_v5 }
 0x127   : > { %1342 = vst [vmem:[%s1831_s10 + $0x60] sm:$0xff] %v1574_v8  ;;  %1343 = vst [vmem:[%s1831_s10 + $0x68] sm:$0xff] %v1575_v9 }
 0x152   : > { %v1127_v10 = vpop.f32.mrf.mxu0  ;;  %v1180_v12 = vpop.f32.mrf.mxu1 }
 0x153   : > { %v1128_v11 = vadd.f32 %v1127_v10, %v1816_v14  ;;  %v1181_v13 = vadd.f32 %v1180_v12, %v1816_v14 }
 0x154   : > { %v1129_v15 = vpop.f32.mrf.mxu0  ;;  %v1182_v18 = vpop.f32.mrf.mxu1 }
 0x155   : > { %v1130_v17 = vadd.f32 %v1129_v15, %v1816_v14  ;;  %v1183_v19 = vadd.f32 %v1182_v18, %v1816_v14  ;;  %v1203_v16 = vmax.f32 %v1128_v11, 0.0  ;;  %v1205_v24 = vmax.f32 %v1181_v13, 0.0 }
 0x156   : > { %v1131_v20 = vpop.f32.mrf.mxu0  ;;  %v1184_v23 = vpop.f32.mrf.mxu1 }
 0x157   : > { %v1204_v22 = vmax.f32 %v1130_v17, 0.0  ;;  %v1132_v25 = vadd.f32 %v1131_v20, %v1820_v21  ;;  %v1206_v36 = vmax.f32 %v1183_v19, 0.0  ;;  %v1185_v27 = vadd.f32 %v1184_v23, %v1820_v21 }
 0x158   : > { %v1133_v28 = vpop.f32.mrf.mxu0  ;;  %v1186_v31 = vpop.f32.mrf.mxu1 }
 0x159   : > { %v1564_v29 = vpack.c.bf16 %v1204_v22, %v1203_v16  ;;  %v1134_v14 = vadd.f32 %v1133_v28, %v1820_v21  ;;  %v1565_v32 = vpack.c.bf16 %v1206_v36, %v1205_v24  ;;  %v1187_v33 = vadd.f32 %v1186_v31, %v1820_v21 }
 0x15a   : > { %v1137_v34 = vpop.f32.mrf.mxu0  ;;  %v1211_v35 = vmax.f32 %v1132_v25, 0.0  ;;  %v1190_v39 = vpop.f32.mrf.mxu1  ;;  %v1213_v40 = vmax.f32 %v1185_v27, 0.0 }
 0x15b   : > { %1329 = vst [vmem:[%s1831_s10 + $0x10] sm:$0xff] %v1564_v29  ;;  %v1212_v37 = vmax.f32 %v1134_v14, 0.0  ;;  %v1138_v38 = vadd.f32 %v1137_v34, %v1825_v26  ;;  %1333 = vst.msk [vmem:[%s1831_s10 + $0x18] sm:$0xff] %vm1860_vm2, %v1565_v32  ;;  %v1214_v41 = vmax.f32 %v1187_v33, 0.0  ;;  %v1191_v42 = vadd.f32 %v1190_v39, %v1825_v26 }
 0x15c   : > { %v1139_v43 = vpop.f32.mrf.mxu0  ;;  %v1192_v45 = vpop.f32.mrf.mxu1 }
 0x15d   : > { %v1568_v44 = vpack.c.bf16 %v1212_v37, %v1211_v35  ;;  %v1140_v21 = vadd.f32 %v1139_v43, %v1825_v26  ;;  %v1569_v46 = vpack.c.bf16 %v1214_v41, %v1213_v40  ;;  %v1193_v47 = vadd.f32 %v1192_v45, %v1825_v26 }
 0x15e   : > { %v1141_v49 = vpop.f32.mrf.mxu0  ;;  %v1219_v50 = vmax.f32 %v1138_v38, 0.0  ;;  %v1194_v53 = vpop.f32.mrf.mxu1  ;;  %v1221_v54 = vmax.f32 %v1191_v42, 0.0 }
 0x15f   : > { %1336 = vst [vmem:[%s1831_s10 + $0x30] sm:$0xff] %v1568_v44  ;;  %v1220_v51 = vmax.f32 %v1140_v21, 0.0  ;;  %v1142_v52 = vadd.f32 %v1141_v49, %v1840_v48  ;;  %1337 = vst.msk [vmem:[%s1831_s10 + $0x38] sm:$0xff] %vm1860_vm2, %v1569_v46  ;;  %v1222_v55 = vmax.f32 %v1193_v47, 0.0  ;;  %v1195_v56 = vadd.f32 %v1194_v53, %v1840_v48 }
 0x160   : > { %v1143_v57 = vpop.f32.mrf.mxu0  ;;  %v1196_v59 = vpop.f32.mrf.mxu1 }
 0x161   : > { %v1572_v26 = vpack.c.bf16 %v1220_v51, %v1219_v50  ;;  %v1144_v58 = vadd.f32 %v1143_v57, %v1840_v48  ;;  %v1573_v60 = vpack.c.bf16 %v1222_v55, %v1221_v54  ;;  %v1197_v61 = vadd.f32 %v1196_v59, %v1840_v48 }
 0x162   : > { %v1227_v0 = vmax.f32 %v1142_v52, 0.0  ;;  %v1229_v63 = vmax.f32 %v1195_v56, 0.0 }
 0x163   : > { %1340 = vst [vmem:[%s1831_s10 + $0x50] sm:$0xff] %v1572_v26  ;;  %v1228_v62 = vmax.f32 %v1144_v58, 0.0  ;;  %1341 = vst.msk [vmem:[%s1831_s10 + $0x58] sm:$0xff] %vm1860_vm2, %v1573_v60  ;;  %v1230_v1 = vmax.f32 %v1197_v61, 0.0 }
 0x165   : > { %v1576_v2 = vpack.c.bf16 %v1228_v62, %v1227_v0  ;;  %v1577_v3 = vpack.c.bf16 %v1230_v1, %v1229_v63 }
 0x167   : > { %1344 = vst [vmem:[%s1831_s10 + $0x70] sm:$0xff] %v1576_v2  ;;  %1345 = vst.msk [vmem:[%s1831_s10 + $0x78] sm:$0xff] %vm1860_vm2, %v1577_v3 }
 0x168 PF: > { %s13_s12 = sadd.s32 1, %s1601_s12  }
 0x169   : > { %p10_p4 = scmp.ge.s32.totalorder %s13_s12, 4  }
 0x16b   :  { %12 = sbr.rel (!%p10_p4) target bundleno = 1 (0x1), region = 62 }

// kernel: cnn_actor_forward.5
= control target key start
LH: loop header
LB: loop body
LE: loop exit
PB: predicated region body
PF: predicated region fallthrough
CT: control target
= control target key end

     0   :  { %s1244_s12 = smov 0   ;;  %s1433_s0 = inlined_call_operand.vmem [shape: bf16[2,512,196], index: 0, kind: input, shape index: {}]   ;;  %s1434_s1 = inlined_call_operand.vmem [shape: bf16[64,512], index: 1, kind: input, shape index: {}]   ;;  %s1435_s2 = inlined_call_operand.vmem [shape: f32[64,1], index: 2, kind: input, shape index: {}]   ;;  %s1436_s3 = inlined_call_operand.vmem [shape: bf16[2,64,196], index: 3, kind: output, shape index: {}]  }
   0x1 LB: > { %s975_s13 = sadd.s32 4294967295, %s1221_s12   ;;  %p979_p0 = scmp.ge.s32.totalorder %s1221_s12, 1  ;;  %s1221_s12 = sphi %s1244_s12, %s13_s12  }
   0x2   : > { %p137_p1 = scmp.lt.s32.totalorder %s1221_s12, 3 }
   0x4   : > { %p138_p2 = pnand %p979_p0, %p137_p1 }
   0x5   : > { %p161_p3 = scmp.lt.s32.totalorder (!%p138_p2), %s975_s13, 1 }
   0x6   : > { %141 = sbr.rel (%p138_p2) target bundleno = 311 (0x137), region = 32 }
   0xb   : > { %v1193_v0 = vld [vmem:[%s1434_s1 + $0x4] ss:$16 sps:$4 sm:$0xff]   ;;  %v1223_v1 = vmov 0   ;;  %s1440_s13 = smov (!%p161_p3, %s975_s13), 1  ;;  %v1196_v2 = vld [vmem:[%s1434_s1 + $0xc] ss:$16 sps:$4 sm:$0xff]  }
   0xc   : > { %1093 = vset.pattern.permute.xlu0 %v1223_v1  ;;  %1094 = vset.pattern.permute.xlu1 %v1223_v1  ;;  %s1074_s18 = sshll.u32 %s1440_s13, 9  ;;  %v251_v53 = vld [vmem:[%s1435_s2] sm:$0xff]  ;;  %v253_v56 = vld [vmem:[%s1435_s2 + $0x10] sm:$0xff]  ;;  %v252_v59 = vld [vmem:[%s1435_s2 + $0x8] sm:$0xff]  ;;  %s1075_s16 = sshll.u32 %s1440_s13, 6  ;;  %vm909_vm0 = vcmask 1043456  }
   0xd   : > { %731 = vmatprep.mubr.bf16.mxu0 %v1193_v0  ;;  %804 = vmatprep.mubr.bf16.mxu1 %v1196_v2  ;;  %s1264_s21 = scalar_lea.vmem %s1433_s0, %s1074_s18  ;;  %v254_v60 = vld [vmem:[%s1435_s2 + $0x18] sm:$0xff]  ;;  %v256_v1 = vld [vmem:[%s1435_s2 + $0x28] sm:$0xff]  ;;  %v255_v2 = vld [vmem:[%s1435_s2 + $0x20] sm:$0xff]  ;;  %vm910_vm1 = vcmask 556036   ;;  %s1400_s19 = scalar_lea.vmem %s1436_s3, %s1075_s16 }
   0xe   : > { %v1095_v3 = vld [vmem:[%s1264_s21 + $0x74] ss:$8 sps:$4 sm:$0xff]   ;;  %v1099_v5 = vld [vmem:[%s1264_s21 + $0x70] ss:$8 sps:$4 sm:$0xff]   ;;  %v1101_v7 = vld [vmem:[%s1264_s21 + $0x64] ss:$8 sps:$4 sm:$0xff]   ;;  %261 = vperm.xlu0 %1093, %v251_v53   ;;  %271 = vperm.xlu1 %1094, %v253_v56  }
   0xf   : > { %v1097_v4 = vld [vmem:[%s1264_s21 + $0x174] ss:$8 sps:$4 sm:$0xff]   ;;  %699 = vmatprep.subr.bf16.mxu0 %v1095_v3  ;;  %v1100_v6 = vld [vmem:[%s1264_s21 + $0x170] ss:$8 sps:$4 sm:$0xff]   ;;  %v1103_v8 = vld [vmem:[%s1264_s21 + $0x164] ss:$8 sps:$4 sm:$0xff]  }
  0x10   : > { %772 = vmatprep.subr.bf16.mxu1 %v1097_v4  ;;  %700 = vmatpush1.bf16.msra.mxu0 %v1099_v5  ;;  %v1105_v9 = vld [vmem:[%s1264_s21 + $0x60] ss:$8 sps:$4 sm:$0xff]   ;;  %v1107_v11 = vld [vmem:[%s1264_s21 + $0x54] ss:$8 sps:$4 sm:$0xff]   ;;  %v1111_v13 = vld [vmem:[%s1264_s21 + $0x50] ss:$8 sps:$4 sm:$0xff]  }
  0x11   : > { %773 = vmatpush1.bf16.msra.mxu1 %v1100_v6  ;;  %701 = vmatprep.subr.bf16.mxu0 %v1101_v7  ;;  %v1106_v10 = vld [vmem:[%s1264_s21 + $0x160] ss:$8 sps:$4 sm:$0xff]   ;;  %v1109_v12 = vld [vmem:[%s1264_s21 + $0x154] ss:$8 sps:$4 sm:$0xff]   ;;  %v1112_v14 = vld [vmem:[%s1264_s21 + $0x150] ss:$8 sps:$4 sm:$0xff]  }
  0x12   : > { %774 = vmatprep.subr.bf16.mxu1 %v1103_v8  ;;  %v1113_v15 = vld [vmem:[%s1264_s21 + $0x44] ss:$8 sps:$4 sm:$0xff]   ;;  %v1117_v17 = vld [vmem:[%s1264_s21 + $0x40] ss:$8 sps:$4 sm:$0xff]   ;;  %v1119_v19 = vld [vmem:[%s1264_s21 + $0x34] ss:$8 sps:$4 sm:$0xff]   ;;  %266 = vperm.xlu0 %1093, %v252_v59  }
  0x13   : > { %v1115_v16 = vld [vmem:[%s1264_s21 + $0x144] ss:$8 sps:$4 sm:$0xff]   ;;  %v1118_v18 = vld [vmem:[%s1264_s21 + $0x140] ss:$8 sps:$4 sm:$0xff]   ;;  %v1121_v20 = vld [vmem:[%s1264_s21 + $0x134] ss:$8 sps:$4 sm:$0xff]   ;;  %276 = vperm.xlu1 %1094, %v254_v60  }
  0x14   : > { %702 = vmatpush1.bf16.msra.mxu0 %v1105_v9  ;;  %v1123_v21 = vld [vmem:[%s1264_s21 + $0x30] ss:$8 sps:$4 sm:$0xff]   ;;  %v1125_v23 = vld [vmem:[%s1264_s21 + $0x24] ss:$8 sps:$4 sm:$0xff]   ;;  %v1129_v25 = vld [vmem:[%s1264_s21 + $0x20] ss:$8 sps:$4 sm:$0xff]  }
  0x15   : > { %775 = vmatpush1.bf16.msra.mxu1 %v1106_v10  ;;  %703 = vmatprep.subr.bf16.mxu0 %v1107_v11  ;;  %v1124_v22 = vld [vmem:[%s1264_s21 + $0x130] ss:$8 sps:$4 sm:$0xff]   ;;  %v1127_v24 = vld [vmem:[%s1264_s21 + $0x124] ss:$8 sps:$4 sm:$0xff]   ;;  %v1130_v26 = vld [vmem:[%s1264_s21 + $0x120] ss:$8 sps:$4 sm:$0xff]  }
  0x16   : > { %776 = vmatprep.subr.bf16.mxu1 %v1109_v12  ;;  %v1131_v27 = vld [vmem:[%s1264_s21 + $0x14] ss:$8 sps:$4 sm:$0xff]   ;;  %v1135_v29 = vld [vmem:[%s1264_s21 + $0x10] ss:$8 sps:$4 sm:$0xff]   ;;  %v1137_v31 = vld [vmem:[%s1264_s21 + $0x4] ss:$8 sps:$4 sm:$0xff]   ;;  %281 = vperm.xlu0 %1093, %v255_v2  }
  0x17   : > { %v1133_v28 = vld [vmem:[%s1264_s21 + $0x114] ss:$8 sps:$4 sm:$0xff]   ;;  %v1136_v30 = vld [vmem:[%s1264_s21 + $0x110] ss:$8 sps:$4 sm:$0xff]   ;;  %v1139_v32 = vld [vmem:[%s1264_s21 + $0x104] ss:$8 sps:$4 sm:$0xff]   ;;  %286 = vperm.xlu1 %1094, %v256_v1  }
  0x18   : > { %704 = vmatpush1.bf16.msra.mxu0 %v1111_v13  ;;  %v1141_v33 = vld [vmem:[%s1264_s21] ss:$8 sps:$4 sm:$0xff]   ;;  %v1143_v35 = vld [vmem:[%s1264_s21 + $0xf4] ss:$8 sps:$4 sm:$0xff]   ;;  %v1147_v37 = vld [vmem:[%s1264_s21 + $0xf0] ss:$8 sps:$4 sm:$0xff]  }
  0x19   : > { %777 = vmatpush1.bf16.msra.mxu1 %v1112_v14  ;;  %705 = vmatprep.subr.bf16.mxu0 %v1113_v15  ;;  %v1142_v34 = vld [vmem:[%s1264_s21 + $0x100] ss:$8 sps:$4 sm:$0xff]   ;;  %v1145_v36 = vld [vmem:[%s1264_s21 + $0x1f4] ss:$8 sps:$4 sm:$0xff]   ;;  %v1148_v38 = vld [vmem:[%s1264_s21 + $0x1f0] ss:$8 sps:$4 sm:$0xff]  }
  0x1a   : > { %778 = vmatprep.subr.bf16.mxu1 %v1115_v16  ;;  %v1149_v39 = vld [vmem:[%s1264_s21 + $0xe4] ss:$8 sps:$4 sm:$0xff]   ;;  %v1153_v41 = vld [vmem:[%s1264_s21 + $0xe0] ss:$8 sps:$4 sm:$0xff]   ;;  %v1155_v43 = vld [vmem:[%s1264_s21 + $0xd4] ss:$8 sps:$4 sm:$0xff]  }
  0x1b   : > { %v1151_v40 = vld [vmem:[%s1264_s21 + $0x1e4] ss:$8 sps:$4 sm:$0xff]   ;;  %v1154_v42 = vld [vmem:[%s1264_s21 + $0x1e0] ss:$8 sps:$4 sm:$0xff]   ;;  %v1157_v44 = vld [vmem:[%s1264_s21 + $0x1d4] ss:$8 sps:$4 sm:$0xff]  }
  0x1c   : > { %706 = vmatpush1.bf16.msra.mxu0 %v1117_v17  ;;  %v1159_v45 = vld [vmem:[%s1264_s21 + $0xd0] ss:$8 sps:$4 sm:$0xff]   ;;  %v1161_v47 = vld [vmem:[%s1264_s21 + $0xc4] ss:$8 sps:$4 sm:$0xff]   ;;  %v1165_v49 = vld [vmem:[%s1264_s21 + $0xc0] ss:$8 sps:$4 sm:$0xff]  }
  0x1d   : > { %779 = vmatpush1.bf16.msra.mxu1 %v1118_v18  ;;  %707 = vmatprep.subr.bf16.mxu0 %v1119_v19  ;;  %v1160_v46 = vld [vmem:[%s1264_s21 + $0x1d0] ss:$8 sps:$4 sm:$0xff]   ;;  %v1163_v48 = vld [vmem:[%s1264_s21 + $0x1c4] ss:$8 sps:$4 sm:$0xff]   ;;  %v1166_v50 = vld [vmem:[%s1264_s21 + $0x1c0] ss:$8 sps:$4 sm:$0xff]  }
  0x1e   : > { %780 = vmatprep.subr.bf16.mxu1 %v1121_v20  ;;  %v1167_v51 = vld [vmem:[%s1264_s21 + $0xb4] ss:$8 sps:$4 sm:$0xff]   ;;  %v1171_v54 = vld [vmem:[%s1264_s21 + $0xb0] ss:$8 sps:$4 sm:$0xff]   ;;  %v1173_v57 = vld [vmem:[%s1264_s21 + $0xa4] ss:$8 sps:$4 sm:$0xff]  }
  0x1f   : > { %v1169_v52 = vld [vmem:[%s1264_s21 + $0x1b4] ss:$8 sps:$4 sm:$0xff]   ;;  %v1172_v55 = vld [vmem:[%s1264_s21 + $0x1b0] ss:$8 sps:$4 sm:$0xff]   ;;  %v1175_v58 = vld [vmem:[%s1264_s21 + $0x1a4] ss:$8 sps:$4 sm:$0xff]  }
  0x20   : > { %708 = vmatpush1.bf16.msra.mxu0 %v1123_v21  ;;  %v1177_v61 = vld [vmem:[%s1264_s21 + $0xa0] ss:$8 sps:$4 sm:$0xff]   ;;  %v1179_v63 = vld [vmem:[%s1264_s21 + $0x94] ss:$8 sps:$4 sm:$0xff]   ;;  %v1183_v3 = vld [vmem:[%s1264_s21 + $0x90] ss:$8 sps:$4 sm:$0xff]  }
  0x21   : > { %781 = vmatpush1.bf16.msra.mxu1 %v1124_v22  ;;  %709 = vmatprep.subr.bf16.mxu0 %v1125_v23  ;;  %v1178_v62 = vld [vmem:[%s1264_s21 + $0x1a0] ss:$8 sps:$4 sm:$0xff]   ;;  %v1181_v0 = vld [vmem:[%s1264_s21 + $0x194] ss:$8 sps:$4 sm:$0xff]   ;;  %v1184_v4 = vld [vmem:[%s1264_s21 + $0x190] ss:$8 sps:$4 sm:$0xff]  }
  0x22   : > { %782 = vmatprep.subr.bf16.mxu1 %v1127_v24  ;;  %v1185_v5 = vld [vmem:[%s1264_s21 + $0x84] ss:$8 sps:$4 sm:$0xff]   ;;  %v258_v7 = vld [vmem:[%s1435_s2 + $0x38] sm:$0xff]  ;;  %v257_v8 = vld [vmem:[%s1435_s2 + $0x30] sm:$0xff] }
  0x23   : > { %v1187_v6 = vld [vmem:[%s1264_s21 + $0x184] ss:$8 sps:$4 sm:$0xff]   ;;  %v1189_v9 = vld [vmem:[%s1264_s21 + $0x80] ss:$8 sps:$4 sm:$0xff]   ;;  %296 = vperm.xlu1 %1094, %v258_v7   ;;  %291 = vperm.xlu0 %1093, %v257_v8   ;;  %vm1402_vm2 = vmor %vm910_vm1, %vm909_vm0 }
  0x24   : > { %710 = vmatpush1.bf16.msra.mxu0 %v1129_v25  ;;  %v1190_v10 = vld [vmem:[%s1264_s21 + $0x180] ss:$8 sps:$4 sm:$0xff]   ;;  %v1197_v13 = vld [vmem:[%s1434_s1 + $0x24] ss:$16 sps:$4 sm:$0xff]   ;;  %v1199_v14 = vld [vmem:[%s1434_s1 + $0x2c] ss:$16 sps:$4 sm:$0xff]  }
  0x25   : > { %783 = vmatpush1.bf16.msra.mxu1 %v1130_v26  ;;  %711 = vmatprep.subr.bf16.mxu0 %v1131_v27  ;;  %v1191_v11 = vld [vmem:[%s1434_s1] ss:$16 sps:$4 sm:$0xff]   ;;  %v1194_v12 = vld [vmem:[%s1434_s1 + $0x8] ss:$16 sps:$4 sm:$0xff]   ;;  %v1203_v17 = vld [vmem:[%s1434_s1 + $0x44] ss:$16 sps:$4 sm:$0xff]  }
  0x26   : > { %784 = vmatprep.subr.bf16.mxu1 %v1133_v28  ;;  %v1201_v15 = vld [vmem:[%s1434_s1 + $0x20] ss:$16 sps:$4 sm:$0xff]   ;;  %v1202_v16 = vld [vmem:[%s1434_s1 + $0x28] ss:$16 sps:$4 sm:$0xff]   ;;  %v1205_v18 = vld [vmem:[%s1434_s1 + $0x4c] ss:$16 sps:$4 sm:$0xff]  }
  0x27   : > { %v1207_v19 = vld [vmem:[%s1434_s1 + $0x40] ss:$16 sps:$4 sm:$0xff]   ;;  %v1208_v20 = vld [vmem:[%s1434_s1 + $0x48] ss:$16 sps:$4 sm:$0xff]   ;;  %v1209_v21 = vld [vmem:[%s1434_s1 + $0x64] ss:$16 sps:$4 sm:$0xff]  }
  0x28   : > { %712 = vmatpush1.bf16.msra.mxu0 %v1135_v29  ;;  %v1211_v22 = vld [vmem:[%s1434_s1 + $0x6c] ss:$16 sps:$4 sm:$0xff]   ;;  %v1213_v23 = vld [vmem:[%s1434_s1 + $0x60] ss:$16 sps:$4 sm:$0xff]   ;;  %v1214_v24 = vld [vmem:[%s1434_s1 + $0x68] ss:$16 sps:$4 sm:$0xff]  }
  0x29   : > { %785 = vmatpush1.bf16.msra.mxu1 %v1136_v30  ;;  %713 = vmatprep.subr.bf16.mxu0 %v1137_v31 }
  0x2a   : > { %786 = vmatprep.subr.bf16.mxu1 %v1139_v32 }
  0x2c   : > { %714 = vmatpush1.bf16.msra.mxu0 %v1141_v33 }
  0x2d   : > { %787 = vmatpush1.bf16.msra.mxu1 %v1142_v34  ;;  %715 = vmatprep.subr.bf16.mxu0 %v1143_v35 }
  0x2e   : > { %788 = vmatprep.subr.bf16.mxu1 %v1145_v36 }
  0x30   : > { %716 = vmatpush2.bf16.msra.mxu0 %v1147_v37 }
  0x31   : > { %789 = vmatpush2.bf16.msra.mxu1 %v1148_v38  ;;  %717 = vmatprep.subr.bf16.mxu0 %v1149_v39 }
  0x32   : > { %790 = vmatprep.subr.bf16.mxu1 %v1151_v40 }
  0x34   : > { %718 = vmatpush2.bf16.msra.mxu0 %v1153_v41 }
  0x35   : > { %791 = vmatpush2.bf16.msra.mxu1 %v1154_v42  ;;  %719 = vmatprep.subr.bf16.mxu0 %v1155_v43 }
  0x36   : > { %792 = vmatprep.subr.bf16.mxu1 %v1157_v44 }
  0x38   : > { %720 = vmatpush2.bf16.msra.mxu0 %v1159_v45 }
  0x39   : > { %793 = vmatpush2.bf16.msra.mxu1 %v1160_v46  ;;  %721 = vmatprep.subr.bf16.mxu0 %v1161_v47 }
  0x3a   : > { %794 = vmatprep.subr.bf16.mxu1 %v1163_v48 }
  0x3c   : > { %722 = vmatpush2.bf16.msra.mxu0 %v1165_v49 }
  0x3d   : > { %795 = vmatpush2.bf16.msra.mxu1 %v1166_v50  ;;  %723 = vmatprep.subr.bf16.mxu0 %v1167_v51 }
  0x3e   : > { %796 = vmatprep.subr.bf16.mxu1 %v1169_v52 }
  0x40   : > { %724 = vmatpush2.bf16.msra.mxu0 %v1171_v54 }
  0x41   : > { %797 = vmatpush2.bf16.msra.mxu1 %v1172_v55  ;;  %725 = vmatprep.subr.bf16.mxu0 %v1173_v57 }
  0x42   : > { %798 = vmatprep.subr.bf16.mxu1 %v1175_v58 }
  0x44   : > { %726 = vmatpush2.bf16.msra.mxu0 %v1177_v61 }
  0x45   : > { %799 = vmatpush2.bf16.msra.mxu1 %v1178_v62  ;;  %727 = vmatprep.subr.bf16.mxu0 %v1179_v63 }
  0x46   : > { %800 = vmatprep.subr.bf16.mxu1 %v1181_v0 }
  0x48   : > { %728 = vmatpush2.bf16.msra.mxu0 %v1183_v3 }
  0x49   : > { %801 = vmatpush2.bf16.msra.mxu1 %v1184_v4  ;;  %729 = vmatprep.subr.bf16.mxu0 %v1185_v5 }
  0x4a   : > { %802 = vmatprep.subr.bf16.mxu1 %v1187_v6 }
  0x4c   : > { %730 = vmatpush2.bf16.msra.mxu0 %v1189_v9 }
  0x4d   : > { %803 = vmatpush2.bf16.msra.mxu1 %v1190_v10 }
  0x4f   : > { %732 = vmatmul.mubr.bf16.vlgmr.msra.gmra.mxu0 %v1191_v11 }
  0x50   : > { %805 = vmatmul.mubr.bf16.vlgmr.msra.gmra.mxu1 %v1194_v12  ;;  %741 = vmatprep.mubr.bf16.mxu0 %v1197_v13 }
  0x51   : > { %814 = vmatprep.mubr.bf16.mxu1 %v1199_v14 }
  0x57   : > { %742 = vmatmul.mubr.bf16.gmra.mxu0 %v1201_v15 }
  0x58   : > { %815 = vmatmul.mubr.bf16.gmra.mxu1 %v1202_v16  ;;  %751 = vmatprep.mubr.bf16.mxu0 %v1203_v17 }
  0x59   : > { %824 = vmatprep.mubr.bf16.mxu1 %v1205_v18 }
  0x5f   : > { %752 = vmatmul.mubr.bf16.gmra.mxu0 %v1207_v19 }
  0x60   : > { %825 = vmatmul.mubr.bf16.gmra.mxu1 %v1208_v20  ;;  %761 = vmatprep.mubr.bf16.mxu0 %v1209_v21 }
  0x61   : > { %834 = vmatprep.mubr.bf16.mxu1 %v1211_v22 }
  0x67   : > { %762 = vmatmul.mubr.bf16.gmra.mxu0 %v1213_v23 }
  0x68   : > { %835 = vmatmul.mubr.bf16.gmra.mxu1 %v1214_v24 }
  0x89   : > { %v262_v25 = vpop.permute.xlu0 %261  ;;  %v272_v38 = vpop.permute.xlu1 %271 }
  0x8d   : > { %v267_v29 = vpop.permute.xlu0 %266 }
  0x8e   : > { %v277_v56 = vpop.permute.xlu1 %276 }
  0x91   : > { %v282_v4 = vpop.permute.xlu0 %281 }
  0x92   : > { %v287_v14 = vpop.permute.xlu1 %286 }
 0x10f   : > { %v733_v26 = vpop.f32.mrf.mxu0 }
 0x110   : > { %v806_v27 = vpop.f32.mrf.mxu1  ;;  %v734_v28 = vadd.f32 %v733_v26, %v262_v25  ;;  %v292_v26 = vpop.permute.xlu0 %291 }
 0x111   : > { %v735_v30 = vpop.f32.mrf.mxu0 }
 0x112   : > { %v808_v31 = vpop.f32.mrf.mxu1  ;;  %v807_v32 = vadd.f32 %v806_v27, %v734_v28  ;;  %v736_v33 = vadd.f32 %v735_v30, %v262_v25 }
 0x113   : > { %v737_v34 = vpop.f32.mrf.mxu0 }
 0x114   : > { %v810_v35 = vpop.f32.mrf.mxu1  ;;  %v809_v36 = vadd.f32 %v808_v31, %v736_v33  ;;  %v738_v37 = vadd.f32 %v737_v34, %v267_v29  ;;  %v845_v41 = vmax.f32 %v807_v32, 0.0 }
 0x115   : > { %v739_v39 = vpop.f32.mrf.mxu0 }
 0x116   : > { %v812_v40 = vpop.f32.mrf.mxu1  ;;  %v846_v42 = vmax.f32 %v809_v36, 0.0  ;;  %v811_v43 = vadd.f32 %v810_v35, %v738_v37  ;;  %v740_v44 = vadd.f32 %v739_v39, %v267_v29  ;;  %v297_v37 = vpop.permute.xlu1 %296 }
 0x117   : > { %v743_v46 = vpop.f32.mrf.mxu0 }
 0x118   : > { %v816_v47 = vpop.f32.mrf.mxu1  ;;  %v1076_v48 = vpack.c.bf16 %v846_v42, %v845_v41  ;;  %v813_v49 = vadd.f32 %v812_v40, %v740_v44  ;;  %v744_v50 = vadd.f32 %v743_v46, %v272_v38  ;;  %v847_v53 = vmax.f32 %v811_v43, 0.0 }
 0x119   : > { %v745_v51 = vpop.f32.mrf.mxu0 }
 0x11a   : > { %v818_v52 = vpop.f32.mrf.mxu1  ;;  %912 = vst.msk [vmem:[%s1400_s19] sm:$0xff] %vm1402_vm2, %v1076_v48  ;;  %v848_v54 = vmax.f32 %v813_v49, 0.0  ;;  %v817_v55 = vadd.f32 %v816_v47, %v744_v50  ;;  %v746_v57 = vadd.f32 %v745_v51, %v272_v38 }
 0x11b   : > { %v747_v58 = vpop.f32.mrf.mxu0 }
 0x11c   : > { %v820_v59 = vpop.f32.mrf.mxu1  ;;  %v1077_v60 = vpack.c.bf16 %v848_v54, %v847_v53  ;;  %v819_v61 = vadd.f32 %v818_v52, %v746_v57  ;;  %v748_v62 = vadd.f32 %v747_v58, %v277_v56  ;;  %v849_v1 = vmax.f32 %v817_v55, 0.0 }
 0x11d   : > { %v749_v63 = vpop.f32.mrf.mxu0 }
 0x11e   : > { %v822_v0 = vpop.f32.mrf.mxu1  ;;  %913 = vst.msk [vmem:[%s1400_s19 + $0x8] sm:$0xff] %vm1402_vm2, %v1077_v60  ;;  %v850_v2 = vmax.f32 %v819_v61, 0.0  ;;  %v821_v3 = vadd.f32 %v820_v59, %v748_v62  ;;  %v750_v5 = vadd.f32 %v749_v63, %v277_v56 }
 0x11f   : > { %v753_v6 = vpop.f32.mrf.mxu0 }
 0x120   : > { %v826_v7 = vpop.f32.mrf.mxu1  ;;  %v1078_v8 = vpack.c.bf16 %v850_v2, %v849_v1  ;;  %v823_v9 = vadd.f32 %v822_v0, %v750_v5  ;;  %v754_v10 = vadd.f32 %v753_v6, %v282_v4  ;;  %v851_v13 = vmax.f32 %v821_v3, 0.0 }
 0x121   : > { %v755_v11 = vpop.f32.mrf.mxu0 }
 0x122   : > { %v828_v12 = vpop.f32.mrf.mxu1  ;;  %914 = vst.msk [vmem:[%s1400_s19 + $0x10] sm:$0xff] %vm1402_vm2, %v1078_v8  ;;  %v852_v15 = vmax.f32 %v823_v9, 0.0  ;;  %v827_v16 = vadd.f32 %v826_v7, %v754_v10  ;;  %v756_v17 = vadd.f32 %v755_v11, %v282_v4 }
 0x123   : > { %v757_v18 = vpop.f32.mrf.mxu0 }
 0x124   : > { %v830_v19 = vpop.f32.mrf.mxu1  ;;  %v1079_v20 = vpack.c.bf16 %v852_v15, %v851_v13  ;;  %v829_v21 = vadd.f32 %v828_v12, %v756_v17  ;;  %v758_v22 = vadd.f32 %v757_v18, %v287_v14  ;;  %v853_v25 = vmax.f32 %v827_v16, 0.0 }
 0x125   : > { %v759_v23 = vpop.f32.mrf.mxu0 }
 0x126   : > { %v832_v24 = vpop.f32.mrf.mxu1  ;;  %915 = vst.msk [vmem:[%s1400_s19 + $0x18] sm:$0xff] %vm1402_vm2, %v1079_v20  ;;  %v854_v27 = vmax.f32 %v829_v21, 0.0  ;;  %v831_v28 = vadd.f32 %v830_v19, %v758_v22  ;;  %v760_v29 = vadd.f32 %v759_v23, %v287_v14 }
 0x127   : > { %v763_v30 = vpop.f32.mrf.mxu0 }
 0x128   : > { %v836_v31 = vpop.f32.mrf.mxu1  ;;  %v1080_v32 = vpack.c.bf16 %v854_v27, %v853_v25  ;;  %v833_v33 = vadd.f32 %v832_v24, %v760_v29  ;;  %v764_v34 = vadd.f32 %v763_v30, %v292_v26  ;;  %v855_v38 = vmax.f32 %v831_v28, 0.0 }
 0x129   : > { %v765_v35 = vpop.f32.mrf.mxu0 }
 0x12a   : > { %v838_v36 = vpop.f32.mrf.mxu1  ;;  %916 = vst.msk [vmem:[%s1400_s19 + $0x20] sm:$0xff] %vm1402_vm2, %v1080_v32  ;;  %v856_v39 = vmax.f32 %v833_v33, 0.0  ;;  %v837_v40 = vadd.f32 %v836_v31, %v764_v34  ;;  %v766_v41 = vadd.f32 %v765_v35, %v292_v26 }
 0x12b   : > { %v767_v42 = vpop.f32.mrf.mxu0 }
 0x12c   : > { %v840_v43 = vpop.f32.mrf.mxu1  ;;  %v1081_v44 = vpack.c.bf16 %v856_v39, %v855_v38  ;;  %v839_v46 = vadd.f32 %v838_v36, %v766_v41  ;;  %v768_v47 = vadd.f32 %v767_v42, %v297_v37  ;;  %v857_v49 = vmax.f32 %v837_v40, 0.0 }
 0x12d   : > { %v769_v48 = vpop.f32.mrf.mxu0 }
 0x12e   : > { %917 = vst.msk [vmem:[%s1400_s19 + $0x28] sm:$0xff] %vm1402_vm2, %v1081_v44  ;;  %v858_v50 = vmax.f32 %v839_v46, 0.0  ;;  %v841_v51 = vadd.f32 %v840_v43, %v768_v47  ;;  %v770_v52 = vadd.f32 %v769_v48, %v297_v37  ;;  %v842_v53 = vpop.f32.mrf.mxu1 }
 0x130   : > { %v1082_v54 = vpack.c.bf16 %v858_v50, %v857_v49  ;;  %v843_v55 = vadd.f32 %v842_v53, %v770_v52  ;;  %v859_v56 = vmax.f32 %v841_v51, 0.0 }
 0x132   : > { %918 = vst.msk [vmem:[%s1400_s19 + $0x30] sm:$0xff] %vm1402_vm2, %v1082_v54  ;;  %v860_v57 = vmax.f32 %v843_v55, 0.0 }
 0x134   : > { %v1083_v58 = vpack.c.bf16 %v860_v57, %v859_v56 }
 0x136   : > { %919 = vst.msk [vmem:[%s1400_s19 + $0x38] sm:$0xff] %vm1402_vm2, %v1083_v58 }
 0x137 PF: > { %s13_s12 = sadd.s32 1, %s1221_s12  }
 0x138   : > { %p10_p4 = scmp.ge.s32.totalorder %s13_s12, 4  }
 0x13a   :  { %12 = sbr.rel (!%p10_p4) target bundleno = 1 (0x1), region = 62 }

// kernel: cnn_actor_forward.6
= control target key start
LH: loop header
LB: loop body
LE: loop exit
PB: predicated region body
PF: predicated region fallthrough
CT: control target
= control target key end

     0   :  { %s1446_s12 = smov 0   ;;  %s1687_s0 = inlined_call_operand.vmem [shape: bf16[2,576,144], index: 0, kind: input, shape index: {}]   ;;  %s1688_s1 = inlined_call_operand.vmem [shape: bf16[64,576], index: 1, kind: input, shape index: {}]   ;;  %s1689_s2 = inlined_call_operand.vmem [shape: f32[64,1], index: 2, kind: input, shape index: {}]   ;;  %s1690_s3 = inlined_call_operand.vmem [shape: bf16[2,64,144], index: 3, kind: output, shape index: {}]  }
   0x1 LB: > { %s1138_s13 = sadd.s32 4294967295, %s1423_s12   ;;  %p1142_p0 = scmp.ge.s32.totalorder %s1423_s12, 1  ;;  %s1423_s12 = sphi %s1446_s12, %s13_s12  }
   0x2   : > { %p137_p1 = scmp.lt.s32.totalorder %s1423_s12, 3 }
   0x4   : > { %p138_p2 = pnand %p1142_p0, %p137_p1 }
   0x5   : > { %p161_p3 = scmp.lt.s32.totalorder (!%p138_p2), %s1138_s13, 1 }
   0x6   : > { %141 = sbr.rel (%p138_p2) target bundleno = 327 (0x147), region = 32 }
   0xb   : > { %v1379_v0 = vld [vmem:[%s1688_s1 + $0x4] ss:$20 sps:$4 sm:$0xff]   ;;  %v1425_v1 = vmov 0   ;;  %s1694_s13 = smov (!%p161_p3, %s1138_s13), 1  ;;  %v1382_v2 = vld [vmem:[%s1688_s1 + $0xc] ss:$20 sps:$4 sm:$0xff]  }
   0xc   : > { %1279 = vset.pattern.permute.xlu0 %v1425_v1  ;;  %1280 = vset.pattern.permute.xlu1 %v1425_v1  ;;  %s1269_s18 = smul.u32 576, %s1694_s13  ;;  %v268_v61 = vld [vmem:[%s1689_s2] sm:$0xff]  ;;  %vm776_vm0 = vcmask 523264   ;;  %vm1072_vm1 = vcmask 1043456   ;;  %vm1073_vm2 = vcmask 130052   ;;  %s1252_s25 = sshll.u32 %s1694_s13, 6 }
   0xd   : > { %821 = vmatprep.mubr.bf16.mxu0 %v1379_v0  ;;  %894 = vmatprep.mubr.bf16.mxu1 %v1382_v2  ;;  %v270_v0 = vld [vmem:[%s1689_s2 + $0x10] sm:$0xff]  ;;  %s1645_s13 = scalar_lea.vmem %s1690_s3, %s1252_s25  ;;  %vm1649_vm3 = vmor %vm1073_vm2, %vm1072_vm1 }
   0xe   : > { %s1468_s21 = scalar_lea.vmem %s1687_s0, %s1269_s18  ;;  %278 = vperm.xlu0 %1279, %v268_v61   ;;  %288 = vperm.xlu1 %1280, %v270_v0  }
   0xf   : > { %v1281_v3 = vld [vmem:[%s1468_s21 + $0x74] ss:$8 sps:$4 sm:$0xff]   ;;  %v1285_v5 = vld [vmem:[%s1468_s21 + $0x70] ss:$8 sps:$4 sm:$0xff]   ;;  %v1287_v7 = vld [vmem:[%s1468_s21 + $0x64] ss:$8 sps:$4 sm:$0xff]  }
  0x10   : > { %v1283_v4 = vld [vmem:[%s1468_s21 + $0x174] ss:$8 sps:$4 sm:$0xff]   ;;  %789 = vmatprep.subr.bf16.mxu0 %v1281_v3  ;;  %v1286_v6 = vld [vmem:[%s1468_s21 + $0x170] ss:$8 sps:$4 sm:$0xff]   ;;  %v1289_v8 = vld [vmem:[%s1468_s21 + $0x164] ss:$8 sps:$4 sm:$0xff]  }
  0x11   : > { %862 = vmatprep.subr.bf16.mxu1 %v1283_v4  ;;  %790 = vmatpush1.bf16.msra.mxu0 %v1285_v5  ;;  %v1291_v9 = vld [vmem:[%s1468_s21 + $0x60] ss:$8 sps:$4 sm:$0xff]   ;;  %v1293_v11 = vld [vmem:[%s1468_s21 + $0x54] ss:$8 sps:$4 sm:$0xff]   ;;  %v1297_v13 = vld [vmem:[%s1468_s21 + $0x50] ss:$8 sps:$4 sm:$0xff]  }
  0x12   : > { %863 = vmatpush1.bf16.msra.mxu1 %v1286_v6  ;;  %791 = vmatprep.subr.bf16.mxu0 %v1287_v7  ;;  %v1292_v10 = vld [vmem:[%s1468_s21 + $0x160] ss:$8 sps:$4 sm:$0xff]   ;;  %v1295_v12 = vld [vmem:[%s1468_s21 + $0x154] ss:$8 sps:$4 sm:$0xff]   ;;  %v1298_v14 = vld [vmem:[%s1468_s21 + $0x150] ss:$8 sps:$4 sm:$0xff]  }
  0x13   : > { %864 = vmatprep.subr.bf16.mxu1 %v1289_v8  ;;  %v1299_v15 = vld [vmem:[%s1468_s21 + $0x44] ss:$8 sps:$4 sm:$0xff]   ;;  %v1303_v17 = vld [vmem:[%s1468_s21 + $0x40] ss:$8 sps:$4 sm:$0xff]   ;;  %v1305_v19 = vld [vmem:[%s1468_s21 + $0x34] ss:$8 sps:$4 sm:$0xff]  }
  0x14   : > { %v1301_v16 = vld [vmem:[%s1468_s21 + $0x144] ss:$8 sps:$4 sm:$0xff]   ;;  %v1304_v18 = vld [vmem:[%s1468_s21 + $0x140] ss:$8 sps:$4 sm:$0xff]   ;;  %v1307_v20 = vld [vmem:[%s1468_s21 + $0x134] ss:$8 sps:$4 sm:$0xff]  }
  0x15   : > { %792 = vmatpush1.bf16.msra.mxu0 %v1291_v9  ;;  %v1309_v21 = vld [vmem:[%s1468_s21 + $0x30] ss:$8 sps:$4 sm:$0xff]   ;;  %v1311_v23 = vld [vmem:[%s1468_s21 + $0x24] ss:$8 sps:$4 sm:$0xff]   ;;  %v1315_v25 = vld [vmem:[%s1468_s21 + $0x20] ss:$8 sps:$4 sm:$0xff]  }
  0x16   : > { %865 = vmatpush1.bf16.msra.mxu1 %v1292_v10  ;;  %793 = vmatprep.subr.bf16.mxu0 %v1293_v11  ;;  %v1310_v22 = vld [vmem:[%s1468_s21 + $0x130] ss:$8 sps:$4 sm:$0xff]   ;;  %v1313_v24 = vld [vmem:[%s1468_s21 + $0x124] ss:$8 sps:$4 sm:$0xff]   ;;  %v1316_v26 = vld [vmem:[%s1468_s21 + $0x120] ss:$8 sps:$4 sm:$0xff]  }
  0x17   : > { %866 = vmatprep.subr.bf16.mxu1 %v1295_v12  ;;  %v1317_v27 = vld [vmem:[%s1468_s21 + $0x14] ss:$8 sps:$4 sm:$0xff]   ;;  %v1321_v29 = vld [vmem:[%s1468_s21 + $0x10] ss:$8 sps:$4 sm:$0xff]   ;;  %v1323_v31 = vld [vmem:[%s1468_s21 + $0x4] ss:$8 sps:$4 sm:$0xff]  }
  0x18   : > { %v1319_v28 = vld [vmem:[%s1468_s21 + $0x114] ss:$8 sps:$4 sm:$0xff]   ;;  %v1322_v30 = vld [vmem:[%s1468_s21 + $0x110] ss:$8 sps:$4 sm:$0xff]   ;;  %v1325_v32 = vld [vmem:[%s1468_s21 + $0x104] ss:$8 sps:$4 sm:$0xff]  }
  0x19   : > { %794 = vmatpush1.bf16.msra.mxu0 %v1297_v13  ;;  %v1327_v33 = vld [vmem:[%s1468_s21] ss:$8 sps:$4 sm:$0xff]   ;;  %v1329_v35 = vld [vmem:[%s1468_s21 + $0xf4] ss:$8 sps:$4 sm:$0xff]   ;;  %v1333_v37 = vld [vmem:[%s1468_s21 + $0xf0] ss:$8 sps:$4 sm:$0xff]  }
  0x1a   : > { %867 = vmatpush1.bf16.msra.mxu1 %v1298_v14  ;;  %795 = vmatprep.subr.bf16.mxu0 %v1299_v15  ;;  %v1328_v34 = vld [vmem:[%s1468_s21 + $0x100] ss:$8 sps:$4 sm:$0xff]   ;;  %v1331_v36 = vld [vmem:[%s1468_s21 + $0x1f4] ss:$8 sps:$4 sm:$0xff]   ;;  %v1334_v38 = vld [vmem:[%s1468_s21 + $0x1f0] ss:$8 sps:$4 sm:$0xff]  }
  0x1b   : > { %868 = vmatprep.subr.bf16.mxu1 %v1301_v16  ;;  %v1335_v39 = vld [vmem:[%s1468_s21 + $0xe4] ss:$8 sps:$4 sm:$0xff]   ;;  %v1339_v41 = vld [vmem:[%s1468_s21 + $0xe0] ss:$8 sps:$4 sm:$0xff]   ;;  %v1341_v43 = vld [vmem:[%s1468_s21 + $0xd4] ss:$8 sps:$4 sm:$0xff]  }
  0x1c   : > { %v1337_v40 = vld [vmem:[%s1468_s21 + $0x1e4] ss:$8 sps:$4 sm:$0xff]   ;;  %v1340_v42 = vld [vmem:[%s1468_s21 + $0x1e0] ss:$8 sps:$4 sm:$0xff]   ;;  %v1343_v44 = vld [vmem:[%s1468_s21 + $0x1d4] ss:$8 sps:$4 sm:$0xff]  }
  0x1d   : > { %796 = vmatpush1.bf16.msra.mxu0 %v1303_v17  ;;  %v1345_v45 = vld [vmem:[%s1468_s21 + $0xd0] ss:$8 sps:$4 sm:$0xff]   ;;  %v1347_v47 = vld [vmem:[%s1468_s21 + $0xc4] ss:$8 sps:$4 sm:$0xff]   ;;  %v1351_v49 = vld [vmem:[%s1468_s21 + $0xc0] ss:$8 sps:$4 sm:$0xff]  }
  0x1e   : > { %869 = vmatpush1.bf16.msra.mxu1 %v1304_v18  ;;  %797 = vmatprep.subr.bf16.mxu0 %v1305_v19  ;;  %v1346_v46 = vld [vmem:[%s1468_s21 + $0x1d0] ss:$8 sps:$4 sm:$0xff]   ;;  %v1349_v48 = vld [vmem:[%s1468_s21 + $0x1c4] ss:$8 sps:$4 sm:$0xff]   ;;  %v1352_v50 = vld [vmem:[%s1468_s21 + $0x1c0] ss:$8 sps:$4 sm:$0xff]  }
  0x1f   : > { %870 = vmatprep.subr.bf16.mxu1 %v1307_v20  ;;  %v1353_v51 = vld [vmem:[%s1468_s21 + $0xb4] ss:$8 sps:$4 sm:$0xff]   ;;  %v1357_v53 = vld [vmem:[%s1468_s21 + $0xb0] ss:$8 sps:$4 sm:$0xff]   ;;  %v1359_v55 = vld [vmem:[%s1468_s21 + $0xa4] ss:$8 sps:$4 sm:$0xff]  }
  0x20   : > { %v1355_v52 = vld [vmem:[%s1468_s21 + $0x1b4] ss:$8 sps:$4 sm:$0xff]   ;;  %v1358_v54 = vld [vmem:[%s1468_s21 + $0x1b0] ss:$8 sps:$4 sm:$0xff]   ;;  %v1361_v56 = vld [vmem:[%s1468_s21 + $0x1a4] ss:$8 sps:$4 sm:$0xff]  }
  0x21   : > { %798 = vmatpush1.bf16.msra.mxu0 %v1309_v21  ;;  %v1363_v57 = vld [vmem:[%s1468_s21 + $0xa0] ss:$8 sps:$4 sm:$0xff]   ;;  %v1365_v59 = vld [vmem:[%s1468_s21 + $0x94] ss:$8 sps:$4 sm:$0xff]   ;;  %v1369_v62 = vld [vmem:[%s1468_s21 + $0x90] ss:$8 sps:$4 sm:$0xff]  }
  0x22   : > { %871 = vmatpush1.bf16.msra.mxu1 %v1310_v22  ;;  %799 = vmatprep.subr.bf16.mxu0 %v1311_v23  ;;  %v1364_v58 = vld [vmem:[%s1468_s21 + $0x1a0] ss:$8 sps:$4 sm:$0xff]   ;;  %v1367_v60 = vld [vmem:[%s1468_s21 + $0x194] ss:$8 sps:$4 sm:$0xff]   ;;  %v1370_v63 = vld [vmem:[%s1468_s21 + $0x190] ss:$8 sps:$4 sm:$0xff]  }
  0x23   : > { %872 = vmatprep.subr.bf16.mxu1 %v1313_v24  ;;  %v1371_v2 = vld [vmem:[%s1468_s21 + $0x84] ss:$8 sps:$4 sm:$0xff]   ;;  %v271_v5 = vld [vmem:[%s1689_s2 + $0x18] sm:$0xff]  ;;  %v1375_v6 = vld [vmem:[%s1468_s21 + $0x80] ss:$8 sps:$4 sm:$0xff]  }
  0x24   : > { %v1373_v3 = vld [vmem:[%s1468_s21 + $0x184] ss:$8 sps:$4 sm:$0xff]   ;;  %v1376_v7 = vld [vmem:[%s1468_s21 + $0x180] ss:$8 sps:$4 sm:$0xff]   ;;  %v1385_v8 = vld [vmem:[%s1468_s21 + $0x234] ss:$8 sps:$4 sm:$0xff]   ;;  %293 = vperm.xlu1 %1280, %v271_v5  }
  0x25   : > { %800 = vmatpush1.bf16.msra.mxu0 %v1315_v25  ;;  %v269_v4 = vld [vmem:[%s1689_s2 + $0x8] sm:$0xff]  ;;  %v1377_v9 = vld [vmem:[%s1688_s1] ss:$20 sps:$4 sm:$0xff]   ;;  %v1383_v13 = vld [vmem:[%s1468_s21 + $0x230] ss:$8 sps:$4 sm:$0xff]  }
  0x26   : > { %873 = vmatpush1.bf16.msra.mxu1 %v1316_v26  ;;  %801 = vmatprep.subr.bf16.mxu0 %v1317_v27  ;;  %v1380_v10 = vld [vmem:[%s1688_s1 + $0x8] ss:$20 sps:$4 sm:$0xff]   ;;  %v272_v11 = vld [vmem:[%s1689_s2 + $0x20] sm:$0xff]  ;;  %v274_v18 = vld [vmem:[%s1689_s2 + $0x30] sm:$0xff] }
  0x27   : > { %874 = vmatprep.subr.bf16.mxu1 %v1319_v28  ;;  %283 = vperm.xlu0 %1279, %v269_v4   ;;  %v273_v12 = vld [vmem:[%s1689_s2 + $0x28] sm:$0xff]  ;;  %v275_v19 = vld [vmem:[%s1689_s2 + $0x38] sm:$0xff]  ;;  %v1391_v22 = vld [vmem:[%s1688_s1 + $0x30] ss:$20 sps:$4 sm:$0xff]  }
  0x28   : > { %v1386_v14 = vld [vmem:[%s1688_s1 + $0x2c] ss:$20 sps:$4 sm:$0xff]   ;;  %v1388_v15 = vld [vmem:[%s1688_s1 + $0x34] ss:$20 sps:$4 sm:$0xff]   ;;  %303 = vperm.xlu1 %1280, %v273_v12   ;;  %v1397_v24 = vld [vmem:[%s1688_s1 + $0x5c] ss:$20 sps:$4 sm:$0xff]  }
  0x29   : > { %802 = vmatpush1.bf16.msra.mxu0 %v1321_v29  ;;  %v1394_v16 = vld [vmem:[%s1468_s21 + $0x224] ss:$8 sps:$4 sm:$0xff]   ;;  %v1392_v17 = vld [vmem:[%s1468_s21 + $0x220] ss:$8 sps:$4 sm:$0xff]   ;;  %v1403_v20 = vld [vmem:[%s1468_s21 + $0x214] ss:$8 sps:$4 sm:$0xff]  }
  0x2a   : > { %875 = vmatpush1.bf16.msra.mxu1 %v1322_v30  ;;  %803 = vmatprep.subr.bf16.mxu0 %v1323_v31  ;;  %v1390_v21 = vld [vmem:[%s1688_s1 + $0x28] ss:$20 sps:$4 sm:$0xff]   ;;  %v1401_v25 = vld [vmem:[%s1468_s21 + $0x210] ss:$8 sps:$4 sm:$0xff]   ;;  %v1412_v26 = vld [vmem:[%s1468_s21 + $0x204] ss:$8 sps:$4 sm:$0xff]  }
  0x2b   : > { %876 = vmatprep.subr.bf16.mxu1 %v1325_v32  ;;  %298 = vperm.xlu0 %1279, %v272_v11   ;;  %v1395_v23 = vld [vmem:[%s1688_s1 + $0x54] ss:$20 sps:$4 sm:$0xff]   ;;  %v1399_v28 = vld [vmem:[%s1688_s1 + $0x50] ss:$20 sps:$4 sm:$0xff]   ;;  %v1400_v29 = vld [vmem:[%s1688_s1 + $0x58] ss:$20 sps:$4 sm:$0xff]  }
  0x2c   : > { %313 = vperm.xlu1 %1280, %v275_v19   ;;  %v1410_v27 = vld [vmem:[%s1468_s21 + $0x200] ss:$8 sps:$4 sm:$0xff]   ;;  %v1404_v30 = vld [vmem:[%s1688_s1 + $0x7c] ss:$20 sps:$4 sm:$0xff]   ;;  %v1406_v31 = vld [vmem:[%s1688_s1 + $0x84] ss:$20 sps:$4 sm:$0xff]  }
  0x2d   : > { %804 = vmatpush1.bf16.msra.mxu0 %v1327_v33  ;;  %v1408_v32 = vld [vmem:[%s1688_s1 + $0x78] ss:$20 sps:$4 sm:$0xff]   ;;  %v1409_v33 = vld [vmem:[%s1688_s1 + $0x80] ss:$20 sps:$4 sm:$0xff]  }
  0x2e   : > { %877 = vmatpush1.bf16.msra.mxu1 %v1328_v34  ;;  %805 = vmatprep.subr.bf16.mxu0 %v1329_v35  ;;  %v1413_v34 = vld [vmem:[%s1688_s1 + $0x10] ss:$20 sps:$4 sm:$0xff]   ;;  %v1414_v35 = vld [vmem:[%s1688_s1 + $0x60] ss:$20 sps:$4 sm:$0xff]  }
  0x2f   : > { %878 = vmatprep.subr.bf16.mxu1 %v1331_v36  ;;  %308 = vperm.xlu0 %1279, %v274_v18   ;;  %v1415_v36 = vld [vmem:[%s1688_s1 + $0x38] ss:$20 sps:$4 sm:$0xff]  }
  0x31   : > { %806 = vmatpush2.bf16.msra.mxu0 %v1333_v37  ;;  %v1416_v37 = vld [vmem:[%s1688_s1 + $0x88] ss:$20 sps:$4 sm:$0xff]  }
  0x32   : > { %879 = vmatpush2.bf16.msra.mxu1 %v1334_v38  ;;  %807 = vmatprep.subr.bf16.mxu0 %v1335_v39 }
  0x33   : > { %880 = vmatprep.subr.bf16.mxu1 %v1337_v40 }
  0x35   : > { %808 = vmatpush2.bf16.msra.mxu0 %v1339_v41 }
  0x36   : > { %881 = vmatpush2.bf16.msra.mxu1 %v1340_v42  ;;  %809 = vmatprep.subr.bf16.mxu0 %v1341_v43 }
  0x37   : > { %882 = vmatprep.subr.bf16.mxu1 %v1343_v44 }
  0x39   : > { %810 = vmatpush2.bf16.msra.mxu0 %v1345_v45 }
  0x3a   : > { %883 = vmatpush2.bf16.msra.mxu1 %v1346_v46  ;;  %811 = vmatprep.subr.bf16.mxu0 %v1347_v47 }
  0x3b   : > { %884 = vmatprep.subr.bf16.mxu1 %v1349_v48 }
  0x3d   : > { %812 = vmatpush2.bf16.msra.mxu0 %v1351_v49 }
  0x3e   : > { %885 = vmatpush2.bf16.msra.mxu1 %v1352_v50  ;;  %813 = vmatprep.subr.bf16.mxu0 %v1353_v51 }
  0x3f   : > { %886 = vmatprep.subr.bf16.mxu1 %v1355_v52 }
  0x41   : > { %814 = vmatpush2.bf16.msra.mxu0 %v1357_v53 }
  0x42   : > { %887 = vmatpush2.bf16.msra.mxu1 %v1358_v54  ;;  %815 = vmatprep.subr.bf16.mxu0 %v1359_v55 }
  0x43   : > { %888 = vmatprep.subr.bf16.mxu1 %v1361_v56 }
  0x45   : > { %816 = vmatpush2.bf16.msra.mxu0 %v1363_v57 }
  0x46   : > { %889 = vmatpush2.bf16.msra.mxu1 %v1364_v58  ;;  %817 = vmatprep.subr.bf16.mxu0 %v1365_v59 }
  0x47   : > { %890 = vmatprep.subr.bf16.mxu1 %v1367_v60 }
  0x49   : > { %818 = vmatpush2.bf16.msra.mxu0 %v1369_v62 }
  0x4a   : > { %891 = vmatpush2.bf16.msra.mxu1 %v1370_v63  ;;  %819 = vmatprep.subr.bf16.mxu0 %v1371_v2 }
  0x4b   : > { %892 = vmatprep.subr.bf16.mxu1 %v1373_v3 }
  0x4d   : > { %820 = vmatpush2.bf16.msra.mxu0 %v1375_v6 }
  0x4e   : > { %893 = vmatpush2.bf16.msra.mxu1 %v1376_v7  ;;  %943 = vmatprep.subr.bf16.mxu0 %v1385_v8 }
  0x4f   : > { %1261 = vmatprep.subr.bf16.mxu1 %v1385_v8 }
  0x50   : > { %822 = vmatmul.mubr.bf16.vlgmr.msra.gmra.mxu0 %v1377_v9 }
  0x51   : > { %895 = vmatmul.mubr.bf16.vlgmr.msra.gmra.mxu1 %v1380_v10  ;;  %944 = vmatpush1.bf16.msra.mxu0 %v1383_v13 }
  0x52   : > { %1265 = vmatpush1.bf16.msra.mxu1 %v1383_v13  ;;  %831 = vmatprep.mubr.bf16.mxu0 %v1386_v14 }
  0x53   : > { %904 = vmatprep.mubr.bf16.mxu1 %v1388_v15  ;;  %945 = vmatprep.subr.bf16.mxu0 %v1394_v16 }
  0x54   : > { %1262 = vmatprep.subr.bf16.mxu1 %v1394_v16 }
  0x55   : > { %946 = vmatpush1.bf16.msra.mxu0 %v1392_v17 }
  0x56   : > { %1266 = vmatpush1.bf16.msra.mxu1 %v1392_v17  ;;  %947 = vmatprep.subr.bf16.mxu0 %v1403_v20 }
  0x57   : > { %1263 = vmatprep.subr.bf16.mxu1 %v1403_v20 }
  0x58   : > { %832 = vmatmul.mubr.bf16.gmra.mxu0 %v1390_v21 }
  0x59   : > { %905 = vmatmul.mubr.bf16.gmra.mxu1 %v1391_v22  ;;  %841 = vmatprep.mubr.bf16.mxu0 %v1395_v23 }
  0x5a   : > { %914 = vmatprep.mubr.bf16.mxu1 %v1397_v24  ;;  %948 = vmatpush1.bf16.msra.mxu0 %v1401_v25 }
  0x5b   : > { %1267 = vmatpush1.bf16.msra.mxu1 %v1401_v25  ;;  %949 = vmatprep.subr.bf16.mxu0 %v1412_v26 }
  0x5c   : > { %1264 = vmatprep.subr.bf16.mxu1 %v1412_v26 }
  0x5e   : > { %950 = vmatpush1.bf16.msra.mxu0 %v1410_v27 }
  0x5f   : > { %1268 = vmatpush1.bf16.msra.mxu1 %v1410_v27 }
  0x60   : > { %842 = vmatmul.mubr.bf16.gmra.mxu0 %v1399_v28 }
  0x61   : > { %915 = vmatmul.mubr.bf16.gmra.mxu1 %v1400_v29  ;;  %851 = vmatprep.mubr.bf16.mxu0 %v1404_v30 }
  0x62   : > { %924 = vmatprep.mubr.bf16.mxu1 %v1406_v31 }
  0x68   : > { %852 = vmatmul.mubr.bf16.gmra.mxu0 %v1408_v32 }
  0x69   : > { %925 = vmatmul.mubr.bf16.gmra.mxu1 %v1409_v33  ;;  %967 = vmatprep.mubr.bf16.mxu0 %v1425_v1 }
  0x6a   : > { %987 = vmatprep.mubr.bf16.mxu1 %v1425_v1 }
  0x70   : > { %1238 = vmatmul.mubr.msk.bf16.vlgmr.msra.gmra.mxu0 %vm776_vm0, %v1413_v34 }
  0x71   : > { %1240 = vmatmul.mubr.msk.bf16.vlgmr.msra.gmra.mxu1 %vm776_vm0, %v1414_v35  ;;  %977 = vmatprep.mubr.bf16.mxu0 %v1425_v1 }
  0x72   : > { %997 = vmatprep.mubr.bf16.mxu1 %v1425_v1 }
  0x78   : > { %1239 = vmatmul.mubr.msk.bf16.gmra.mxu0 %vm776_vm0, %v1415_v36 }
  0x79   : > { %1241 = vmatmul.mubr.msk.bf16.gmra.mxu1 %vm776_vm0, %v1416_v37 }
  0x89   : > { %v279_v51 = vpop.permute.xlu0 %278  ;;  %v289_v59 = vpop.permute.xlu1 %288 }
  0x9f   : > { %v294_v4 = vpop.permute.xlu1 %293 }
  0xa2   : > { %v284_v58 = vpop.permute.xlu0 %283 }
  0xa3   : > { %v304_v13 = vpop.permute.xlu1 %303 }
  0xa6   : > { %v299_v0 = vpop.permute.xlu0 %298 }
  0xaa   : > { %v309_v19 = vpop.permute.xlu0 %308 }
 0x110   : > { %v823_v38 = vpop.f32.mrf.mxu0 }
 0x111   : > { %v896_v39 = vpop.f32.mrf.mxu1  ;;  %v824_v7 = vadd.f32 %v823_v38, %v279_v51 }
 0x112   : > { %v825_v40 = vpop.f32.mrf.mxu0 }
 0x113   : > { %v898_v41 = vpop.f32.mrf.mxu1  ;;  %v826_v11 = vadd.f32 %v825_v40, %v279_v51  ;;  %v897_v16 = vadd.f32 %v896_v39, %v824_v7 }
 0x114   : > { %v827_v42 = vpop.f32.mrf.mxu0 }
 0x115   : > { %v900_v43 = vpop.f32.mrf.mxu1  ;;  %v828_v17 = vadd.f32 %v827_v42, %v284_v58  ;;  %v899_v25 = vadd.f32 %v898_v41, %v826_v11 }
 0x116   : > { %v829_v44 = vpop.f32.mrf.mxu0 }
 0x117   : > { %v902_v45 = vpop.f32.mrf.mxu1  ;;  %v830_v20 = vadd.f32 %v829_v44, %v284_v58  ;;  %v901_v33 = vadd.f32 %v900_v43, %v828_v17  ;;  %v314_v44 = vpop.permute.xlu1 %313 }
 0x118   : > { %v833_v46 = vpop.f32.mrf.mxu0 }
 0x119   : > { %v906_v1 = vpop.f32.mrf.mxu1  ;;  %v834_v21 = vadd.f32 %v833_v46, %v289_v59  ;;  %v903_v37 = vadd.f32 %v902_v45, %v830_v20 }
 0x11a   : > { %v835_v47 = vpop.f32.mrf.mxu0 }
 0x11b   : > { %v1624_v48 = vpop.f32.mrf.mxu1  ;;  %v836_v29 = vadd.f32 %v835_v47, %v289_v59  ;;  %v907_v38 = vadd.f32 %v906_v1, %v834_v21 }
 0x11c   : > { %v1626_v49 = vpop.f32.mrf.mxu0 }
 0x11d   : > { %v1628_v50 = vpop.f32.mrf.mxu1 }
 0x11e   : > { %v1630_v52 = vpop.f32.mrf.mxu0 }
 0x11f   : > { %v1632_v53 = vpop.f32.mrf.mxu1 }
 0x120   : > { %v843_v54 = vpop.f32.mrf.mxu0 }
 0x121   : > { %v916_v55 = vpop.f32.mrf.mxu1  ;;  %v844_v8 = vadd.f32 %v843_v54, %v299_v0 }
 0x122   : > { %v845_v56 = vpop.f32.mrf.mxu0 }
 0x123   : > { %v918_v57 = vpop.f32.mrf.mxu1  ;;  %v846_v12 = vadd.f32 %v845_v56, %v299_v0  ;;  %v917_v18 = vadd.f32 %v916_v55, %v844_v8  ;;  %v909_v55 = vadd.f32 %v1624_v48, %v836_v29  ;;  %v838_v48 = vadd.f32 %v1626_v49, %v294_v4 }
 0x124   : > { %v847_v60 = vpop.f32.mrf.mxu0 }
 0x125   : > { %v920_v61 = vpop.f32.mrf.mxu1  ;;  %v848_v22 = vadd.f32 %v847_v60, %v304_v13  ;;  %v919_v26 = vadd.f32 %v918_v57, %v846_v12 }
 0x126   : > { %v849_v62 = vpop.f32.mrf.mxu0 }
 0x127   : > { %v922_v63 = vpop.f32.mrf.mxu1  ;;  %v850_v30 = vadd.f32 %v849_v62, %v304_v13  ;;  %v921_v39 = vadd.f32 %v920_v61, %v848_v22  ;;  %v840_v62 = vadd.f32 %v1630_v52, %v294_v4 }
 0x128   : > { %v853_v2 = vpop.f32.mrf.mxu0 }
 0x129   : > { %v926_v3 = vpop.f32.mrf.mxu1  ;;  %v854_v34 = vadd.f32 %v853_v2, %v309_v19  ;;  %v923_v56 = vadd.f32 %v922_v63, %v850_v30 }
 0x12a   : > { %v855_v5 = vpop.f32.mrf.mxu0 }
 0x12b   : > { %v1634_v6 = vpop.f32.mrf.mxu1  ;;  %v856_v40 = vadd.f32 %v855_v5, %v309_v19  ;;  %v927_v59 = vadd.f32 %v926_v3, %v854_v34 }
 0x12c   : > { %v857_v9 = vpop.f32.mrf.mxu0 }
 0x12d   : > { %v1636_v10 = vpop.f32.mrf.mxu1  ;;  %v858_v63 = vadd.f32 %v857_v9, %v314_v44  ;;  %v929_v8 = vadd.f32 %v1634_v6, %v856_v40  ;;  %v911_v6 = vadd.f32 %v1628_v50, %v838_v48 }
 0x12e   : > { %v859_v14 = vpop.f32.mrf.mxu0 }
 0x12f   : > { %v1638_v15 = vpop.f32.mrf.mxu1  ;;  %v860_v11 = vadd.f32 %v859_v14, %v314_v44  ;;  %v931_v14 = vadd.f32 %v1636_v10, %v858_v63 }
 0x130   : > { %v969_v23 = vpop.f32.mrf.mxu0 }
 0x131   : > { %v989_v24 = vpop.f32.mrf.mxu1  ;;  %v970_v27 = vadd.f32 %v969_v23, %v897_v16 }
 0x132   : > { %v990_v28 = vadd.f32 %v989_v24, %v917_v18  ;;  %v971_v31 = vpop.f32.mrf.mxu0 }
 0x133   : > { %v991_v32 = vpop.f32.mrf.mxu1  ;;  %v972_v35 = vadd.f32 %v971_v31, %v899_v25  ;;  %v1008_v46 = vmax.f32 %v970_v27, 0.0  ;;  %v913_v27 = vadd.f32 %v1632_v53, %v840_v62 }
 0x134   : > { %v992_v36 = vadd.f32 %v991_v32, %v919_v26  ;;  %v973_v42 = vpop.f32.mrf.mxu0  ;;  %v1016_v51 = vmax.f32 %v990_v28, 0.0  ;;  %v933_v28 = vadd.f32 %v1638_v15, %v860_v11 }
 0x135   : > { %v993_v41 = vpop.f32.mrf.mxu1  ;;  %v1009_v47 = vmax.f32 %v972_v35, 0.0  ;;  %v974_v45 = vadd.f32 %v973_v42, %v901_v33 }
 0x136   : > { %v1017_v54 = vmax.f32 %v992_v36, 0.0  ;;  %v994_v1 = vadd.f32 %v993_v41, %v921_v39  ;;  %v975_v57 = vpop.f32.mrf.mxu0 }
 0x137   : > { %v995_v58 = vpop.f32.mrf.mxu1  ;;  %v1253_v60 = vpack.c.bf16 %v1009_v47, %v1008_v46  ;;  %v976_v0 = vadd.f32 %v975_v57, %v903_v37  ;;  %v1010_v12 = vmax.f32 %v974_v45, 0.0 }
 0x138   : > { %v1257_v61 = vpack.c.bf16 %v1017_v54, %v1016_v51  ;;  %v996_v2 = vadd.f32 %v995_v58, %v923_v56  ;;  %v979_v5 = vpop.f32.mrf.mxu0  ;;  %v1018_v13 = vmax.f32 %v994_v1, 0.0 }
 0x139   : > { %v999_v7 = vpop.f32.mrf.mxu1  ;;  %1075 = vst.msk [vmem:[%s1645_s13] sm:$0xff] %vm1649_vm3, %v1253_v60  ;;  %v980_v49 = vadd.f32 %v979_v5, %v907_v38  ;;  %v1011_v16 = vmax.f32 %v976_v0, 0.0 }
 0x13a   : > { %1079 = vst.msk [vmem:[%s1645_s13 + $0x20] sm:$0xff] %vm1649_vm3, %v1257_v61  ;;  %v1000_v3 = vadd.f32 %v999_v7, %v927_v59  ;;  %v1019_v52 = vmax.f32 %v996_v2, 0.0  ;;  %v981_v4 = vpop.f32.mrf.mxu0 }
 0x13b   : > { %v1001_v9 = vpop.f32.mrf.mxu1  ;;  %v982_v17 = vadd.f32 %v981_v4, %v909_v55  ;;  %v1254_v19 = vpack.c.bf16 %v1011_v16, %v1010_v12  ;;  %v1012_v23 = vmax.f32 %v980_v49, 0.0 }
 0x13c   : > { %v1002_v18 = vadd.f32 %v1001_v9, %v929_v8  ;;  %v1258_v20 = vpack.c.bf16 %v1019_v52, %v1018_v13  ;;  %v983_v21 = vpop.f32.mrf.mxu0  ;;  %v1020_v24 = vmax.f32 %v1000_v3, 0.0 }
 0x13d   : > { %v1003_v22 = vpop.f32.mrf.mxu1  ;;  %v1013_v25 = vmax.f32 %v982_v17, 0.0  ;;  %1076 = vst.msk [vmem:[%s1645_s13 + $0x8] sm:$0xff] %vm1649_vm3, %v1254_v19  ;;  %v984_v50 = vadd.f32 %v983_v21, %v911_v6 }
 0x13e   : > { %v1021_v26 = vmax.f32 %v1002_v18, 0.0  ;;  %1080 = vst.msk [vmem:[%s1645_s13 + $0x28] sm:$0xff] %vm1649_vm3, %v1258_v20  ;;  %v1004_v10 = vadd.f32 %v1003_v22, %v931_v14  ;;  %v985_v29 = vpop.f32.mrf.mxu0 }
 0x13f   : > { %v1005_v30 = vpop.f32.mrf.mxu1  ;;  %v1255_v31 = vpack.c.bf16 %v1013_v25, %v1012_v23  ;;  %v986_v33 = vadd.f32 %v985_v29, %v913_v27  ;;  %v1014_v53 = vmax.f32 %v984_v50, 0.0 }
 0x140   : > { %v1259_v32 = vpack.c.bf16 %v1021_v26, %v1020_v24  ;;  %v1006_v34 = vadd.f32 %v1005_v30, %v933_v28  ;;  %v1022_v15 = vmax.f32 %v1004_v10, 0.0 }
 0x141   : > { %1077 = vst.msk [vmem:[%s1645_s13 + $0x10] sm:$0xff] %vm1649_vm3, %v1255_v31  ;;  %v1015_v35 = vmax.f32 %v986_v33, 0.0 }
 0x142   : > { %1081 = vst.msk [vmem:[%s1645_s13 + $0x30] sm:$0xff] %vm1649_vm3, %v1259_v32  ;;  %v1023_v36 = vmax.f32 %v1006_v34, 0.0 }
 0x143   : > { %v1256_v37 = vpack.c.bf16 %v1015_v35, %v1014_v53 }
 0x144   : > { %v1260_v38 = vpack.c.bf16 %v1023_v36, %v1022_v15 }
 0x145   : > { %1078 = vst.msk [vmem:[%s1645_s13 + $0x18] sm:$0xff] %vm1649_vm3, %v1256_v37 }
 0x146   : > { %1082 = vst.msk [vmem:[%s1645_s13 + $0x38] sm:$0xff] %vm1649_vm3, %v1260_v38 }
 0x147 PF: > { %s13_s12 = sadd.s32 1, %s1423_s12  }
 0x148   : > { %p10_p4 = scmp.ge.s32.totalorder %s13_s12, 4  }
 0x14a   :  { %12 = sbr.rel (!%p10_p4) target bundleno = 1 (0x1), region = 62 }

// kernel: cnn_actor_forward.7
= control target key start
LH: loop header
LB: loop body
LE: loop exit
PB: predicated region body
PF: predicated region fallthrough
CT: control target
= control target key end

     0   :  { %12 = vsyncpa [#allocation4], 0  ;;  %s13824_s24 = smov 0   ;;  %s15899_s0 = inlined_call_operand.vmem [shape: bf16[2,9216], index: 0, kind: input, shape index: {}]   ;;  %s15900_s1 = inlined_call_operand.vmem [shape: bf16[9216,512], index: 1, kind: input, shape index: {}]   ;;  %s15901_s2 = inlined_call_operand.vmem [shape: f32[1,512], index: 2, kind: input, shape index: {}]   ;;  %s15902_s3 = inlined_call_operand.vmem [shape: bf16[512,512], index: 3, kind: input, shape index: {}]   ;;  %s15903_s4 = inlined_call_operand.vmem [shape: f32[1,512], index: 4, kind: input, shape index: {}]   ;;  %s15904_s5 = inlined_call_operand.vmem [shape: bf16[512,128], index: 5, kind: input, shape index: {}]   ;;  %s15905_s6 = inlined_call_operand.vmem [shape: f32[1,128], index: 6, kind: input, shape index: {}]   ;;  %s15906_s7 = inlined_call_operand.hbm [shape: f32[2,128], index: 7, kind: output, shape index: {}]  }
   0x1 LB: > { %s13830_s25 = sadd.s32 4294967295, %s13778_s24   ;;  %p10402_p0 = scmp.ge.s32.totalorder %s13778_s24, 1  ;;  %s13778_s24 = sphi %s13824_s24, %s18_s24  }
   0x2   : > { %p245_p1 = scmp.lt.s32.totalorder %s13778_s24, 3 }
   0x4   : > { %p246_p2 = pnand %p10402_p0, %p245_p1 }
   0x5   : > { %s277_s26 = smul.u32 (!%p246_p2), 36, %s13830_s25  ;;  %p10405_p5 = scmp.ne.s32.totalorder (!%p246_p2), %s13830_s25, 0 }
   0x6   : > { %249 = sbr.rel (%p246_p2) target bundleno = 1927 (0x787), region = 48 }
   0x7   : > { %s282_s27 = smul.u32 (!%p246_p2), 576, %s13830_s25  ;;  %p278_p3 = scmp.lt.s32.totalorder (!%p246_p2), %s277_s26, 71 }
   0x9   : > { %p283_p4 = scmp.lt.s32.totalorder (!%p246_p2), %s282_s27, 1151 }
   0xb   : > { %s15908_s26 = smov (!%p278_p3, %s277_s26), 71  ;;  %s15910_s27 = smov (!%p283_p4, %s282_s27), 1151 }
   0xc   : > { %s13839_s30 = scalar_lea.vmem %s15899_s0, %s15908_s26  ;;  %s11725_s8 = sshll.u32 %s15910_s27, 4 }
   0xd   : > { %s13844_s11 = scalar_lea.vmem %s15900_s1, %s11725_s8  ;;  %293 = sbr.rel (%p10405_p5) target bundleno = 20 (0x14), region = 52 }
  0x12   : > { %v13780_v0 = vmov 0.0  }
  0x13   : > { %294 = vst [vmem:[#allocation2] sm:$0xff] %v13780_v0 }
  0x14 PF: > { %v11788_v1 = vld [vmem:[%s13844_s11 + $0xe4] ss:$16 sps:$4 sm:$0xff]   ;;  %v11792_v3 = vld [vmem:[%s13844_s11 + $0xe0] ss:$16 sps:$4 sm:$0xff]   ;;  %v13781_v37 = vmov 1966171168   ;;  %v1462_v39 = vlaneseq }
  0x15   : > { %v11790_v2 = vld [vmem:[%s13844_s11 + $0x2e4] ss:$16 sps:$4 sm:$0xff]   ;;  %7474 = vmatprep.subr.bf16.mxu0 %v11788_v1  ;;  %v11793_v4 = vld [vmem:[%s13844_s11 + $0x2e0] ss:$16 sps:$4 sm:$0xff]   ;;  %v1460_v38 = vunpack.c.l.s4 %v13781_v37  ;;  %p11559_p6 = scmp.ne.s32.totalorder %s13830_s25, 1 }
  0x16   : > { %7515 = vmatprep.subr.bf16.mxu1 %v11790_v2  ;;  %v11794_v5 = vld [vmem:[%s13844_s11 + $0xc4] ss:$16 sps:$4 sm:$0xff]   ;;  %7475 = vmatpush1.bf16.msra.mxu0 %v11792_v3  ;;  %v11798_v7 = vld [vmem:[%s13844_s11 + $0xc0] ss:$16 sps:$4 sm:$0xff]   ;;  %v13886_v44 = vshrl.u32 %v1462_v39, 7 }
  0x17   : > { %7516 = vmatpush1.bf16.msra.mxu1 %v11793_v4  ;;  %v11796_v6 = vld [vmem:[%s13844_s11 + $0x2c4] ss:$16 sps:$4 sm:$0xff]   ;;  %7476 = vmatprep.subr.bf16.mxu0 %v11794_v5  ;;  %v11799_v8 = vld [vmem:[%s13844_s11 + $0x2c0] ss:$16 sps:$4 sm:$0xff]   ;;  %v1461_v43 = vunpack.c.0.s8 %v1460_v38 }
  0x18   : > { %7517 = vmatprep.subr.bf16.mxu1 %v11796_v6  ;;  %v11800_v9 = vld [vmem:[%s13844_s11 + $0xa4] ss:$16 sps:$4 sm:$0xff]   ;;  %v11804_v11 = vld [vmem:[%s13844_s11 + $0xa0] ss:$16 sps:$4 sm:$0xff]  }
  0x19   : > { %v11802_v10 = vld [vmem:[%s13844_s11 + $0x2a4] ss:$16 sps:$4 sm:$0xff]   ;;  %v11805_v12 = vld [vmem:[%s13844_s11 + $0x2a0] ss:$16 sps:$4 sm:$0xff]   ;;  %v13894_v50 = vsub.s32 %v1461_v43, %v13886_v44 }
  0x1a   : > { %7477 = vmatpush1.bf16.msra.mxu0 %v11798_v7  ;;  %v11806_v13 = vld [vmem:[%s13844_s11 + $0x84] ss:$16 sps:$4 sm:$0xff]   ;;  %v11810_v15 = vld [vmem:[%s13844_s11 + $0x80] ss:$16 sps:$4 sm:$0xff]  }
  0x1b   : > { %7518 = vmatpush1.bf16.msra.mxu1 %v11799_v8  ;;  %7478 = vmatprep.subr.bf16.mxu0 %v11800_v9  ;;  %v11808_v14 = vld [vmem:[%s13844_s11 + $0x284] ss:$16 sps:$4 sm:$0xff]   ;;  %v11811_v16 = vld [vmem:[%s13844_s11 + $0x280] ss:$16 sps:$4 sm:$0xff]  }
  0x1c   : > { %7519 = vmatprep.subr.bf16.mxu1 %v11802_v10  ;;  %v11812_v17 = vld [vmem:[%s13844_s11 + $0x64] ss:$16 sps:$4 sm:$0xff]   ;;  %v11816_v19 = vld [vmem:[%s13844_s11 + $0x60] ss:$16 sps:$4 sm:$0xff]  }
  0x1d   : > { %v11814_v18 = vld [vmem:[%s13844_s11 + $0x264] ss:$16 sps:$4 sm:$0xff]   ;;  %v11817_v20 = vld [vmem:[%s13844_s11 + $0x260] ss:$16 sps:$4 sm:$0xff]  }
  0x1e   : > { %7479 = vmatpush1.bf16.msra.mxu0 %v11804_v11  ;;  %v11818_v21 = vld [vmem:[%s13844_s11 + $0x44] ss:$16 sps:$4 sm:$0xff]   ;;  %v11822_v23 = vld [vmem:[%s13844_s11 + $0x40] ss:$16 sps:$4 sm:$0xff]  }
  0x1f   : > { %7520 = vmatpush1.bf16.msra.mxu1 %v11805_v12  ;;  %7480 = vmatprep.subr.bf16.mxu0 %v11806_v13  ;;  %v11820_v22 = vld [vmem:[%s13844_s11 + $0x244] ss:$16 sps:$4 sm:$0xff]   ;;  %v11823_v24 = vld [vmem:[%s13844_s11 + $0x240] ss:$16 sps:$4 sm:$0xff]  }
  0x20   : > { %7521 = vmatprep.subr.bf16.mxu1 %v11808_v14  ;;  %v11824_v25 = vld [vmem:[%s13844_s11 + $0x24] ss:$16 sps:$4 sm:$0xff]   ;;  %v11828_v27 = vld [vmem:[%s13844_s11 + $0x20] ss:$16 sps:$4 sm:$0xff]  }
  0x21   : > { %v11826_v26 = vld [vmem:[%s13844_s11 + $0x224] ss:$16 sps:$4 sm:$0xff]   ;;  %v11829_v28 = vld [vmem:[%s13844_s11 + $0x220] ss:$16 sps:$4 sm:$0xff]  }
  0x22   : > { %7481 = vmatpush1.bf16.msra.mxu0 %v11810_v15  ;;  %v11830_v29 = vld [vmem:[%s13844_s11 + $0x4] ss:$16 sps:$4 sm:$0xff]   ;;  %v11834_v31 = vld [vmem:[%s13844_s11] ss:$16 sps:$4 sm:$0xff]  }
  0x23   : > { %7522 = vmatpush1.bf16.msra.mxu1 %v11811_v16  ;;  %7482 = vmatprep.subr.bf16.mxu0 %v11812_v17  ;;  %v11832_v30 = vld [vmem:[%s13844_s11 + $0x204] ss:$16 sps:$4 sm:$0xff]   ;;  %v11835_v32 = vld [vmem:[%s13844_s11 + $0x200] ss:$16 sps:$4 sm:$0xff]  }
  0x24   : > { %7523 = vmatprep.subr.bf16.mxu1 %v11814_v18  ;;  %v11836_v33 = vld [vmem:[%s13844_s11 + $0x1e4] ss:$16 sps:$4 sm:$0xff]   ;;  %v11840_v35 = vld [vmem:[%s13844_s11 + $0x1e0] ss:$16 sps:$4 sm:$0xff]  }
  0x25   : > { %v11838_v34 = vld [vmem:[%s13844_s11 + $0x3e4] ss:$16 sps:$4 sm:$0xff]   ;;  %v11841_v36 = vld [vmem:[%s13844_s11 + $0x3e0] ss:$16 sps:$4 sm:$0xff]  }
  0x26   : > { %7483 = vmatpush1.bf16.msra.mxu0 %v11816_v19  ;;  %v11842_v40 = vld [vmem:[%s13844_s11 + $0x1c4] ss:$16 sps:$4 sm:$0xff]   ;;  %v11846_v42 = vld [vmem:[%s13844_s11 + $0x1c0] ss:$16 sps:$4 sm:$0xff]  }
  0x27   : > { %7524 = vmatpush1.bf16.msra.mxu1 %v11817_v20  ;;  %7484 = vmatprep.subr.bf16.mxu0 %v11818_v21  ;;  %v11844_v41 = vld [vmem:[%s13844_s11 + $0x3c4] ss:$16 sps:$4 sm:$0xff]   ;;  %v11847_v45 = vld [vmem:[%s13844_s11 + $0x3c0] ss:$16 sps:$4 sm:$0xff]  }
  0x28   : > { %7525 = vmatprep.subr.bf16.mxu1 %v11820_v22  ;;  %v11848_v46 = vld [vmem:[%s13844_s11 + $0x1a4] ss:$16 sps:$4 sm:$0xff]   ;;  %v11852_v48 = vld [vmem:[%s13844_s11 + $0x1a0] ss:$16 sps:$4 sm:$0xff]  }
  0x29   : > { %v11850_v47 = vld [vmem:[%s13844_s11 + $0x3a4] ss:$16 sps:$4 sm:$0xff]   ;;  %v11853_v49 = vld [vmem:[%s13844_s11 + $0x3a0] ss:$16 sps:$4 sm:$0xff]  }
  0x2a   : > { %7485 = vmatpush1.bf16.msra.mxu0 %v11822_v23  ;;  %v11854_v51 = vld [vmem:[%s13844_s11 + $0x184] ss:$16 sps:$4 sm:$0xff]   ;;  %v11858_v54 = vld [vmem:[%s13844_s11 + $0x180] ss:$16 sps:$4 sm:$0xff]  }
  0x2b   : > { %7526 = vmatpush1.bf16.msra.mxu1 %v11823_v24  ;;  %7486 = vmatprep.subr.bf16.mxu0 %v11824_v25  ;;  %v11856_v52 = vld [vmem:[%s13844_s11 + $0x384] ss:$16 sps:$4 sm:$0xff]   ;;  %v11859_v56 = vld [vmem:[%s13844_s11 + $0x380] ss:$16 sps:$4 sm:$0xff]  }
  0x2c   : > { %7527 = vmatprep.subr.bf16.mxu1 %v11826_v26  ;;  %v296_v53 = vld [vmem:[%s13839_s30] sm:$0xff] }
  0x2d   : > { %v1465_v55 = vrot.slane %v296_v53, %v13894_v50  ;;  %v11860_v57 = vld [vmem:[%s13844_s11 + $0x164] ss:$16 sps:$4 sm:$0xff]   ;;  %v11864_v60 = vld [vmem:[%s13844_s11 + $0x160] ss:$16 sps:$4 sm:$0xff]   ;;  %v1458_v2 = vcombine.high %v296_v53, %v296_v53 }
  0x2e   : > { %7487 = vmatpush1.bf16.msra.mxu0 %v11828_v27  ;;  %v11862_v58 = vld [vmem:[%s13844_s11 + $0x364] ss:$16 sps:$4 sm:$0xff]   ;;  %v11865_v62 = vld [vmem:[%s13844_s11 + $0x360] ss:$16 sps:$4 sm:$0xff]  }
  0x2f   : > { %7528 = vmatpush1.bf16.msra.mxu1 %v11829_v28  ;;  %7488 = vmatprep.subr.bf16.mxu0 %v11830_v29  ;;  %v1473_v59 = vcombine.high %v1465_v55, %v1465_v55  ;;  %v11866_v63 = vld [vmem:[%s13844_s11 + $0x144] ss:$16 sps:$4 sm:$0xff]   ;;  %v11870_v3 = vld [vmem:[%s13844_s11 + $0x140] ss:$16 sps:$4 sm:$0xff]   ;;  %v13922_v7 = vrot.slane %v1458_v2, %v13894_v50  ;;  %v13932_v14 = vrot.slane %v1465_v55, %v13894_v50 }
  0x30   : > { %7529 = vmatprep.subr.bf16.mxu1 %v11832_v30  ;;  %v11868_v0 = vld [vmem:[%s13844_s11 + $0x344] ss:$16 sps:$4 sm:$0xff]   ;;  %v11871_v4 = vld [vmem:[%s13844_s11 + $0x340] ss:$16 sps:$4 sm:$0xff]  }
  0x31   : > { %v13906_v61 = vrot.slane %v1473_v59, %v13894_v50  ;;  %v11872_v5 = vld [vmem:[%s13844_s11 + $0x124] ss:$16 sps:$4 sm:$0xff]   ;;  %v11876_v8 = vld [vmem:[%s13844_s11 + $0x120] ss:$16 sps:$4 sm:$0xff]   ;;  %v1474_v12 = vcombine.high %v13922_v7, %v13922_v7  ;;  %v13942_v19 = vcombine.high %v13932_v14, %v13932_v14 }
  0x32   : > { %7489 = vmatpush1.bf16.msra.mxu0 %v11834_v31  ;;  %v11874_v6 = vld [vmem:[%s13844_s11 + $0x324] ss:$16 sps:$4 sm:$0xff]   ;;  %v11877_v9 = vld [vmem:[%s13844_s11 + $0x320] ss:$16 sps:$4 sm:$0xff]  }
  0x33   : > { %7530 = vmatpush1.bf16.msra.mxu1 %v11835_v32  ;;  %7490 = vmatprep.subr.bf16.mxu0 %v11836_v33  ;;  %v13913_v1 = vcombine.high %v13906_v61, %v13906_v61  ;;  %v11878_v10 = vld [vmem:[%s13844_s11 + $0x104] ss:$16 sps:$4 sm:$0xff]   ;;  %v11882_v13 = vld [vmem:[%s13844_s11 + $0x100] ss:$16 sps:$4 sm:$0xff]   ;;  %v13938_v18 = vrot.slane %v1474_v12, %v13894_v50 }
  0x34   : > { %7531 = vmatprep.subr.bf16.mxu1 %v11838_v34  ;;  %7506 = vmatprep.mubr.bf16.mxu0 %v13906_v61  ;;  %v11880_v11 = vld [vmem:[%s13844_s11 + $0x304] ss:$16 sps:$4 sm:$0xff]   ;;  %v11883_v15 = vld [vmem:[%s13844_s11 + $0x300] ss:$16 sps:$4 sm:$0xff]  }
  0x35   : > { %7547 = vmatprep.mubr.bf16.mxu1 %v13913_v1  ;;  %v11886_v16 = vld [vmem:[%s13844_s11 + $0x4e4] ss:$16 sps:$4 sm:$0xff]   ;;  %v11884_v20 = vld [vmem:[%s13844_s11 + $0x4e0] ss:$16 sps:$4 sm:$0xff]   ;;  %v13950_v24 = vcombine.high %v13938_v18, %v13938_v18 }
  0x36   : > { %7491 = vmatpush2.bf16.msra.mxu0 %v11840_v35  ;;  %v11889_v17 = vld [vmem:[%s13844_s11 + $0x6e4] ss:$16 sps:$4 sm:$0xff]   ;;  %v11887_v21 = vld [vmem:[%s13844_s11 + $0x6e0] ss:$16 sps:$4 sm:$0xff]  }
  0x37   : > { %7532 = vmatpush2.bf16.msra.mxu1 %v11841_v36  ;;  %7492 = vmatprep.subr.bf16.mxu0 %v11842_v40  ;;  %v11892_v22 = vld [vmem:[%s13844_s11 + $0x4c4] ss:$16 sps:$4 sm:$0xff]   ;;  %v11890_v25 = vld [vmem:[%s13844_s11 + $0x4c0] ss:$16 sps:$4 sm:$0xff]  }
  0x38   : > { %7533 = vmatprep.subr.bf16.mxu1 %v11844_v41  ;;  %v11895_v23 = vld [vmem:[%s13844_s11 + $0x6c4] ss:$16 sps:$4 sm:$0xff]   ;;  %v11893_v26 = vld [vmem:[%s13844_s11 + $0x6c0] ss:$16 sps:$4 sm:$0xff]  }
  0x39   : > { %v11898_v27 = vld [vmem:[%s13844_s11 + $0x4a4] ss:$16 sps:$4 sm:$0xff]   ;;  %v11896_v29 = vld [vmem:[%s13844_s11 + $0x4a0] ss:$16 sps:$4 sm:$0xff]  }
  0x3a   : > { %7493 = vmatpush2.bf16.msra.mxu0 %v11846_v42  ;;  %v11901_v28 = vld [vmem:[%s13844_s11 + $0x6a4] ss:$16 sps:$4 sm:$0xff]   ;;  %v11899_v30 = vld [vmem:[%s13844_s11 + $0x6a0] ss:$16 sps:$4 sm:$0xff]  }
  0x3b   : > { %7534 = vmatpush2.bf16.msra.mxu1 %v11847_v45  ;;  %7494 = vmatprep.subr.bf16.mxu0 %v11848_v46  ;;  %v11904_v31 = vld [vmem:[%s13844_s11 + $0x484] ss:$16 sps:$4 sm:$0xff]   ;;  %v11902_v33 = vld [vmem:[%s13844_s11 + $0x480] ss:$16 sps:$4 sm:$0xff]  }
  0x3c   : > { %7535 = vmatprep.subr.bf16.mxu1 %v11850_v47  ;;  %v11907_v32 = vld [vmem:[%s13844_s11 + $0x684] ss:$16 sps:$4 sm:$0xff]   ;;  %v11905_v34 = vld [vmem:[%s13844_s11 + $0x680] ss:$16 sps:$4 sm:$0xff]  }
  0x3d   : > { %v11910_v35 = vld [vmem:[%s13844_s11 + $0x464] ss:$16 sps:$4 sm:$0xff]   ;;  %v11908_v37 = vld [vmem:[%s13844_s11 + $0x460] ss:$16 sps:$4 sm:$0xff]  }
  0x3e   : > { %7495 = vmatpush2.bf16.msra.mxu0 %v11852_v48  ;;  %v11913_v36 = vld [vmem:[%s13844_s11 + $0x664] ss:$16 sps:$4 sm:$0xff]   ;;  %v11911_v38 = vld [vmem:[%s13844_s11 + $0x660] ss:$16 sps:$4 sm:$0xff]  }
  0x3f   : > { %7536 = vmatpush2.bf16.msra.mxu1 %v11853_v49  ;;  %7496 = vmatprep.subr.bf16.mxu0 %v11854_v51  ;;  %v11916_v39 = vld [vmem:[%s13844_s11 + $0x444] ss:$16 sps:$4 sm:$0xff]   ;;  %v11914_v41 = vld [vmem:[%s13844_s11 + $0x440] ss:$16 sps:$4 sm:$0xff]  }
  0x40   : > { %7537 = vmatprep.subr.bf16.mxu1 %v11856_v52  ;;  %v11919_v40 = vld [vmem:[%s13844_s11 + $0x644] ss:$16 sps:$4 sm:$0xff]   ;;  %v11917_v42 = vld [vmem:[%s13844_s11 + $0x640] ss:$16 sps:$4 sm:$0xff]  }
  0x41   : > { %v11922_v43 = vld [vmem:[%s13844_s11 + $0x424] ss:$16 sps:$4 sm:$0xff]   ;;  %v11920_v46 = vld [vmem:[%s13844_s11 + $0x420] ss:$16 sps:$4 sm:$0xff]  }
  0x42   : > { %7497 = vmatpush2.bf16.msra.mxu0 %v11858_v54  ;;  %v11925_v45 = vld [vmem:[%s13844_s11 + $0x624] ss:$16 sps:$4 sm:$0xff]   ;;  %v11923_v47 = vld [vmem:[%s13844_s11 + $0x620] ss:$16 sps:$4 sm:$0xff]  }
  0x43   : > { %7538 = vmatpush2.bf16.msra.mxu1 %v11859_v56  ;;  %7498 = vmatprep.subr.bf16.mxu0 %v11860_v57  ;;  %v11928_v48 = vld [vmem:[%s13844_s11 + $0x404] ss:$16 sps:$4 sm:$0xff]   ;;  %v11926_v51 = vld [vmem:[%s13844_s11 + $0x400] ss:$16 sps:$4 sm:$0xff]  }
  0x44   : > { %7539 = vmatprep.subr.bf16.mxu1 %v11862_v58  ;;  %v11931_v49 = vld [vmem:[%s13844_s11 + $0x604] ss:$16 sps:$4 sm:$0xff]   ;;  %v11929_v52 = vld [vmem:[%s13844_s11 + $0x600] ss:$16 sps:$4 sm:$0xff]  }
  0x45   : > { %v11934_v53 = vld [vmem:[%s13844_s11 + $0x5e4] ss:$16 sps:$4 sm:$0xff]   ;;  %v11932_v55 = vld [vmem:[%s13844_s11 + $0x5e0] ss:$16 sps:$4 sm:$0xff]  }
  0x46   : > { %7499 = vmatpush2.bf16.msra.mxu0 %v11864_v60  ;;  %v11937_v54 = vld [vmem:[%s13844_s11 + $0x7e4] ss:$16 sps:$4 sm:$0xff]   ;;  %v11935_v56 = vld [vmem:[%s13844_s11 + $0x7e0] ss:$16 sps:$4 sm:$0xff]  }
  0x47   : > { %7540 = vmatpush2.bf16.msra.mxu1 %v11865_v62  ;;  %7500 = vmatprep.subr.bf16.mxu0 %v11866_v63  ;;  %v11940_v57 = vld [vmem:[%s13844_s11 + $0x5c4] ss:$16 sps:$4 sm:$0xff]   ;;  %v11938_v59 = vld [vmem:[%s13844_s11 + $0x5c0] ss:$16 sps:$4 sm:$0xff]  }
  0x48   : > { %7541 = vmatprep.subr.bf16.mxu1 %v11868_v0  ;;  %v11943_v58 = vld [vmem:[%s13844_s11 + $0x7c4] ss:$16 sps:$4 sm:$0xff]   ;;  %v11941_v60 = vld [vmem:[%s13844_s11 + $0x7c0] ss:$16 sps:$4 sm:$0xff]  }
  0x49   : > { %v11946_v62 = vld [vmem:[%s13844_s11 + $0x5a4] ss:$16 sps:$4 sm:$0xff]   ;;  %v11944_v0 = vld [vmem:[%s13844_s11 + $0x5a0] ss:$16 sps:$4 sm:$0xff]  }
  0x4a   : > { %7501 = vmatpush2.bf16.msra.mxu0 %v11870_v3  ;;  %v11949_v63 = vld [vmem:[%s13844_s11 + $0x7a4] ss:$16 sps:$4 sm:$0xff]   ;;  %v11947_v2 = vld [vmem:[%s13844_s11 + $0x7a0] ss:$16 sps:$4 sm:$0xff]  }
  0x4b   : > { %7542 = vmatpush2.bf16.msra.mxu1 %v11871_v4  ;;  %7502 = vmatprep.subr.bf16.mxu0 %v11872_v5  ;;  %v11952_v3 = vld [vmem:[%s13844_s11 + $0x584] ss:$16 sps:$4 sm:$0xff]   ;;  %v11950_v5 = vld [vmem:[%s13844_s11 + $0x580] ss:$16 sps:$4 sm:$0xff]  }
  0x4c   : > { %7543 = vmatprep.subr.bf16.mxu1 %v11874_v6  ;;  %v11955_v4 = vld [vmem:[%s13844_s11 + $0x784] ss:$16 sps:$4 sm:$0xff]   ;;  %v11953_v6 = vld [vmem:[%s13844_s11 + $0x780] ss:$16 sps:$4 sm:$0xff]  }
  0x4d   : > { %v11964_v12 = vld [vmem:[%s13844_s11 + $0x544] ss:$16 sps:$4 sm:$0xff]  }
  0x4e   : > { %7503 = vmatpush2.bf16.msra.mxu0 %v11876_v8  ;;  %v11958_v8 = vld [vmem:[%s13844_s11 + $0x564] ss:$16 sps:$4 sm:$0xff]  }
  0x4f   : > { %7544 = vmatpush2.bf16.msra.mxu1 %v11877_v9  ;;  %7504 = vmatprep.subr.bf16.mxu0 %v11878_v10  ;;  %v11961_v9 = vld [vmem:[%s13844_s11 + $0x764] ss:$16 sps:$4 sm:$0xff]   ;;  %v11956_v10 = vld [vmem:[%s13844_s11 + $0x560] ss:$16 sps:$4 sm:$0xff]  }
  0x50   : > { %7545 = vmatprep.subr.bf16.mxu1 %v11880_v11  ;;  %v11959_v11 = vld [vmem:[%s13844_s11 + $0x760] ss:$16 sps:$4 sm:$0xff]  }
  0x52   : > { %7505 = vmatpush2.bf16.msra.mxu0 %v11882_v13  ;;  %v11967_v13 = vld [vmem:[%s13844_s11 + $0x744] ss:$16 sps:$4 sm:$0xff]  }
  0x53   : > { %7546 = vmatpush2.bf16.msra.mxu1 %v11883_v15  ;;  %7556 = vmatprep.subr.bf16.mxu0 %v11886_v16  ;;  %v11962_v15 = vld [vmem:[%s13844_s11 + $0x540] ss:$16 sps:$4 sm:$0xff]  }
  0x54   : > { %7597 = vmatprep.subr.bf16.mxu1 %v11889_v17  ;;  %v11965_v16 = vld [vmem:[%s13844_s11 + $0x740] ss:$16 sps:$4 sm:$0xff]   ;;  %v11970_v17 = vld [vmem:[%s13844_s11 + $0x524] ss:$16 sps:$4 sm:$0xff]  }
  0x55   : > { %7507 = vmatmul.mubr.bf16.vlgmr.msra.gmra.mxu0 %v13932_v14 }
  0x56   : > { %7548 = vmatmul.mubr.bf16.vlgmr.msra.gmra.mxu1 %v13942_v19  ;;  %7557 = vmatpush1.bf16.msra.mxu0 %v11884_v20  ;;  %v11973_v20 = vld [vmem:[%s13844_s11 + $0x724] ss:$16 sps:$4 sm:$0xff]  }
  0x57   : > { %7598 = vmatpush1.bf16.msra.mxu1 %v11887_v21  ;;  %7558 = vmatprep.subr.bf16.mxu0 %v11892_v22  ;;  %v11968_v21 = vld [vmem:[%s13844_s11 + $0x520] ss:$16 sps:$4 sm:$0xff]  }
  0x58   : > { %7599 = vmatprep.subr.bf16.mxu1 %v11895_v23  ;;  %7588 = vmatprep.mubr.bf16.mxu0 %v13938_v18  ;;  %v11971_v22 = vld [vmem:[%s13844_s11 + $0x720] ss:$16 sps:$4 sm:$0xff]   ;;  %v11976_v23 = vld [vmem:[%s13844_s11 + $0x504] ss:$16 sps:$4 sm:$0xff]  }
  0x59   : > { %7629 = vmatprep.mubr.bf16.mxu1 %v13950_v24 }
  0x5a   : > { %7559 = vmatpush1.bf16.msra.mxu0 %v11890_v25  ;;  %v11979_v25 = vld [vmem:[%s13844_s11 + $0x704] ss:$16 sps:$4 sm:$0xff]  }
  0x5b   : > { %7600 = vmatpush1.bf16.msra.mxu1 %v11893_v26  ;;  %7560 = vmatprep.subr.bf16.mxu0 %v11898_v27  ;;  %v11974_v26 = vld [vmem:[%s13844_s11 + $0x500] ss:$16 sps:$4 sm:$0xff]   ;;  %v14015_v27 = vrot.slane %v13922_v7, %v13894_v50 }
  0x5c   : > { %7601 = vmatprep.subr.bf16.mxu1 %v11901_v28  ;;  %v11977_v28 = vld [vmem:[%s13844_s11 + $0x700] ss:$16 sps:$4 sm:$0xff]  }
  0x5d   : > { %v11984_v7 = vld [vmem:[%s13844_s11 + $0xae0] ss:$16 sps:$4 sm:$0xff]  }
  0x5e   : > { %7561 = vmatpush1.bf16.msra.mxu0 %v11896_v29  ;;  %v11983_v29 = vld [vmem:[%s13844_s11 + $0x8e4] ss:$16 sps:$4 sm:$0xff]  }
  0x5f   : > { %7602 = vmatpush1.bf16.msra.mxu1 %v11899_v30  ;;  %7562 = vmatprep.subr.bf16.mxu0 %v11904_v31  ;;  %v11986_v30 = vld [vmem:[%s13844_s11 + $0xae4] ss:$16 sps:$4 sm:$0xff]   ;;  %v14022_v31 = vcombine.high %v14015_v27, %v14015_v27 }
  0x60   : > { %7603 = vmatprep.subr.bf16.mxu1 %v11907_v32  ;;  %v11981_v32 = vld [vmem:[%s13844_s11 + $0x8e0] ss:$16 sps:$4 sm:$0xff]  }
  0x62   : > { %7563 = vmatpush1.bf16.msra.mxu0 %v11902_v33  ;;  %v14027_v33 = vld [vmem:[%s13839_s30 + $0x8] sm:$0xff] }
  0x63   : > { %7604 = vmatpush1.bf16.msra.mxu1 %v11905_v34  ;;  %7564 = vmatprep.subr.bf16.mxu0 %v11910_v35  ;;  %v11989_v34 = vld [vmem:[%s13844_s11 + $0x8c4] ss:$16 sps:$4 sm:$0xff]  }
  0x64   : > { %7605 = vmatprep.subr.bf16.mxu1 %v11913_v36  ;;  %v11992_v35 = vld [vmem:[%s13844_s11 + $0xac4] ss:$16 sps:$4 sm:$0xff]   ;;  %v14033_v36 = vrot.slane %v14027_v33, %v13894_v50 }
  0x66   : > { %7565 = vmatpush1.bf16.msra.mxu0 %v11908_v37  ;;  %v1522_v37 = vcombine.high %v14033_v36, %v14033_v36 }
  0x67   : > { %7606 = vmatpush1.bf16.msra.mxu1 %v11911_v38  ;;  %7566 = vmatprep.subr.bf16.mxu0 %v11916_v39  ;;  %v11987_v38 = vld [vmem:[%s13844_s11 + $0x8c0] ss:$16 sps:$4 sm:$0xff]  }
  0x68   : > { %7607 = vmatprep.subr.bf16.mxu1 %v11919_v40  ;;  %v11990_v39 = vld [vmem:[%s13844_s11 + $0xac0] ss:$16 sps:$4 sm:$0xff]   ;;  %v11995_v40 = vld [vmem:[%s13844_s11 + $0x8a4] ss:$16 sps:$4 sm:$0xff]  }
  0x6a   : > { %7567 = vmatpush1.bf16.msra.mxu0 %v11914_v41  ;;  %v11998_v41 = vld [vmem:[%s13844_s11 + $0xaa4] ss:$16 sps:$4 sm:$0xff]  }
  0x6b   : > { %7608 = vmatpush1.bf16.msra.mxu1 %v11917_v42  ;;  %7568 = vmatprep.subr.bf16.mxu0 %v11922_v43  ;;  %v14044_v42 = vrot.slane %v1522_v37, %v13894_v50  ;;  %v12059_v37 = vld [vmem:[%s13844_s11 + $0x940] ss:$16 sps:$4 sm:$0xff]  }
  0x6c   : > { %7609 = vmatprep.subr.bf16.mxu1 %v11925_v45  ;;  %v11993_v45 = vld [vmem:[%s13844_s11 + $0x8a0] ss:$16 sps:$4 sm:$0xff]  }
  0x6d   : > { %v14049_v43 = vcombine.high %v14044_v42, %v14044_v42 }
  0x6e   : > { %7569 = vmatpush1.bf16.msra.mxu0 %v11920_v46  ;;  %v11996_v46 = vld [vmem:[%s13844_s11 + $0xaa0] ss:$16 sps:$4 sm:$0xff]  }
  0x6f   : > { %7610 = vmatpush1.bf16.msra.mxu1 %v11923_v47  ;;  %7570 = vmatprep.subr.bf16.mxu0 %v11928_v48  ;;  %v12001_v47 = vld [vmem:[%s13844_s11 + $0x884] ss:$16 sps:$4 sm:$0xff]  }
  0x70   : > { %7611 = vmatprep.subr.bf16.mxu1 %v11931_v49  ;;  %v12004_v48 = vld [vmem:[%s13844_s11 + $0xa84] ss:$16 sps:$4 sm:$0xff]   ;;  %v11999_v49 = vld [vmem:[%s13844_s11 + $0x880] ss:$16 sps:$4 sm:$0xff]  }
  0x72   : > { %7571 = vmatpush1.bf16.msra.mxu0 %v11926_v51  ;;  %v12002_v51 = vld [vmem:[%s13844_s11 + $0xa80] ss:$16 sps:$4 sm:$0xff]  }
  0x73   : > { %7612 = vmatpush1.bf16.msra.mxu1 %v11929_v52  ;;  %7572 = vmatprep.subr.bf16.mxu0 %v11934_v53  ;;  %v12007_v52 = vld [vmem:[%s13844_s11 + $0x864] ss:$16 sps:$4 sm:$0xff]  }
  0x74   : > { %7613 = vmatprep.subr.bf16.mxu1 %v11937_v54  ;;  %v12010_v53 = vld [vmem:[%s13844_s11 + $0xa64] ss:$16 sps:$4 sm:$0xff]   ;;  %v12005_v54 = vld [vmem:[%s13844_s11 + $0x860] ss:$16 sps:$4 sm:$0xff]  }
  0x76   : > { %7573 = vmatpush2.bf16.msra.mxu0 %v11932_v55  ;;  %v12008_v55 = vld [vmem:[%s13844_s11 + $0xa60] ss:$16 sps:$4 sm:$0xff]  }
  0x77   : > { %7614 = vmatpush2.bf16.msra.mxu1 %v11935_v56  ;;  %7574 = vmatprep.subr.bf16.mxu0 %v11940_v57  ;;  %v12013_v56 = vld [vmem:[%s13844_s11 + $0x844] ss:$16 sps:$4 sm:$0xff]  }
  0x78   : > { %7615 = vmatprep.subr.bf16.mxu1 %v11943_v58  ;;  %v12016_v57 = vld [vmem:[%s13844_s11 + $0xa44] ss:$16 sps:$4 sm:$0xff]   ;;  %v12011_v58 = vld [vmem:[%s13844_s11 + $0x840] ss:$16 sps:$4 sm:$0xff]  }
  0x7a   : > { %7575 = vmatpush2.bf16.msra.mxu0 %v11938_v59  ;;  %v12014_v59 = vld [vmem:[%s13844_s11 + $0xa40] ss:$16 sps:$4 sm:$0xff]  }
  0x7b   : > { %7616 = vmatpush2.bf16.msra.mxu1 %v11941_v60  ;;  %7576 = vmatprep.subr.bf16.mxu0 %v11946_v62  ;;  %v12019_v60 = vld [vmem:[%s13844_s11 + $0x824] ss:$16 sps:$4 sm:$0xff]  }
  0x7c   : > { %7617 = vmatprep.subr.bf16.mxu1 %v11949_v63  ;;  %v12022_v62 = vld [vmem:[%s13844_s11 + $0xa24] ss:$16 sps:$4 sm:$0xff]   ;;  %v12017_v63 = vld [vmem:[%s13844_s11 + $0x820] ss:$16 sps:$4 sm:$0xff]  }
  0x7e   : > { %7577 = vmatpush2.bf16.msra.mxu0 %v11944_v0  ;;  %v12020_v0 = vld [vmem:[%s13844_s11 + $0xa20] ss:$16 sps:$4 sm:$0xff]  }
  0x7f   : > { %7618 = vmatpush2.bf16.msra.mxu1 %v11947_v2  ;;  %7578 = vmatprep.subr.bf16.mxu0 %v11952_v3  ;;  %v12025_v2 = vld [vmem:[%s13844_s11 + $0x804] ss:$16 sps:$4 sm:$0xff]  }
  0x80   : > { %7619 = vmatprep.subr.bf16.mxu1 %v11955_v4  ;;  %v12028_v3 = vld [vmem:[%s13844_s11 + $0xa04] ss:$16 sps:$4 sm:$0xff]   ;;  %v12023_v4 = vld [vmem:[%s13844_s11 + $0x800] ss:$16 sps:$4 sm:$0xff]  }
  0x82   : > { %7579 = vmatpush2.bf16.msra.mxu0 %v11950_v5  ;;  %v12026_v5 = vld [vmem:[%s13844_s11 + $0xa00] ss:$16 sps:$4 sm:$0xff]  }
  0x83   : > { %7620 = vmatpush2.bf16.msra.mxu1 %v11953_v6  ;;  %7580 = vmatprep.subr.bf16.mxu0 %v11958_v8  ;;  %v12031_v6 = vld [vmem:[%s13844_s11 + $0x9e4] ss:$16 sps:$4 sm:$0xff]  }
  0x84   : > { %7621 = vmatprep.subr.bf16.mxu1 %v11961_v9  ;;  %v12034_v8 = vld [vmem:[%s13844_s11 + $0xbe4] ss:$16 sps:$4 sm:$0xff]   ;;  %v12029_v9 = vld [vmem:[%s13844_s11 + $0x9e0] ss:$16 sps:$4 sm:$0xff]  }
  0x86   : > { %7581 = vmatpush2.bf16.msra.mxu0 %v11956_v10  ;;  %v12032_v10 = vld [vmem:[%s13844_s11 + $0xbe0] ss:$16 sps:$4 sm:$0xff]  }
  0x87   : > { %7622 = vmatpush2.bf16.msra.mxu1 %v11959_v11  ;;  %7582 = vmatprep.subr.bf16.mxu0 %v11964_v12  ;;  %v12037_v11 = vld [vmem:[%s13844_s11 + $0x9c4] ss:$16 sps:$4 sm:$0xff]  }
  0x88   : > { %7623 = vmatprep.subr.bf16.mxu1 %v11967_v13  ;;  %v12040_v12 = vld [vmem:[%s13844_s11 + $0xbc4] ss:$16 sps:$4 sm:$0xff]   ;;  %v12035_v13 = vld [vmem:[%s13844_s11 + $0x9c0] ss:$16 sps:$4 sm:$0xff]  }
  0x8a   : > { %7583 = vmatpush2.bf16.msra.mxu0 %v11962_v15  ;;  %v12038_v15 = vld [vmem:[%s13844_s11 + $0xbc0] ss:$16 sps:$4 sm:$0xff]  }
  0x8b   : > { %7624 = vmatpush2.bf16.msra.mxu1 %v11965_v16  ;;  %7584 = vmatprep.subr.bf16.mxu0 %v11970_v17  ;;  %v12043_v16 = vld [vmem:[%s13844_s11 + $0x9a4] ss:$16 sps:$4 sm:$0xff]  }
  0x8c   : > { %7625 = vmatprep.subr.bf16.mxu1 %v11973_v20  ;;  %v12046_v17 = vld [vmem:[%s13844_s11 + $0xba4] ss:$16 sps:$4 sm:$0xff]   ;;  %v12041_v20 = vld [vmem:[%s13844_s11 + $0x9a0] ss:$16 sps:$4 sm:$0xff]  }
  0x8e   : > { %7585 = vmatpush2.bf16.msra.mxu0 %v11968_v21  ;;  %v12044_v21 = vld [vmem:[%s13844_s11 + $0xba0] ss:$16 sps:$4 sm:$0xff]  }
  0x8f   : > { %7626 = vmatpush2.bf16.msra.mxu1 %v11971_v22  ;;  %7586 = vmatprep.subr.bf16.mxu0 %v11976_v23  ;;  %v12049_v22 = vld [vmem:[%s13844_s11 + $0x984] ss:$16 sps:$4 sm:$0xff]  }
  0x90   : > { %7627 = vmatprep.subr.bf16.mxu1 %v11979_v25  ;;  %v12052_v23 = vld [vmem:[%s13844_s11 + $0xb84] ss:$16 sps:$4 sm:$0xff]   ;;  %v12047_v25 = vld [vmem:[%s13844_s11 + $0x980] ss:$16 sps:$4 sm:$0xff]  }
  0x92   : > { %7587 = vmatpush2.bf16.msra.mxu0 %v11974_v26  ;;  %v12050_v26 = vld [vmem:[%s13844_s11 + $0xb80] ss:$16 sps:$4 sm:$0xff]  }
  0x93   : > { %7628 = vmatpush2.bf16.msra.mxu1 %v11977_v28  ;;  %7638 = vmatprep.subr.bf16.mxu0 %v11983_v29  ;;  %v12055_v28 = vld [vmem:[%s13844_s11 + $0x964] ss:$16 sps:$4 sm:$0xff]  }
  0x94   : > { %7679 = vmatprep.subr.bf16.mxu1 %v11986_v30  ;;  %v12058_v29 = vld [vmem:[%s13844_s11 + $0xb64] ss:$16 sps:$4 sm:$0xff]   ;;  %v12053_v30 = vld [vmem:[%s13844_s11 + $0x960] ss:$16 sps:$4 sm:$0xff]  }
  0x95   : > { %7589 = vmatmul.mubr.bf16.vlgmr.msra.gmra.mxu0 %v14015_v27 }
  0x96   : > { %7630 = vmatmul.mubr.bf16.vlgmr.msra.gmra.mxu1 %v14022_v31  ;;  %7639 = vmatpush1.bf16.msra.mxu0 %v11981_v32  ;;  %v12056_v32 = vld [vmem:[%s13844_s11 + $0xb60] ss:$16 sps:$4 sm:$0xff]  }
  0x97   : > { %7680 = vmatpush1.bf16.msra.mxu1 %v11984_v7  ;;  %7640 = vmatprep.subr.bf16.mxu0 %v11989_v34  ;;  %v12061_v7 = vld [vmem:[%s13844_s11 + $0x944] ss:$16 sps:$4 sm:$0xff]  }
  0x98   : > { %7681 = vmatprep.subr.bf16.mxu1 %v11992_v35  ;;  %7670 = vmatprep.mubr.bf16.mxu0 %v14044_v42  ;;  %v12064_v34 = vld [vmem:[%s13844_s11 + $0xb44] ss:$16 sps:$4 sm:$0xff]   ;;  %v1507_v35 = vcombine.high %v14027_v33, %v14027_v33  ;;  %v12065_v33 = vld [vmem:[%s13844_s11 + $0x920] ss:$16 sps:$4 sm:$0xff]  }
  0x99   : > { %7711 = vmatprep.mubr.bf16.mxu1 %v14049_v43 }
  0x9a   : > { %7641 = vmatpush1.bf16.msra.mxu0 %v11987_v38  ;;  %v12062_v38 = vld [vmem:[%s13844_s11 + $0xb40] ss:$16 sps:$4 sm:$0xff]  }
  0x9b   : > { %7682 = vmatpush1.bf16.msra.mxu1 %v11990_v39  ;;  %7642 = vmatprep.subr.bf16.mxu0 %v11995_v40  ;;  %v12067_v39 = vld [vmem:[%s13844_s11 + $0x924] ss:$16 sps:$4 sm:$0xff]  }
  0x9c   : > { %7683 = vmatprep.subr.bf16.mxu1 %v11998_v41  ;;  %v12070_v40 = vld [vmem:[%s13844_s11 + $0xb24] ss:$16 sps:$4 sm:$0xff]   ;;  %v14103_v41 = vrot.slane %v1507_v35, %v13894_v50  ;;  %v12128_v35 = vld [vmem:[%s13844_s11 + $0xfe0] ss:$16 sps:$4 sm:$0xff]  }
  0x9e   : > { %7643 = vmatpush1.bf16.msra.mxu0 %v11993_v45  ;;  %v12068_v45 = vld [vmem:[%s13844_s11 + $0xb20] ss:$16 sps:$4 sm:$0xff]  }
  0x9f   : > { %7684 = vmatpush1.bf16.msra.mxu1 %v11996_v46  ;;  %7644 = vmatprep.subr.bf16.mxu0 %v12001_v47  ;;  %v12073_v46 = vld [vmem:[%s13844_s11 + $0x904] ss:$16 sps:$4 sm:$0xff]  }
  0xa0   : > { %7685 = vmatprep.subr.bf16.mxu1 %v12004_v48  ;;  %v12076_v47 = vld [vmem:[%s13844_s11 + $0xb04] ss:$16 sps:$4 sm:$0xff]   ;;  %v1523_v48 = vcombine.high %v14103_v41, %v14103_v41 }
  0xa2   : > { %7645 = vmatpush1.bf16.msra.mxu0 %v11999_v49  ;;  %v14113_v49 = vrot.slane %v14033_v36, %v13894_v50  ;;  %v12077_v36 = vld [vmem:[%s13844_s11 + $0xce0] ss:$16 sps:$4 sm:$0xff]  }
  0xa3   : > { %7686 = vmatpush1.bf16.msra.mxu1 %v12002_v51  ;;  %7646 = vmatprep.subr.bf16.mxu0 %v12007_v52  ;;  %v12071_v51 = vld [vmem:[%s13844_s11 + $0x900] ss:$16 sps:$4 sm:$0xff]  }
  0xa4   : > { %7687 = vmatprep.subr.bf16.mxu1 %v12010_v53  ;;  %v12074_v52 = vld [vmem:[%s13844_s11 + $0xb00] ss:$16 sps:$4 sm:$0xff]   ;;  %v12079_v53 = vld [vmem:[%s13844_s11 + $0xce4] ss:$16 sps:$4 sm:$0xff]  }
  0xa6   : > { %7647 = vmatpush1.bf16.msra.mxu0 %v12005_v54  ;;  %v12082_v54 = vld [vmem:[%s13844_s11 + $0xee4] ss:$16 sps:$4 sm:$0xff]  }
  0xa7   : > { %7688 = vmatpush1.bf16.msra.mxu1 %v12008_v55  ;;  %7648 = vmatprep.subr.bf16.mxu0 %v12013_v56  ;;  %v14120_v55 = vrot.slane %v1523_v48, %v13894_v50  ;;  %v14124_v56 = vcombine.high %v14113_v49, %v14113_v49  ;;  %v12145_v48 = vld [vmem:[%s13844_s11 + $0xd84] ss:$16 sps:$4 sm:$0xff]  }
  0xa8   : > { %7689 = vmatprep.subr.bf16.mxu1 %v12016_v57  ;;  %v12080_v57 = vld [vmem:[%s13844_s11 + $0xee0] ss:$16 sps:$4 sm:$0xff]  }
  0xaa   : > { %7649 = vmatpush1.bf16.msra.mxu0 %v12011_v58  ;;  %v12085_v58 = vld [vmem:[%s13844_s11 + $0xcc4] ss:$16 sps:$4 sm:$0xff]  }
  0xab   : > { %7690 = vmatpush1.bf16.msra.mxu1 %v12014_v59  ;;  %7650 = vmatprep.subr.bf16.mxu0 %v12019_v60  ;;  %v12088_v59 = vld [vmem:[%s13844_s11 + $0xec4] ss:$16 sps:$4 sm:$0xff]   ;;  %v14132_v60 = vcombine.high %v14120_v55, %v14120_v55 }
  0xac   : > { %7691 = vmatprep.subr.bf16.mxu1 %v12022_v62  ;;  %v12083_v62 = vld [vmem:[%s13844_s11 + $0xcc0] ss:$16 sps:$4 sm:$0xff]  }
  0xae   : > { %7651 = vmatpush1.bf16.msra.mxu0 %v12017_v63  ;;  %v12086_v63 = vld [vmem:[%s13844_s11 + $0xec0] ss:$16 sps:$4 sm:$0xff]  }
  0xaf   : > { %7692 = vmatpush1.bf16.msra.mxu1 %v12020_v0  ;;  %7652 = vmatprep.subr.bf16.mxu0 %v12025_v2  ;;  %v12091_v0 = vld [vmem:[%s13844_s11 + $0xca4] ss:$16 sps:$4 sm:$0xff]  }
  0xb0   : > { %7693 = vmatprep.subr.bf16.mxu1 %v12028_v3  ;;  %v12094_v2 = vld [vmem:[%s13844_s11 + $0xea4] ss:$16 sps:$4 sm:$0xff]   ;;  %v12089_v3 = vld [vmem:[%s13844_s11 + $0xca0] ss:$16 sps:$4 sm:$0xff]  }
  0xb2   : > { %7653 = vmatpush1.bf16.msra.mxu0 %v12023_v4  ;;  %v12092_v4 = vld [vmem:[%s13844_s11 + $0xea0] ss:$16 sps:$4 sm:$0xff]  }
  0xb3   : > { %7694 = vmatpush1.bf16.msra.mxu1 %v12026_v5  ;;  %7654 = vmatprep.subr.bf16.mxu0 %v12031_v6  ;;  %v12097_v5 = vld [vmem:[%s13844_s11 + $0xc84] ss:$16 sps:$4 sm:$0xff]  }
  0xb4   : > { %7695 = vmatprep.subr.bf16.mxu1 %v12034_v8  ;;  %v12100_v6 = vld [vmem:[%s13844_s11 + $0xe84] ss:$16 sps:$4 sm:$0xff]   ;;  %v12095_v8 = vld [vmem:[%s13844_s11 + $0xc80] ss:$16 sps:$4 sm:$0xff]  }
  0xb6   : > { %7655 = vmatpush2.bf16.msra.mxu0 %v12029_v9  ;;  %v12098_v9 = vld [vmem:[%s13844_s11 + $0xe80] ss:$16 sps:$4 sm:$0xff]  }
  0xb7   : > { %7696 = vmatpush2.bf16.msra.mxu1 %v12032_v10  ;;  %7656 = vmatprep.subr.bf16.mxu0 %v12037_v11  ;;  %v12103_v10 = vld [vmem:[%s13844_s11 + $0xc64] ss:$16 sps:$4 sm:$0xff]  }
  0xb8   : > { %7697 = vmatprep.subr.bf16.mxu1 %v12040_v12  ;;  %v12106_v11 = vld [vmem:[%s13844_s11 + $0xe64] ss:$16 sps:$4 sm:$0xff]   ;;  %v12101_v12 = vld [vmem:[%s13844_s11 + $0xc60] ss:$16 sps:$4 sm:$0xff]  }
  0xba   : > { %7657 = vmatpush2.bf16.msra.mxu0 %v12035_v13  ;;  %v12104_v13 = vld [vmem:[%s13844_s11 + $0xe60] ss:$16 sps:$4 sm:$0xff]  }
  0xbb   : > { %7698 = vmatpush2.bf16.msra.mxu1 %v12038_v15  ;;  %7658 = vmatprep.subr.bf16.mxu0 %v12043_v16  ;;  %v12109_v15 = vld [vmem:[%s13844_s11 + $0xc44] ss:$16 sps:$4 sm:$0xff]  }
  0xbc   : > { %7699 = vmatprep.subr.bf16.mxu1 %v12046_v17  ;;  %v12112_v16 = vld [vmem:[%s13844_s11 + $0xe44] ss:$16 sps:$4 sm:$0xff]   ;;  %v12107_v17 = vld [vmem:[%s13844_s11 + $0xc40] ss:$16 sps:$4 sm:$0xff]  }
  0xbe   : > { %7659 = vmatpush2.bf16.msra.mxu0 %v12041_v20  ;;  %v12110_v20 = vld [vmem:[%s13844_s11 + $0xe40] ss:$16 sps:$4 sm:$0xff]  }
  0xbf   : > { %7700 = vmatpush2.bf16.msra.mxu1 %v12044_v21  ;;  %7660 = vmatprep.subr.bf16.mxu0 %v12049_v22  ;;  %v12115_v21 = vld [vmem:[%s13844_s11 + $0xc24] ss:$16 sps:$4 sm:$0xff]  }
  0xc0   : > { %7701 = vmatprep.subr.bf16.mxu1 %v12052_v23  ;;  %v12118_v22 = vld [vmem:[%s13844_s11 + $0xe24] ss:$16 sps:$4 sm:$0xff]   ;;  %v12113_v23 = vld [vmem:[%s13844_s11 + $0xc20] ss:$16 sps:$4 sm:$0xff]  }
  0xc2   : > { %7661 = vmatpush2.bf16.msra.mxu0 %v12047_v25  ;;  %v12116_v25 = vld [vmem:[%s13844_s11 + $0xe20] ss:$16 sps:$4 sm:$0xff]  }
  0xc3   : > { %7702 = vmatpush2.bf16.msra.mxu1 %v12050_v26  ;;  %7662 = vmatprep.subr.bf16.mxu0 %v12055_v28  ;;  %v12121_v26 = vld [vmem:[%s13844_s11 + $0xc04] ss:$16 sps:$4 sm:$0xff]  }
  0xc4   : > { %7703 = vmatprep.subr.bf16.mxu1 %v12058_v29  ;;  %v12124_v28 = vld [vmem:[%s13844_s11 + $0xe04] ss:$16 sps:$4 sm:$0xff]   ;;  %v12119_v29 = vld [vmem:[%s13844_s11 + $0xc00] ss:$16 sps:$4 sm:$0xff]  }
  0xc6   : > { %7663 = vmatpush2.bf16.msra.mxu0 %v12053_v30  ;;  %v12122_v30 = vld [vmem:[%s13844_s11 + $0xe00] ss:$16 sps:$4 sm:$0xff]  }
  0xc7   : > { %7704 = vmatpush2.bf16.msra.mxu1 %v12056_v32  ;;  %7664 = vmatprep.subr.bf16.mxu0 %v12061_v7  ;;  %v12127_v32 = vld [vmem:[%s13844_s11 + $0xde4] ss:$16 sps:$4 sm:$0xff]  }
  0xc8   : > { %7705 = vmatprep.subr.bf16.mxu1 %v12064_v34  ;;  %v12130_v7 = vld [vmem:[%s13844_s11 + $0xfe4] ss:$16 sps:$4 sm:$0xff]   ;;  %v12125_v34 = vld [vmem:[%s13844_s11 + $0xde0] ss:$16 sps:$4 sm:$0xff]  }
  0xca   : > { %7665 = vmatpush2.bf16.msra.mxu0 %v12059_v37  ;;  %v12133_v37 = vld [vmem:[%s13844_s11 + $0xdc4] ss:$16 sps:$4 sm:$0xff]  }
  0xcb   : > { %7706 = vmatpush2.bf16.msra.mxu1 %v12062_v38  ;;  %7666 = vmatprep.subr.bf16.mxu0 %v12067_v39  ;;  %v12136_v38 = vld [vmem:[%s13844_s11 + $0xfc4] ss:$16 sps:$4 sm:$0xff]   ;;  %v12131_v39 = vld [vmem:[%s13844_s11 + $0xdc0] ss:$16 sps:$4 sm:$0xff]  }
  0xcc   : > { %7707 = vmatprep.subr.bf16.mxu1 %v12070_v40  ;;  %v12134_v40 = vld [vmem:[%s13844_s11 + $0xfc0] ss:$16 sps:$4 sm:$0xff]  }
  0xce   : > { %7667 = vmatpush2.bf16.msra.mxu0 %v12065_v33  ;;  %v12139_v33 = vld [vmem:[%s13844_s11 + $0xda4] ss:$16 sps:$4 sm:$0xff]  }
  0xcf   : > { %7708 = vmatpush2.bf16.msra.mxu1 %v12068_v45  ;;  %7668 = vmatprep.subr.bf16.mxu0 %v12073_v46  ;;  %v12142_v45 = vld [vmem:[%s13844_s11 + $0xfa4] ss:$16 sps:$4 sm:$0xff]   ;;  %v12137_v46 = vld [vmem:[%s13844_s11 + $0xda0] ss:$16 sps:$4 sm:$0xff]  }
  0xd0   : > { %7709 = vmatprep.subr.bf16.mxu1 %v12076_v47  ;;  %v12140_v47 = vld [vmem:[%s13844_s11 + $0xfa0] ss:$16 sps:$4 sm:$0xff]  }
  0xd2   : > { %7669 = vmatpush2.bf16.msra.mxu0 %v12071_v51  ;;  %v12148_v51 = vld [vmem:[%s13844_s11 + $0xf84] ss:$16 sps:$4 sm:$0xff]  }
  0xd3   : > { %7710 = vmatpush2.bf16.msra.mxu1 %v12074_v52  ;;  %7720 = vmatprep.subr.bf16.mxu0 %v12079_v53  ;;  %v12143_v52 = vld [vmem:[%s13844_s11 + $0xd80] ss:$16 sps:$4 sm:$0xff]  }
  0xd4   : > { %7761 = vmatprep.subr.bf16.mxu1 %v12082_v54  ;;  %v12146_v53 = vld [vmem:[%s13844_s11 + $0xf80] ss:$16 sps:$4 sm:$0xff]   ;;  %v12151_v54 = vld [vmem:[%s13844_s11 + $0xd64] ss:$16 sps:$4 sm:$0xff]  }
  0xd5   : > { %7671 = vmatmul.mubr.bf16.vlgmr.msra.gmra.mxu0 %v14113_v49 }
  0xd6   : > { %7712 = vmatmul.mubr.bf16.vlgmr.msra.gmra.mxu1 %v14124_v56  ;;  %7721 = vmatpush1.bf16.msra.mxu0 %v12077_v36  ;;  %v12154_v36 = vld [vmem:[%s13844_s11 + $0xf64] ss:$16 sps:$4 sm:$0xff]  }
  0xd7   : > { %7762 = vmatpush1.bf16.msra.mxu1 %v12080_v57  ;;  %7722 = vmatprep.subr.bf16.mxu0 %v12085_v58  ;;  %v12149_v57 = vld [vmem:[%s13844_s11 + $0xd60] ss:$16 sps:$4 sm:$0xff]  }
  0xd8   : > { %7763 = vmatprep.subr.bf16.mxu1 %v12088_v59  ;;  %7752 = vmatprep.mubr.bf16.mxu0 %v14120_v55  ;;  %v12152_v58 = vld [vmem:[%s13844_s11 + $0xf60] ss:$16 sps:$4 sm:$0xff]   ;;  %v12157_v59 = vld [vmem:[%s13844_s11 + $0xd44] ss:$16 sps:$4 sm:$0xff]  }
  0xd9   : > { %7793 = vmatprep.mubr.bf16.mxu1 %v14132_v60 }
  0xda   : > { %7723 = vmatpush1.bf16.msra.mxu0 %v12083_v62  ;;  %v12160_v62 = vld [vmem:[%s13844_s11 + $0xf44] ss:$16 sps:$4 sm:$0xff]  }
  0xdb   : > { %7764 = vmatpush1.bf16.msra.mxu1 %v12086_v63  ;;  %7724 = vmatprep.subr.bf16.mxu0 %v12091_v0  ;;  %v12155_v63 = vld [vmem:[%s13844_s11 + $0xd40] ss:$16 sps:$4 sm:$0xff]  }
  0xdc   : > { %7765 = vmatprep.subr.bf16.mxu1 %v12094_v2  ;;  %v14188_v0 = vld [vmem:[%s13839_s30 + $0x10] sm:$0xff] }
  0xdd   : > { %v12158_v2 = vld [vmem:[%s13844_s11 + $0xf40] ss:$16 sps:$4 sm:$0xff]  }
  0xde   : > { %7725 = vmatpush1.bf16.msra.mxu0 %v12089_v3  ;;  %v12163_v3 = vld [vmem:[%s13844_s11 + $0xd24] ss:$16 sps:$4 sm:$0xff]  }
  0xdf   : > { %7766 = vmatpush1.bf16.msra.mxu1 %v12092_v4  ;;  %7726 = vmatprep.subr.bf16.mxu0 %v12097_v5  ;;  %v12166_v4 = vld [vmem:[%s13844_s11 + $0xf24] ss:$16 sps:$4 sm:$0xff]   ;;  %v14195_v5 = vrot.slane %v14188_v0, %v13894_v50 }
  0xe0   : > { %7767 = vmatprep.subr.bf16.mxu1 %v12100_v6  ;;  %v12161_v6 = vld [vmem:[%s13844_s11 + $0xd20] ss:$16 sps:$4 sm:$0xff]  }
  0xe2   : > { %7727 = vmatpush1.bf16.msra.mxu0 %v12095_v8  ;;  %v12164_v8 = vld [vmem:[%s13844_s11 + $0xf20] ss:$16 sps:$4 sm:$0xff]  }
  0xe3   : > { %7768 = vmatpush1.bf16.msra.mxu1 %v12098_v9  ;;  %7728 = vmatprep.subr.bf16.mxu0 %v12103_v10  ;;  %v12169_v9 = vld [vmem:[%s13844_s11 + $0xd04] ss:$16 sps:$4 sm:$0xff]  }
  0xe4   : > { %7769 = vmatprep.subr.bf16.mxu1 %v12106_v11  ;;  %v12172_v10 = vld [vmem:[%s13844_s11 + $0xf04] ss:$16 sps:$4 sm:$0xff]   ;;  %v1571_v11 = vcombine.high %v14195_v5, %v14195_v5 }
  0xe6   : > { %7729 = vmatpush1.bf16.msra.mxu0 %v12101_v12  ;;  %v12167_v12 = vld [vmem:[%s13844_s11 + $0xd00] ss:$16 sps:$4 sm:$0xff]  }
  0xe7   : > { %7770 = vmatpush1.bf16.msra.mxu1 %v12104_v13  ;;  %7730 = vmatprep.subr.bf16.mxu0 %v12109_v15  ;;  %v14206_v13 = vrot.slane %v14103_v41, %v13894_v50  ;;  %v12170_v15 = vld [vmem:[%s13844_s11 + $0xf00] ss:$16 sps:$4 sm:$0xff]  }
  0xe8   : > { %7771 = vmatprep.subr.bf16.mxu1 %v12112_v16  ;;  %v12176_v16 = vld [vmem:[%s13844_s11 + $0x10e4] ss:$16 sps:$4 sm:$0xff]   ;;  %v12177_v41 = vld [vmem:[%s13844_s11 + $0x12e0] ss:$16 sps:$4 sm:$0xff]  }
  0xea   : > { %7731 = vmatpush1.bf16.msra.mxu0 %v12107_v17  ;;  %v12179_v17 = vld [vmem:[%s13844_s11 + $0x12e4] ss:$16 sps:$4 sm:$0xff]  }
  0xeb   : > { %7772 = vmatpush1.bf16.msra.mxu1 %v12110_v20  ;;  %7732 = vmatprep.subr.bf16.mxu0 %v12115_v21  ;;  %v14212_v20 = vrot.slane %v1571_v11, %v13894_v50  ;;  %v14216_v21 = vcombine.high %v14206_v13, %v14206_v13  ;;  %v12221_v11 = vld [vmem:[%s13844_s11 + $0x1204] ss:$16 sps:$4 sm:$0xff]  }
  0xec   : > { %7773 = vmatprep.subr.bf16.mxu1 %v12118_v22  ;;  %v12174_v22 = vld [vmem:[%s13844_s11 + $0x10e0] ss:$16 sps:$4 sm:$0xff]  }
  0xee   : > { %7733 = vmatpush1.bf16.msra.mxu0 %v12113_v23  ;;  %v12182_v23 = vld [vmem:[%s13844_s11 + $0x10c4] ss:$16 sps:$4 sm:$0xff]  }
  0xef   : > { %7774 = vmatpush1.bf16.msra.mxu1 %v12116_v25  ;;  %7734 = vmatprep.subr.bf16.mxu0 %v12121_v26  ;;  %v12185_v25 = vld [vmem:[%s13844_s11 + $0x12c4] ss:$16 sps:$4 sm:$0xff]   ;;  %v14224_v26 = vcombine.high %v14212_v20, %v14212_v20 }
  0xf0   : > { %7775 = vmatprep.subr.bf16.mxu1 %v12124_v28 }
  0xf2   : > { %7735 = vmatpush1.bf16.msra.mxu0 %v12119_v29 }
  0xf3   : > { %7776 = vmatpush1.bf16.msra.mxu1 %v12122_v30  ;;  %7736 = vmatprep.subr.bf16.mxu0 %v12127_v32  ;;  %v12180_v30 = vld [vmem:[%s13844_s11 + $0x10c0] ss:$16 sps:$4 sm:$0xff]  }
  0xf4   : > { %7777 = vmatprep.subr.bf16.mxu1 %v12130_v7  ;;  %v12183_v32 = vld [vmem:[%s13844_s11 + $0x12c0] ss:$16 sps:$4 sm:$0xff]  }
  0xf6   : > { %7737 = vmatpush2.bf16.msra.mxu0 %v12125_v34 }
  0xf7   : > { %7778 = vmatpush2.bf16.msra.mxu1 %v12128_v35  ;;  %7738 = vmatprep.subr.bf16.mxu0 %v12133_v37  ;;  %v12188_v37 = vld [vmem:[%s13844_s11 + $0x10a4] ss:$16 sps:$4 sm:$0xff]  }
  0xf8   : > { %7779 = vmatprep.subr.bf16.mxu1 %v12136_v38  ;;  %v12191_v38 = vld [vmem:[%s13844_s11 + $0x12a4] ss:$16 sps:$4 sm:$0xff]  }
  0xfa   : > { %7739 = vmatpush2.bf16.msra.mxu0 %v12131_v39 }
  0xfb   : > { %7780 = vmatpush2.bf16.msra.mxu1 %v12134_v40  ;;  %7740 = vmatprep.subr.bf16.mxu0 %v12139_v33  ;;  %v12186_v40 = vld [vmem:[%s13844_s11 + $0x10a0] ss:$16 sps:$4 sm:$0xff]  }
  0xfc   : > { %7781 = vmatprep.subr.bf16.mxu1 %v12142_v45  ;;  %v12189_v33 = vld [vmem:[%s13844_s11 + $0x12a0] ss:$16 sps:$4 sm:$0xff]  }
  0xfe   : > { %7741 = vmatpush2.bf16.msra.mxu0 %v12137_v46 }
  0xff   : > { %7782 = vmatpush2.bf16.msra.mxu1 %v12140_v47  ;;  %7742 = vmatprep.subr.bf16.mxu0 %v12145_v48 }
 0x100   : > { %7783 = vmatprep.subr.bf16.mxu1 %v12148_v51  ;;  %v12194_v51 = vld [vmem:[%s13844_s11 + $0x1084] ss:$16 sps:$4 sm:$0xff]  }
 0x102   : > { %7743 = vmatpush2.bf16.msra.mxu0 %v12143_v52  ;;  %v12197_v52 = vld [vmem:[%s13844_s11 + $0x1284] ss:$16 sps:$4 sm:$0xff]  }
 0x103   : > { %7784 = vmatpush2.bf16.msra.mxu1 %v12146_v53  ;;  %7744 = vmatprep.subr.bf16.mxu0 %v12151_v54  ;;  %v12192_v53 = vld [vmem:[%s13844_s11 + $0x1080] ss:$16 sps:$4 sm:$0xff]  }
 0x104   : > { %7785 = vmatprep.subr.bf16.mxu1 %v12154_v36  ;;  %v12195_v54 = vld [vmem:[%s13844_s11 + $0x1280] ss:$16 sps:$4 sm:$0xff]   ;;  %v12200_v36 = vld [vmem:[%s13844_s11 + $0x1064] ss:$16 sps:$4 sm:$0xff]  }
 0x106   : > { %7745 = vmatpush2.bf16.msra.mxu0 %v12149_v57  ;;  %v12203_v57 = vld [vmem:[%s13844_s11 + $0x1264] ss:$16 sps:$4 sm:$0xff]  }
 0x107   : > { %7786 = vmatpush2.bf16.msra.mxu1 %v12152_v58  ;;  %7746 = vmatprep.subr.bf16.mxu0 %v12157_v59  ;;  %v12198_v58 = vld [vmem:[%s13844_s11 + $0x1060] ss:$16 sps:$4 sm:$0xff]  }
 0x108   : > { %7787 = vmatprep.subr.bf16.mxu1 %v12160_v62  ;;  %v12201_v59 = vld [vmem:[%s13844_s11 + $0x1260] ss:$16 sps:$4 sm:$0xff]   ;;  %v12206_v62 = vld [vmem:[%s13844_s11 + $0x1044] ss:$16 sps:$4 sm:$0xff]  }
 0x10a   : > { %7747 = vmatpush2.bf16.msra.mxu0 %v12155_v63  ;;  %v12209_v63 = vld [vmem:[%s13844_s11 + $0x1244] ss:$16 sps:$4 sm:$0xff]  }
 0x10b   : > { %7788 = vmatpush2.bf16.msra.mxu1 %v12158_v2  ;;  %7748 = vmatprep.subr.bf16.mxu0 %v12163_v3  ;;  %v12204_v2 = vld [vmem:[%s13844_s11 + $0x1040] ss:$16 sps:$4 sm:$0xff]  }
 0x10c   : > { %7789 = vmatprep.subr.bf16.mxu1 %v12166_v4  ;;  %v12207_v3 = vld [vmem:[%s13844_s11 + $0x1240] ss:$16 sps:$4 sm:$0xff]   ;;  %v12212_v4 = vld [vmem:[%s13844_s11 + $0x1024] ss:$16 sps:$4 sm:$0xff]  }
 0x10e   : > { %7749 = vmatpush2.bf16.msra.mxu0 %v12161_v6  ;;  %v12215_v6 = vld [vmem:[%s13844_s11 + $0x1224] ss:$16 sps:$4 sm:$0xff]  }
 0x10f   : > { %7790 = vmatpush2.bf16.msra.mxu1 %v12164_v8  ;;  %7750 = vmatprep.subr.bf16.mxu0 %v12169_v9  ;;  %v12210_v8 = vld [vmem:[%s13844_s11 + $0x1020] ss:$16 sps:$4 sm:$0xff]  }
 0x110   : > { %7791 = vmatprep.subr.bf16.mxu1 %v12172_v10  ;;  %v12213_v9 = vld [vmem:[%s13844_s11 + $0x1220] ss:$16 sps:$4 sm:$0xff]   ;;  %v12218_v10 = vld [vmem:[%s13844_s11 + $0x1004] ss:$16 sps:$4 sm:$0xff]  }
 0x112   : > { %7751 = vmatpush2.bf16.msra.mxu0 %v12167_v12  ;;  %v12216_v12 = vld [vmem:[%s13844_s11 + $0x1000] ss:$16 sps:$4 sm:$0xff]  }
 0x113   : > { %7792 = vmatpush2.bf16.msra.mxu1 %v12170_v15  ;;  %7802 = vmatprep.subr.bf16.mxu0 %v12176_v16  ;;  %v12219_v15 = vld [vmem:[%s13844_s11 + $0x1200] ss:$16 sps:$4 sm:$0xff]   ;;  %v12224_v16 = vld [vmem:[%s13844_s11 + $0x11e4] ss:$16 sps:$4 sm:$0xff]  }
 0x114   : > { %7843 = vmatprep.subr.bf16.mxu1 %v12179_v17  ;;  %v12227_v17 = vld [vmem:[%s13844_s11 + $0x13e4] ss:$16 sps:$4 sm:$0xff]  }
 0x115   : > { %v7508_v28 = vpop.f32.mrf.mxu0  ;;  %7753 = vmatmul.mubr.bf16.vlgmr.msra.gmra.mxu0 %v14206_v13 }
 0x116   : > { %v7549_v29 = vpop.f32.mrf.mxu1  ;;  %7794 = vmatmul.mubr.bf16.vlgmr.msra.gmra.mxu1 %v14216_v21  ;;  %7803 = vmatpush1.bf16.msra.mxu0 %v12174_v22  ;;  %v12222_v22 = vld [vmem:[%s13844_s11 + $0x11e0] ss:$16 sps:$4 sm:$0xff]  }
 0x117   : > { %v14230_v7 = vadd.f32 %v7549_v29, %v7508_v28  ;;  %7844 = vmatpush1.bf16.msra.mxu1 %v12177_v41  ;;  %v7510_v34 = vpop.f32.mrf.mxu0  ;;  %7804 = vmatprep.subr.bf16.mxu0 %v12182_v23  ;;  %v12225_v41 = vld [vmem:[%s13844_s11 + $0x13e0] ss:$16 sps:$4 sm:$0xff]   ;;  %v12230_v23 = vld [vmem:[%s13844_s11 + $0x11c4] ss:$16 sps:$4 sm:$0xff]  }
 0x118   : > { %v7551_v35 = vpop.f32.mrf.mxu1  ;;  %7845 = vmatprep.subr.bf16.mxu1 %v12185_v25  ;;  %7834 = vmatprep.mubr.bf16.mxu0 %v14212_v20  ;;  %v12233_v25 = vld [vmem:[%s13844_s11 + $0x13c4] ss:$16 sps:$4 sm:$0xff]   ;;  %v12228_v28 = vld [vmem:[%s13844_s11 + $0x11c0] ss:$16 sps:$4 sm:$0xff]  }
 0x119   : > { %v14234_v39 = vadd.f32 %v7551_v35, %v7510_v34  ;;  %7875 = vmatprep.mubr.bf16.mxu1 %v14224_v26  ;;  %v7512_v45 = vpop.f32.mrf.mxu0  ;;  %v12231_v29 = vld [vmem:[%s13844_s11 + $0x13c0] ss:$16 sps:$4 sm:$0xff]  }
 0x11a   : > { %v7553_v46 = vpop.f32.mrf.mxu1  ;;  %7805 = vmatpush1.bf16.msra.mxu0 %v12180_v30  ;;  %v12236_v30 = vld [vmem:[%s13844_s11 + $0x11a4] ss:$16 sps:$4 sm:$0xff]   ;;  %v12234_v34 = vld [vmem:[%s13844_s11 + $0x11a0] ss:$16 sps:$4 sm:$0xff]  }
 0x11b   : > { %7846 = vmatpush1.bf16.msra.mxu1 %v12183_v32  ;;  %v7513_v47 = vpop.f32.mrf.mxu0  ;;  %7806 = vmatprep.subr.bf16.mxu0 %v12188_v37  ;;  %v12239_v32 = vld [vmem:[%s13844_s11 + $0x13a4] ss:$16 sps:$4 sm:$0xff]   ;;  %v12237_v35 = vld [vmem:[%s13844_s11 + $0x13a0] ss:$16 sps:$4 sm:$0xff]  }
 0x11c   : > { %v7554_v48 = vpop.f32.mrf.mxu1  ;;  %7847 = vmatprep.subr.bf16.mxu1 %v12191_v38  ;;  %v12242_v37 = vld [vmem:[%s13844_s11 + $0x1184] ss:$16 sps:$4 sm:$0xff]   ;;  %v12246_v47 = vld [vmem:[%s13844_s11 + $0x1160] ss:$16 sps:$4 sm:$0xff]  }
 0x11d   : > { %v12245_v38 = vld [vmem:[%s13844_s11 + $0x1384] ss:$16 sps:$4 sm:$0xff]   ;;  %v12249_v48 = vld [vmem:[%s13844_s11 + $0x1360] ss:$16 sps:$4 sm:$0xff]  }
 0x11e   : > { %7807 = vmatpush1.bf16.msra.mxu0 %v12186_v40  ;;  %v12240_v40 = vld [vmem:[%s13844_s11 + $0x1180] ss:$16 sps:$4 sm:$0xff]   ;;  %v12248_v45 = vld [vmem:[%s13844_s11 + $0x1164] ss:$16 sps:$4 sm:$0xff]  }
 0x11f   : > { %7848 = vmatpush1.bf16.msra.mxu1 %v12189_v33  ;;  %7808 = vmatprep.subr.bf16.mxu0 %v12194_v51  ;;  %v12243_v33 = vld [vmem:[%s13844_s11 + $0x1380] ss:$16 sps:$4 sm:$0xff]   ;;  %v12251_v46 = vld [vmem:[%s13844_s11 + $0x1364] ss:$16 sps:$4 sm:$0xff]  }
 0x120   : > { %7849 = vmatprep.subr.bf16.mxu1 %v12197_v52  ;;  %v12254_v51 = vld [vmem:[%s13844_s11 + $0x1144] ss:$16 sps:$4 sm:$0xff]  }
 0x121   : > { %v12257_v52 = vld [vmem:[%s13844_s11 + $0x1344] ss:$16 sps:$4 sm:$0xff]  }
 0x122   : > { %7809 = vmatpush1.bf16.msra.mxu0 %v12192_v53  ;;  %v1556_v53 = vcombine.high %v14188_v0, %v14188_v0  ;;  %v12258_v0 = vld [vmem:[%s13844_s11 + $0x1120] ss:$16 sps:$4 sm:$0xff]  }
 0x123   : > { %7850 = vmatpush1.bf16.msra.mxu1 %v12195_v54  ;;  %7810 = vmatprep.subr.bf16.mxu0 %v12200_v36  ;;  %v12252_v54 = vld [vmem:[%s13844_s11 + $0x1140] ss:$16 sps:$4 sm:$0xff]  }
 0x124   : > { %7851 = vmatprep.subr.bf16.mxu1 %v12203_v57  ;;  %v12255_v36 = vld [vmem:[%s13844_s11 + $0x1340] ss:$16 sps:$4 sm:$0xff]   ;;  %v12260_v57 = vld [vmem:[%s13844_s11 + $0x1124] ss:$16 sps:$4 sm:$0xff]  }
 0x126   : > { %7811 = vmatpush1.bf16.msra.mxu0 %v12198_v58  ;;  %v12263_v58 = vld [vmem:[%s13844_s11 + $0x1324] ss:$16 sps:$4 sm:$0xff]  }
 0x127   : > { %7852 = vmatpush1.bf16.msra.mxu1 %v12201_v59  ;;  %7812 = vmatprep.subr.bf16.mxu0 %v12206_v62  ;;  %v14289_v59 = vrot.slane %v1556_v53, %v13894_v50  ;;  %v12261_v62 = vld [vmem:[%s13844_s11 + $0x1320] ss:$16 sps:$4 sm:$0xff]  }
 0x128   : > { %7853 = vmatprep.subr.bf16.mxu1 %v12209_v63  ;;  %v12266_v63 = vld [vmem:[%s13844_s11 + $0x1104] ss:$16 sps:$4 sm:$0xff]   ;;  %v12291_v53 = vld [vmem:[%s13844_s11 + $0x1680] ss:$16 sps:$4 sm:$0xff]  }
 0x12a   : > { %7813 = vmatpush1.bf16.msra.mxu0 %v12204_v2  ;;  %v12269_v2 = vld [vmem:[%s13844_s11 + $0x1304] ss:$16 sps:$4 sm:$0xff]  }
 0x12b   : > { %7854 = vmatpush1.bf16.msra.mxu1 %v12207_v3  ;;  %7814 = vmatprep.subr.bf16.mxu0 %v12212_v4  ;;  %v1572_v3 = vcombine.high %v14289_v59, %v14289_v59  ;;  %v14299_v4 = vrot.slane %v14195_v5, %v13894_v50 }
 0x12c   : > { %7855 = vmatprep.subr.bf16.mxu1 %v12215_v6  ;;  %v12264_v6 = vld [vmem:[%s13844_s11 + $0x1100] ss:$16 sps:$4 sm:$0xff]  }
 0x12d   : > { %v14312_v5 = vcombine.high %v14299_v4, %v14299_v4 }
 0x12e   : > { %7815 = vmatpush1.bf16.msra.mxu0 %v12210_v8  ;;  %v12267_v8 = vld [vmem:[%s13844_s11 + $0x1300] ss:$16 sps:$4 sm:$0xff]  }
 0x12f   : > { %7856 = vmatpush1.bf16.msra.mxu1 %v12213_v9  ;;  %7816 = vmatprep.subr.bf16.mxu0 %v12218_v10  ;;  %v12272_v9 = vld [vmem:[%s13844_s11 + $0x14e4] ss:$16 sps:$4 sm:$0xff]  }
 0x130   : > { %7857 = vmatprep.subr.bf16.mxu1 %v12221_v11  ;;  %v12275_v10 = vld [vmem:[%s13844_s11 + $0x16e4] ss:$16 sps:$4 sm:$0xff]   ;;  %v12270_v11 = vld [vmem:[%s13844_s11 + $0x14e0] ss:$16 sps:$4 sm:$0xff]  }
 0x132   : > { %7817 = vmatpush1.bf16.msra.mxu0 %v12216_v12  ;;  %v12273_v12 = vld [vmem:[%s13844_s11 + $0x16e0] ss:$16 sps:$4 sm:$0xff]  }
 0x133   : > { %7858 = vmatpush1.bf16.msra.mxu1 %v12219_v15  ;;  %7818 = vmatprep.subr.bf16.mxu0 %v12224_v16  ;;  %v14308_v15 = vrot.slane %v1572_v3, %v13894_v50  ;;  %v12278_v16 = vld [vmem:[%s13844_s11 + $0x14c4] ss:$16 sps:$4 sm:$0xff]  }
 0x134   : > { %7859 = vmatprep.subr.bf16.mxu1 %v12227_v17  ;;  %v12281_v17 = vld [vmem:[%s13844_s11 + $0x16c4] ss:$16 sps:$4 sm:$0xff]  }
 0x135   : > { %v12308_v3 = vld [vmem:[%s13844_s11 + $0x1424] ss:$16 sps:$4 sm:$0xff]  }
 0x136   : > { %7819 = vmatpush2.bf16.msra.mxu0 %v12222_v22  ;;  %v12276_v22 = vld [vmem:[%s13844_s11 + $0x14c0] ss:$16 sps:$4 sm:$0xff]  }
 0x137   : > { %7860 = vmatpush2.bf16.msra.mxu1 %v12225_v41  ;;  %7820 = vmatprep.subr.bf16.mxu0 %v12230_v23  ;;  %v12279_v41 = vld [vmem:[%s13844_s11 + $0x16c0] ss:$16 sps:$4 sm:$0xff]   ;;  %v14320_v23 = vcombine.high %v14308_v15, %v14308_v15 }
 0x138   : > { %7861 = vmatprep.subr.bf16.mxu1 %v12233_v25 }
 0x13a   : > { %7821 = vmatpush2.bf16.msra.mxu0 %v12228_v28 }
 0x13b   : > { %7862 = vmatpush2.bf16.msra.mxu1 %v12231_v29  ;;  %7822 = vmatprep.subr.bf16.mxu0 %v12236_v30 }
 0x13c   : > { %7863 = vmatprep.subr.bf16.mxu1 %v12239_v32 }
 0x13e   : > { %7823 = vmatpush2.bf16.msra.mxu0 %v12234_v34  ;;  %v12284_v34 = vld [vmem:[%s13844_s11 + $0x14a4] ss:$16 sps:$4 sm:$0xff]  }
 0x13f   : > { %7864 = vmatpush2.bf16.msra.mxu1 %v12237_v35  ;;  %7824 = vmatprep.subr.bf16.mxu0 %v12242_v37  ;;  %v12287_v35 = vld [vmem:[%s13844_s11 + $0x16a4] ss:$16 sps:$4 sm:$0xff]  }
 0x140   : > { %7865 = vmatprep.subr.bf16.mxu1 %v12245_v38 }
 0x142   : > { %7825 = vmatpush2.bf16.msra.mxu0 %v12240_v40  ;;  %v12282_v40 = vld [vmem:[%s13844_s11 + $0x14a0] ss:$16 sps:$4 sm:$0xff]  }
 0x143   : > { %7866 = vmatpush2.bf16.msra.mxu1 %v12243_v33  ;;  %7826 = vmatprep.subr.bf16.mxu0 %v12248_v45  ;;  %v12285_v33 = vld [vmem:[%s13844_s11 + $0x16a0] ss:$16 sps:$4 sm:$0xff]  }
 0x144   : > { %7867 = vmatprep.subr.bf16.mxu1 %v12251_v46 }
 0x146   : > { %7827 = vmatpush2.bf16.msra.mxu0 %v12246_v47 }
 0x147   : > { %7868 = vmatpush2.bf16.msra.mxu1 %v12249_v48  ;;  %7828 = vmatprep.subr.bf16.mxu0 %v12254_v51  ;;  %v12293_v51 = vld [vmem:[%s13844_s11 + $0x1684] ss:$16 sps:$4 sm:$0xff]  }
 0x148   : > { %7869 = vmatprep.subr.bf16.mxu1 %v12257_v52  ;;  %v12288_v52 = vld [vmem:[%s13844_s11 + $0x1480] ss:$16 sps:$4 sm:$0xff]  }
 0x14a   : > { %7829 = vmatpush2.bf16.msra.mxu0 %v12252_v54  ;;  %v12296_v54 = vld [vmem:[%s13844_s11 + $0x1464] ss:$16 sps:$4 sm:$0xff]  }
 0x14b   : > { %7870 = vmatpush2.bf16.msra.mxu1 %v12255_v36  ;;  %7830 = vmatprep.subr.bf16.mxu0 %v12260_v57  ;;  %v12299_v36 = vld [vmem:[%s13844_s11 + $0x1664] ss:$16 sps:$4 sm:$0xff]   ;;  %v12294_v57 = vld [vmem:[%s13844_s11 + $0x1460] ss:$16 sps:$4 sm:$0xff]  }
 0x14c   : > { %7871 = vmatprep.subr.bf16.mxu1 %v12263_v58  ;;  %v12297_v58 = vld [vmem:[%s13844_s11 + $0x1660] ss:$16 sps:$4 sm:$0xff]  }
 0x14e   : > { %7831 = vmatpush2.bf16.msra.mxu0 %v12258_v0  ;;  %v12302_v0 = vld [vmem:[%s13844_s11 + $0x1444] ss:$16 sps:$4 sm:$0xff]  }
 0x14f   : > { %7872 = vmatpush2.bf16.msra.mxu1 %v12261_v62  ;;  %7832 = vmatprep.subr.bf16.mxu0 %v12266_v63  ;;  %v12305_v62 = vld [vmem:[%s13844_s11 + $0x1644] ss:$16 sps:$4 sm:$0xff]   ;;  %v12300_v63 = vld [vmem:[%s13844_s11 + $0x1440] ss:$16 sps:$4 sm:$0xff]  }
 0x150   : > { %7873 = vmatprep.subr.bf16.mxu1 %v12269_v2  ;;  %v12303_v2 = vld [vmem:[%s13844_s11 + $0x1640] ss:$16 sps:$4 sm:$0xff]  }
 0x152   : > { %7833 = vmatpush2.bf16.msra.mxu0 %v12264_v6  ;;  %v12311_v6 = vld [vmem:[%s13844_s11 + $0x1624] ss:$16 sps:$4 sm:$0xff]  }
 0x153   : > { %7874 = vmatpush2.bf16.msra.mxu1 %v12267_v8  ;;  %7884 = vmatprep.subr.bf16.mxu0 %v12272_v9  ;;  %v12306_v8 = vld [vmem:[%s13844_s11 + $0x1420] ss:$16 sps:$4 sm:$0xff]  }
 0x154   : > { %7925 = vmatprep.subr.bf16.mxu1 %v12275_v10  ;;  %v12309_v9 = vld [vmem:[%s13844_s11 + $0x1620] ss:$16 sps:$4 sm:$0xff]   ;;  %v12314_v10 = vld [vmem:[%s13844_s11 + $0x1404] ss:$16 sps:$4 sm:$0xff]  }
 0x155   : > { %v7590_v25 = vpop.f32.mrf.mxu0  ;;  %7835 = vmatmul.mubr.bf16.vlgmr.msra.gmra.mxu0 %v14299_v4 }
 0x156   : > { %v7631_v28 = vpop.f32.mrf.mxu1  ;;  %7876 = vmatmul.mubr.bf16.vlgmr.msra.gmra.mxu1 %v14312_v5  ;;  %v7591_v29 = vadd.f32 %v7590_v25, %v14230_v7  ;;  %7885 = vmatpush1.bf16.msra.mxu0 %v12270_v11  ;;  %v12317_v11 = vld [vmem:[%s13844_s11 + $0x1604] ss:$16 sps:$4 sm:$0xff]   ;;  %v12321_v25 = vld [vmem:[%s13844_s11 + $0x17e0] ss:$16 sps:$4 sm:$0xff]  }
 0x157   : > { %7926 = vmatpush1.bf16.msra.mxu1 %v12273_v12  ;;  %v7592_v30 = vpop.f32.mrf.mxu0  ;;  %7886 = vmatprep.subr.bf16.mxu0 %v12278_v16  ;;  %v12312_v12 = vld [vmem:[%s13844_s11 + $0x1400] ss:$16 sps:$4 sm:$0xff]  }
 0x158   : > { %v7633_v32 = vpop.f32.mrf.mxu1  ;;  %7927 = vmatprep.subr.bf16.mxu1 %v12281_v17  ;;  %v14327_v37 = vadd.f32 %v7631_v28, %v7591_v29  ;;  %v7593_v38 = vadd.f32 %v7592_v30, %v14234_v39  ;;  %7916 = vmatprep.mubr.bf16.mxu0 %v14308_v15  ;;  %v12290_v39 = vld [vmem:[%s13844_s11 + $0x1484] ss:$16 sps:$4 sm:$0xff]   ;;  %v12315_v16 = vld [vmem:[%s13844_s11 + $0x1600] ss:$16 sps:$4 sm:$0xff]  }
 0x159   : > { %7957 = vmatprep.mubr.bf16.mxu1 %v14320_v23  ;;  %v7594_v7 = vpop.f32.mrf.mxu0  ;;  %v12320_v17 = vld [vmem:[%s13844_s11 + $0x15e4] ss:$16 sps:$4 sm:$0xff]   ;;  %v12324_v30 = vld [vmem:[%s13844_s11 + $0x15c0] ss:$16 sps:$4 sm:$0xff]  }
 0x15a   : > { %v7635_v45 = vpop.f32.mrf.mxu1  ;;  %v14334_v46 = vadd.f32 %v7633_v32, %v7593_v38  ;;  %7887 = vmatpush1.bf16.msra.mxu0 %v12276_v22  ;;  %v12323_v22 = vld [vmem:[%s13844_s11 + $0x17e4] ss:$16 sps:$4 sm:$0xff]   ;;  %v12327_v32 = vld [vmem:[%s13844_s11 + $0x17c0] ss:$16 sps:$4 sm:$0xff]  }
 0x15b   : > { %7928 = vmatpush1.bf16.msra.mxu1 %v12279_v41  ;;  %v7595_v47 = vpop.f32.mrf.mxu0  ;;  %7888 = vmatprep.subr.bf16.mxu0 %v12284_v34  ;;  %v12318_v41 = vld [vmem:[%s13844_s11 + $0x15e0] ss:$16 sps:$4 sm:$0xff]   ;;  %v12326_v28 = vld [vmem:[%s13844_s11 + $0x15c4] ss:$16 sps:$4 sm:$0xff]  }
 0x15c   : > { %v7636_v48 = vpop.f32.mrf.mxu1  ;;  %7929 = vmatprep.subr.bf16.mxu1 %v12287_v35  ;;  %v12329_v29 = vld [vmem:[%s13844_s11 + $0x17c4] ss:$16 sps:$4 sm:$0xff]   ;;  %v12330_v38 = vld [vmem:[%s13844_s11 + $0x15a0] ss:$16 sps:$4 sm:$0xff]  }
 0x15d   : > { %v12332_v34 = vld [vmem:[%s13844_s11 + $0x15a4] ss:$16 sps:$4 sm:$0xff]   ;;  %v12336_v45 = vld [vmem:[%s13844_s11 + $0x1580] ss:$16 sps:$4 sm:$0xff]  }
 0x15e   : > { %7889 = vmatpush1.bf16.msra.mxu0 %v12282_v40  ;;  %v12335_v35 = vld [vmem:[%s13844_s11 + $0x17a4] ss:$16 sps:$4 sm:$0xff]   ;;  %v12333_v40 = vld [vmem:[%s13844_s11 + $0x17a0] ss:$16 sps:$4 sm:$0xff]  }
 0x15f   : > { %7930 = vmatpush1.bf16.msra.mxu1 %v12285_v33  ;;  %7890 = vmatprep.subr.bf16.mxu0 %v12290_v39  ;;  %v12338_v33 = vld [vmem:[%s13844_s11 + $0x1584] ss:$16 sps:$4 sm:$0xff]   ;;  %v12339_v47 = vld [vmem:[%s13844_s11 + $0x1780] ss:$16 sps:$4 sm:$0xff]  }
 0x160   : > { %7931 = vmatprep.subr.bf16.mxu1 %v12293_v51  ;;  %v12341_v7 = vld [vmem:[%s13844_s11 + $0x1784] ss:$16 sps:$4 sm:$0xff]   ;;  %v12342_v51 = vld [vmem:[%s13844_s11 + $0x1560] ss:$16 sps:$4 sm:$0xff]  }
 0x161   : > { %v12344_v48 = vld [vmem:[%s13844_s11 + $0x1564] ss:$16 sps:$4 sm:$0xff]  }
 0x162   : > { %7891 = vmatpush1.bf16.msra.mxu0 %v12288_v52  ;;  %v12347_v39 = vld [vmem:[%s13844_s11 + $0x1764] ss:$16 sps:$4 sm:$0xff]   ;;  %v12345_v52 = vld [vmem:[%s13844_s11 + $0x1760] ss:$16 sps:$4 sm:$0xff]  }
 0x163   : > { %7932 = vmatpush1.bf16.msra.mxu1 %v12291_v53  ;;  %7892 = vmatprep.subr.bf16.mxu0 %v12296_v54  ;;  %v12350_v53 = vld [vmem:[%s13844_s11 + $0x1544] ss:$16 sps:$4 sm:$0xff]  }
 0x164   : > { %7933 = vmatprep.subr.bf16.mxu1 %v12299_v36  ;;  %v12353_v54 = vld [vmem:[%s13844_s11 + $0x1744] ss:$16 sps:$4 sm:$0xff]   ;;  %v14379_v36 = vld [vmem:[%s13839_s30 + $0x18] sm:$0xff] }
 0x166   : > { %7893 = vmatpush1.bf16.msra.mxu0 %v12294_v57  ;;  %v12348_v57 = vld [vmem:[%s13844_s11 + $0x1540] ss:$16 sps:$4 sm:$0xff]  }
 0x167   : > { %7934 = vmatpush1.bf16.msra.mxu1 %v12297_v58  ;;  %7894 = vmatprep.subr.bf16.mxu0 %v12302_v0  ;;  %v12351_v58 = vld [vmem:[%s13844_s11 + $0x1740] ss:$16 sps:$4 sm:$0xff]   ;;  %v12356_v0 = vld [vmem:[%s13844_s11 + $0x1524] ss:$16 sps:$4 sm:$0xff]  }
 0x168   : > { %7935 = vmatprep.subr.bf16.mxu1 %v12305_v62  ;;  %v12359_v62 = vld [vmem:[%s13844_s11 + $0x1724] ss:$16 sps:$4 sm:$0xff]  }
 0x16a   : > { %7895 = vmatpush1.bf16.msra.mxu0 %v12300_v63  ;;  %v14387_v63 = vrot.slane %v14379_v36, %v13894_v50 }
 0x16b   : > { %7936 = vmatpush1.bf16.msra.mxu1 %v12303_v2  ;;  %7896 = vmatprep.subr.bf16.mxu0 %v12308_v3  ;;  %v12354_v2 = vld [vmem:[%s13844_s11 + $0x1520] ss:$16 sps:$4 sm:$0xff]  }
 0x16c   : > { %7937 = vmatprep.subr.bf16.mxu1 %v12311_v6  ;;  %v12357_v3 = vld [vmem:[%s13844_s11 + $0x1720] ss:$16 sps:$4 sm:$0xff]   ;;  %v12362_v6 = vld [vmem:[%s13844_s11 + $0x1504] ss:$16 sps:$4 sm:$0xff]  }
 0x16e   : > { %7897 = vmatpush1.bf16.msra.mxu0 %v12306_v8  ;;  %v12365_v8 = vld [vmem:[%s13844_s11 + $0x1704] ss:$16 sps:$4 sm:$0xff]  }
 0x16f   : > { %7938 = vmatpush1.bf16.msra.mxu1 %v12309_v9  ;;  %7898 = vmatprep.subr.bf16.mxu0 %v12314_v10  ;;  %v1620_v9 = vcombine.high %v14387_v63, %v14387_v63  ;;  %v14397_v10 = vrot.slane %v14289_v59, %v13894_v50 }
 0x170   : > { %7939 = vmatprep.subr.bf16.mxu1 %v12317_v11  ;;  %v12360_v11 = vld [vmem:[%s13844_s11 + $0x1500] ss:$16 sps:$4 sm:$0xff]  }
 0x171   : > { %v14410_v59 = vcombine.high %v14397_v10, %v14397_v10 }
 0x172   : > { %7899 = vmatpush1.bf16.msra.mxu0 %v12312_v12  ;;  %v12363_v12 = vld [vmem:[%s13844_s11 + $0x1700] ss:$16 sps:$4 sm:$0xff]  }
 0x173   : > { %7940 = vmatpush1.bf16.msra.mxu1 %v12315_v16  ;;  %7900 = vmatprep.subr.bf16.mxu0 %v12320_v17  ;;  %v12369_v16 = vld [vmem:[%s13844_s11 + $0x18e4] ss:$16 sps:$4 sm:$0xff]  }
 0x174   : > { %7941 = vmatprep.subr.bf16.mxu1 %v12323_v22  ;;  %v12372_v17 = vld [vmem:[%s13844_s11 + $0x1ae4] ss:$16 sps:$4 sm:$0xff]   ;;  %v12367_v22 = vld [vmem:[%s13844_s11 + $0x18e0] ss:$16 sps:$4 sm:$0xff]  }
 0x176   : > { %7901 = vmatpush2.bf16.msra.mxu0 %v12318_v41  ;;  %v12370_v41 = vld [vmem:[%s13844_s11 + $0x1ae0] ss:$16 sps:$4 sm:$0xff]  }
 0x177   : > { %7942 = vmatpush2.bf16.msra.mxu1 %v12321_v25  ;;  %7902 = vmatprep.subr.bf16.mxu0 %v12326_v28  ;;  %v14406_v25 = vrot.slane %v1620_v9, %v13894_v50  ;;  %v12375_v28 = vld [vmem:[%s13844_s11 + $0x18c4] ss:$16 sps:$4 sm:$0xff]   ;;  %v12394_v9 = vld [vmem:[%s13844_s11 + $0x1a60] ss:$16 sps:$4 sm:$0xff]  }
 0x178   : > { %7943 = vmatprep.subr.bf16.mxu1 %v12329_v29  ;;  %v12378_v29 = vld [vmem:[%s13844_s11 + $0x1ac4] ss:$16 sps:$4 sm:$0xff]  }
 0x17a   : > { %7903 = vmatpush2.bf16.msra.mxu0 %v12324_v30  ;;  %v12373_v30 = vld [vmem:[%s13844_s11 + $0x18c0] ss:$16 sps:$4 sm:$0xff]  }
 0x17b   : > { %7944 = vmatpush2.bf16.msra.mxu1 %v12327_v32  ;;  %7904 = vmatprep.subr.bf16.mxu0 %v12332_v34  ;;  %v12376_v32 = vld [vmem:[%s13844_s11 + $0x1ac0] ss:$16 sps:$4 sm:$0xff]   ;;  %v14418_v34 = vcombine.high %v14406_v25, %v14406_v25 }
 0x17c   : > { %7945 = vmatprep.subr.bf16.mxu1 %v12335_v35 }
 0x17e   : > { %7905 = vmatpush2.bf16.msra.mxu0 %v12330_v38 }
 0x17f   : > { %7946 = vmatpush2.bf16.msra.mxu1 %v12333_v40  ;;  %7906 = vmatprep.subr.bf16.mxu0 %v12338_v33 }
 0x180   : > { %7947 = vmatprep.subr.bf16.mxu1 %v12341_v7 }
 0x182   : > { %7907 = vmatpush2.bf16.msra.mxu0 %v12336_v45  ;;  %v12381_v45 = vld [vmem:[%s13844_s11 + $0x18a4] ss:$16 sps:$4 sm:$0xff]  }
 0x183   : > { %7948 = vmatpush2.bf16.msra.mxu1 %v12339_v47  ;;  %7908 = vmatprep.subr.bf16.mxu0 %v12344_v48  ;;  %v12384_v47 = vld [vmem:[%s13844_s11 + $0x1aa4] ss:$16 sps:$4 sm:$0xff]  }
 0x184   : > { %7949 = vmatprep.subr.bf16.mxu1 %v12347_v39 }
 0x186   : > { %7909 = vmatpush2.bf16.msra.mxu0 %v12342_v51  ;;  %v12379_v51 = vld [vmem:[%s13844_s11 + $0x18a0] ss:$16 sps:$4 sm:$0xff]  }
 0x187   : > { %7950 = vmatpush2.bf16.msra.mxu1 %v12345_v52  ;;  %7910 = vmatprep.subr.bf16.mxu0 %v12350_v53  ;;  %v12382_v52 = vld [vmem:[%s13844_s11 + $0x1aa0] ss:$16 sps:$4 sm:$0xff]  }
 0x188   : > { %7951 = vmatprep.subr.bf16.mxu1 %v12353_v54 }
 0x18a   : > { %7911 = vmatpush2.bf16.msra.mxu0 %v12348_v57 }
 0x18b   : > { %7952 = vmatpush2.bf16.msra.mxu1 %v12351_v58  ;;  %7912 = vmatprep.subr.bf16.mxu0 %v12356_v0  ;;  %v12390_v0 = vld [vmem:[%s13844_s11 + $0x1a84] ss:$16 sps:$4 sm:$0xff]  }
 0x18c   : > { %7953 = vmatprep.subr.bf16.mxu1 %v12359_v62  ;;  %v12385_v62 = vld [vmem:[%s13844_s11 + $0x1880] ss:$16 sps:$4 sm:$0xff]  }
 0x18e   : > { %7913 = vmatpush2.bf16.msra.mxu0 %v12354_v2  ;;  %v12388_v2 = vld [vmem:[%s13844_s11 + $0x1a80] ss:$16 sps:$4 sm:$0xff]  }
 0x18f   : > { %7954 = vmatpush2.bf16.msra.mxu1 %v12357_v3  ;;  %7914 = vmatprep.subr.bf16.mxu0 %v12362_v6  ;;  %v12393_v3 = vld [vmem:[%s13844_s11 + $0x1864] ss:$16 sps:$4 sm:$0xff]  }
 0x190   : > { %7955 = vmatprep.subr.bf16.mxu1 %v12365_v8  ;;  %v12396_v6 = vld [vmem:[%s13844_s11 + $0x1a64] ss:$16 sps:$4 sm:$0xff]   ;;  %v12391_v8 = vld [vmem:[%s13844_s11 + $0x1860] ss:$16 sps:$4 sm:$0xff]  }
 0x192   : > { %7915 = vmatpush2.bf16.msra.mxu0 %v12360_v11  ;;  %v12399_v11 = vld [vmem:[%s13844_s11 + $0x1844] ss:$16 sps:$4 sm:$0xff]  }
 0x193   : > { %7956 = vmatpush2.bf16.msra.mxu1 %v12363_v12  ;;  %7966 = vmatprep.subr.bf16.mxu0 %v12369_v16  ;;  %v12402_v12 = vld [vmem:[%s13844_s11 + $0x1a44] ss:$16 sps:$4 sm:$0xff]   ;;  %v12397_v16 = vld [vmem:[%s13844_s11 + $0x1840] ss:$16 sps:$4 sm:$0xff]  }
 0x194   : > { %8007 = vmatprep.subr.bf16.mxu1 %v12372_v17  ;;  %v12400_v17 = vld [vmem:[%s13844_s11 + $0x1a40] ss:$16 sps:$4 sm:$0xff]  }
 0x195   : > { %v7672_v35 = vpop.f32.mrf.mxu0  ;;  %7917 = vmatmul.mubr.bf16.vlgmr.msra.gmra.mxu0 %v14397_v10 }
 0x196   : > { %v7713_v38 = vpop.f32.mrf.mxu1  ;;  %7958 = vmatmul.mubr.bf16.vlgmr.msra.gmra.mxu1 %v14410_v59  ;;  %v7673_v40 = vadd.f32 %v7672_v35, %v14327_v37  ;;  %7967 = vmatpush1.bf16.msra.mxu0 %v12367_v22  ;;  %v12405_v22 = vld [vmem:[%s13844_s11 + $0x1824] ss:$16 sps:$4 sm:$0xff]   ;;  %v12409_v35 = vld [vmem:[%s13844_s11 + $0x1800] ss:$16 sps:$4 sm:$0xff]  }
 0x197   : > { %8008 = vmatpush1.bf16.msra.mxu1 %v12370_v41  ;;  %v7674_v33 = vpop.f32.mrf.mxu0  ;;  %7968 = vmatprep.subr.bf16.mxu0 %v12375_v28  ;;  %v12408_v41 = vld [vmem:[%s13844_s11 + $0x1a24] ss:$16 sps:$4 sm:$0xff]   ;;  %v12403_v28 = vld [vmem:[%s13844_s11 + $0x1820] ss:$16 sps:$4 sm:$0xff]  }
 0x198   : > { %v7715_v7 = vpop.f32.mrf.mxu1  ;;  %8009 = vmatprep.subr.bf16.mxu1 %v12378_v29  ;;  %v14425_v48 = vadd.f32 %v7713_v38, %v7673_v40  ;;  %v7675_v39 = vadd.f32 %v7674_v33, %v14334_v46  ;;  %7998 = vmatprep.mubr.bf16.mxu0 %v14406_v25  ;;  %v12387_v46 = vld [vmem:[%s13844_s11 + $0x1884] ss:$16 sps:$4 sm:$0xff]   ;;  %v12406_v29 = vld [vmem:[%s13844_s11 + $0x1a20] ss:$16 sps:$4 sm:$0xff]  }
 0x199   : > { %8039 = vmatprep.mubr.bf16.mxu1 %v14418_v34  ;;  %v7676_v37 = vpop.f32.mrf.mxu0  ;;  %v12412_v38 = vld [vmem:[%s13844_s11 + $0x1a00] ss:$16 sps:$4 sm:$0xff]   ;;  %v12417_v40 = vld [vmem:[%s13844_s11 + $0x19e4] ss:$16 sps:$4 sm:$0xff]  }
 0x19a   : > { %v7717_v53 = vpop.f32.mrf.mxu1  ;;  %v14432_v54 = vadd.f32 %v7715_v7, %v7675_v39  ;;  %7969 = vmatpush1.bf16.msra.mxu0 %v12373_v30  ;;  %v12411_v30 = vld [vmem:[%s13844_s11 + $0x1804] ss:$16 sps:$4 sm:$0xff]   ;;  %v12415_v7 = vld [vmem:[%s13844_s11 + $0x19e0] ss:$16 sps:$4 sm:$0xff]  }
 0x19b   : > { %8010 = vmatpush1.bf16.msra.mxu1 %v12376_v32  ;;  %v7677_v57 = vpop.f32.mrf.mxu0  ;;  %7970 = vmatprep.subr.bf16.mxu0 %v12381_v45  ;;  %v12414_v32 = vld [vmem:[%s13844_s11 + $0x1a04] ss:$16 sps:$4 sm:$0xff]   ;;  %v12418_v45 = vld [vmem:[%s13844_s11 + $0x1be0] ss:$16 sps:$4 sm:$0xff]  }
 0x19c   : > { %v7718_v58 = vpop.f32.mrf.mxu1  ;;  %8011 = vmatprep.subr.bf16.mxu1 %v12384_v47  ;;  %v12420_v33 = vld [vmem:[%s13844_s11 + $0x1be4] ss:$16 sps:$4 sm:$0xff]   ;;  %v12427_v57 = vld [vmem:[%s13844_s11 + $0x19a0] ss:$16 sps:$4 sm:$0xff]  }
 0x19d   : > { %v12423_v47 = vld [vmem:[%s13844_s11 + $0x19c4] ss:$16 sps:$4 sm:$0xff]   ;;  %v12430_v58 = vld [vmem:[%s13844_s11 + $0x1ba0] ss:$16 sps:$4 sm:$0xff]  }
 0x19e   : > { %7971 = vmatpush1.bf16.msra.mxu0 %v12379_v51  ;;  %v12426_v39 = vld [vmem:[%s13844_s11 + $0x1bc4] ss:$16 sps:$4 sm:$0xff]   ;;  %v12421_v51 = vld [vmem:[%s13844_s11 + $0x19c0] ss:$16 sps:$4 sm:$0xff]  }
 0x19f   : > { %8012 = vmatpush1.bf16.msra.mxu1 %v12382_v52  ;;  %7972 = vmatprep.subr.bf16.mxu0 %v12387_v46  ;;  %v12424_v52 = vld [vmem:[%s13844_s11 + $0x1bc0] ss:$16 sps:$4 sm:$0xff]   ;;  %v12429_v37 = vld [vmem:[%s13844_s11 + $0x19a4] ss:$16 sps:$4 sm:$0xff]  }
 0x1a0   : > { %8013 = vmatprep.subr.bf16.mxu1 %v12390_v0  ;;  %v12432_v53 = vld [vmem:[%s13844_s11 + $0x1ba4] ss:$16 sps:$4 sm:$0xff]  }
 0x1a1   : > { %v12435_v46 = vld [vmem:[%s13844_s11 + $0x1984] ss:$16 sps:$4 sm:$0xff]  }
 0x1a2   : > { %7973 = vmatpush1.bf16.msra.mxu0 %v12385_v62  ;;  %v12438_v0 = vld [vmem:[%s13844_s11 + $0x1b84] ss:$16 sps:$4 sm:$0xff]   ;;  %v12433_v62 = vld [vmem:[%s13844_s11 + $0x1980] ss:$16 sps:$4 sm:$0xff]  }
 0x1a3   : > { %8014 = vmatpush1.bf16.msra.mxu1 %v12388_v2  ;;  %7974 = vmatprep.subr.bf16.mxu0 %v12393_v3  ;;  %v12436_v2 = vld [vmem:[%s13844_s11 + $0x1b80] ss:$16 sps:$4 sm:$0xff]   ;;  %v12441_v3 = vld [vmem:[%s13844_s11 + $0x1964] ss:$16 sps:$4 sm:$0xff]  }
 0x1a4   : > { %8015 = vmatprep.subr.bf16.mxu1 %v12396_v6  ;;  %v12444_v6 = vld [vmem:[%s13844_s11 + $0x1b64] ss:$16 sps:$4 sm:$0xff]  }
 0x1a6   : > { %7975 = vmatpush1.bf16.msra.mxu0 %v12391_v8  ;;  %v12439_v8 = vld [vmem:[%s13844_s11 + $0x1960] ss:$16 sps:$4 sm:$0xff]  }
 0x1a7   : > { %8016 = vmatpush1.bf16.msra.mxu1 %v12394_v9  ;;  %7976 = vmatprep.subr.bf16.mxu0 %v12399_v11  ;;  %v12442_v9 = vld [vmem:[%s13844_s11 + $0x1b60] ss:$16 sps:$4 sm:$0xff]   ;;  %v12447_v11 = vld [vmem:[%s13844_s11 + $0x1944] ss:$16 sps:$4 sm:$0xff]  }
 0x1a8   : > { %8017 = vmatprep.subr.bf16.mxu1 %v12402_v12  ;;  %v12450_v12 = vld [vmem:[%s13844_s11 + $0x1b44] ss:$16 sps:$4 sm:$0xff]  }
 0x1aa   : > { %7977 = vmatpush1.bf16.msra.mxu0 %v12397_v16  ;;  %v1605_v16 = vcombine.high %v14379_v36, %v14379_v36  ;;  %v12451_v36 = vld [vmem:[%s13844_s11 + $0x1920] ss:$16 sps:$4 sm:$0xff]  }
 0x1ab   : > { %8018 = vmatpush1.bf16.msra.mxu1 %v12400_v17  ;;  %7978 = vmatprep.subr.bf16.mxu0 %v12405_v22  ;;  %v12445_v17 = vld [vmem:[%s13844_s11 + $0x1940] ss:$16 sps:$4 sm:$0xff]  }
 0x1ac   : > { %8019 = vmatprep.subr.bf16.mxu1 %v12408_v41  ;;  %v12448_v22 = vld [vmem:[%s13844_s11 + $0x1b40] ss:$16 sps:$4 sm:$0xff]   ;;  %v12453_v41 = vld [vmem:[%s13844_s11 + $0x1924] ss:$16 sps:$4 sm:$0xff]  }
 0x1ae   : > { %7979 = vmatpush1.bf16.msra.mxu0 %v12403_v28  ;;  %v12456_v28 = vld [vmem:[%s13844_s11 + $0x1b24] ss:$16 sps:$4 sm:$0xff]  }
 0x1af   : > { %8020 = vmatpush1.bf16.msra.mxu1 %v12406_v29  ;;  %7980 = vmatprep.subr.bf16.mxu0 %v12411_v30  ;;  %v14483_v29 = vrot.slane %v1605_v16, %v13894_v50  ;;  %v12454_v30 = vld [vmem:[%s13844_s11 + $0x1b20] ss:$16 sps:$4 sm:$0xff]  }
 0x1b0   : > { %8021 = vmatprep.subr.bf16.mxu1 %v12414_v32  ;;  %v12459_v32 = vld [vmem:[%s13844_s11 + $0x1904] ss:$16 sps:$4 sm:$0xff]   ;;  %v12475_v16 = vld [vmem:[%s13844_s11 + $0x1ca0] ss:$16 sps:$4 sm:$0xff]  }
 0x1b2   : > { %7981 = vmatpush1.bf16.msra.mxu0 %v12409_v35  ;;  %v12462_v35 = vld [vmem:[%s13844_s11 + $0x1b04] ss:$16 sps:$4 sm:$0xff]  }
 0x1b3   : > { %8022 = vmatpush1.bf16.msra.mxu1 %v12412_v38  ;;  %7982 = vmatprep.subr.bf16.mxu0 %v12417_v40  ;;  %v1621_v38 = vcombine.high %v14483_v29, %v14483_v29  ;;  %v14493_v40 = vrot.slane %v14387_v63, %v13894_v50 }
 0x1b4   : > { %8023 = vmatprep.subr.bf16.mxu1 %v12420_v33  ;;  %v12457_v33 = vld [vmem:[%s13844_s11 + $0x1900] ss:$16 sps:$4 sm:$0xff]  }
 0x1b5   : > { %v14506_v63 = vcombine.high %v14493_v40, %v14493_v40 }
 0x1b6   : > { %7983 = vmatpush2.bf16.msra.mxu0 %v12415_v7  ;;  %v12460_v7 = vld [vmem:[%s13844_s11 + $0x1b00] ss:$16 sps:$4 sm:$0xff]  }
 0x1b7   : > { %8024 = vmatpush2.bf16.msra.mxu1 %v12418_v45  ;;  %7984 = vmatprep.subr.bf16.mxu0 %v12423_v47  ;;  %v12465_v45 = vld [vmem:[%s13844_s11 + $0x1ce4] ss:$16 sps:$4 sm:$0xff]  }
 0x1b8   : > { %8025 = vmatprep.subr.bf16.mxu1 %v12426_v39  ;;  %v12468_v47 = vld [vmem:[%s13844_s11 + $0x1ee4] ss:$16 sps:$4 sm:$0xff]   ;;  %v12463_v39 = vld [vmem:[%s13844_s11 + $0x1ce0] ss:$16 sps:$4 sm:$0xff]  }
 0x1ba   : > { %7985 = vmatpush2.bf16.msra.mxu0 %v12421_v51  ;;  %v12466_v51 = vld [vmem:[%s13844_s11 + $0x1ee0] ss:$16 sps:$4 sm:$0xff]  }
 0x1bb   : > { %8026 = vmatpush2.bf16.msra.mxu1 %v12424_v52  ;;  %7986 = vmatprep.subr.bf16.mxu0 %v12429_v37  ;;  %v14502_v52 = vrot.slane %v1621_v38, %v13894_v50  ;;  %v12471_v37 = vld [vmem:[%s13844_s11 + $0x1cc4] ss:$16 sps:$4 sm:$0xff]  }
 0x1bc   : > { %8027 = vmatprep.subr.bf16.mxu1 %v12432_v53  ;;  %v12474_v53 = vld [vmem:[%s13844_s11 + $0x1ec4] ss:$16 sps:$4 sm:$0xff]  }
 0x1bd   : > { %v12489_v38 = vld [vmem:[%s13844_s11 + $0x1c64] ss:$16 sps:$4 sm:$0xff]  }
 0x1be   : > { %7987 = vmatpush2.bf16.msra.mxu0 %v12427_v57  ;;  %v12469_v57 = vld [vmem:[%s13844_s11 + $0x1cc0] ss:$16 sps:$4 sm:$0xff]  }
 0x1bf   : > { %8028 = vmatpush2.bf16.msra.mxu1 %v12430_v58  ;;  %7988 = vmatprep.subr.bf16.mxu0 %v12435_v46  ;;  %v12472_v58 = vld [vmem:[%s13844_s11 + $0x1ec0] ss:$16 sps:$4 sm:$0xff]   ;;  %v14514_v46 = vcombine.high %v14502_v52, %v14502_v52 }
 0x1c0   : > { %8029 = vmatprep.subr.bf16.mxu1 %v12438_v0 }
 0x1c2   : > { %7989 = vmatpush2.bf16.msra.mxu0 %v12433_v62 }
 0x1c3   : > { %8030 = vmatpush2.bf16.msra.mxu1 %v12436_v2  ;;  %7990 = vmatprep.subr.bf16.mxu0 %v12441_v3 }
 0x1c4   : > { %8031 = vmatprep.subr.bf16.mxu1 %v12444_v6 }
 0x1c6   : > { %7991 = vmatpush2.bf16.msra.mxu0 %v12439_v8  ;;  %v12477_v8 = vld [vmem:[%s13844_s11 + $0x1ca4] ss:$16 sps:$4 sm:$0xff]  }
 0x1c7   : > { %8032 = vmatpush2.bf16.msra.mxu1 %v12442_v9  ;;  %7992 = vmatprep.subr.bf16.mxu0 %v12447_v11  ;;  %v12480_v9 = vld [vmem:[%s13844_s11 + $0x1ea4] ss:$16 sps:$4 sm:$0xff]  }
 0x1c8   : > { %8033 = vmatprep.subr.bf16.mxu1 %v12450_v12 }
 0x1ca   : > { %7993 = vmatpush2.bf16.msra.mxu0 %v12445_v17  ;;  %v12478_v17 = vld [vmem:[%s13844_s11 + $0x1ea0] ss:$16 sps:$4 sm:$0xff]  }
 0x1cb   : > { %8034 = vmatpush2.bf16.msra.mxu1 %v12448_v22  ;;  %7994 = vmatprep.subr.bf16.mxu0 %v12453_v41 }
 0x1cc   : > { %8035 = vmatprep.subr.bf16.mxu1 %v12456_v28 }
 0x1ce   : > { %7995 = vmatpush2.bf16.msra.mxu0 %v12451_v36 }
 0x1cf   : > { %8036 = vmatpush2.bf16.msra.mxu1 %v12454_v30  ;;  %7996 = vmatprep.subr.bf16.mxu0 %v12459_v32  ;;  %v12486_v30 = vld [vmem:[%s13844_s11 + $0x1e84] ss:$16 sps:$4 sm:$0xff]   ;;  %v12481_v32 = vld [vmem:[%s13844_s11 + $0x1c80] ss:$16 sps:$4 sm:$0xff]  }
 0x1d0   : > { %8037 = vmatprep.subr.bf16.mxu1 %v12462_v35  ;;  %v12484_v35 = vld [vmem:[%s13844_s11 + $0x1e80] ss:$16 sps:$4 sm:$0xff]  }
 0x1d2   : > { %7997 = vmatpush2.bf16.msra.mxu0 %v12457_v33  ;;  %v12492_v33 = vld [vmem:[%s13844_s11 + $0x1e64] ss:$16 sps:$4 sm:$0xff]  }
 0x1d3   : > { %8038 = vmatpush2.bf16.msra.mxu1 %v12460_v7  ;;  %8048 = vmatprep.subr.bf16.mxu0 %v12465_v45  ;;  %v12487_v7 = vld [vmem:[%s13844_s11 + $0x1c60] ss:$16 sps:$4 sm:$0xff]  }
 0x1d4   : > { %8089 = vmatprep.subr.bf16.mxu1 %v12468_v47  ;;  %v12490_v45 = vld [vmem:[%s13844_s11 + $0x1e60] ss:$16 sps:$4 sm:$0xff]   ;;  %v12495_v47 = vld [vmem:[%s13844_s11 + $0x1c44] ss:$16 sps:$4 sm:$0xff]  }
 0x1d5   : > { %v7754_v0 = vpop.f32.mrf.mxu0  ;;  %7999 = vmatmul.mubr.bf16.vlgmr.msra.gmra.mxu0 %v14493_v40 }
 0x1d6   : > { %v7795_v62 = vpop.f32.mrf.mxu1  ;;  %8040 = vmatmul.mubr.bf16.vlgmr.msra.gmra.mxu1 %v14506_v63  ;;  %v7755_v2 = vadd.f32 %v7754_v0, %v14425_v48  ;;  %8049 = vmatpush1.bf16.msra.mxu0 %v12463_v39  ;;  %v12498_v39 = vld [vmem:[%s13844_s11 + $0x1e44] ss:$16 sps:$4 sm:$0xff]   ;;  %v12502_v0 = vld [vmem:[%s13844_s11 + $0x1e20] ss:$16 sps:$4 sm:$0xff]  }
 0x1d7   : > { %8090 = vmatpush1.bf16.msra.mxu1 %v12466_v51  ;;  %v7756_v3 = vpop.f32.mrf.mxu0  ;;  %8050 = vmatprep.subr.bf16.mxu0 %v12471_v37  ;;  %v12493_v51 = vld [vmem:[%s13844_s11 + $0x1c40] ss:$16 sps:$4 sm:$0xff]  }
 0x1d8   : > { %v7797_v6 = vpop.f32.mrf.mxu1  ;;  %8091 = vmatprep.subr.bf16.mxu1 %v12474_v53  ;;  %v14521_v11 = vadd.f32 %v7795_v62, %v7755_v2  ;;  %v7757_v12 = vadd.f32 %v7756_v3, %v14432_v54  ;;  %8080 = vmatprep.mubr.bf16.mxu0 %v14502_v52  ;;  %v12483_v54 = vld [vmem:[%s13844_s11 + $0x1c84] ss:$16 sps:$4 sm:$0xff]   ;;  %v12496_v37 = vld [vmem:[%s13844_s11 + $0x1e40] ss:$16 sps:$4 sm:$0xff]  }
 0x1d9   : > { %8121 = vmatprep.mubr.bf16.mxu1 %v14514_v46  ;;  %v7758_v48 = vpop.f32.mrf.mxu0  ;;  %v12501_v53 = vld [vmem:[%s13844_s11 + $0x1c24] ss:$16 sps:$4 sm:$0xff]   ;;  %v12505_v3 = vld [vmem:[%s13844_s11 + $0x1c00] ss:$16 sps:$4 sm:$0xff]  }
 0x1da   : > { %v7799_v22 = vpop.f32.mrf.mxu1  ;;  %v14528_v41 = vadd.f32 %v7797_v6, %v7757_v12  ;;  %8051 = vmatpush1.bf16.msra.mxu0 %v12469_v57  ;;  %v12504_v57 = vld [vmem:[%s13844_s11 + $0x1e24] ss:$16 sps:$4 sm:$0xff]   ;;  %v12508_v6 = vld [vmem:[%s13844_s11 + $0x1e00] ss:$16 sps:$4 sm:$0xff]  }
 0x1db   : > { %8092 = vmatpush1.bf16.msra.mxu1 %v12472_v58  ;;  %v7759_v28 = vpop.f32.mrf.mxu0  ;;  %8052 = vmatprep.subr.bf16.mxu0 %v12477_v8  ;;  %v12499_v58 = vld [vmem:[%s13844_s11 + $0x1c20] ss:$16 sps:$4 sm:$0xff]   ;;  %v12507_v62 = vld [vmem:[%s13844_s11 + $0x1c04] ss:$16 sps:$4 sm:$0xff]  }
 0x1dc   : > { %v7800_v36 = vpop.f32.mrf.mxu1  ;;  %8093 = vmatprep.subr.bf16.mxu1 %v12480_v9  ;;  %v12510_v2 = vld [vmem:[%s13844_s11 + $0x1e04] ss:$16 sps:$4 sm:$0xff]   ;;  %v12511_v12 = vld [vmem:[%s13844_s11 + $0x1de0] ss:$16 sps:$4 sm:$0xff]  }
 0x1dd   : > { %v12513_v8 = vld [vmem:[%s13844_s11 + $0x1de4] ss:$16 sps:$4 sm:$0xff]   ;;  %v12517_v22 = vld [vmem:[%s13844_s11 + $0x1dc0] ss:$16 sps:$4 sm:$0xff]  }
 0x1de   : > { %8053 = vmatpush1.bf16.msra.mxu0 %v12475_v16  ;;  %v12516_v9 = vld [vmem:[%s13844_s11 + $0x1fe4] ss:$16 sps:$4 sm:$0xff]   ;;  %v12514_v16 = vld [vmem:[%s13844_s11 + $0x1fe0] ss:$16 sps:$4 sm:$0xff]  }
 0x1df   : > { %8094 = vmatpush1.bf16.msra.mxu1 %v12478_v17  ;;  %8054 = vmatprep.subr.bf16.mxu0 %v12483_v54  ;;  %v12519_v17 = vld [vmem:[%s13844_s11 + $0x1dc4] ss:$16 sps:$4 sm:$0xff]   ;;  %v12520_v28 = vld [vmem:[%s13844_s11 + $0x1fc0] ss:$16 sps:$4 sm:$0xff]  }
 0x1e0   : > { %8095 = vmatprep.subr.bf16.mxu1 %v12486_v30  ;;  %v12522_v48 = vld [vmem:[%s13844_s11 + $0x1fc4] ss:$16 sps:$4 sm:$0xff]   ;;  %v12523_v30 = vld [vmem:[%s13844_s11 + $0x1da0] ss:$16 sps:$4 sm:$0xff]  }
 0x1e1   : > { %v12525_v36 = vld [vmem:[%s13844_s11 + $0x1da4] ss:$16 sps:$4 sm:$0xff]  }
 0x1e2   : > { %8055 = vmatpush1.bf16.msra.mxu0 %v12481_v32  ;;  %v12528_v54 = vld [vmem:[%s13844_s11 + $0x1fa4] ss:$16 sps:$4 sm:$0xff]   ;;  %v12526_v32 = vld [vmem:[%s13844_s11 + $0x1fa0] ss:$16 sps:$4 sm:$0xff]  }
 0x1e3   : > { %8096 = vmatpush1.bf16.msra.mxu1 %v12484_v35  ;;  %8056 = vmatprep.subr.bf16.mxu0 %v12489_v38  ;;  %v12531_v35 = vld [vmem:[%s13844_s11 + $0x1d84] ss:$16 sps:$4 sm:$0xff]  }
 0x1e4   : > { %8097 = vmatprep.subr.bf16.mxu1 %v12492_v33  ;;  %v12534_v38 = vld [vmem:[%s13844_s11 + $0x1f84] ss:$16 sps:$4 sm:$0xff]   ;;  %v12529_v33 = vld [vmem:[%s13844_s11 + $0x1d80] ss:$16 sps:$4 sm:$0xff]  }
 0x1e6   : > { %8057 = vmatpush1.bf16.msra.mxu0 %v12487_v7  ;;  %v12532_v7 = vld [vmem:[%s13844_s11 + $0x1f80] ss:$16 sps:$4 sm:$0xff]  }
 0x1e7   : > { %8098 = vmatpush1.bf16.msra.mxu1 %v12490_v45  ;;  %8058 = vmatprep.subr.bf16.mxu0 %v12495_v47  ;;  %v12537_v45 = vld [vmem:[%s13844_s11 + $0x1d64] ss:$16 sps:$4 sm:$0xff]  }
 0x1e8   : > { %8099 = vmatprep.subr.bf16.mxu1 %v12498_v39  ;;  %v12540_v47 = vld [vmem:[%s13844_s11 + $0x1f64] ss:$16 sps:$4 sm:$0xff]   ;;  %v12535_v39 = vld [vmem:[%s13844_s11 + $0x1d60] ss:$16 sps:$4 sm:$0xff]  }
 0x1ea   : > { %8059 = vmatpush1.bf16.msra.mxu0 %v12493_v51  ;;  %v12538_v51 = vld [vmem:[%s13844_s11 + $0x1f60] ss:$16 sps:$4 sm:$0xff]  }
 0x1eb   : > { %8100 = vmatpush1.bf16.msra.mxu1 %v12496_v37  ;;  %8060 = vmatprep.subr.bf16.mxu0 %v12501_v53  ;;  %v12543_v37 = vld [vmem:[%s13844_s11 + $0x1d44] ss:$16 sps:$4 sm:$0xff]  }
 0x1ec   : > { %8101 = vmatprep.subr.bf16.mxu1 %v12504_v57  ;;  %v12546_v53 = vld [vmem:[%s13844_s11 + $0x1f44] ss:$16 sps:$4 sm:$0xff]   ;;  %v12541_v57 = vld [vmem:[%s13844_s11 + $0x1d40] ss:$16 sps:$4 sm:$0xff]  }
 0x1ee   : > { %8061 = vmatpush1.bf16.msra.mxu0 %v12499_v58  ;;  %v12544_v58 = vld [vmem:[%s13844_s11 + $0x1f40] ss:$16 sps:$4 sm:$0xff]  }
 0x1ef   : > { %8102 = vmatpush1.bf16.msra.mxu1 %v12502_v0  ;;  %8062 = vmatprep.subr.bf16.mxu0 %v12507_v62  ;;  %v12549_v0 = vld [vmem:[%s13844_s11 + $0x1d24] ss:$16 sps:$4 sm:$0xff]  }
 0x1f0   : > { %8103 = vmatprep.subr.bf16.mxu1 %v12510_v2  ;;  %v12552_v62 = vld [vmem:[%s13844_s11 + $0x1f24] ss:$16 sps:$4 sm:$0xff]   ;;  %v14577_v2 = vld.sshfl [vmem:[%s13839_s30 + $0x20] sm:$0x33 pattern:$0x75316420] }
 0x1f2   : > { %8063 = vmatpush1.bf16.msra.mxu0 %v12505_v3  ;;  %v12547_v3 = vld [vmem:[%s13844_s11 + $0x1d20] ss:$16 sps:$4 sm:$0xff]  }
 0x1f3   : > { %8104 = vmatpush1.bf16.msra.mxu1 %v12508_v6  ;;  %8064 = vmatprep.subr.bf16.mxu0 %v12513_v8  ;;  %v12550_v6 = vld [vmem:[%s13844_s11 + $0x1f20] ss:$16 sps:$4 sm:$0xff]   ;;  %v12555_v8 = vld [vmem:[%s13844_s11 + $0x1d04] ss:$16 sps:$4 sm:$0xff]  }
 0x1f4   : > { %8105 = vmatprep.subr.bf16.mxu1 %v12516_v9  ;;  %v12558_v9 = vld [vmem:[%s13844_s11 + $0x1f04] ss:$16 sps:$4 sm:$0xff]  }
 0x1f6   : > { %8065 = vmatpush2.bf16.msra.mxu0 %v12511_v12  ;;  %v1661_v12 = vcombine.high %v14577_v2, %v14577_v2 }
 0x1f7   : > { %8106 = vmatpush2.bf16.msra.mxu1 %v12514_v16  ;;  %8066 = vmatprep.subr.bf16.mxu0 %v12519_v17  ;;  %v14587_v16 = vrot.slane %v14483_v29, %v13894_v50  ;;  %v12553_v17 = vld [vmem:[%s13844_s11 + $0x1d00] ss:$16 sps:$4 sm:$0xff]  }
 0x1f8   : > { %8107 = vmatprep.subr.bf16.mxu1 %v12522_v48  ;;  %v12556_v48 = vld [vmem:[%s13844_s11 + $0x1f00] ss:$16 sps:$4 sm:$0xff]  }
 0x1f9   : > { %v14600_v29 = vcombine.high %v14587_v16, %v14587_v16 }
 0x1fa   : > { %8067 = vmatpush2.bf16.msra.mxu0 %v12517_v22  ;;  %v12562_v22 = vld [vmem:[%s13844_s11 + $0x20e4] ss:$16 sps:$4 sm:$0xff]  }
 0x1fb   : > { %8108 = vmatpush2.bf16.msra.mxu1 %v12520_v28  ;;  %8068 = vmatprep.subr.bf16.mxu0 %v12525_v36  ;;  %v12565_v28 = vld [vmem:[%s13844_s11 + $0x22e4] ss:$16 sps:$4 sm:$0xff]   ;;  %v12560_v36 = vld [vmem:[%s13844_s11 + $0x20e0] ss:$16 sps:$4 sm:$0xff]  }
 0x1fc   : > { %8109 = vmatprep.subr.bf16.mxu1 %v12528_v54  ;;  %v12563_v54 = vld [vmem:[%s13844_s11 + $0x22e0] ss:$16 sps:$4 sm:$0xff]  }
 0x1fe   : > { %8069 = vmatpush2.bf16.msra.mxu0 %v12523_v30  ;;  %v14596_v30 = vrot.slane %v1661_v12, %v13894_v50 }
 0x1ff   : > { %8110 = vmatpush2.bf16.msra.mxu1 %v12526_v32  ;;  %8070 = vmatprep.subr.bf16.mxu0 %v12531_v35  ;;  %v12568_v32 = vld [vmem:[%s13844_s11 + $0x20c4] ss:$16 sps:$4 sm:$0xff]  }
 0x200   : > { %8111 = vmatprep.subr.bf16.mxu1 %v12534_v38  ;;  %v12571_v35 = vld [vmem:[%s13844_s11 + $0x22c4] ss:$16 sps:$4 sm:$0xff]   ;;  %v12566_v38 = vld [vmem:[%s13844_s11 + $0x20c0] ss:$16 sps:$4 sm:$0xff]  }
 0x202   : > { %8071 = vmatpush2.bf16.msra.mxu0 %v12529_v33  ;;  %v12569_v33 = vld [vmem:[%s13844_s11 + $0x22c0] ss:$16 sps:$4 sm:$0xff]  }
 0x203   : > { %8112 = vmatpush2.bf16.msra.mxu1 %v12532_v7  ;;  %8072 = vmatprep.subr.bf16.mxu0 %v12537_v45  ;;  %v14608_v7 = vcombine.high %v14596_v30, %v14596_v30 }
 0x204   : > { %8113 = vmatprep.subr.bf16.mxu1 %v12540_v47 }
 0x206   : > { %8073 = vmatpush2.bf16.msra.mxu0 %v12535_v39 }
 0x207   : > { %8114 = vmatpush2.bf16.msra.mxu1 %v12538_v51  ;;  %8074 = vmatprep.subr.bf16.mxu0 %v12543_v37 }
 0x208   : > { %8115 = vmatprep.subr.bf16.mxu1 %v12546_v53  ;;  %v12574_v53 = vld [vmem:[%s13844_s11 + $0x20a4] ss:$16 sps:$4 sm:$0xff]  }
 0x20a   : > { %8075 = vmatpush2.bf16.msra.mxu0 %v12541_v57  ;;  %v12577_v57 = vld [vmem:[%s13844_s11 + $0x22a4] ss:$16 sps:$4 sm:$0xff]  }
 0x20b   : > { %8116 = vmatpush2.bf16.msra.mxu1 %v12544_v58  ;;  %8076 = vmatprep.subr.bf16.mxu0 %v12549_v0 }
 0x20c   : > { %8117 = vmatprep.subr.bf16.mxu1 %v12552_v62  ;;  %v12572_v62 = vld [vmem:[%s13844_s11 + $0x20a0] ss:$16 sps:$4 sm:$0xff]  }
 0x20e   : > { %8077 = vmatpush2.bf16.msra.mxu0 %v12547_v3  ;;  %v12575_v3 = vld [vmem:[%s13844_s11 + $0x22a0] ss:$16 sps:$4 sm:$0xff]  }
 0x20f   : > { %8118 = vmatpush2.bf16.msra.mxu1 %v12550_v6  ;;  %8078 = vmatprep.subr.bf16.mxu0 %v12555_v8 }
 0x210   : > { %8119 = vmatprep.subr.bf16.mxu1 %v12558_v9 }
 0x212   : > { %8079 = vmatpush2.bf16.msra.mxu0 %v12553_v17  ;;  %v12583_v17 = vld [vmem:[%s13844_s11 + $0x2284] ss:$16 sps:$4 sm:$0xff]  }
 0x213   : > { %8120 = vmatpush2.bf16.msra.mxu1 %v12556_v48  ;;  %8130 = vmatprep.subr.bf16.mxu0 %v12562_v22  ;;  %v12578_v48 = vld [vmem:[%s13844_s11 + $0x2080] ss:$16 sps:$4 sm:$0xff]  }
 0x214   : > { %8171 = vmatprep.subr.bf16.mxu1 %v12565_v28  ;;  %v12581_v22 = vld [vmem:[%s13844_s11 + $0x2280] ss:$16 sps:$4 sm:$0xff]   ;;  %v12586_v28 = vld [vmem:[%s13844_s11 + $0x2064] ss:$16 sps:$4 sm:$0xff]  }
 0x215   : > { %v7836_v45 = vpop.f32.mrf.mxu0  ;;  %8081 = vmatmul.mubr.bf16.vlgmr.msra.gmra.mxu0 %v14587_v16 }
 0x216   : > { %v7877_v47 = vpop.f32.mrf.mxu1  ;;  %8122 = vmatmul.mubr.bf16.vlgmr.msra.gmra.mxu1 %v14600_v29  ;;  %v7837_v39 = vadd.f32 %v7836_v45, %v14521_v11  ;;  %8131 = vmatpush1.bf16.msra.mxu0 %v12560_v36  ;;  %v12589_v36 = vld [vmem:[%s13844_s11 + $0x2264] ss:$16 sps:$4 sm:$0xff]   ;;  %v12593_v45 = vld [vmem:[%s13844_s11 + $0x2240] ss:$16 sps:$4 sm:$0xff]  }
 0x217   : > { %8172 = vmatpush1.bf16.msra.mxu1 %v12563_v54  ;;  %v7838_v51 = vpop.f32.mrf.mxu0  ;;  %8132 = vmatprep.subr.bf16.mxu0 %v12568_v32  ;;  %v12584_v54 = vld [vmem:[%s13844_s11 + $0x2060] ss:$16 sps:$4 sm:$0xff]  }
 0x218   : > { %v7879_v37 = vpop.f32.mrf.mxu1  ;;  %8173 = vmatprep.subr.bf16.mxu1 %v12571_v35  ;;  %v14615_v58 = vadd.f32 %v7877_v47, %v7837_v39  ;;  %v7839_v0 = vadd.f32 %v7838_v51, %v14528_v41  ;;  %8162 = vmatprep.mubr.bf16.mxu0 %v14596_v30  ;;  %v12580_v41 = vld [vmem:[%s13844_s11 + $0x2084] ss:$16 sps:$4 sm:$0xff]   ;;  %v12587_v32 = vld [vmem:[%s13844_s11 + $0x2260] ss:$16 sps:$4 sm:$0xff]  }
 0x219   : > { %8203 = vmatprep.mubr.bf16.mxu1 %v14608_v7  ;;  %v7840_v11 = vpop.f32.mrf.mxu0  ;;  %v12592_v35 = vld [vmem:[%s13844_s11 + $0x2044] ss:$16 sps:$4 sm:$0xff]   ;;  %v12596_v51 = vld [vmem:[%s13844_s11 + $0x2020] ss:$16 sps:$4 sm:$0xff]  }
 0x21a   : > { %v7881_v6 = vpop.f32.mrf.mxu1  ;;  %v14622_v8 = vadd.f32 %v7879_v37, %v7839_v0  ;;  %8133 = vmatpush1.bf16.msra.mxu0 %v12566_v38  ;;  %v12595_v38 = vld [vmem:[%s13844_s11 + $0x2244] ss:$16 sps:$4 sm:$0xff]   ;;  %v12599_v37 = vld [vmem:[%s13844_s11 + $0x2220] ss:$16 sps:$4 sm:$0xff]  }
 0x21b   : > { %8174 = vmatpush1.bf16.msra.mxu1 %v12569_v33  ;;  %v7841_v9 = vpop.f32.mrf.mxu0  ;;  %8134 = vmatprep.subr.bf16.mxu0 %v12574_v53  ;;  %v12590_v33 = vld [vmem:[%s13844_s11 + $0x2040] ss:$16 sps:$4 sm:$0xff]   ;;  %v12598_v47 = vld [vmem:[%s13844_s11 + $0x2024] ss:$16 sps:$4 sm:$0xff]  }
 0x21c   : > { %v7882_v12 = vpop.f32.mrf.mxu1  ;;  %8175 = vmatprep.subr.bf16.mxu1 %v12577_v57  ;;  %v12601_v39 = vld [vmem:[%s13844_s11 + $0x2224] ss:$16 sps:$4 sm:$0xff]   ;;  %v12602_v0 = vld [vmem:[%s13844_s11 + $0x2000] ss:$16 sps:$4 sm:$0xff]  }
 0x21d   : > { %v12604_v53 = vld [vmem:[%s13844_s11 + $0x2004] ss:$16 sps:$4 sm:$0xff]   ;;  %v12608_v6 = vld [vmem:[%s13844_s11 + $0x21e0] ss:$16 sps:$4 sm:$0xff]  }
 0x21e   : > { %8135 = vmatpush1.bf16.msra.mxu0 %v12572_v62  ;;  %v12607_v57 = vld [vmem:[%s13844_s11 + $0x2204] ss:$16 sps:$4 sm:$0xff]   ;;  %v12605_v62 = vld [vmem:[%s13844_s11 + $0x2200] ss:$16 sps:$4 sm:$0xff]  }
 0x21f   : > { %8176 = vmatpush1.bf16.msra.mxu1 %v12575_v3  ;;  %8136 = vmatprep.subr.bf16.mxu0 %v12580_v41  ;;  %v12610_v3 = vld [vmem:[%s13844_s11 + $0x21e4] ss:$16 sps:$4 sm:$0xff]   ;;  %v12611_v9 = vld [vmem:[%s13844_s11 + $0x23e0] ss:$16 sps:$4 sm:$0xff]  }
 0x220   : > { %8177 = vmatprep.subr.bf16.mxu1 %v12583_v17  ;;  %v12613_v11 = vld [vmem:[%s13844_s11 + $0x23e4] ss:$16 sps:$4 sm:$0xff]   ;;  %v12614_v17 = vld [vmem:[%s13844_s11 + $0x21c0] ss:$16 sps:$4 sm:$0xff]  }
 0x221   : > { %v12616_v12 = vld [vmem:[%s13844_s11 + $0x21c4] ss:$16 sps:$4 sm:$0xff]  }
 0x222   : > { %8137 = vmatpush1.bf16.msra.mxu0 %v12578_v48  ;;  %v12619_v41 = vld [vmem:[%s13844_s11 + $0x23c4] ss:$16 sps:$4 sm:$0xff]   ;;  %v12617_v48 = vld [vmem:[%s13844_s11 + $0x23c0] ss:$16 sps:$4 sm:$0xff]  }
 0x223   : > { %8178 = vmatpush1.bf16.msra.mxu1 %v12581_v22  ;;  %8138 = vmatprep.subr.bf16.mxu0 %v12586_v28  ;;  %v12622_v22 = vld [vmem:[%s13844_s11 + $0x21a4] ss:$16 sps:$4 sm:$0xff]  }
 0x224   : > { %8179 = vmatprep.subr.bf16.mxu1 %v12589_v36  ;;  %v12625_v28 = vld [vmem:[%s13844_s11 + $0x23a4] ss:$16 sps:$4 sm:$0xff]   ;;  %v12620_v36 = vld [vmem:[%s13844_s11 + $0x21a0] ss:$16 sps:$4 sm:$0xff]  }
 0x226   : > { %8139 = vmatpush1.bf16.msra.mxu0 %v12584_v54  ;;  %v12623_v54 = vld [vmem:[%s13844_s11 + $0x23a0] ss:$16 sps:$4 sm:$0xff]  }
 0x227   : > { %8180 = vmatpush1.bf16.msra.mxu1 %v12587_v32  ;;  %8140 = vmatprep.subr.bf16.mxu0 %v12592_v35  ;;  %v12628_v32 = vld [vmem:[%s13844_s11 + $0x2184] ss:$16 sps:$4 sm:$0xff]  }
 0x228   : > { %8181 = vmatprep.subr.bf16.mxu1 %v12595_v38  ;;  %v12631_v35 = vld [vmem:[%s13844_s11 + $0x2384] ss:$16 sps:$4 sm:$0xff]   ;;  %v12626_v38 = vld [vmem:[%s13844_s11 + $0x2180] ss:$16 sps:$4 sm:$0xff]  }
 0x22a   : > { %8141 = vmatpush1.bf16.msra.mxu0 %v12590_v33  ;;  %v12629_v33 = vld [vmem:[%s13844_s11 + $0x2380] ss:$16 sps:$4 sm:$0xff]  }
 0x22b   : > { %8182 = vmatpush1.bf16.msra.mxu1 %v12593_v45  ;;  %8142 = vmatprep.subr.bf16.mxu0 %v12598_v47  ;;  %v12634_v45 = vld [vmem:[%s13844_s11 + $0x2164] ss:$16 sps:$4 sm:$0xff]  }
 0x22c   : > { %8183 = vmatprep.subr.bf16.mxu1 %v12601_v39  ;;  %v12637_v47 = vld [vmem:[%s13844_s11 + $0x2364] ss:$16 sps:$4 sm:$0xff]   ;;  %v12632_v39 = vld [vmem:[%s13844_s11 + $0x2160] ss:$16 sps:$4 sm:$0xff]  }
 0x22e   : > { %8143 = vmatpush1.bf16.msra.mxu0 %v12596_v51  ;;  %v12635_v51 = vld [vmem:[%s13844_s11 + $0x2360] ss:$16 sps:$4 sm:$0xff]  }
 0x22f   : > { %8184 = vmatpush1.bf16.msra.mxu1 %v12599_v37  ;;  %8144 = vmatprep.subr.bf16.mxu0 %v12604_v53  ;;  %v12640_v37 = vld [vmem:[%s13844_s11 + $0x2144] ss:$16 sps:$4 sm:$0xff]  }
 0x230   : > { %8185 = vmatprep.subr.bf16.mxu1 %v12607_v57  ;;  %v12643_v53 = vld [vmem:[%s13844_s11 + $0x2344] ss:$16 sps:$4 sm:$0xff]   ;;  %v12638_v57 = vld [vmem:[%s13844_s11 + $0x2140] ss:$16 sps:$4 sm:$0xff]  }
 0x232   : > { %8145 = vmatpush1.bf16.msra.mxu0 %v12602_v0  ;;  %v12641_v0 = vld [vmem:[%s13844_s11 + $0x2340] ss:$16 sps:$4 sm:$0xff]  }
 0x233   : > { %8186 = vmatpush1.bf16.msra.mxu1 %v12605_v62  ;;  %8146 = vmatprep.subr.bf16.mxu0 %v12610_v3  ;;  %v12646_v62 = vld [vmem:[%s13844_s11 + $0x2124] ss:$16 sps:$4 sm:$0xff]  }
 0x234   : > { %8187 = vmatprep.subr.bf16.mxu1 %v12613_v11  ;;  %v12649_v3 = vld [vmem:[%s13844_s11 + $0x2324] ss:$16 sps:$4 sm:$0xff]   ;;  %v12644_v11 = vld [vmem:[%s13844_s11 + $0x2120] ss:$16 sps:$4 sm:$0xff]  }
 0x236   : > { %8147 = vmatpush2.bf16.msra.mxu0 %v12608_v6  ;;  %v12647_v6 = vld [vmem:[%s13844_s11 + $0x2320] ss:$16 sps:$4 sm:$0xff]  }
 0x237   : > { %8188 = vmatpush2.bf16.msra.mxu1 %v12611_v9  ;;  %8148 = vmatprep.subr.bf16.mxu0 %v12616_v12  ;;  %v12652_v9 = vld [vmem:[%s13844_s11 + $0x2104] ss:$16 sps:$4 sm:$0xff]  }
 0x238   : > { %8189 = vmatprep.subr.bf16.mxu1 %v12619_v41  ;;  %v12655_v12 = vld [vmem:[%s13844_s11 + $0x2304] ss:$16 sps:$4 sm:$0xff]   ;;  %v14676_v41 = vrot.slane %v14577_v2, %v13894_v50  ;;  %v12664_v50 = vld [vmem:[%s13844_s11 + $0xcc] ss:$16 sps:$4 sm:$0xff]  }
 0x239   : > { %v12667_v2 = vld [vmem:[%s13844_s11 + $0x2cc] ss:$16 sps:$4 sm:$0xff]  }
 0x23a   : > { %8149 = vmatpush2.bf16.msra.mxu0 %v12614_v17  ;;  %v12650_v17 = vld [vmem:[%s13844_s11 + $0x2100] ss:$16 sps:$4 sm:$0xff]  }
 0x23b   : > { %8190 = vmatpush2.bf16.msra.mxu1 %v12617_v48  ;;  %8150 = vmatprep.subr.bf16.mxu0 %v12622_v22  ;;  %v12653_v48 = vld [vmem:[%s13844_s11 + $0x2300] ss:$16 sps:$4 sm:$0xff]   ;;  %v12658_v22 = vld [vmem:[%s13844_s11 + $0xec] ss:$16 sps:$4 sm:$0xff]  }
 0x23c   : > { %8191 = vmatprep.subr.bf16.mxu1 %v12625_v28  ;;  %v12661_v28 = vld [vmem:[%s13844_s11 + $0x2ec] ss:$16 sps:$4 sm:$0xff]  }
 0x23e   : > { %8151 = vmatpush2.bf16.msra.mxu0 %v12620_v36  ;;  %v12656_v36 = vld [vmem:[%s13844_s11 + $0xe8] ss:$16 sps:$4 sm:$0xff]  }
 0x23f   : > { %8192 = vmatpush2.bf16.msra.mxu1 %v12623_v54  ;;  %8152 = vmatprep.subr.bf16.mxu0 %v12628_v32  ;;  %v12659_v54 = vld [vmem:[%s13844_s11 + $0x2e8] ss:$16 sps:$4 sm:$0xff]   ;;  %v14686_v32 = vcombine.high %v14676_v41, %v14676_v41 }
 0x240   : > { %8193 = vmatprep.subr.bf16.mxu1 %v12631_v35  ;;  %v12662_v35 = vld [vmem:[%s13844_s11 + $0xc8] ss:$16 sps:$4 sm:$0xff]  }
 0x242   : > { %8153 = vmatpush2.bf16.msra.mxu0 %v12626_v38  ;;  %v12665_v38 = vld [vmem:[%s13844_s11 + $0x2c8] ss:$16 sps:$4 sm:$0xff]  }
 0x243   : > { %8194 = vmatpush2.bf16.msra.mxu1 %v12629_v33  ;;  %8154 = vmatprep.subr.bf16.mxu0 %v12634_v45 }
 0x244   : > { %8195 = vmatprep.subr.bf16.mxu1 %v12637_v47 }
 0x246   : > { %8155 = vmatpush2.bf16.msra.mxu0 %v12632_v39 }
 0x247   : > { %8196 = vmatpush2.bf16.msra.mxu1 %v12635_v51  ;;  %8156 = vmatprep.subr.bf16.mxu0 %v12640_v37  ;;  %v12670_v37 = vld [vmem:[%s13844_s11 + $0xac] ss:$16 sps:$4 sm:$0xff]  }
 0x248   : > { %8197 = vmatprep.subr.bf16.mxu1 %v12643_v53  ;;  %v12673_v53 = vld [vmem:[%s13844_s11 + $0x2ac] ss:$16 sps:$4 sm:$0xff]  }
 0x24a   : > { %8157 = vmatpush2.bf16.msra.mxu0 %v12638_v57 }
 0x24b   : > { %8198 = vmatpush2.bf16.msra.mxu1 %v12641_v0  ;;  %8158 = vmatprep.subr.bf16.mxu0 %v12646_v62  ;;  %v12668_v62 = vld [vmem:[%s13844_s11 + $0xa8] ss:$16 sps:$4 sm:$0xff]  }
 0x24c   : > { %8199 = vmatprep.subr.bf16.mxu1 %v12649_v3  ;;  %v12671_v3 = vld [vmem:[%s13844_s11 + $0x2a8] ss:$16 sps:$4 sm:$0xff]  }
 0x24e   : > { %8159 = vmatpush2.bf16.msra.mxu0 %v12644_v11 }
 0x24f   : > { %8200 = vmatpush2.bf16.msra.mxu1 %v12647_v6  ;;  %8160 = vmatprep.subr.bf16.mxu0 %v12652_v9 }
 0x250   : > { %8201 = vmatprep.subr.bf16.mxu1 %v12655_v12 }
 0x252   : > { %8161 = vmatpush2.bf16.msra.mxu0 %v12650_v17  ;;  %v12677_v17 = vld [vmem:[%s13844_s11 + $0x288] ss:$16 sps:$4 sm:$0xff]  }
 0x253   : > { %8202 = vmatpush2.bf16.msra.mxu1 %v12653_v48  ;;  %8212 = vmatprep.subr.bf16.mxu0 %v12658_v22  ;;  %v12682_v48 = vld [vmem:[%s13844_s11 + $0x6c] ss:$16 sps:$4 sm:$0xff]  }
 0x254   : > { %8253 = vmatprep.subr.bf16.mxu1 %v12661_v28  ;;  %v12685_v22 = vld [vmem:[%s13844_s11 + $0x26c] ss:$16 sps:$4 sm:$0xff]   ;;  %v12680_v28 = vld [vmem:[%s13844_s11 + $0x68] ss:$16 sps:$4 sm:$0xff]  }
 0x255   : > { %v7918_v33 = vpop.f32.mrf.mxu0  ;;  %8163 = vmatmul.mubr.bf16.vlgmr.msra.gmra.mxu0 %v14676_v41 }
 0x256   : > { %v7959_v45 = vpop.f32.mrf.mxu1  ;;  %8204 = vmatmul.mubr.bf16.vlgmr.msra.gmra.mxu1 %v14686_v32  ;;  %v7919_v47 = vadd.f32 %v7918_v33, %v14615_v58  ;;  %8213 = vmatpush1.bf16.msra.mxu0 %v12656_v36  ;;  %v12683_v36 = vld [vmem:[%s13844_s11 + $0x268] ss:$16 sps:$4 sm:$0xff]   ;;  %v12697_v33 = vld [vmem:[%s13844_s11 + $0x22c] ss:$16 sps:$4 sm:$0xff]  }
 0x257   : > { %8254 = vmatpush1.bf16.msra.mxu1 %v12659_v54  ;;  %v7920_v39 = vpop.f32.mrf.mxu0  ;;  %8214 = vmatprep.subr.bf16.mxu0 %v12664_v50  ;;  %v12688_v54 = vld [vmem:[%s13844_s11 + $0x4c] ss:$16 sps:$4 sm:$0xff]  }
 0x258   : > { %v7961_v51 = vpop.f32.mrf.mxu1  ;;  %8255 = vmatprep.subr.bf16.mxu1 %v12667_v2  ;;  %v14697_v57 = vadd.f32 %v7959_v45, %v7919_v47  ;;  %v7921_v0 = vadd.f32 %v7920_v39, %v14622_v8  ;;  %8244 = vmatprep.mubr.bf16.mxu0 %v13906_v61  ;;  %v12676_v8 = vld [vmem:[%s13844_s11 + $0x8c] ss:$16 sps:$4 sm:$0xff]   ;;  %v12686_v2 = vld [vmem:[%s13844_s11 + $0x48] ss:$16 sps:$4 sm:$0xff]  }
 0x259   : > { %8285 = vmatprep.mubr.bf16.mxu1 %v13913_v1  ;;  %v7922_v58 = vpop.f32.mrf.mxu0  ;;  %v12679_v61 = vld [vmem:[%s13844_s11 + $0x28c] ss:$16 sps:$4 sm:$0xff]   ;;  %v12674_v1 = vld [vmem:[%s13844_s11 + $0x88] ss:$16 sps:$4 sm:$0xff]  }
 0x25a   : > { %v7963_v11 = vpop.f32.mrf.mxu1  ;;  %v14704_v6 = vadd.f32 %v7961_v51, %v7921_v0  ;;  %8215 = vmatpush1.bf16.msra.mxu0 %v12662_v35  ;;  %v12691_v50 = vld [vmem:[%s13844_s11 + $0x24c] ss:$16 sps:$4 sm:$0xff]   ;;  %v12689_v35 = vld [vmem:[%s13844_s11 + $0x248] ss:$16 sps:$4 sm:$0xff]  }
 0x25b   : > { %8256 = vmatpush1.bf16.msra.mxu1 %v12665_v38  ;;  %v7923_v9 = vpop.f32.mrf.mxu0  ;;  %8216 = vmatprep.subr.bf16.mxu0 %v12670_v37  ;;  %v12694_v38 = vld [vmem:[%s13844_s11 + $0x2c] ss:$16 sps:$4 sm:$0xff]   ;;  %v12692_v45 = vld [vmem:[%s13844_s11 + $0x28] ss:$16 sps:$4 sm:$0xff]  }
 0x25c   : > { %v7964_v12 = vpop.f32.mrf.mxu1  ;;  %8257 = vmatprep.subr.bf16.mxu1 %v12673_v53  ;;  %v12695_v47 = vld [vmem:[%s13844_s11 + $0x228] ss:$16 sps:$4 sm:$0xff]   ;;  %v12700_v39 = vld [vmem:[%s13844_s11 + $0xc] ss:$16 sps:$4 sm:$0xff]  }
 0x25d   : > { %v12703_v51 = vld [vmem:[%s13844_s11 + $0x20c] ss:$16 sps:$4 sm:$0xff]   ;;  %v12698_v37 = vld [vmem:[%s13844_s11 + $0x8] ss:$16 sps:$4 sm:$0xff]  }
 0x25e   : > { %8217 = vmatpush1.bf16.msra.mxu0 %v12668_v62  ;;  %v12701_v53 = vld [vmem:[%s13844_s11 + $0x208] ss:$16 sps:$4 sm:$0xff]   ;;  %v12706_v0 = vld [vmem:[%s13844_s11 + $0x1ec] ss:$16 sps:$4 sm:$0xff]  }
 0x25f   : > { %8258 = vmatpush1.bf16.msra.mxu1 %v12671_v3  ;;  %8218 = vmatprep.subr.bf16.mxu0 %v12676_v8  ;;  %v12709_v62 = vld [vmem:[%s13844_s11 + $0x3ec] ss:$16 sps:$4 sm:$0xff]   ;;  %v12704_v3 = vld [vmem:[%s13844_s11 + $0x1e8] ss:$16 sps:$4 sm:$0xff]  }
 0x260   : > { %8259 = vmatprep.subr.bf16.mxu1 %v12679_v61  ;;  %v12707_v58 = vld [vmem:[%s13844_s11 + $0x3e8] ss:$16 sps:$4 sm:$0xff]   ;;  %v12712_v11 = vld [vmem:[%s13844_s11 + $0x1cc] ss:$16 sps:$4 sm:$0xff]  }
 0x261   : > { %v12715_v9 = vld [vmem:[%s13844_s11 + $0x3cc] ss:$16 sps:$4 sm:$0xff]   ;;  %v12710_v12 = vld [vmem:[%s13844_s11 + $0x1c8] ss:$16 sps:$4 sm:$0xff]  }
 0x262   : > { %8219 = vmatpush1.bf16.msra.mxu0 %v12674_v1  ;;  %v12713_v8 = vld [vmem:[%s13844_s11 + $0x3c8] ss:$16 sps:$4 sm:$0xff]   ;;  %v12718_v61 = vld [vmem:[%s13844_s11 + $0x1ac] ss:$16 sps:$4 sm:$0xff]  }
 0x263   : > { %8260 = vmatpush1.bf16.msra.mxu1 %v12677_v17  ;;  %8220 = vmatprep.subr.bf16.mxu0 %v12682_v48  ;;  %v12721_v1 = vld [vmem:[%s13844_s11 + $0x3ac] ss:$16 sps:$4 sm:$0xff]   ;;  %v12716_v17 = vld [vmem:[%s13844_s11 + $0x1a8] ss:$16 sps:$4 sm:$0xff]  }
 0x264   : > { %8261 = vmatprep.subr.bf16.mxu1 %v12685_v22  ;;  %v12719_v48 = vld [vmem:[%s13844_s11 + $0x3a8] ss:$16 sps:$4 sm:$0xff]   ;;  %v12724_v22 = vld [vmem:[%s13844_s11 + $0x18c] ss:$16 sps:$4 sm:$0xff]  }
 0x266   : > { %8221 = vmatpush1.bf16.msra.mxu0 %v12680_v28  ;;  %v12727_v28 = vld [vmem:[%s13844_s11 + $0x38c] ss:$16 sps:$4 sm:$0xff]  }
 0x267   : > { %8262 = vmatpush1.bf16.msra.mxu1 %v12683_v36  ;;  %8222 = vmatprep.subr.bf16.mxu0 %v12688_v54  ;;  %v12722_v36 = vld [vmem:[%s13844_s11 + $0x188] ss:$16 sps:$4 sm:$0xff]  }
 0x268   : > { %8263 = vmatprep.subr.bf16.mxu1 %v12691_v50  ;;  %v12725_v54 = vld [vmem:[%s13844_s11 + $0x388] ss:$16 sps:$4 sm:$0xff]   ;;  %v12730_v50 = vld [vmem:[%s13844_s11 + $0x16c] ss:$16 sps:$4 sm:$0xff]  }
 0x26a   : > { %8223 = vmatpush1.bf16.msra.mxu0 %v12686_v2  ;;  %v12733_v2 = vld [vmem:[%s13844_s11 + $0x36c] ss:$16 sps:$4 sm:$0xff]  }
 0x26b   : > { %8264 = vmatpush1.bf16.msra.mxu1 %v12689_v35  ;;  %8224 = vmatprep.subr.bf16.mxu0 %v12694_v38  ;;  %v12728_v35 = vld [vmem:[%s13844_s11 + $0x168] ss:$16 sps:$4 sm:$0xff]  }
 0x26c   : > { %8265 = vmatprep.subr.bf16.mxu1 %v12697_v33  ;;  %v12731_v38 = vld [vmem:[%s13844_s11 + $0x368] ss:$16 sps:$4 sm:$0xff]   ;;  %v12736_v33 = vld [vmem:[%s13844_s11 + $0x14c] ss:$16 sps:$4 sm:$0xff]  }
 0x26e   : > { %8225 = vmatpush1.bf16.msra.mxu0 %v12692_v45  ;;  %v12739_v45 = vld [vmem:[%s13844_s11 + $0x34c] ss:$16 sps:$4 sm:$0xff]  }
 0x26f   : > { %8266 = vmatpush1.bf16.msra.mxu1 %v12695_v47  ;;  %8226 = vmatprep.subr.bf16.mxu0 %v12700_v39  ;;  %v12734_v47 = vld [vmem:[%s13844_s11 + $0x148] ss:$16 sps:$4 sm:$0xff]  }
 0x270   : > { %8267 = vmatprep.subr.bf16.mxu1 %v12703_v51  ;;  %v12737_v39 = vld [vmem:[%s13844_s11 + $0x348] ss:$16 sps:$4 sm:$0xff]   ;;  %v12742_v51 = vld [vmem:[%s13844_s11 + $0x12c] ss:$16 sps:$4 sm:$0xff]  }
 0x272   : > { %8227 = vmatpush1.bf16.msra.mxu0 %v12698_v37  ;;  %v12745_v37 = vld [vmem:[%s13844_s11 + $0x32c] ss:$16 sps:$4 sm:$0xff]  }
 0x273   : > { %8268 = vmatpush1.bf16.msra.mxu1 %v12701_v53  ;;  %8228 = vmatprep.subr.bf16.mxu0 %v12706_v0  ;;  %v12740_v53 = vld [vmem:[%s13844_s11 + $0x128] ss:$16 sps:$4 sm:$0xff]  }
 0x274   : > { %8269 = vmatprep.subr.bf16.mxu1 %v12709_v62  ;;  %v12743_v0 = vld [vmem:[%s13844_s11 + $0x328] ss:$16 sps:$4 sm:$0xff]   ;;  %v12748_v62 = vld [vmem:[%s13844_s11 + $0x10c] ss:$16 sps:$4 sm:$0xff]  }
 0x276   : > { %8229 = vmatpush2.bf16.msra.mxu0 %v12704_v3  ;;  %v12751_v3 = vld [vmem:[%s13844_s11 + $0x30c] ss:$16 sps:$4 sm:$0xff]  }
 0x277   : > { %8270 = vmatpush2.bf16.msra.mxu1 %v12707_v58  ;;  %8230 = vmatprep.subr.bf16.mxu0 %v12712_v11  ;;  %v12746_v58 = vld [vmem:[%s13844_s11 + $0x108] ss:$16 sps:$4 sm:$0xff]  }
 0x278   : > { %8271 = vmatprep.subr.bf16.mxu1 %v12715_v9  ;;  %v12749_v11 = vld [vmem:[%s13844_s11 + $0x308] ss:$16 sps:$4 sm:$0xff]   ;;  %v12754_v9 = vld [vmem:[%s13844_s11 + $0x4ec] ss:$16 sps:$4 sm:$0xff]  }
 0x27a   : > { %8231 = vmatpush2.bf16.msra.mxu0 %v12710_v12  ;;  %v12757_v12 = vld [vmem:[%s13844_s11 + $0x6ec] ss:$16 sps:$4 sm:$0xff]  }
 0x27b   : > { %8272 = vmatpush2.bf16.msra.mxu1 %v12713_v8  ;;  %8232 = vmatprep.subr.bf16.mxu0 %v12718_v61  ;;  %v12752_v8 = vld [vmem:[%s13844_s11 + $0x4e8] ss:$16 sps:$4 sm:$0xff]  }
 0x27c   : > { %8273 = vmatprep.subr.bf16.mxu1 %v12721_v1  ;;  %v12755_v61 = vld [vmem:[%s13844_s11 + $0x6e8] ss:$16 sps:$4 sm:$0xff]   ;;  %v12760_v1 = vld [vmem:[%s13844_s11 + $0x4cc] ss:$16 sps:$4 sm:$0xff]  }
 0x27e   : > { %8233 = vmatpush2.bf16.msra.mxu0 %v12716_v17  ;;  %v12763_v17 = vld [vmem:[%s13844_s11 + $0x6cc] ss:$16 sps:$4 sm:$0xff]  }
 0x27f   : > { %8274 = vmatpush2.bf16.msra.mxu1 %v12719_v48  ;;  %8234 = vmatprep.subr.bf16.mxu0 %v12724_v22 }
 0x280   : > { %8275 = vmatprep.subr.bf16.mxu1 %v12727_v28 }
 0x282   : > { %8235 = vmatpush2.bf16.msra.mxu0 %v12722_v36  ;;  %v12758_v36 = vld [vmem:[%s13844_s11 + $0x4c8] ss:$16 sps:$4 sm:$0xff]  }
 0x283   : > { %8276 = vmatpush2.bf16.msra.mxu1 %v12725_v54  ;;  %8236 = vmatprep.subr.bf16.mxu0 %v12730_v50  ;;  %v12761_v54 = vld [vmem:[%s13844_s11 + $0x6c8] ss:$16 sps:$4 sm:$0xff]  }
 0x284   : > { %8277 = vmatprep.subr.bf16.mxu1 %v12733_v2 }
 0x286   : > { %8237 = vmatpush2.bf16.msra.mxu0 %v12728_v35  ;;  %v12766_v35 = vld [vmem:[%s13844_s11 + $0x4ac] ss:$16 sps:$4 sm:$0xff]  }
 0x287   : > { %8278 = vmatpush2.bf16.msra.mxu1 %v12731_v38  ;;  %8238 = vmatprep.subr.bf16.mxu0 %v12736_v33  ;;  %v12769_v38 = vld [vmem:[%s13844_s11 + $0x6ac] ss:$16 sps:$4 sm:$0xff]  }
 0x288   : > { %8279 = vmatprep.subr.bf16.mxu1 %v12739_v45 }
 0x28a   : > { %8239 = vmatpush2.bf16.msra.mxu0 %v12734_v47  ;;  %v12764_v47 = vld [vmem:[%s13844_s11 + $0x4a8] ss:$16 sps:$4 sm:$0xff]  }
 0x28b   : > { %8280 = vmatpush2.bf16.msra.mxu1 %v12737_v39  ;;  %8240 = vmatprep.subr.bf16.mxu0 %v12742_v51  ;;  %v12767_v39 = vld [vmem:[%s13844_s11 + $0x6a8] ss:$16 sps:$4 sm:$0xff]  }
 0x28c   : > { %8281 = vmatprep.subr.bf16.mxu1 %v12745_v37 }
 0x28e   : > { %8241 = vmatpush2.bf16.msra.mxu0 %v12740_v53  ;;  %v12773_v53 = vld [vmem:[%s13844_s11 + $0x688] ss:$16 sps:$4 sm:$0xff]  }
 0x28f   : > { %8282 = vmatpush2.bf16.msra.mxu1 %v12743_v0  ;;  %8242 = vmatprep.subr.bf16.mxu0 %v12748_v62  ;;  %v12778_v0 = vld [vmem:[%s13844_s11 + $0x46c] ss:$16 sps:$4 sm:$0xff]  }
 0x290   : > { %8283 = vmatprep.subr.bf16.mxu1 %v12751_v3  ;;  %v12781_v62 = vld [vmem:[%s13844_s11 + $0x66c] ss:$16 sps:$4 sm:$0xff]   ;;  %v12776_v3 = vld [vmem:[%s13844_s11 + $0x468] ss:$16 sps:$4 sm:$0xff]  }
 0x292   : > { %8243 = vmatpush2.bf16.msra.mxu0 %v12746_v58  ;;  %v12779_v58 = vld [vmem:[%s13844_s11 + $0x668] ss:$16 sps:$4 sm:$0xff]  }
 0x293   : > { %8284 = vmatpush2.bf16.msra.mxu1 %v12749_v11  ;;  %8294 = vmatprep.subr.bf16.mxu0 %v12754_v9  ;;  %v12784_v11 = vld [vmem:[%s13844_s11 + $0x44c] ss:$16 sps:$4 sm:$0xff]  }
 0x294   : > { %8335 = vmatprep.subr.bf16.mxu1 %v12757_v12  ;;  %v12787_v9 = vld [vmem:[%s13844_s11 + $0x64c] ss:$16 sps:$4 sm:$0xff]   ;;  %v12782_v12 = vld [vmem:[%s13844_s11 + $0x448] ss:$16 sps:$4 sm:$0xff]  }
 0x295   : > { %v8000_v48 = vpop.f32.mrf.mxu0  ;;  %8245 = vmatmul.mubr.bf16.vlgmr.msra.gmra.mxu0 %v13932_v14 }
 0x296   : > { %v8041_v22 = vpop.f32.mrf.mxu1  ;;  %8286 = vmatmul.mubr.bf16.vlgmr.msra.gmra.mxu1 %v13942_v19  ;;  %v8001_v28 = vadd.f32 %v8000_v48, %v14697_v57  ;;  %8295 = vmatpush1.bf16.msra.mxu0 %v12752_v8  ;;  %v12785_v8 = vld [vmem:[%s13844_s11 + $0x648] ss:$16 sps:$4 sm:$0xff]  }
 0x297   : > { %8336 = vmatpush1.bf16.msra.mxu1 %v12755_v61  ;;  %v8002_v50 = vpop.f32.mrf.mxu0  ;;  %8296 = vmatprep.subr.bf16.mxu0 %v12760_v1  ;;  %v12790_v61 = vld [vmem:[%s13844_s11 + $0x42c] ss:$16 sps:$4 sm:$0xff]   ;;  %v12791_v48 = vld [vmem:[%s13844_s11 + $0x628] ss:$16 sps:$4 sm:$0xff]  }
 0x298   : > { %v8043_v2 = vpop.f32.mrf.mxu1  ;;  %8337 = vmatprep.subr.bf16.mxu1 %v12763_v17  ;;  %v14771_v33 = vadd.f32 %v8041_v22, %v8001_v28  ;;  %v8003_v14 = vadd.f32 %v8002_v50, %v14704_v6  ;;  %8326 = vmatprep.mubr.bf16.mxu0 %v13938_v18  ;;  %v12772_v18 = vld [vmem:[%s13844_s11 + $0x48c] ss:$16 sps:$4 sm:$0xff]   ;;  %v12770_v6 = vld [vmem:[%s13844_s11 + $0x488] ss:$16 sps:$4 sm:$0xff]  }
 0x299   : > { %8367 = vmatprep.mubr.bf16.mxu1 %v13950_v24  ;;  %v8004_v19 = vpop.f32.mrf.mxu0  ;;  %v12775_v24 = vld [vmem:[%s13844_s11 + $0x68c] ss:$16 sps:$4 sm:$0xff]   ;;  %v12788_v17 = vld [vmem:[%s13844_s11 + $0x428] ss:$16 sps:$4 sm:$0xff]  }
 0x29a   : > { %v8045_v57 = vpop.f32.mrf.mxu1  ;;  %v14776_v45 = vadd.f32 %v8043_v2, %v8003_v14  ;;  %8297 = vmatpush1.bf16.msra.mxu0 %v12758_v36  ;;  %v12793_v1 = vld [vmem:[%s13844_s11 + $0x62c] ss:$16 sps:$4 sm:$0xff]   ;;  %v12794_v36 = vld [vmem:[%s13844_s11 + $0x408] ss:$16 sps:$4 sm:$0xff]  }
 0x29b   : > { %8338 = vmatpush1.bf16.msra.mxu1 %v12761_v54  ;;  %v8005_v51 = vpop.f32.mrf.mxu0  ;;  %8298 = vmatprep.subr.bf16.mxu0 %v12766_v35  ;;  %v12796_v22 = vld [vmem:[%s13844_s11 + $0x40c] ss:$16 sps:$4 sm:$0xff]   ;;  %v12797_v54 = vld [vmem:[%s13844_s11 + $0x608] ss:$16 sps:$4 sm:$0xff]  }
 0x29c   : > { %v8046_v37 = vpop.f32.mrf.mxu1  ;;  %8339 = vmatprep.subr.bf16.mxu1 %v12769_v38  ;;  %v12799_v28 = vld [vmem:[%s13844_s11 + $0x60c] ss:$16 sps:$4 sm:$0xff]   ;;  %v12800_v35 = vld [vmem:[%s13844_s11 + $0x5e8] ss:$16 sps:$4 sm:$0xff]  }
 0x29d   : > { %v12802_v50 = vld [vmem:[%s13844_s11 + $0x5ec] ss:$16 sps:$4 sm:$0xff]   ;;  %v12803_v38 = vld [vmem:[%s13844_s11 + $0x7e8] ss:$16 sps:$4 sm:$0xff]  }
 0x29e   : > { %8299 = vmatpush1.bf16.msra.mxu0 %v12764_v47  ;;  %v12805_v2 = vld [vmem:[%s13844_s11 + $0x7ec] ss:$16 sps:$4 sm:$0xff]   ;;  %v12806_v57 = vld [vmem:[%s13844_s11 + $0x5c8] ss:$16 sps:$4 sm:$0xff]  }
 0x29f   : > { %8340 = vmatpush1.bf16.msra.mxu1 %v12767_v39  ;;  %8300 = vmatprep.subr.bf16.mxu0 %v12772_v18  ;;  %v12808_v14 = vld [vmem:[%s13844_s11 + $0x5cc] ss:$16 sps:$4 sm:$0xff]   ;;  %v12809_v47 = vld [vmem:[%s13844_s11 + $0x7c8] ss:$16 sps:$4 sm:$0xff]  }
 0x2a0   : > { %8341 = vmatprep.subr.bf16.mxu1 %v12775_v24  ;;  %v12811_v19 = vld [vmem:[%s13844_s11 + $0x7cc] ss:$16 sps:$4 sm:$0xff]   ;;  %v12812_v37 = vld [vmem:[%s13844_s11 + $0x5a8] ss:$16 sps:$4 sm:$0xff]  }
 0x2a1   : > { %v12814_v39 = vld [vmem:[%s13844_s11 + $0x5ac] ss:$16 sps:$4 sm:$0xff]   ;;  %v12815_v18 = vld [vmem:[%s13844_s11 + $0x7a8] ss:$16 sps:$4 sm:$0xff]  }
 0x2a2   : > { %8301 = vmatpush1.bf16.msra.mxu0 %v12770_v6  ;;  %v12817_v51 = vld [vmem:[%s13844_s11 + $0x7ac] ss:$16 sps:$4 sm:$0xff]  }
 0x2a3   : > { %8342 = vmatpush1.bf16.msra.mxu1 %v12773_v53  ;;  %8302 = vmatprep.subr.bf16.mxu0 %v12778_v0  ;;  %v12820_v24 = vld [vmem:[%s13844_s11 + $0x58c] ss:$16 sps:$4 sm:$0xff]   ;;  %v12818_v53 = vld [vmem:[%s13844_s11 + $0x588] ss:$16 sps:$4 sm:$0xff]  }
 0x2a4   : > { %8343 = vmatprep.subr.bf16.mxu1 %v12781_v62  ;;  %v12823_v6 = vld [vmem:[%s13844_s11 + $0x78c] ss:$16 sps:$4 sm:$0xff]   ;;  %v12821_v0 = vld [vmem:[%s13844_s11 + $0x788] ss:$16 sps:$4 sm:$0xff]  }
 0x2a5   : > { %v12826_v62 = vld [vmem:[%s13844_s11 + $0x56c] ss:$16 sps:$4 sm:$0xff]  }
 0x2a6   : > { %8303 = vmatpush1.bf16.msra.mxu0 %v12776_v3  ;;  %v12829_v3 = vld [vmem:[%s13844_s11 + $0x76c] ss:$16 sps:$4 sm:$0xff]  }
 0x2a7   : > { %8344 = vmatpush1.bf16.msra.mxu1 %v12779_v58  ;;  %8304 = vmatprep.subr.bf16.mxu0 %v12784_v11  ;;  %v12824_v58 = vld [vmem:[%s13844_s11 + $0x568] ss:$16 sps:$4 sm:$0xff]  }
 0x2a8   : > { %8345 = vmatprep.subr.bf16.mxu1 %v12787_v9  ;;  %v12827_v11 = vld [vmem:[%s13844_s11 + $0x768] ss:$16 sps:$4 sm:$0xff]   ;;  %v12832_v9 = vld [vmem:[%s13844_s11 + $0x54c] ss:$16 sps:$4 sm:$0xff]  }
 0x2aa   : > { %8305 = vmatpush1.bf16.msra.mxu0 %v12782_v12  ;;  %v12835_v12 = vld [vmem:[%s13844_s11 + $0x74c] ss:$16 sps:$4 sm:$0xff]  }
 0x2ab   : > { %8346 = vmatpush1.bf16.msra.mxu1 %v12785_v8  ;;  %8306 = vmatprep.subr.bf16.mxu0 %v12790_v61  ;;  %v12830_v8 = vld [vmem:[%s13844_s11 + $0x548] ss:$16 sps:$4 sm:$0xff]  }
 0x2ac   : > { %8347 = vmatprep.subr.bf16.mxu1 %v12793_v1  ;;  %v12833_v61 = vld [vmem:[%s13844_s11 + $0x748] ss:$16 sps:$4 sm:$0xff]   ;;  %v12838_v1 = vld [vmem:[%s13844_s11 + $0x52c] ss:$16 sps:$4 sm:$0xff]  }
 0x2ae   : > { %8307 = vmatpush1.bf16.msra.mxu0 %v12788_v17  ;;  %v12841_v17 = vld [vmem:[%s13844_s11 + $0x72c] ss:$16 sps:$4 sm:$0xff]  }
 0x2af   : > { %8348 = vmatpush1.bf16.msra.mxu1 %v12791_v48  ;;  %8308 = vmatprep.subr.bf16.mxu0 %v12796_v22  ;;  %v12836_v48 = vld [vmem:[%s13844_s11 + $0x528] ss:$16 sps:$4 sm:$0xff]  }
 0x2b0   : > { %8349 = vmatprep.subr.bf16.mxu1 %v12799_v28  ;;  %v12839_v22 = vld [vmem:[%s13844_s11 + $0x728] ss:$16 sps:$4 sm:$0xff]   ;;  %v12844_v28 = vld [vmem:[%s13844_s11 + $0x50c] ss:$16 sps:$4 sm:$0xff]  }
 0x2b2   : > { %8309 = vmatpush1.bf16.msra.mxu0 %v12794_v36  ;;  %v12847_v36 = vld [vmem:[%s13844_s11 + $0x70c] ss:$16 sps:$4 sm:$0xff]  }
 0x2b3   : > { %8350 = vmatpush1.bf16.msra.mxu1 %v12797_v54  ;;  %8310 = vmatprep.subr.bf16.mxu0 %v12802_v50  ;;  %v12842_v54 = vld [vmem:[%s13844_s11 + $0x508] ss:$16 sps:$4 sm:$0xff]  }
 0x2b4   : > { %8351 = vmatprep.subr.bf16.mxu1 %v12805_v2  ;;  %v12845_v50 = vld [vmem:[%s13844_s11 + $0x708] ss:$16 sps:$4 sm:$0xff]   ;;  %v12850_v2 = vld [vmem:[%s13844_s11 + $0x8ec] ss:$16 sps:$4 sm:$0xff]  }
 0x2b6   : > { %8311 = vmatpush2.bf16.msra.mxu0 %v12800_v35  ;;  %v12853_v35 = vld [vmem:[%s13844_s11 + $0xaec] ss:$16 sps:$4 sm:$0xff]  }
 0x2b7   : > { %8352 = vmatpush2.bf16.msra.mxu1 %v12803_v38  ;;  %8312 = vmatprep.subr.bf16.mxu0 %v12808_v14  ;;  %v12848_v38 = vld [vmem:[%s13844_s11 + $0x8e8] ss:$16 sps:$4 sm:$0xff]  }
 0x2b8   : > { %8353 = vmatprep.subr.bf16.mxu1 %v12811_v19  ;;  %v12851_v14 = vld [vmem:[%s13844_s11 + $0xae8] ss:$16 sps:$4 sm:$0xff]   ;;  %v12856_v19 = vld [vmem:[%s13844_s11 + $0x8cc] ss:$16 sps:$4 sm:$0xff]  }
 0x2ba   : > { %8313 = vmatpush2.bf16.msra.mxu0 %v12806_v57  ;;  %v12859_v57 = vld [vmem:[%s13844_s11 + $0xacc] ss:$16 sps:$4 sm:$0xff]  }
 0x2bb   : > { %8354 = vmatpush2.bf16.msra.mxu1 %v12809_v47  ;;  %8314 = vmatprep.subr.bf16.mxu0 %v12814_v39 }
 0x2bc   : > { %8355 = vmatprep.subr.bf16.mxu1 %v12817_v51 }
 0x2be   : > { %8315 = vmatpush2.bf16.msra.mxu0 %v12812_v37  ;;  %v12854_v37 = vld [vmem:[%s13844_s11 + $0x8c8] ss:$16 sps:$4 sm:$0xff]  }
 0x2bf   : > { %8356 = vmatpush2.bf16.msra.mxu1 %v12815_v18  ;;  %8316 = vmatprep.subr.bf16.mxu0 %v12820_v24  ;;  %v12857_v18 = vld [vmem:[%s13844_s11 + $0xac8] ss:$16 sps:$4 sm:$0xff]  }
 0x2c0   : > { %8357 = vmatprep.subr.bf16.mxu1 %v12823_v6 }
 0x2c2   : > { %8317 = vmatpush2.bf16.msra.mxu0 %v12818_v53  ;;  %v12862_v53 = vld [vmem:[%s13844_s11 + $0x8ac] ss:$16 sps:$4 sm:$0xff]  }
 0x2c3   : > { %8358 = vmatpush2.bf16.msra.mxu1 %v12821_v0  ;;  %8318 = vmatprep.subr.bf16.mxu0 %v12826_v62  ;;  %v12865_v0 = vld [vmem:[%s13844_s11 + $0xaac] ss:$16 sps:$4 sm:$0xff]  }
 0x2c4   : > { %8359 = vmatprep.subr.bf16.mxu1 %v12829_v3 }
 0x2c6   : > { %8319 = vmatpush2.bf16.msra.mxu0 %v12824_v58  ;;  %v12860_v58 = vld [vmem:[%s13844_s11 + $0x8a8] ss:$16 sps:$4 sm:$0xff]  }
 0x2c7   : > { %8360 = vmatpush2.bf16.msra.mxu1 %v12827_v11  ;;  %8320 = vmatprep.subr.bf16.mxu0 %v12832_v9  ;;  %v12863_v11 = vld [vmem:[%s13844_s11 + $0xaa8] ss:$16 sps:$4 sm:$0xff]  }
 0x2c8   : > { %8361 = vmatprep.subr.bf16.mxu1 %v12835_v12 }
 0x2ca   : > { %8321 = vmatpush2.bf16.msra.mxu0 %v12830_v8  ;;  %v12869_v8 = vld [vmem:[%s13844_s11 + $0xa88] ss:$16 sps:$4 sm:$0xff]  }
 0x2cb   : > { %8362 = vmatpush2.bf16.msra.mxu1 %v12833_v61  ;;  %8322 = vmatprep.subr.bf16.mxu0 %v12838_v1  ;;  %v12874_v61 = vld [vmem:[%s13844_s11 + $0x86c] ss:$16 sps:$4 sm:$0xff]  }
 0x2cc   : > { %8363 = vmatprep.subr.bf16.mxu1 %v12841_v17  ;;  %v12877_v1 = vld [vmem:[%s13844_s11 + $0xa6c] ss:$16 sps:$4 sm:$0xff]   ;;  %v12872_v17 = vld [vmem:[%s13844_s11 + $0x868] ss:$16 sps:$4 sm:$0xff]  }
 0x2ce   : > { %8323 = vmatpush2.bf16.msra.mxu0 %v12836_v48  ;;  %v12875_v48 = vld [vmem:[%s13844_s11 + $0xa68] ss:$16 sps:$4 sm:$0xff]  }
 0x2cf   : > { %8364 = vmatpush2.bf16.msra.mxu1 %v12839_v22  ;;  %8324 = vmatprep.subr.bf16.mxu0 %v12844_v28  ;;  %v12880_v22 = vld [vmem:[%s13844_s11 + $0x84c] ss:$16 sps:$4 sm:$0xff]  }
 0x2d0   : > { %8365 = vmatprep.subr.bf16.mxu1 %v12847_v36  ;;  %v12883_v28 = vld [vmem:[%s13844_s11 + $0xa4c] ss:$16 sps:$4 sm:$0xff]   ;;  %v12878_v36 = vld [vmem:[%s13844_s11 + $0x848] ss:$16 sps:$4 sm:$0xff]  }
 0x2d2   : > { %8325 = vmatpush2.bf16.msra.mxu0 %v12842_v54  ;;  %v12881_v54 = vld [vmem:[%s13844_s11 + $0xa48] ss:$16 sps:$4 sm:$0xff]  }
 0x2d3   : > { %8366 = vmatpush2.bf16.msra.mxu1 %v12845_v50  ;;  %8376 = vmatprep.subr.bf16.mxu0 %v12850_v2  ;;  %v12886_v50 = vld [vmem:[%s13844_s11 + $0x82c] ss:$16 sps:$4 sm:$0xff]  }
 0x2d4   : > { %8417 = vmatprep.subr.bf16.mxu1 %v12853_v35  ;;  %v12889_v2 = vld [vmem:[%s13844_s11 + $0xa2c] ss:$16 sps:$4 sm:$0xff]   ;;  %v12884_v35 = vld [vmem:[%s13844_s11 + $0x828] ss:$16 sps:$4 sm:$0xff]  }
 0x2d5   : > { %v8082_v47 = vpop.f32.mrf.mxu0  ;;  %8327 = vmatmul.mubr.bf16.vlgmr.msra.gmra.mxu0 %v14015_v27 }
 0x2d6   : > { %v8123_v39 = vpop.f32.mrf.mxu1  ;;  %8368 = vmatmul.mubr.bf16.vlgmr.msra.gmra.mxu1 %v14022_v31  ;;  %v8083_v51 = vadd.f32 %v8082_v47, %v14771_v33  ;;  %8377 = vmatpush1.bf16.msra.mxu0 %v12848_v38  ;;  %v12887_v38 = vld [vmem:[%s13844_s11 + $0xa28] ss:$16 sps:$4 sm:$0xff]  }
 0x2d7   : > { %8418 = vmatpush1.bf16.msra.mxu1 %v12851_v14  ;;  %v8084_v24 = vpop.f32.mrf.mxu0  ;;  %8378 = vmatprep.subr.bf16.mxu0 %v12856_v19  ;;  %v12892_v14 = vld [vmem:[%s13844_s11 + $0x80c] ss:$16 sps:$4 sm:$0xff]   ;;  %v12893_v47 = vld [vmem:[%s13844_s11 + $0xa08] ss:$16 sps:$4 sm:$0xff]  }
 0x2d8   : > { %v8125_v6 = vpop.f32.mrf.mxu1  ;;  %8419 = vmatprep.subr.bf16.mxu1 %v12859_v57  ;;  %v14845_v62 = vadd.f32 %v8123_v39, %v8083_v51  ;;  %v8085_v27 = vadd.f32 %v8084_v24, %v14776_v45  ;;  %8408 = vmatprep.mubr.bf16.mxu0 %v14044_v42  ;;  %v12868_v42 = vld [vmem:[%s13844_s11 + $0x88c] ss:$16 sps:$4 sm:$0xff]   ;;  %v12866_v45 = vld [vmem:[%s13844_s11 + $0x888] ss:$16 sps:$4 sm:$0xff]  }
 0x2d9   : > { %8449 = vmatprep.mubr.bf16.mxu1 %v14049_v43  ;;  %v8086_v31 = vpop.f32.mrf.mxu0  ;;  %v12871_v43 = vld [vmem:[%s13844_s11 + $0xa8c] ss:$16 sps:$4 sm:$0xff]   ;;  %v12890_v57 = vld [vmem:[%s13844_s11 + $0x808] ss:$16 sps:$4 sm:$0xff]  }
 0x2da   : > { %v8127_v33 = vpop.f32.mrf.mxu1  ;;  %v14850_v3 = vadd.f32 %v8125_v6, %v8085_v27  ;;  %8379 = vmatpush1.bf16.msra.mxu0 %v12854_v37  ;;  %v12895_v19 = vld [vmem:[%s13844_s11 + $0xa0c] ss:$16 sps:$4 sm:$0xff]   ;;  %v12896_v37 = vld [vmem:[%s13844_s11 + $0x9e8] ss:$16 sps:$4 sm:$0xff]  }
 0x2db   : > { %8420 = vmatpush1.bf16.msra.mxu1 %v12857_v18  ;;  %v8087_v9 = vpop.f32.mrf.mxu0  ;;  %8380 = vmatprep.subr.bf16.mxu0 %v12862_v53  ;;  %v12898_v39 = vld [vmem:[%s13844_s11 + $0x9ec] ss:$16 sps:$4 sm:$0xff]   ;;  %v12899_v18 = vld [vmem:[%s13844_s11 + $0xbe8] ss:$16 sps:$4 sm:$0xff]  }
 0x2dc   : > { %v8128_v12 = vpop.f32.mrf.mxu1  ;;  %8421 = vmatprep.subr.bf16.mxu1 %v12865_v0  ;;  %v12901_v51 = vld [vmem:[%s13844_s11 + $0xbec] ss:$16 sps:$4 sm:$0xff]   ;;  %v12902_v53 = vld [vmem:[%s13844_s11 + $0x9c8] ss:$16 sps:$4 sm:$0xff]  }
 0x2dd   : > { %v12904_v24 = vld [vmem:[%s13844_s11 + $0x9cc] ss:$16 sps:$4 sm:$0xff]   ;;  %v12905_v0 = vld [vmem:[%s13844_s11 + $0xbc8] ss:$16 sps:$4 sm:$0xff]  }
 0x2de   : > { %8381 = vmatpush1.bf16.msra.mxu0 %v12860_v58  ;;  %v12907_v6 = vld [vmem:[%s13844_s11 + $0xbcc] ss:$16 sps:$4 sm:$0xff]   ;;  %v12908_v33 = vld [vmem:[%s13844_s11 + $0x9a8] ss:$16 sps:$4 sm:$0xff]  }
 0x2df   : > { %8422 = vmatpush1.bf16.msra.mxu1 %v12863_v11  ;;  %8382 = vmatprep.subr.bf16.mxu0 %v12868_v42  ;;  %v12910_v27 = vld [vmem:[%s13844_s11 + $0x9ac] ss:$16 sps:$4 sm:$0xff]   ;;  %v12911_v58 = vld [vmem:[%s13844_s11 + $0xba8] ss:$16 sps:$4 sm:$0xff]  }
 0x2e0   : > { %8423 = vmatprep.subr.bf16.mxu1 %v12871_v43  ;;  %v12913_v31 = vld [vmem:[%s13844_s11 + $0xbac] ss:$16 sps:$4 sm:$0xff]   ;;  %v12914_v12 = vld [vmem:[%s13844_s11 + $0x988] ss:$16 sps:$4 sm:$0xff]  }
 0x2e1   : > { %v12916_v11 = vld [vmem:[%s13844_s11 + $0x98c] ss:$16 sps:$4 sm:$0xff]   ;;  %v12917_v42 = vld [vmem:[%s13844_s11 + $0xb88] ss:$16 sps:$4 sm:$0xff]  }
 0x2e2   : > { %8383 = vmatpush1.bf16.msra.mxu0 %v12866_v45  ;;  %v12919_v9 = vld [vmem:[%s13844_s11 + $0xb8c] ss:$16 sps:$4 sm:$0xff]  }
 0x2e3   : > { %8424 = vmatpush1.bf16.msra.mxu1 %v12869_v8  ;;  %8384 = vmatprep.subr.bf16.mxu0 %v12874_v61  ;;  %v12922_v43 = vld [vmem:[%s13844_s11 + $0x96c] ss:$16 sps:$4 sm:$0xff]   ;;  %v12920_v8 = vld [vmem:[%s13844_s11 + $0x968] ss:$16 sps:$4 sm:$0xff]  }
 0x2e4   : > { %8425 = vmatprep.subr.bf16.mxu1 %v12877_v1  ;;  %v12925_v45 = vld [vmem:[%s13844_s11 + $0xb6c] ss:$16 sps:$4 sm:$0xff]   ;;  %v12923_v61 = vld [vmem:[%s13844_s11 + $0xb68] ss:$16 sps:$4 sm:$0xff]  }
 0x2e5   : > { %v12928_v1 = vld [vmem:[%s13844_s11 + $0x94c] ss:$16 sps:$4 sm:$0xff]  }
 0x2e6   : > { %8385 = vmatpush1.bf16.msra.mxu0 %v12872_v17  ;;  %v12931_v17 = vld [vmem:[%s13844_s11 + $0xb4c] ss:$16 sps:$4 sm:$0xff]  }
 0x2e7   : > { %8426 = vmatpush1.bf16.msra.mxu1 %v12875_v48  ;;  %8386 = vmatprep.subr.bf16.mxu0 %v12880_v22  ;;  %v12926_v48 = vld [vmem:[%s13844_s11 + $0x948] ss:$16 sps:$4 sm:$0xff]  }
 0x2e8   : > { %8427 = vmatprep.subr.bf16.mxu1 %v12883_v28  ;;  %v12929_v22 = vld [vmem:[%s13844_s11 + $0xb48] ss:$16 sps:$4 sm:$0xff]   ;;  %v12934_v28 = vld [vmem:[%s13844_s11 + $0x92c] ss:$16 sps:$4 sm:$0xff]  }
 0x2ea   : > { %8387 = vmatpush1.bf16.msra.mxu0 %v12878_v36  ;;  %v12937_v36 = vld [vmem:[%s13844_s11 + $0xb2c] ss:$16 sps:$4 sm:$0xff]  }
 0x2eb   : > { %8428 = vmatpush1.bf16.msra.mxu1 %v12881_v54  ;;  %8388 = vmatprep.subr.bf16.mxu0 %v12886_v50  ;;  %v12932_v54 = vld [vmem:[%s13844_s11 + $0x928] ss:$16 sps:$4 sm:$0xff]  }
 0x2ec   : > { %8429 = vmatprep.subr.bf16.mxu1 %v12889_v2  ;;  %v12935_v50 = vld [vmem:[%s13844_s11 + $0xb28] ss:$16 sps:$4 sm:$0xff]   ;;  %v12940_v2 = vld [vmem:[%s13844_s11 + $0x90c] ss:$16 sps:$4 sm:$0xff]  }
 0x2ee   : > { %8389 = vmatpush1.bf16.msra.mxu0 %v12884_v35  ;;  %v12943_v35 = vld [vmem:[%s13844_s11 + $0xb0c] ss:$16 sps:$4 sm:$0xff]  }
 0x2ef   : > { %8430 = vmatpush1.bf16.msra.mxu1 %v12887_v38  ;;  %8390 = vmatprep.subr.bf16.mxu0 %v12892_v14  ;;  %v12938_v38 = vld [vmem:[%s13844_s11 + $0x908] ss:$16 sps:$4 sm:$0xff]  }
 0x2f0   : > { %8431 = vmatprep.subr.bf16.mxu1 %v12895_v19  ;;  %v12941_v14 = vld [vmem:[%s13844_s11 + $0xb08] ss:$16 sps:$4 sm:$0xff]   ;;  %v12946_v19 = vld [vmem:[%s13844_s11 + $0xcec] ss:$16 sps:$4 sm:$0xff]  }
 0x2f2   : > { %8391 = vmatpush1.bf16.msra.mxu0 %v12890_v57  ;;  %v12949_v57 = vld [vmem:[%s13844_s11 + $0xeec] ss:$16 sps:$4 sm:$0xff]  }
 0x2f3   : > { %8432 = vmatpush1.bf16.msra.mxu1 %v12893_v47  ;;  %8392 = vmatprep.subr.bf16.mxu0 %v12898_v39  ;;  %v12944_v47 = vld [vmem:[%s13844_s11 + $0xce8] ss:$16 sps:$4 sm:$0xff]  }
 0x2f4   : > { %8433 = vmatprep.subr.bf16.mxu1 %v12901_v51  ;;  %v12947_v39 = vld [vmem:[%s13844_s11 + $0xee8] ss:$16 sps:$4 sm:$0xff]   ;;  %v12952_v51 = vld [vmem:[%s13844_s11 + $0xccc] ss:$16 sps:$4 sm:$0xff]  }
 0x2f6   : > { %8393 = vmatpush2.bf16.msra.mxu0 %v12896_v37  ;;  %v12955_v37 = vld [vmem:[%s13844_s11 + $0xecc] ss:$16 sps:$4 sm:$0xff]  }
 0x2f7   : > { %8434 = vmatpush2.bf16.msra.mxu1 %v12899_v18  ;;  %8394 = vmatprep.subr.bf16.mxu0 %v12904_v24 }
 0x2f8   : > { %8435 = vmatprep.subr.bf16.mxu1 %v12907_v6 }
 0x2fa   : > { %8395 = vmatpush2.bf16.msra.mxu0 %v12902_v53  ;;  %v12950_v53 = vld [vmem:[%s13844_s11 + $0xcc8] ss:$16 sps:$4 sm:$0xff]  }
 0x2fb   : > { %8436 = vmatpush2.bf16.msra.mxu1 %v12905_v0  ;;  %8396 = vmatprep.subr.bf16.mxu0 %v12910_v27  ;;  %v12953_v0 = vld [vmem:[%s13844_s11 + $0xec8] ss:$16 sps:$4 sm:$0xff]  }
 0x2fc   : > { %8437 = vmatprep.subr.bf16.mxu1 %v12913_v31 }
 0x2fe   : > { %8397 = vmatpush2.bf16.msra.mxu0 %v12908_v33  ;;  %v12958_v33 = vld [vmem:[%s13844_s11 + $0xcac] ss:$16 sps:$4 sm:$0xff]  }
 0x2ff   : > { %8438 = vmatpush2.bf16.msra.mxu1 %v12911_v58  ;;  %8398 = vmatprep.subr.bf16.mxu0 %v12916_v11  ;;  %v12961_v58 = vld [vmem:[%s13844_s11 + $0xeac] ss:$16 sps:$4 sm:$0xff]  }
 0x300   : > { %8439 = vmatprep.subr.bf16.mxu1 %v12919_v9 }
 0x302   : > { %8399 = vmatpush2.bf16.msra.mxu0 %v12914_v12  ;;  %v12956_v12 = vld [vmem:[%s13844_s11 + $0xca8] ss:$16 sps:$4 sm:$0xff]  }
 0x303   : > { %8440 = vmatpush2.bf16.msra.mxu1 %v12917_v42  ;;  %8400 = vmatprep.subr.bf16.mxu0 %v12922_v43  ;;  %v12959_v42 = vld [vmem:[%s13844_s11 + $0xea8] ss:$16 sps:$4 sm:$0xff]  }
 0x304   : > { %8441 = vmatprep.subr.bf16.mxu1 %v12925_v45 }
 0x306   : > { %8401 = vmatpush2.bf16.msra.mxu0 %v12920_v8  ;;  %v12962_v8 = vld [vmem:[%s13844_s11 + $0xc88] ss:$16 sps:$4 sm:$0xff]  }
 0x307   : > { %8442 = vmatpush2.bf16.msra.mxu1 %v12923_v61  ;;  %8402 = vmatprep.subr.bf16.mxu0 %v12928_v1  ;;  %v12965_v61 = vld [vmem:[%s13844_s11 + $0xe88] ss:$16 sps:$4 sm:$0xff]   ;;  %v12970_v1 = vld [vmem:[%s13844_s11 + $0xc6c] ss:$16 sps:$4 sm:$0xff]  }
 0x308   : > { %8443 = vmatprep.subr.bf16.mxu1 %v12931_v17  ;;  %v12973_v17 = vld [vmem:[%s13844_s11 + $0xe6c] ss:$16 sps:$4 sm:$0xff]  }
 0x30a   : > { %8403 = vmatpush2.bf16.msra.mxu0 %v12926_v48  ;;  %v12968_v48 = vld [vmem:[%s13844_s11 + $0xc68] ss:$16 sps:$4 sm:$0xff]  }
 0x30b   : > { %8444 = vmatpush2.bf16.msra.mxu1 %v12929_v22  ;;  %8404 = vmatprep.subr.bf16.mxu0 %v12934_v28  ;;  %v12971_v22 = vld [vmem:[%s13844_s11 + $0xe68] ss:$16 sps:$4 sm:$0xff]   ;;  %v12976_v28 = vld [vmem:[%s13844_s11 + $0xc4c] ss:$16 sps:$4 sm:$0xff]  }
 0x30c   : > { %8445 = vmatprep.subr.bf16.mxu1 %v12937_v36  ;;  %v12979_v36 = vld [vmem:[%s13844_s11 + $0xe4c] ss:$16 sps:$4 sm:$0xff]  }
 0x30e   : > { %8405 = vmatpush2.bf16.msra.mxu0 %v12932_v54  ;;  %v12974_v54 = vld [vmem:[%s13844_s11 + $0xc48] ss:$16 sps:$4 sm:$0xff]  }
 0x30f   : > { %8446 = vmatpush2.bf16.msra.mxu1 %v12935_v50  ;;  %8406 = vmatprep.subr.bf16.mxu0 %v12940_v2  ;;  %v12977_v50 = vld [vmem:[%s13844_s11 + $0xe48] ss:$16 sps:$4 sm:$0xff]   ;;  %v12982_v2 = vld [vmem:[%s13844_s11 + $0xc2c] ss:$16 sps:$4 sm:$0xff]  }
 0x310   : > { %8447 = vmatprep.subr.bf16.mxu1 %v12943_v35  ;;  %v12985_v35 = vld [vmem:[%s13844_s11 + $0xe2c] ss:$16 sps:$4 sm:$0xff]  }
 0x312   : > { %8407 = vmatpush2.bf16.msra.mxu0 %v12938_v38  ;;  %v12980_v38 = vld [vmem:[%s13844_s11 + $0xc28] ss:$16 sps:$4 sm:$0xff]  }
 0x313   : > { %8448 = vmatpush2.bf16.msra.mxu1 %v12941_v14  ;;  %8458 = vmatprep.subr.bf16.mxu0 %v12946_v19  ;;  %v12983_v14 = vld [vmem:[%s13844_s11 + $0xe28] ss:$16 sps:$4 sm:$0xff]   ;;  %v12988_v19 = vld [vmem:[%s13844_s11 + $0xc0c] ss:$16 sps:$4 sm:$0xff]  }
 0x314   : > { %8499 = vmatprep.subr.bf16.mxu1 %v12949_v57  ;;  %v12991_v57 = vld [vmem:[%s13844_s11 + $0xe0c] ss:$16 sps:$4 sm:$0xff]  }
 0x315   : > { %v8164_v18 = vpop.f32.mrf.mxu0  ;;  %8409 = vmatmul.mubr.bf16.vlgmr.msra.gmra.mxu0 %v14113_v49 }
 0x316   : > { %v8205_v24 = vpop.f32.mrf.mxu1  ;;  %8450 = vmatmul.mubr.bf16.vlgmr.msra.gmra.mxu1 %v14124_v56  ;;  %v8165_v6 = vadd.f32 %v8164_v18, %v14845_v62  ;;  %8459 = vmatpush1.bf16.msra.mxu0 %v12944_v47  ;;  %v12986_v47 = vld [vmem:[%s13844_s11 + $0xc08] ss:$16 sps:$4 sm:$0xff]  }
 0x317   : > { %8500 = vmatpush1.bf16.msra.mxu1 %v12947_v39  ;;  %v8166_v27 = vpop.f32.mrf.mxu0  ;;  %8460 = vmatprep.subr.bf16.mxu0 %v12952_v51  ;;  %v12989_v39 = vld [vmem:[%s13844_s11 + $0xe08] ss:$16 sps:$4 sm:$0xff]   ;;  %v12994_v51 = vld [vmem:[%s13844_s11 + $0xdec] ss:$16 sps:$4 sm:$0xff]  }
 0x318   : > { %v8207_v31 = vpop.f32.mrf.mxu1  ;;  %8501 = vmatprep.subr.bf16.mxu1 %v12955_v37  ;;  %v14919_v11 = vadd.f32 %v8205_v24, %v8165_v6  ;;  %v8167_v49 = vadd.f32 %v8166_v27, %v14850_v3  ;;  %8490 = vmatprep.mubr.bf16.mxu0 %v14120_v55  ;;  %v12964_v55 = vld [vmem:[%s13844_s11 + $0xc8c] ss:$16 sps:$4 sm:$0xff]   ;;  %v12992_v18 = vld [vmem:[%s13844_s11 + $0xde8] ss:$16 sps:$4 sm:$0xff]  }
 0x319   : > { %8531 = vmatprep.mubr.bf16.mxu1 %v14132_v60  ;;  %v8168_v56 = vpop.f32.mrf.mxu0  ;;  %v12967_v60 = vld [vmem:[%s13844_s11 + $0xe8c] ss:$16 sps:$4 sm:$0xff]   ;;  %v12995_v24 = vld [vmem:[%s13844_s11 + $0xfe8] ss:$16 sps:$4 sm:$0xff]  }
 0x31a   : > { %v8209_v62 = vpop.f32.mrf.mxu1  ;;  %v14924_v9 = vadd.f32 %v8207_v31, %v8167_v49  ;;  %8461 = vmatpush1.bf16.msra.mxu0 %v12950_v53  ;;  %v12997_v37 = vld [vmem:[%s13844_s11 + $0xfec] ss:$16 sps:$4 sm:$0xff]   ;;  %v13001_v27 = vld [vmem:[%s13844_s11 + $0xfc8] ss:$16 sps:$4 sm:$0xff]  }
 0x31b   : > { %8502 = vmatpush1.bf16.msra.mxu1 %v12953_v0  ;;  %v8169_v43 = vpop.f32.mrf.mxu0  ;;  %8462 = vmatprep.subr.bf16.mxu0 %v12958_v33  ;;  %v13000_v6 = vld [vmem:[%s13844_s11 + $0xdcc] ss:$16 sps:$4 sm:$0xff]   ;;  %v12998_v0 = vld [vmem:[%s13844_s11 + $0xdc8] ss:$16 sps:$4 sm:$0xff]  }
 0x31c   : > { %v8210_v45 = vpop.f32.mrf.mxu1  ;;  %8503 = vmatprep.subr.bf16.mxu1 %v12961_v58  ;;  %v8954_v3 = vcombine.low %v14919_v11, %v14924_v9  ;;  %v13003_v53 = vld [vmem:[%s13844_s11 + $0xfcc] ss:$16 sps:$4 sm:$0xff]   ;;  %v13004_v58 = vld [vmem:[%s13844_s11 + $0xda8] ss:$16 sps:$4 sm:$0xff]  }
 0x31d   : > { %v13006_v31 = vld [vmem:[%s13844_s11 + $0xdac] ss:$16 sps:$4 sm:$0xff]   ;;  %v13007_v49 = vld [vmem:[%s13844_s11 + $0xfa8] ss:$16 sps:$4 sm:$0xff]  }
 0x31e   : > { %8463 = vmatpush1.bf16.msra.mxu0 %v12956_v12  ;;  %v13009_v33 = vld [vmem:[%s13844_s11 + $0xfac] ss:$16 sps:$4 sm:$0xff]   ;;  %v13010_v12 = vld [vmem:[%s13844_s11 + $0xd88] ss:$16 sps:$4 sm:$0xff]  }
 0x31f   : > { %8504 = vmatpush1.bf16.msra.mxu1 %v12959_v42  ;;  %8464 = vmatprep.subr.bf16.mxu0 %v12964_v55  ;;  %v13012_v56 = vld [vmem:[%s13844_s11 + $0xd8c] ss:$16 sps:$4 sm:$0xff]   ;;  %v13013_v42 = vld [vmem:[%s13844_s11 + $0xf88] ss:$16 sps:$4 sm:$0xff]  }
 0x320   : > { %8505 = vmatprep.subr.bf16.mxu1 %v12967_v60  ;;  %v13015_v62 = vld [vmem:[%s13844_s11 + $0xf8c] ss:$16 sps:$4 sm:$0xff]   ;;  %v13016_v55 = vld [vmem:[%s13844_s11 + $0xd68] ss:$16 sps:$4 sm:$0xff]  }
 0x321   : > { %v13018_v43 = vld [vmem:[%s13844_s11 + $0xd6c] ss:$16 sps:$4 sm:$0xff]   ;;  %v13019_v60 = vld [vmem:[%s13844_s11 + $0xf68] ss:$16 sps:$4 sm:$0xff]  }
 0x322   : > { %8465 = vmatpush1.bf16.msra.mxu0 %v12962_v8  ;;  %v13021_v45 = vld [vmem:[%s13844_s11 + $0xf6c] ss:$16 sps:$4 sm:$0xff]  }
 0x323   : > { %8506 = vmatpush1.bf16.msra.mxu1 %v12965_v61  ;;  %8466 = vmatprep.subr.bf16.mxu0 %v12970_v1  ;;  %v13024_v8 = vld [vmem:[%s13844_s11 + $0xd4c] ss:$16 sps:$4 sm:$0xff]   ;;  %v13022_v1 = vld [vmem:[%s13844_s11 + $0xd48] ss:$16 sps:$4 sm:$0xff]  }
 0x324   : > { %8507 = vmatprep.subr.bf16.mxu1 %v12973_v17  ;;  %v13027_v61 = vld [vmem:[%s13844_s11 + $0xf4c] ss:$16 sps:$4 sm:$0xff]   ;;  %v13025_v17 = vld [vmem:[%s13844_s11 + $0xf48] ss:$16 sps:$4 sm:$0xff]  }
 0x326   : > { %8467 = vmatpush1.bf16.msra.mxu0 %v12968_v48  ;;  %v13030_v48 = vld [vmem:[%s13844_s11 + $0xd2c] ss:$16 sps:$4 sm:$0xff]  }
 0x327   : > { %8508 = vmatpush1.bf16.msra.mxu1 %v12971_v22  ;;  %8468 = vmatprep.subr.bf16.mxu0 %v12976_v28  ;;  %v13033_v22 = vld [vmem:[%s13844_s11 + $0xf2c] ss:$16 sps:$4 sm:$0xff]   ;;  %v13028_v28 = vld [vmem:[%s13844_s11 + $0xd28] ss:$16 sps:$4 sm:$0xff]  }
 0x328   : > { %8509 = vmatprep.subr.bf16.mxu1 %v12979_v36  ;;  %v13031_v36 = vld [vmem:[%s13844_s11 + $0xf28] ss:$16 sps:$4 sm:$0xff]  }
 0x32a   : > { %8469 = vmatpush1.bf16.msra.mxu0 %v12974_v54  ;;  %v13036_v54 = vld [vmem:[%s13844_s11 + $0xd0c] ss:$16 sps:$4 sm:$0xff]  }
 0x32b   : > { %8510 = vmatpush1.bf16.msra.mxu1 %v12977_v50  ;;  %8470 = vmatprep.subr.bf16.mxu0 %v12982_v2  ;;  %v13039_v50 = vld [vmem:[%s13844_s11 + $0xf0c] ss:$16 sps:$4 sm:$0xff]   ;;  %v13034_v2 = vld [vmem:[%s13844_s11 + $0xd08] ss:$16 sps:$4 sm:$0xff]  }
 0x32c   : > { %8511 = vmatprep.subr.bf16.mxu1 %v12985_v35  ;;  %v13037_v35 = vld [vmem:[%s13844_s11 + $0xf08] ss:$16 sps:$4 sm:$0xff]  }
 0x32e   : > { %8471 = vmatpush1.bf16.msra.mxu0 %v12980_v38  ;;  %v13042_v38 = vld [vmem:[%s13844_s11 + $0x10ec] ss:$16 sps:$4 sm:$0xff]  }
 0x32f   : > { %8512 = vmatpush1.bf16.msra.mxu1 %v12983_v14  ;;  %8472 = vmatprep.subr.bf16.mxu0 %v12988_v19  ;;  %v13045_v14 = vld [vmem:[%s13844_s11 + $0x12ec] ss:$16 sps:$4 sm:$0xff]   ;;  %v13040_v19 = vld [vmem:[%s13844_s11 + $0x10e8] ss:$16 sps:$4 sm:$0xff]  }
 0x330   : > { %8513 = vmatprep.subr.bf16.mxu1 %v12991_v57  ;;  %v13043_v57 = vld [vmem:[%s13844_s11 + $0x12e8] ss:$16 sps:$4 sm:$0xff]  }
 0x332   : > { %8473 = vmatpush1.bf16.msra.mxu0 %v12986_v47  ;;  %v13048_v47 = vld [vmem:[%s13844_s11 + $0x10cc] ss:$16 sps:$4 sm:$0xff]  }
 0x333   : > { %8514 = vmatpush1.bf16.msra.mxu1 %v12989_v39  ;;  %8474 = vmatprep.subr.bf16.mxu0 %v12994_v51  ;;  %v13051_v39 = vld [vmem:[%s13844_s11 + $0x12cc] ss:$16 sps:$4 sm:$0xff]  }
 0x334   : > { %8515 = vmatprep.subr.bf16.mxu1 %v12997_v37 }
 0x336   : > { %8475 = vmatpush2.bf16.msra.mxu0 %v12992_v18 }
 0x337   : > { %8516 = vmatpush2.bf16.msra.mxu1 %v12995_v24  ;;  %8476 = vmatprep.subr.bf16.mxu0 %v13000_v6  ;;  %v13046_v24 = vld [vmem:[%s13844_s11 + $0x10c8] ss:$16 sps:$4 sm:$0xff]  }
 0x338   : > { %8517 = vmatprep.subr.bf16.mxu1 %v13003_v53  ;;  %v13049_v6 = vld [vmem:[%s13844_s11 + $0x12c8] ss:$16 sps:$4 sm:$0xff]  }
 0x33a   : > { %8477 = vmatpush2.bf16.msra.mxu0 %v12998_v0 }
 0x33b   : > { %8518 = vmatpush2.bf16.msra.mxu1 %v13001_v27  ;;  %8478 = vmatprep.subr.bf16.mxu0 %v13006_v31  ;;  %v13054_v27 = vld [vmem:[%s13844_s11 + $0x10ac] ss:$16 sps:$4 sm:$0xff]  }
 0x33c   : > { %8519 = vmatprep.subr.bf16.mxu1 %v13009_v33  ;;  %v13057_v31 = vld [vmem:[%s13844_s11 + $0x12ac] ss:$16 sps:$4 sm:$0xff]  }
 0x33e   : > { %8479 = vmatpush2.bf16.msra.mxu0 %v13004_v58  ;;  %v13052_v58 = vld [vmem:[%s13844_s11 + $0x10a8] ss:$16 sps:$4 sm:$0xff]  }
 0x33f   : > { %8520 = vmatpush2.bf16.msra.mxu1 %v13007_v49  ;;  %8480 = vmatprep.subr.bf16.mxu0 %v13012_v56  ;;  %v13055_v49 = vld [vmem:[%s13844_s11 + $0x12a8] ss:$16 sps:$4 sm:$0xff]  }
 0x340   : > { %8521 = vmatprep.subr.bf16.mxu1 %v13015_v62 }
 0x342   : > { %8481 = vmatpush2.bf16.msra.mxu0 %v13010_v12  ;;  %v13060_v12 = vld [vmem:[%s13844_s11 + $0x108c] ss:$16 sps:$4 sm:$0xff]  }
 0x343   : > { %8522 = vmatpush2.bf16.msra.mxu1 %v13013_v42  ;;  %8482 = vmatprep.subr.bf16.mxu0 %v13018_v43  ;;  %v13061_v42 = vld [vmem:[%s13844_s11 + $0x1288] ss:$16 sps:$4 sm:$0xff]   ;;  %v13066_v43 = vld [vmem:[%s13844_s11 + $0x106c] ss:$16 sps:$4 sm:$0xff]  }
 0x344   : > { %8523 = vmatprep.subr.bf16.mxu1 %v13021_v45  ;;  %v13069_v45 = vld [vmem:[%s13844_s11 + $0x126c] ss:$16 sps:$4 sm:$0xff]  }
 0x346   : > { %8483 = vmatpush2.bf16.msra.mxu0 %v13016_v55  ;;  %v13064_v55 = vld [vmem:[%s13844_s11 + $0x1068] ss:$16 sps:$4 sm:$0xff]  }
 0x347   : > { %8524 = vmatpush2.bf16.msra.mxu1 %v13019_v60  ;;  %8484 = vmatprep.subr.bf16.mxu0 %v13024_v8  ;;  %v13067_v60 = vld [vmem:[%s13844_s11 + $0x1268] ss:$16 sps:$4 sm:$0xff]   ;;  %v13072_v8 = vld [vmem:[%s13844_s11 + $0x104c] ss:$16 sps:$4 sm:$0xff]  }
 0x348   : > { %8525 = vmatprep.subr.bf16.mxu1 %v13027_v61  ;;  %v13075_v61 = vld [vmem:[%s13844_s11 + $0x124c] ss:$16 sps:$4 sm:$0xff]  }
 0x34a   : > { %8485 = vmatpush2.bf16.msra.mxu0 %v13022_v1  ;;  %v13070_v1 = vld [vmem:[%s13844_s11 + $0x1048] ss:$16 sps:$4 sm:$0xff]  }
 0x34b   : > { %8526 = vmatpush2.bf16.msra.mxu1 %v13025_v17  ;;  %8486 = vmatprep.subr.bf16.mxu0 %v13030_v48  ;;  %v13073_v17 = vld [vmem:[%s13844_s11 + $0x1248] ss:$16 sps:$4 sm:$0xff]   ;;  %v13078_v48 = vld [vmem:[%s13844_s11 + $0x102c] ss:$16 sps:$4 sm:$0xff]  }
 0x34c   : > { %8527 = vmatprep.subr.bf16.mxu1 %v13033_v22  ;;  %v13081_v22 = vld [vmem:[%s13844_s11 + $0x122c] ss:$16 sps:$4 sm:$0xff]  }
 0x34e   : > { %8487 = vmatpush2.bf16.msra.mxu0 %v13028_v28  ;;  %v13076_v28 = vld [vmem:[%s13844_s11 + $0x1028] ss:$16 sps:$4 sm:$0xff]  }
 0x34f   : > { %8528 = vmatpush2.bf16.msra.mxu1 %v13031_v36  ;;  %8488 = vmatprep.subr.bf16.mxu0 %v13036_v54  ;;  %v13079_v36 = vld [vmem:[%s13844_s11 + $0x1228] ss:$16 sps:$4 sm:$0xff]   ;;  %v13084_v54 = vld [vmem:[%s13844_s11 + $0x100c] ss:$16 sps:$4 sm:$0xff]  }
 0x350   : > { %8529 = vmatprep.subr.bf16.mxu1 %v13039_v50  ;;  %v13087_v50 = vld [vmem:[%s13844_s11 + $0x120c] ss:$16 sps:$4 sm:$0xff]  }
 0x352   : > { %8489 = vmatpush2.bf16.msra.mxu0 %v13034_v2  ;;  %v13082_v2 = vld [vmem:[%s13844_s11 + $0x1008] ss:$16 sps:$4 sm:$0xff]  }
 0x353   : > { %8530 = vmatpush2.bf16.msra.mxu1 %v13037_v35  ;;  %8540 = vmatprep.subr.bf16.mxu0 %v13042_v38  ;;  %v13085_v35 = vld [vmem:[%s13844_s11 + $0x1208] ss:$16 sps:$4 sm:$0xff]   ;;  %v13090_v38 = vld [vmem:[%s13844_s11 + $0x11ec] ss:$16 sps:$4 sm:$0xff]  }
 0x354   : > { %8581 = vmatprep.subr.bf16.mxu1 %v13045_v14  ;;  %v13093_v14 = vld [vmem:[%s13844_s11 + $0x13ec] ss:$16 sps:$4 sm:$0xff]  }
 0x355   : > { %v8246_v51 = vpop.f32.mrf.mxu0  ;;  %8491 = vmatmul.mubr.bf16.vlgmr.msra.gmra.mxu0 %v14206_v13 }
 0x356   : > { %v8287_v37 = vpop.f32.mrf.mxu1  ;;  %8532 = vmatmul.mubr.bf16.vlgmr.msra.gmra.mxu1 %v14216_v21  ;;  %8541 = vmatpush1.bf16.msra.mxu0 %v13040_v19  ;;  %v13088_v19 = vld [vmem:[%s13844_s11 + $0x11e8] ss:$16 sps:$4 sm:$0xff]  }
 0x357   : > { %v14990_v18 = vadd.f32 %v8287_v37, %v8246_v51  ;;  %8582 = vmatpush1.bf16.msra.mxu1 %v13043_v57  ;;  %v8248_v53 = vpop.f32.mrf.mxu0  ;;  %8542 = vmatprep.subr.bf16.mxu0 %v13048_v47  ;;  %v13091_v57 = vld [vmem:[%s13844_s11 + $0x13e8] ss:$16 sps:$4 sm:$0xff]   ;;  %v13096_v47 = vld [vmem:[%s13844_s11 + $0x11cc] ss:$16 sps:$4 sm:$0xff]  }
 0x358   : > { %v8289_v0 = vpop.f32.mrf.mxu1  ;;  %8583 = vmatprep.subr.bf16.mxu1 %v13051_v39  ;;  %8572 = vmatprep.mubr.bf16.mxu0 %v14212_v20  ;;  %v13063_v20 = vld [vmem:[%s13844_s11 + $0x128c] ss:$16 sps:$4 sm:$0xff]   ;;  %v13094_v51 = vld [vmem:[%s13844_s11 + $0x11c8] ss:$16 sps:$4 sm:$0xff]  }
 0x359   : > { %v14996_v33 = vadd.f32 %v8289_v0, %v8248_v53  ;;  %8613 = vmatprep.mubr.bf16.mxu1 %v14224_v26  ;;  %v8250_v13 = vpop.f32.mrf.mxu0  ;;  %v13058_v26 = vld [vmem:[%s13844_s11 + $0x1088] ss:$16 sps:$4 sm:$0xff]   ;;  %v13099_v39 = vld [vmem:[%s13844_s11 + $0x13cc] ss:$16 sps:$4 sm:$0xff]  }
 0x35a   : > { %v8291_v21 = vpop.f32.mrf.mxu1  ;;  %8543 = vmatpush1.bf16.msra.mxu0 %v13046_v24  ;;  %v13097_v37 = vld [vmem:[%s13844_s11 + $0x13c8] ss:$16 sps:$4 sm:$0xff]   ;;  %v13102_v24 = vld [vmem:[%s13844_s11 + $0x11ac] ss:$16 sps:$4 sm:$0xff]  }
 0x35b   : > { %8584 = vmatpush1.bf16.msra.mxu1 %v13049_v6  ;;  %v8251_v56 = vpop.f32.mrf.mxu0  ;;  %8544 = vmatprep.subr.bf16.mxu0 %v13054_v27  ;;  %v13105_v6 = vld [vmem:[%s13844_s11 + $0x13ac] ss:$16 sps:$4 sm:$0xff]   ;;  %v13100_v53 = vld [vmem:[%s13844_s11 + $0x11a8] ss:$16 sps:$4 sm:$0xff]  }
 0x35c   : > { %v8292_v62 = vpop.f32.mrf.mxu1  ;;  %8585 = vmatprep.subr.bf16.mxu1 %v13057_v31  ;;  %v13103_v0 = vld [vmem:[%s13844_s11 + $0x13a8] ss:$16 sps:$4 sm:$0xff]   ;;  %v13108_v27 = vld [vmem:[%s13844_s11 + $0x118c] ss:$16 sps:$4 sm:$0xff]  }
 0x35d   : > { %v13111_v31 = vld [vmem:[%s13844_s11 + $0x138c] ss:$16 sps:$4 sm:$0xff]   ;;  %v13106_v13 = vld [vmem:[%s13844_s11 + $0x1188] ss:$16 sps:$4 sm:$0xff]  }
 0x35e   : > { %8545 = vmatpush1.bf16.msra.mxu0 %v13052_v58  ;;  %v13109_v21 = vld [vmem:[%s13844_s11 + $0x1388] ss:$16 sps:$4 sm:$0xff]   ;;  %v13114_v58 = vld [vmem:[%s13844_s11 + $0x116c] ss:$16 sps:$4 sm:$0xff]  }
 0x35f   : > { %8586 = vmatpush1.bf16.msra.mxu1 %v13055_v49  ;;  %8546 = vmatprep.subr.bf16.mxu0 %v13060_v12  ;;  %v13117_v49 = vld [vmem:[%s13844_s11 + $0x136c] ss:$16 sps:$4 sm:$0xff]   ;;  %v13112_v56 = vld [vmem:[%s13844_s11 + $0x1168] ss:$16 sps:$4 sm:$0xff]  }
 0x360   : > { %8587 = vmatprep.subr.bf16.mxu1 %v13063_v20  ;;  %v13115_v62 = vld [vmem:[%s13844_s11 + $0x1368] ss:$16 sps:$4 sm:$0xff]   ;;  %v13120_v12 = vld [vmem:[%s13844_s11 + $0x114c] ss:$16 sps:$4 sm:$0xff]  }
 0x361   : > { %v13123_v20 = vld [vmem:[%s13844_s11 + $0x134c] ss:$16 sps:$4 sm:$0xff]  }
 0x362   : > { %8547 = vmatpush1.bf16.msra.mxu0 %v13058_v26  ;;  %v13118_v26 = vld [vmem:[%s13844_s11 + $0x1148] ss:$16 sps:$4 sm:$0xff]  }
 0x363   : > { %8588 = vmatpush1.bf16.msra.mxu1 %v13061_v42  ;;  %8548 = vmatprep.subr.bf16.mxu0 %v13066_v43  ;;  %v13121_v42 = vld [vmem:[%s13844_s11 + $0x1348] ss:$16 sps:$4 sm:$0xff]   ;;  %v13126_v43 = vld [vmem:[%s13844_s11 + $0x112c] ss:$16 sps:$4 sm:$0xff]  }
 0x364   : > { %8589 = vmatprep.subr.bf16.mxu1 %v13069_v45  ;;  %v13129_v45 = vld [vmem:[%s13844_s11 + $0x132c] ss:$16 sps:$4 sm:$0xff]  }
 0x366   : > { %8549 = vmatpush1.bf16.msra.mxu0 %v13064_v55  ;;  %v13124_v55 = vld [vmem:[%s13844_s11 + $0x1128] ss:$16 sps:$4 sm:$0xff]  }
 0x367   : > { %8590 = vmatpush1.bf16.msra.mxu1 %v13067_v60  ;;  %8550 = vmatprep.subr.bf16.mxu0 %v13072_v8  ;;  %v13127_v60 = vld [vmem:[%s13844_s11 + $0x1328] ss:$16 sps:$4 sm:$0xff]   ;;  %v13132_v8 = vld [vmem:[%s13844_s11 + $0x110c] ss:$16 sps:$4 sm:$0xff]  }
 0x368   : > { %8591 = vmatprep.subr.bf16.mxu1 %v13075_v61  ;;  %v13135_v61 = vld [vmem:[%s13844_s11 + $0x130c] ss:$16 sps:$4 sm:$0xff]  }
 0x36a   : > { %8551 = vmatpush1.bf16.msra.mxu0 %v13070_v1  ;;  %v13130_v1 = vld [vmem:[%s13844_s11 + $0x1108] ss:$16 sps:$4 sm:$0xff]  }
 0x36b   : > { %8592 = vmatpush1.bf16.msra.mxu1 %v13073_v17  ;;  %8552 = vmatprep.subr.bf16.mxu0 %v13078_v48  ;;  %v13133_v17 = vld [vmem:[%s13844_s11 + $0x1308] ss:$16 sps:$4 sm:$0xff]   ;;  %v13138_v48 = vld [vmem:[%s13844_s11 + $0x14ec] ss:$16 sps:$4 sm:$0xff]  }
 0x36c   : > { %8593 = vmatprep.subr.bf16.mxu1 %v13081_v22  ;;  %v13141_v22 = vld [vmem:[%s13844_s11 + $0x16ec] ss:$16 sps:$4 sm:$0xff]  }
 0x36e   : > { %8553 = vmatpush1.bf16.msra.mxu0 %v13076_v28  ;;  %v13136_v28 = vld [vmem:[%s13844_s11 + $0x14e8] ss:$16 sps:$4 sm:$0xff]  }
 0x36f   : > { %8594 = vmatpush1.bf16.msra.mxu1 %v13079_v36  ;;  %8554 = vmatprep.subr.bf16.mxu0 %v13084_v54  ;;  %v13139_v36 = vld [vmem:[%s13844_s11 + $0x16e8] ss:$16 sps:$4 sm:$0xff]   ;;  %v13144_v54 = vld [vmem:[%s13844_s11 + $0x14cc] ss:$16 sps:$4 sm:$0xff]  }
 0x370   : > { %8595 = vmatprep.subr.bf16.mxu1 %v13087_v50  ;;  %v13147_v50 = vld [vmem:[%s13844_s11 + $0x16cc] ss:$16 sps:$4 sm:$0xff]  }
 0x372   : > { %8555 = vmatpush1.bf16.msra.mxu0 %v13082_v2 }
 0x373   : > { %8596 = vmatpush1.bf16.msra.mxu1 %v13085_v35  ;;  %8556 = vmatprep.subr.bf16.mxu0 %v13090_v38 }
 0x374   : > { %8597 = vmatprep.subr.bf16.mxu1 %v13093_v14  ;;  %v13142_v14 = vld [vmem:[%s13844_s11 + $0x14c8] ss:$16 sps:$4 sm:$0xff]  }
 0x376   : > { %8557 = vmatpush2.bf16.msra.mxu0 %v13088_v19  ;;  %v13145_v19 = vld [vmem:[%s13844_s11 + $0x16c8] ss:$16 sps:$4 sm:$0xff]  }
 0x377   : > { %8598 = vmatpush2.bf16.msra.mxu1 %v13091_v57  ;;  %8558 = vmatprep.subr.bf16.mxu0 %v13096_v47 }
 0x378   : > { %8599 = vmatprep.subr.bf16.mxu1 %v13099_v39  ;;  %v13150_v39 = vld [vmem:[%s13844_s11 + $0x14ac] ss:$16 sps:$4 sm:$0xff]  }
 0x37a   : > { %8559 = vmatpush2.bf16.msra.mxu0 %v13094_v51  ;;  %v13153_v51 = vld [vmem:[%s13844_s11 + $0x16ac] ss:$16 sps:$4 sm:$0xff]  }
 0x37b   : > { %8600 = vmatpush2.bf16.msra.mxu1 %v13097_v37  ;;  %8560 = vmatprep.subr.bf16.mxu0 %v13102_v24 }
 0x37c   : > { %8601 = vmatprep.subr.bf16.mxu1 %v13105_v6  ;;  %v13148_v6 = vld [vmem:[%s13844_s11 + $0x14a8] ss:$16 sps:$4 sm:$0xff]  }
 0x37e   : > { %8561 = vmatpush2.bf16.msra.mxu0 %v13100_v53  ;;  %v13151_v53 = vld [vmem:[%s13844_s11 + $0x16a8] ss:$16 sps:$4 sm:$0xff]  }
 0x37f   : > { %8602 = vmatpush2.bf16.msra.mxu1 %v13103_v0  ;;  %8562 = vmatprep.subr.bf16.mxu0 %v13108_v27 }
 0x380   : > { %8603 = vmatprep.subr.bf16.mxu1 %v13111_v31  ;;  %v13157_v31 = vld [vmem:[%s13844_s11 + $0x1688] ss:$16 sps:$4 sm:$0xff]  }
 0x382   : > { %8563 = vmatpush2.bf16.msra.mxu0 %v13106_v13  ;;  %v13162_v13 = vld [vmem:[%s13844_s11 + $0x146c] ss:$16 sps:$4 sm:$0xff]  }
 0x383   : > { %8604 = vmatpush2.bf16.msra.mxu1 %v13109_v21  ;;  %8564 = vmatprep.subr.bf16.mxu0 %v13114_v58  ;;  %v13165_v21 = vld [vmem:[%s13844_s11 + $0x166c] ss:$16 sps:$4 sm:$0xff]   ;;  %v13160_v58 = vld [vmem:[%s13844_s11 + $0x1468] ss:$16 sps:$4 sm:$0xff]  }
 0x384   : > { %8605 = vmatprep.subr.bf16.mxu1 %v13117_v49  ;;  %v13163_v49 = vld [vmem:[%s13844_s11 + $0x1668] ss:$16 sps:$4 sm:$0xff]  }
 0x386   : > { %8565 = vmatpush2.bf16.msra.mxu0 %v13112_v56  ;;  %v13168_v56 = vld [vmem:[%s13844_s11 + $0x144c] ss:$16 sps:$4 sm:$0xff]  }
 0x387   : > { %8606 = vmatpush2.bf16.msra.mxu1 %v13115_v62  ;;  %8566 = vmatprep.subr.bf16.mxu0 %v13120_v12  ;;  %v13171_v62 = vld [vmem:[%s13844_s11 + $0x164c] ss:$16 sps:$4 sm:$0xff]   ;;  %v13166_v12 = vld [vmem:[%s13844_s11 + $0x1448] ss:$16 sps:$4 sm:$0xff]  }
 0x388   : > { %8607 = vmatprep.subr.bf16.mxu1 %v13123_v20  ;;  %v13169_v20 = vld [vmem:[%s13844_s11 + $0x1648] ss:$16 sps:$4 sm:$0xff]  }
 0x38a   : > { %8567 = vmatpush2.bf16.msra.mxu0 %v13118_v26  ;;  %v13174_v26 = vld [vmem:[%s13844_s11 + $0x142c] ss:$16 sps:$4 sm:$0xff]  }
 0x38b   : > { %8608 = vmatpush2.bf16.msra.mxu1 %v13121_v42  ;;  %8568 = vmatprep.subr.bf16.mxu0 %v13126_v43  ;;  %v13177_v42 = vld [vmem:[%s13844_s11 + $0x162c] ss:$16 sps:$4 sm:$0xff]   ;;  %v13172_v43 = vld [vmem:[%s13844_s11 + $0x1428] ss:$16 sps:$4 sm:$0xff]  }
 0x38c   : > { %8609 = vmatprep.subr.bf16.mxu1 %v13129_v45  ;;  %v13175_v45 = vld [vmem:[%s13844_s11 + $0x1628] ss:$16 sps:$4 sm:$0xff]  }
 0x38e   : > { %8569 = vmatpush2.bf16.msra.mxu0 %v13124_v55  ;;  %v13180_v55 = vld [vmem:[%s13844_s11 + $0x140c] ss:$16 sps:$4 sm:$0xff]  }
 0x38f   : > { %8610 = vmatpush2.bf16.msra.mxu1 %v13127_v60  ;;  %8570 = vmatprep.subr.bf16.mxu0 %v13132_v8  ;;  %v13183_v60 = vld [vmem:[%s13844_s11 + $0x160c] ss:$16 sps:$4 sm:$0xff]   ;;  %v13178_v8 = vld [vmem:[%s13844_s11 + $0x1408] ss:$16 sps:$4 sm:$0xff]  }
 0x390   : > { %8611 = vmatprep.subr.bf16.mxu1 %v13135_v61  ;;  %v13181_v61 = vld [vmem:[%s13844_s11 + $0x1608] ss:$16 sps:$4 sm:$0xff]  }
 0x392   : > { %8571 = vmatpush2.bf16.msra.mxu0 %v13130_v1  ;;  %v13186_v1 = vld [vmem:[%s13844_s11 + $0x15ec] ss:$16 sps:$4 sm:$0xff]  }
 0x393   : > { %8612 = vmatpush2.bf16.msra.mxu1 %v13133_v17  ;;  %8622 = vmatprep.subr.bf16.mxu0 %v13138_v48  ;;  %v13189_v17 = vld [vmem:[%s13844_s11 + $0x17ec] ss:$16 sps:$4 sm:$0xff]   ;;  %v13184_v48 = vld [vmem:[%s13844_s11 + $0x15e8] ss:$16 sps:$4 sm:$0xff]  }
 0x394   : > { %8663 = vmatprep.subr.bf16.mxu1 %v13141_v22  ;;  %v13187_v22 = vld [vmem:[%s13844_s11 + $0x17e8] ss:$16 sps:$4 sm:$0xff]  }
 0x395   : > { %v8328_v2 = vpop.f32.mrf.mxu0  ;;  %8573 = vmatmul.mubr.bf16.vlgmr.msra.gmra.mxu0 %v14299_v4 }
 0x396   : > { %v8369_v35 = vpop.f32.mrf.mxu1  ;;  %8614 = vmatmul.mubr.bf16.vlgmr.msra.gmra.mxu1 %v14312_v5  ;;  %v8329_v38 = vadd.f32 %v8328_v2, %v14990_v18  ;;  %8623 = vmatpush1.bf16.msra.mxu0 %v13136_v28  ;;  %v13192_v28 = vld [vmem:[%s13844_s11 + $0x15cc] ss:$16 sps:$4 sm:$0xff]  }
 0x397   : > { %8664 = vmatpush1.bf16.msra.mxu1 %v13139_v36  ;;  %v8330_v57 = vpop.f32.mrf.mxu0  ;;  %8624 = vmatprep.subr.bf16.mxu0 %v13144_v54  ;;  %v13195_v36 = vld [vmem:[%s13844_s11 + $0x17cc] ss:$16 sps:$4 sm:$0xff]   ;;  %v13190_v54 = vld [vmem:[%s13844_s11 + $0x15c8] ss:$16 sps:$4 sm:$0xff]  }
 0x398   : > { %v8371_v47 = vpop.f32.mrf.mxu1  ;;  %8665 = vmatprep.subr.bf16.mxu1 %v13147_v50  ;;  %v15067_v37 = vadd.f32 %v8369_v35, %v8329_v38  ;;  %v8331_v4 = vadd.f32 %v8330_v57, %v14996_v33  ;;  %8654 = vmatprep.mubr.bf16.mxu0 %v14308_v15  ;;  %v13156_v15 = vld [vmem:[%s13844_s11 + $0x148c] ss:$16 sps:$4 sm:$0xff]   ;;  %v13154_v33 = vld [vmem:[%s13844_s11 + $0x1488] ss:$16 sps:$4 sm:$0xff]  }
 0x399   : > { %8695 = vmatprep.mubr.bf16.mxu1 %v14320_v23  ;;  %v8332_v5 = vpop.f32.mrf.mxu0  ;;  %v13159_v23 = vld [vmem:[%s13844_s11 + $0x168c] ss:$16 sps:$4 sm:$0xff]   ;;  %v13193_v50 = vld [vmem:[%s13844_s11 + $0x17c8] ss:$16 sps:$4 sm:$0xff]  }
 0x39a   : > { %v8373_v18 = vpop.f32.mrf.mxu1  ;;  %v15072_v24 = vadd.f32 %v8371_v47, %v8331_v4  ;;  %8625 = vmatpush1.bf16.msra.mxu0 %v13142_v14  ;;  %v13198_v2 = vld [vmem:[%s13844_s11 + $0x15ac] ss:$16 sps:$4 sm:$0xff]   ;;  %v13196_v38 = vld [vmem:[%s13844_s11 + $0x15a8] ss:$16 sps:$4 sm:$0xff]  }
 0x39b   : > { %8666 = vmatpush1.bf16.msra.mxu1 %v13145_v19  ;;  %v8333_v0 = vpop.f32.mrf.mxu0  ;;  %8626 = vmatprep.subr.bf16.mxu0 %v13150_v39  ;;  %v13201_v35 = vld [vmem:[%s13844_s11 + $0x17ac] ss:$16 sps:$4 sm:$0xff]   ;;  %v13199_v14 = vld [vmem:[%s13844_s11 + $0x17a8] ss:$16 sps:$4 sm:$0xff]  }
 0x39c   : > { %v8374_v27 = vpop.f32.mrf.mxu1  ;;  %8667 = vmatprep.subr.bf16.mxu1 %v13153_v51  ;;  %v13204_v19 = vld [vmem:[%s13844_s11 + $0x158c] ss:$16 sps:$4 sm:$0xff]   ;;  %v13202_v47 = vld [vmem:[%s13844_s11 + $0x1588] ss:$16 sps:$4 sm:$0xff]  }
 0x39d   : > { %v13207_v57 = vld [vmem:[%s13844_s11 + $0x178c] ss:$16 sps:$4 sm:$0xff]   ;;  %v13205_v39 = vld [vmem:[%s13844_s11 + $0x1788] ss:$16 sps:$4 sm:$0xff]  }
 0x39e   : > { %8627 = vmatpush1.bf16.msra.mxu0 %v13148_v6  ;;  %v13210_v51 = vld [vmem:[%s13844_s11 + $0x156c] ss:$16 sps:$4 sm:$0xff]   ;;  %v13208_v5 = vld [vmem:[%s13844_s11 + $0x1568] ss:$16 sps:$4 sm:$0xff]  }
 0x39f   : > { %8668 = vmatpush1.bf16.msra.mxu1 %v13151_v53  ;;  %8628 = vmatprep.subr.bf16.mxu0 %v13156_v15  ;;  %v13213_v4 = vld [vmem:[%s13844_s11 + $0x176c] ss:$16 sps:$4 sm:$0xff]   ;;  %v13211_v18 = vld [vmem:[%s13844_s11 + $0x1768] ss:$16 sps:$4 sm:$0xff]  }
 0x3a0   : > { %8669 = vmatprep.subr.bf16.mxu1 %v13159_v23  ;;  %v13216_v6 = vld [vmem:[%s13844_s11 + $0x154c] ss:$16 sps:$4 sm:$0xff]   ;;  %v13214_v0 = vld [vmem:[%s13844_s11 + $0x1548] ss:$16 sps:$4 sm:$0xff]  }
 0x3a1   : > { %v13219_v53 = vld [vmem:[%s13844_s11 + $0x174c] ss:$16 sps:$4 sm:$0xff]   ;;  %v13217_v27 = vld [vmem:[%s13844_s11 + $0x1748] ss:$16 sps:$4 sm:$0xff]  }
 0x3a2   : > { %8629 = vmatpush1.bf16.msra.mxu0 %v13154_v33  ;;  %v13222_v15 = vld [vmem:[%s13844_s11 + $0x152c] ss:$16 sps:$4 sm:$0xff]   ;;  %v13220_v33 = vld [vmem:[%s13844_s11 + $0x1528] ss:$16 sps:$4 sm:$0xff]  }
 0x3a3   : > { %8670 = vmatpush1.bf16.msra.mxu1 %v13157_v31  ;;  %8630 = vmatprep.subr.bf16.mxu0 %v13162_v13  ;;  %v13225_v23 = vld [vmem:[%s13844_s11 + $0x172c] ss:$16 sps:$4 sm:$0xff]   ;;  %v13223_v31 = vld [vmem:[%s13844_s11 + $0x1728] ss:$16 sps:$4 sm:$0xff]  }
 0x3a4   : > { %8671 = vmatprep.subr.bf16.mxu1 %v13165_v21  ;;  %v13228_v13 = vld [vmem:[%s13844_s11 + $0x150c] ss:$16 sps:$4 sm:$0xff]  }
 0x3a5   : > { %v13231_v21 = vld [vmem:[%s13844_s11 + $0x170c] ss:$16 sps:$4 sm:$0xff]  }
 0x3a6   : > { %8631 = vmatpush1.bf16.msra.mxu0 %v13160_v58  ;;  %v13226_v58 = vld [vmem:[%s13844_s11 + $0x1508] ss:$16 sps:$4 sm:$0xff]  }
 0x3a7   : > { %8672 = vmatpush1.bf16.msra.mxu1 %v13163_v49  ;;  %8632 = vmatprep.subr.bf16.mxu0 %v13168_v56  ;;  %v13229_v49 = vld [vmem:[%s13844_s11 + $0x1708] ss:$16 sps:$4 sm:$0xff]   ;;  %v13234_v56 = vld [vmem:[%s13844_s11 + $0x18ec] ss:$16 sps:$4 sm:$0xff]  }
 0x3a8   : > { %8673 = vmatprep.subr.bf16.mxu1 %v13171_v62  ;;  %v13237_v62 = vld [vmem:[%s13844_s11 + $0x1aec] ss:$16 sps:$4 sm:$0xff]  }
 0x3aa   : > { %8633 = vmatpush1.bf16.msra.mxu0 %v13166_v12  ;;  %v13232_v12 = vld [vmem:[%s13844_s11 + $0x18e8] ss:$16 sps:$4 sm:$0xff]  }
 0x3ab   : > { %8674 = vmatpush1.bf16.msra.mxu1 %v13169_v20  ;;  %8634 = vmatprep.subr.bf16.mxu0 %v13174_v26  ;;  %v13235_v20 = vld [vmem:[%s13844_s11 + $0x1ae8] ss:$16 sps:$4 sm:$0xff]   ;;  %v13240_v26 = vld [vmem:[%s13844_s11 + $0x18cc] ss:$16 sps:$4 sm:$0xff]  }
 0x3ac   : > { %8675 = vmatprep.subr.bf16.mxu1 %v13177_v42  ;;  %v13243_v42 = vld [vmem:[%s13844_s11 + $0x1acc] ss:$16 sps:$4 sm:$0xff]  }
 0x3ae   : > { %8635 = vmatpush1.bf16.msra.mxu0 %v13172_v43 }
 0x3af   : > { %8676 = vmatpush1.bf16.msra.mxu1 %v13175_v45  ;;  %8636 = vmatprep.subr.bf16.mxu0 %v13180_v55 }
 0x3b0   : > { %8677 = vmatprep.subr.bf16.mxu1 %v13183_v60  ;;  %v13238_v60 = vld [vmem:[%s13844_s11 + $0x18c8] ss:$16 sps:$4 sm:$0xff]  }
 0x3b2   : > { %8637 = vmatpush1.bf16.msra.mxu0 %v13178_v8  ;;  %v13241_v8 = vld [vmem:[%s13844_s11 + $0x1ac8] ss:$16 sps:$4 sm:$0xff]  }
 0x3b3   : > { %8678 = vmatpush1.bf16.msra.mxu1 %v13181_v61  ;;  %8638 = vmatprep.subr.bf16.mxu0 %v13186_v1 }
 0x3b4   : > { %8679 = vmatprep.subr.bf16.mxu1 %v13189_v17  ;;  %v13246_v17 = vld [vmem:[%s13844_s11 + $0x18ac] ss:$16 sps:$4 sm:$0xff]  }
 0x3b6   : > { %8639 = vmatpush2.bf16.msra.mxu0 %v13184_v48  ;;  %v13249_v48 = vld [vmem:[%s13844_s11 + $0x1aac] ss:$16 sps:$4 sm:$0xff]  }
 0x3b7   : > { %8680 = vmatpush2.bf16.msra.mxu1 %v13187_v22  ;;  %8640 = vmatprep.subr.bf16.mxu0 %v13192_v28 }
 0x3b8   : > { %8681 = vmatprep.subr.bf16.mxu1 %v13195_v36  ;;  %v13244_v36 = vld [vmem:[%s13844_s11 + $0x18a8] ss:$16 sps:$4 sm:$0xff]  }
 0x3ba   : > { %8641 = vmatpush2.bf16.msra.mxu0 %v13190_v54  ;;  %v13247_v54 = vld [vmem:[%s13844_s11 + $0x1aa8] ss:$16 sps:$4 sm:$0xff]  }
 0x3bb   : > { %8682 = vmatpush2.bf16.msra.mxu1 %v13193_v50  ;;  %8642 = vmatprep.subr.bf16.mxu0 %v13198_v2 }
 0x3bc   : > { %8683 = vmatprep.subr.bf16.mxu1 %v13201_v35  ;;  %v13253_v35 = vld [vmem:[%s13844_s11 + $0x1a88] ss:$16 sps:$4 sm:$0xff]  }
 0x3be   : > { %8643 = vmatpush2.bf16.msra.mxu0 %v13196_v38  ;;  %v13258_v38 = vld [vmem:[%s13844_s11 + $0x186c] ss:$16 sps:$4 sm:$0xff]  }
 0x3bf   : > { %8684 = vmatpush2.bf16.msra.mxu1 %v13199_v14  ;;  %8644 = vmatprep.subr.bf16.mxu0 %v13204_v19  ;;  %v13261_v14 = vld [vmem:[%s13844_s11 + $0x1a6c] ss:$16 sps:$4 sm:$0xff]   ;;  %v13256_v19 = vld [vmem:[%s13844_s11 + $0x1868] ss:$16 sps:$4 sm:$0xff]  }
 0x3c0   : > { %8685 = vmatprep.subr.bf16.mxu1 %v13207_v57  ;;  %v13259_v57 = vld [vmem:[%s13844_s11 + $0x1a68] ss:$16 sps:$4 sm:$0xff]  }
 0x3c2   : > { %8645 = vmatpush2.bf16.msra.mxu0 %v13202_v47  ;;  %v13264_v47 = vld [vmem:[%s13844_s11 + $0x184c] ss:$16 sps:$4 sm:$0xff]  }
 0x3c3   : > { %8686 = vmatpush2.bf16.msra.mxu1 %v13205_v39  ;;  %8646 = vmatprep.subr.bf16.mxu0 %v13210_v51  ;;  %v13267_v39 = vld [vmem:[%s13844_s11 + $0x1a4c] ss:$16 sps:$4 sm:$0xff]   ;;  %v13262_v51 = vld [vmem:[%s13844_s11 + $0x1848] ss:$16 sps:$4 sm:$0xff]  }
 0x3c4   : > { %8687 = vmatprep.subr.bf16.mxu1 %v13213_v4  ;;  %v13265_v4 = vld [vmem:[%s13844_s11 + $0x1a48] ss:$16 sps:$4 sm:$0xff]  }
 0x3c6   : > { %8647 = vmatpush2.bf16.msra.mxu0 %v13208_v5  ;;  %v13270_v5 = vld [vmem:[%s13844_s11 + $0x182c] ss:$16 sps:$4 sm:$0xff]  }
 0x3c7   : > { %8688 = vmatpush2.bf16.msra.mxu1 %v13211_v18  ;;  %8648 = vmatprep.subr.bf16.mxu0 %v13216_v6  ;;  %v13273_v18 = vld [vmem:[%s13844_s11 + $0x1a2c] ss:$16 sps:$4 sm:$0xff]   ;;  %v13268_v6 = vld [vmem:[%s13844_s11 + $0x1828] ss:$16 sps:$4 sm:$0xff]  }
 0x3c8   : > { %8689 = vmatprep.subr.bf16.mxu1 %v13219_v53  ;;  %v13271_v53 = vld [vmem:[%s13844_s11 + $0x1a28] ss:$16 sps:$4 sm:$0xff]  }
 0x3ca   : > { %8649 = vmatpush2.bf16.msra.mxu0 %v13214_v0  ;;  %v13276_v0 = vld [vmem:[%s13844_s11 + $0x180c] ss:$16 sps:$4 sm:$0xff]  }
 0x3cb   : > { %8690 = vmatpush2.bf16.msra.mxu1 %v13217_v27  ;;  %8650 = vmatprep.subr.bf16.mxu0 %v13222_v15  ;;  %v13279_v27 = vld [vmem:[%s13844_s11 + $0x1a0c] ss:$16 sps:$4 sm:$0xff]   ;;  %v13274_v15 = vld [vmem:[%s13844_s11 + $0x1808] ss:$16 sps:$4 sm:$0xff]  }
 0x3cc   : > { %8691 = vmatprep.subr.bf16.mxu1 %v13225_v23  ;;  %v13277_v23 = vld [vmem:[%s13844_s11 + $0x1a08] ss:$16 sps:$4 sm:$0xff]  }
 0x3ce   : > { %8651 = vmatpush2.bf16.msra.mxu0 %v13220_v33  ;;  %v13282_v33 = vld [vmem:[%s13844_s11 + $0x19ec] ss:$16 sps:$4 sm:$0xff]  }
 0x3cf   : > { %8692 = vmatpush2.bf16.msra.mxu1 %v13223_v31  ;;  %8652 = vmatprep.subr.bf16.mxu0 %v13228_v13  ;;  %v13285_v31 = vld [vmem:[%s13844_s11 + $0x1bec] ss:$16 sps:$4 sm:$0xff]   ;;  %v13280_v13 = vld [vmem:[%s13844_s11 + $0x19e8] ss:$16 sps:$4 sm:$0xff]  }
 0x3d0   : > { %8693 = vmatprep.subr.bf16.mxu1 %v13231_v21  ;;  %v13283_v21 = vld [vmem:[%s13844_s11 + $0x1be8] ss:$16 sps:$4 sm:$0xff]  }
 0x3d2   : > { %8653 = vmatpush2.bf16.msra.mxu0 %v13226_v58  ;;  %v13288_v58 = vld [vmem:[%s13844_s11 + $0x19cc] ss:$16 sps:$4 sm:$0xff]  }
 0x3d3   : > { %8694 = vmatpush2.bf16.msra.mxu1 %v13229_v49  ;;  %8704 = vmatprep.subr.bf16.mxu0 %v13234_v56  ;;  %v13291_v49 = vld [vmem:[%s13844_s11 + $0x1bcc] ss:$16 sps:$4 sm:$0xff]   ;;  %v13286_v56 = vld [vmem:[%s13844_s11 + $0x19c8] ss:$16 sps:$4 sm:$0xff]  }
 0x3d4   : > { %8745 = vmatprep.subr.bf16.mxu1 %v13237_v62  ;;  %v13289_v62 = vld [vmem:[%s13844_s11 + $0x1bc8] ss:$16 sps:$4 sm:$0xff]  }
 0x3d5   : > { %v8410_v43 = vpop.f32.mrf.mxu0  ;;  %8655 = vmatmul.mubr.bf16.vlgmr.msra.gmra.mxu0 %v14397_v10 }
 0x3d6   : > { %v8451_v45 = vpop.f32.mrf.mxu1  ;;  %8696 = vmatmul.mubr.bf16.vlgmr.msra.gmra.mxu1 %v14410_v59  ;;  %v8411_v55 = vadd.f32 %v8410_v43, %v15067_v37  ;;  %8705 = vmatpush1.bf16.msra.mxu0 %v13232_v12  ;;  %v13294_v12 = vld [vmem:[%s13844_s11 + $0x19ac] ss:$16 sps:$4 sm:$0xff]  }
 0x3d7   : > { %8746 = vmatpush1.bf16.msra.mxu1 %v13235_v20  ;;  %v8412_v61 = vpop.f32.mrf.mxu0  ;;  %8706 = vmatprep.subr.bf16.mxu0 %v13240_v26  ;;  %v13297_v20 = vld [vmem:[%s13844_s11 + $0x1bac] ss:$16 sps:$4 sm:$0xff]   ;;  %v13292_v26 = vld [vmem:[%s13844_s11 + $0x19a8] ss:$16 sps:$4 sm:$0xff]  }
 0x3d8   : > { %v8453_v1 = vpop.f32.mrf.mxu1  ;;  %8747 = vmatprep.subr.bf16.mxu1 %v13243_v42  ;;  %v15141_v22 = vadd.f32 %v8451_v45, %v8411_v55  ;;  %v8413_v10 = vadd.f32 %v8412_v61, %v15072_v24  ;;  %8736 = vmatprep.mubr.bf16.mxu0 %v14406_v25  ;;  %v13252_v25 = vld [vmem:[%s13844_s11 + $0x188c] ss:$16 sps:$4 sm:$0xff]   ;;  %v13250_v24 = vld [vmem:[%s13844_s11 + $0x1888] ss:$16 sps:$4 sm:$0xff]  }
 0x3d9   : > { %8777 = vmatprep.mubr.bf16.mxu1 %v14418_v34  ;;  %v8414_v59 = vpop.f32.mrf.mxu0  ;;  %v13255_v34 = vld [vmem:[%s13844_s11 + $0x1a8c] ss:$16 sps:$4 sm:$0xff]   ;;  %v13295_v42 = vld [vmem:[%s13844_s11 + $0x1ba8] ss:$16 sps:$4 sm:$0xff]  }
 0x3da   : > { %v8455_v37 = vpop.f32.mrf.mxu1  ;;  %v15146_v28 = vadd.f32 %v8453_v1, %v8413_v10  ;;  %8707 = vmatpush1.bf16.msra.mxu0 %v13238_v60  ;;  %v13300_v43 = vld [vmem:[%s13844_s11 + $0x198c] ss:$16 sps:$4 sm:$0xff]   ;;  %v13298_v55 = vld [vmem:[%s13844_s11 + $0x1988] ss:$16 sps:$4 sm:$0xff]  }
 0x3db   : > { %8748 = vmatpush1.bf16.msra.mxu1 %v13241_v8  ;;  %v8415_v50 = vpop.f32.mrf.mxu0  ;;  %8708 = vmatprep.subr.bf16.mxu0 %v13246_v17  ;;  %v13303_v45 = vld [vmem:[%s13844_s11 + $0x1b8c] ss:$16 sps:$4 sm:$0xff]   ;;  %v13301_v60 = vld [vmem:[%s13844_s11 + $0x1b88] ss:$16 sps:$4 sm:$0xff]  }
 0x3dc   : > { %v8456_v2 = vpop.f32.mrf.mxu1  ;;  %8749 = vmatprep.subr.bf16.mxu1 %v13249_v48  ;;  %v13306_v8 = vld [vmem:[%s13844_s11 + $0x196c] ss:$16 sps:$4 sm:$0xff]   ;;  %v13304_v1 = vld [vmem:[%s13844_s11 + $0x1968] ss:$16 sps:$4 sm:$0xff]  }
 0x3dd   : > { %v13309_v61 = vld [vmem:[%s13844_s11 + $0x1b6c] ss:$16 sps:$4 sm:$0xff]   ;;  %v13307_v17 = vld [vmem:[%s13844_s11 + $0x1b68] ss:$16 sps:$4 sm:$0xff]  }
 0x3de   : > { %8709 = vmatpush1.bf16.msra.mxu0 %v13244_v36  ;;  %v13312_v48 = vld [vmem:[%s13844_s11 + $0x194c] ss:$16 sps:$4 sm:$0xff]   ;;  %v13310_v59 = vld [vmem:[%s13844_s11 + $0x1948] ss:$16 sps:$4 sm:$0xff]  }
 0x3df   : > { %8750 = vmatpush1.bf16.msra.mxu1 %v13247_v54  ;;  %8710 = vmatprep.subr.bf16.mxu0 %v13252_v25  ;;  %v13315_v10 = vld [vmem:[%s13844_s11 + $0x1b4c] ss:$16 sps:$4 sm:$0xff]   ;;  %v13313_v37 = vld [vmem:[%s13844_s11 + $0x1b48] ss:$16 sps:$4 sm:$0xff]  }
 0x3e0   : > { %8751 = vmatprep.subr.bf16.mxu1 %v13255_v34  ;;  %v13318_v36 = vld [vmem:[%s13844_s11 + $0x192c] ss:$16 sps:$4 sm:$0xff]   ;;  %v13316_v50 = vld [vmem:[%s13844_s11 + $0x1928] ss:$16 sps:$4 sm:$0xff]  }
 0x3e1   : > { %v13321_v54 = vld [vmem:[%s13844_s11 + $0x1b2c] ss:$16 sps:$4 sm:$0xff]   ;;  %v13319_v2 = vld [vmem:[%s13844_s11 + $0x1b28] ss:$16 sps:$4 sm:$0xff]  }
 0x3e2   : > { %8711 = vmatpush1.bf16.msra.mxu0 %v13250_v24  ;;  %v13324_v25 = vld [vmem:[%s13844_s11 + $0x190c] ss:$16 sps:$4 sm:$0xff]   ;;  %v13322_v24 = vld [vmem:[%s13844_s11 + $0x1908] ss:$16 sps:$4 sm:$0xff]  }
 0x3e3   : > { %8752 = vmatpush1.bf16.msra.mxu1 %v13253_v35  ;;  %8712 = vmatprep.subr.bf16.mxu0 %v13258_v38  ;;  %v13327_v34 = vld [vmem:[%s13844_s11 + $0x1b0c] ss:$16 sps:$4 sm:$0xff]   ;;  %v13325_v35 = vld [vmem:[%s13844_s11 + $0x1b08] ss:$16 sps:$4 sm:$0xff]  }
 0x3e4   : > { %8753 = vmatprep.subr.bf16.mxu1 %v13261_v14  ;;  %v13330_v38 = vld [vmem:[%s13844_s11 + $0x1cec] ss:$16 sps:$4 sm:$0xff]  }
 0x3e5   : > { %v13333_v14 = vld [vmem:[%s13844_s11 + $0x1eec] ss:$16 sps:$4 sm:$0xff]  }
 0x3e6   : > { %8713 = vmatpush1.bf16.msra.mxu0 %v13256_v19  ;;  %v13328_v19 = vld [vmem:[%s13844_s11 + $0x1ce8] ss:$16 sps:$4 sm:$0xff]  }
 0x3e7   : > { %8754 = vmatpush1.bf16.msra.mxu1 %v13259_v57  ;;  %8714 = vmatprep.subr.bf16.mxu0 %v13264_v47  ;;  %v13331_v57 = vld [vmem:[%s13844_s11 + $0x1ee8] ss:$16 sps:$4 sm:$0xff]   ;;  %v13336_v47 = vld [vmem:[%s13844_s11 + $0x1ccc] ss:$16 sps:$4 sm:$0xff]  }
 0x3e8   : > { %8755 = vmatprep.subr.bf16.mxu1 %v13267_v39  ;;  %v13339_v39 = vld [vmem:[%s13844_s11 + $0x1ecc] ss:$16 sps:$4 sm:$0xff]  }
 0x3ea   : > { %8715 = vmatpush1.bf16.msra.mxu0 %v13262_v51 }
 0x3eb   : > { %8756 = vmatpush1.bf16.msra.mxu1 %v13265_v4  ;;  %8716 = vmatprep.subr.bf16.mxu0 %v13270_v5 }
 0x3ec   : > { %8757 = vmatprep.subr.bf16.mxu1 %v13273_v18  ;;  %v13334_v18 = vld [vmem:[%s13844_s11 + $0x1cc8] ss:$16 sps:$4 sm:$0xff]  }
 0x3ee   : > { %8717 = vmatpush1.bf16.msra.mxu0 %v13268_v6  ;;  %v13337_v6 = vld [vmem:[%s13844_s11 + $0x1ec8] ss:$16 sps:$4 sm:$0xff]  }
 0x3ef   : > { %8758 = vmatpush1.bf16.msra.mxu1 %v13271_v53  ;;  %8718 = vmatprep.subr.bf16.mxu0 %v13276_v0 }
 0x3f0   : > { %8759 = vmatprep.subr.bf16.mxu1 %v13279_v27  ;;  %v13342_v27 = vld [vmem:[%s13844_s11 + $0x1cac] ss:$16 sps:$4 sm:$0xff]  }
 0x3f2   : > { %8719 = vmatpush1.bf16.msra.mxu0 %v13274_v15  ;;  %v13345_v15 = vld [vmem:[%s13844_s11 + $0x1eac] ss:$16 sps:$4 sm:$0xff]  }
 0x3f3   : > { %8760 = vmatpush1.bf16.msra.mxu1 %v13277_v23  ;;  %8720 = vmatprep.subr.bf16.mxu0 %v13282_v33 }
 0x3f4   : > { %8761 = vmatprep.subr.bf16.mxu1 %v13285_v31  ;;  %v13340_v31 = vld [vmem:[%s13844_s11 + $0x1ca8] ss:$16 sps:$4 sm:$0xff]  }
 0x3f6   : > { %8721 = vmatpush2.bf16.msra.mxu0 %v13280_v13  ;;  %v13343_v13 = vld [vmem:[%s13844_s11 + $0x1ea8] ss:$16 sps:$4 sm:$0xff]  }
 0x3f7   : > { %8762 = vmatpush2.bf16.msra.mxu1 %v13283_v21  ;;  %8722 = vmatprep.subr.bf16.mxu0 %v13288_v58 }
 0x3f8   : > { %8763 = vmatprep.subr.bf16.mxu1 %v13291_v49  ;;  %v13349_v49 = vld [vmem:[%s13844_s11 + $0x1e88] ss:$16 sps:$4 sm:$0xff]  }
 0x3fa   : > { %8723 = vmatpush2.bf16.msra.mxu0 %v13286_v56  ;;  %v13354_v56 = vld [vmem:[%s13844_s11 + $0x1c6c] ss:$16 sps:$4 sm:$0xff]  }
 0x3fb   : > { %8764 = vmatpush2.bf16.msra.mxu1 %v13289_v62  ;;  %8724 = vmatprep.subr.bf16.mxu0 %v13294_v12  ;;  %v13357_v62 = vld [vmem:[%s13844_s11 + $0x1e6c] ss:$16 sps:$4 sm:$0xff]   ;;  %v13352_v12 = vld [vmem:[%s13844_s11 + $0x1c68] ss:$16 sps:$4 sm:$0xff]  }
 0x3fc   : > { %8765 = vmatprep.subr.bf16.mxu1 %v13297_v20  ;;  %v13355_v20 = vld [vmem:[%s13844_s11 + $0x1e68] ss:$16 sps:$4 sm:$0xff]  }
 0x3fe   : > { %8725 = vmatpush2.bf16.msra.mxu0 %v13292_v26  ;;  %v13360_v26 = vld [vmem:[%s13844_s11 + $0x1c4c] ss:$16 sps:$4 sm:$0xff]  }
 0x3ff   : > { %8766 = vmatpush2.bf16.msra.mxu1 %v13295_v42  ;;  %8726 = vmatprep.subr.bf16.mxu0 %v13300_v43  ;;  %v13363_v42 = vld [vmem:[%s13844_s11 + $0x1e4c] ss:$16 sps:$4 sm:$0xff]   ;;  %v13358_v43 = vld [vmem:[%s13844_s11 + $0x1c48] ss:$16 sps:$4 sm:$0xff]  }
 0x400   : > { %8767 = vmatprep.subr.bf16.mxu1 %v13303_v45  ;;  %v13361_v45 = vld [vmem:[%s13844_s11 + $0x1e48] ss:$16 sps:$4 sm:$0xff]  }
 0x402   : > { %8727 = vmatpush2.bf16.msra.mxu0 %v13298_v55  ;;  %v13366_v55 = vld [vmem:[%s13844_s11 + $0x1c2c] ss:$16 sps:$4 sm:$0xff]  }
 0x403   : > { %8768 = vmatpush2.bf16.msra.mxu1 %v13301_v60  ;;  %8728 = vmatprep.subr.bf16.mxu0 %v13306_v8  ;;  %v13369_v60 = vld [vmem:[%s13844_s11 + $0x1e2c] ss:$16 sps:$4 sm:$0xff]   ;;  %v13364_v8 = vld [vmem:[%s13844_s11 + $0x1c28] ss:$16 sps:$4 sm:$0xff]  }
 0x404   : > { %8769 = vmatprep.subr.bf16.mxu1 %v13309_v61  ;;  %v13367_v61 = vld [vmem:[%s13844_s11 + $0x1e28] ss:$16 sps:$4 sm:$0xff]  }
 0x406   : > { %8729 = vmatpush2.bf16.msra.mxu0 %v13304_v1  ;;  %v13372_v1 = vld [vmem:[%s13844_s11 + $0x1c0c] ss:$16 sps:$4 sm:$0xff]  }
 0x407   : > { %8770 = vmatpush2.bf16.msra.mxu1 %v13307_v17  ;;  %8730 = vmatprep.subr.bf16.mxu0 %v13312_v48  ;;  %v13375_v17 = vld [vmem:[%s13844_s11 + $0x1e0c] ss:$16 sps:$4 sm:$0xff]   ;;  %v13370_v48 = vld [vmem:[%s13844_s11 + $0x1c08] ss:$16 sps:$4 sm:$0xff]  }
 0x408   : > { %8771 = vmatprep.subr.bf16.mxu1 %v13315_v10  ;;  %v13373_v10 = vld [vmem:[%s13844_s11 + $0x1e08] ss:$16 sps:$4 sm:$0xff]  }
 0x40a   : > { %8731 = vmatpush2.bf16.msra.mxu0 %v13310_v59  ;;  %v13378_v59 = vld [vmem:[%s13844_s11 + $0x1dec] ss:$16 sps:$4 sm:$0xff]  }
 0x40b   : > { %8772 = vmatpush2.bf16.msra.mxu1 %v13313_v37  ;;  %8732 = vmatprep.subr.bf16.mxu0 %v13318_v36  ;;  %v13381_v37 = vld [vmem:[%s13844_s11 + $0x1fec] ss:$16 sps:$4 sm:$0xff]   ;;  %v13376_v36 = vld [vmem:[%s13844_s11 + $0x1de8] ss:$16 sps:$4 sm:$0xff]  }
 0x40c   : > { %8773 = vmatprep.subr.bf16.mxu1 %v13321_v54  ;;  %v13379_v54 = vld [vmem:[%s13844_s11 + $0x1fe8] ss:$16 sps:$4 sm:$0xff]  }
 0x40e   : > { %8733 = vmatpush2.bf16.msra.mxu0 %v13316_v50  ;;  %v13384_v50 = vld [vmem:[%s13844_s11 + $0x1dcc] ss:$16 sps:$4 sm:$0xff]  }
 0x40f   : > { %8774 = vmatpush2.bf16.msra.mxu1 %v13319_v2  ;;  %8734 = vmatprep.subr.bf16.mxu0 %v13324_v25  ;;  %v13387_v2 = vld [vmem:[%s13844_s11 + $0x1fcc] ss:$16 sps:$4 sm:$0xff]   ;;  %v13382_v25 = vld [vmem:[%s13844_s11 + $0x1dc8] ss:$16 sps:$4 sm:$0xff]  }
 0x410   : > { %8775 = vmatprep.subr.bf16.mxu1 %v13327_v34  ;;  %v13385_v34 = vld [vmem:[%s13844_s11 + $0x1fc8] ss:$16 sps:$4 sm:$0xff]  }
 0x412   : > { %8735 = vmatpush2.bf16.msra.mxu0 %v13322_v24  ;;  %v13390_v24 = vld [vmem:[%s13844_s11 + $0x1dac] ss:$16 sps:$4 sm:$0xff]  }
 0x413   : > { %8776 = vmatpush2.bf16.msra.mxu1 %v13325_v35  ;;  %8786 = vmatprep.subr.bf16.mxu0 %v13330_v38  ;;  %v13393_v35 = vld [vmem:[%s13844_s11 + $0x1fac] ss:$16 sps:$4 sm:$0xff]   ;;  %v13388_v38 = vld [vmem:[%s13844_s11 + $0x1da8] ss:$16 sps:$4 sm:$0xff]  }
 0x414   : > { %8827 = vmatprep.subr.bf16.mxu1 %v13333_v14  ;;  %v13391_v14 = vld [vmem:[%s13844_s11 + $0x1fa8] ss:$16 sps:$4 sm:$0xff]  }
 0x415   : > { %v8492_v51 = vpop.f32.mrf.mxu0  ;;  %8737 = vmatmul.mubr.bf16.vlgmr.msra.gmra.mxu0 %v14493_v40 }
 0x416   : > { %v8533_v4 = vpop.f32.mrf.mxu1  ;;  %8778 = vmatmul.mubr.bf16.vlgmr.msra.gmra.mxu1 %v14506_v63  ;;  %v8493_v5 = vadd.f32 %v8492_v51, %v15141_v22  ;;  %8787 = vmatpush1.bf16.msra.mxu0 %v13328_v19  ;;  %v13396_v19 = vld [vmem:[%s13844_s11 + $0x1d8c] ss:$16 sps:$4 sm:$0xff]  }
 0x417   : > { %8828 = vmatpush1.bf16.msra.mxu1 %v13331_v57  ;;  %v8494_v53 = vpop.f32.mrf.mxu0  ;;  %8788 = vmatprep.subr.bf16.mxu0 %v13336_v47  ;;  %v13399_v57 = vld [vmem:[%s13844_s11 + $0x1f8c] ss:$16 sps:$4 sm:$0xff]   ;;  %v13394_v47 = vld [vmem:[%s13844_s11 + $0x1d88] ss:$16 sps:$4 sm:$0xff]  }
 0x418   : > { %v8535_v0 = vpop.f32.mrf.mxu1  ;;  %8829 = vmatprep.subr.bf16.mxu1 %v13339_v39  ;;  %v15215_v23 = vadd.f32 %v8533_v4, %v8493_v5  ;;  %v8495_v40 = vadd.f32 %v8494_v53, %v15146_v28  ;;  %8818 = vmatprep.mubr.bf16.mxu0 %v14502_v52  ;;  %v13348_v52 = vld [vmem:[%s13844_s11 + $0x1c8c] ss:$16 sps:$4 sm:$0xff]   ;;  %v13346_v28 = vld [vmem:[%s13844_s11 + $0x1c88] ss:$16 sps:$4 sm:$0xff]  }
 0x419   : > { %8859 = vmatprep.mubr.bf16.mxu1 %v14514_v46  ;;  %v8496_v63 = vpop.f32.mrf.mxu0  ;;  %v13351_v46 = vld [vmem:[%s13844_s11 + $0x1e8c] ss:$16 sps:$4 sm:$0xff]   ;;  %v13397_v39 = vld [vmem:[%s13844_s11 + $0x1f88] ss:$16 sps:$4 sm:$0xff]  }
 0x41a   : > { %v8537_v22 = vpop.f32.mrf.mxu1  ;;  %v15220_v33 = vadd.f32 %v8535_v0, %v8495_v40  ;;  %8789 = vmatpush1.bf16.msra.mxu0 %v13334_v18  ;;  %v13402_v51 = vld [vmem:[%s13844_s11 + $0x1d6c] ss:$16 sps:$4 sm:$0xff]   ;;  %v13400_v5 = vld [vmem:[%s13844_s11 + $0x1d68] ss:$16 sps:$4 sm:$0xff]  }
 0x41b   : > { %8830 = vmatpush1.bf16.msra.mxu1 %v13337_v6  ;;  %v8497_v21 = vpop.f32.mrf.mxu0  ;;  %8790 = vmatprep.subr.bf16.mxu0 %v13342_v27  ;;  %v13405_v4 = vld [vmem:[%s13844_s11 + $0x1f6c] ss:$16 sps:$4 sm:$0xff]   ;;  %v13403_v18 = vld [vmem:[%s13844_s11 + $0x1f68] ss:$16 sps:$4 sm:$0xff]  }
 0x41c   : > { %v8538_v58 = vpop.f32.mrf.mxu1  ;;  %8831 = vmatprep.subr.bf16.mxu1 %v13345_v15  ;;  %v13408_v6 = vld [vmem:[%s13844_s11 + $0x1d4c] ss:$16 sps:$4 sm:$0xff]   ;;  %v13406_v0 = vld [vmem:[%s13844_s11 + $0x1d48] ss:$16 sps:$4 sm:$0xff]  }
 0x41d   : > { %v13411_v53 = vld [vmem:[%s13844_s11 + $0x1f4c] ss:$16 sps:$4 sm:$0xff]   ;;  %v13409_v27 = vld [vmem:[%s13844_s11 + $0x1f48] ss:$16 sps:$4 sm:$0xff]  }
 0x41e   : > { %8791 = vmatpush1.bf16.msra.mxu0 %v13340_v31  ;;  %v13414_v15 = vld [vmem:[%s13844_s11 + $0x1d2c] ss:$16 sps:$4 sm:$0xff]   ;;  %v13412_v63 = vld [vmem:[%s13844_s11 + $0x1d28] ss:$16 sps:$4 sm:$0xff]  }
 0x41f   : > { %8832 = vmatpush1.bf16.msra.mxu1 %v13343_v13  ;;  %8792 = vmatprep.subr.bf16.mxu0 %v13348_v52  ;;  %v13417_v40 = vld [vmem:[%s13844_s11 + $0x1f2c] ss:$16 sps:$4 sm:$0xff]   ;;  %v13415_v22 = vld [vmem:[%s13844_s11 + $0x1f28] ss:$16 sps:$4 sm:$0xff]  }
 0x420   : > { %8833 = vmatprep.subr.bf16.mxu1 %v13351_v46  ;;  %v13420_v31 = vld [vmem:[%s13844_s11 + $0x1d0c] ss:$16 sps:$4 sm:$0xff]   ;;  %v13418_v21 = vld [vmem:[%s13844_s11 + $0x1d08] ss:$16 sps:$4 sm:$0xff]  }
 0x421   : > { %v13423_v13 = vld [vmem:[%s13844_s11 + $0x1f0c] ss:$16 sps:$4 sm:$0xff]   ;;  %v13421_v58 = vld [vmem:[%s13844_s11 + $0x1f08] ss:$16 sps:$4 sm:$0xff]  }
 0x422   : > { %8793 = vmatpush1.bf16.msra.mxu0 %v13346_v28  ;;  %v13426_v52 = vld [vmem:[%s13844_s11 + $0x20ec] ss:$16 sps:$4 sm:$0xff]   ;;  %v13424_v28 = vld [vmem:[%s13844_s11 + $0x20e8] ss:$16 sps:$4 sm:$0xff]  }
 0x423   : > { %8834 = vmatpush1.bf16.msra.mxu1 %v13349_v49  ;;  %8794 = vmatprep.subr.bf16.mxu0 %v13354_v56  ;;  %v13429_v46 = vld [vmem:[%s13844_s11 + $0x22ec] ss:$16 sps:$4 sm:$0xff]   ;;  %v13427_v49 = vld [vmem:[%s13844_s11 + $0x22e8] ss:$16 sps:$4 sm:$0xff]  }
 0x424   : > { %8835 = vmatprep.subr.bf16.mxu1 %v13357_v62  ;;  %v13432_v56 = vld [vmem:[%s13844_s11 + $0x20cc] ss:$16 sps:$4 sm:$0xff]  }
 0x425   : > { %v13435_v62 = vld [vmem:[%s13844_s11 + $0x22cc] ss:$16 sps:$4 sm:$0xff]  }
 0x426   : > { %8795 = vmatpush1.bf16.msra.mxu0 %v13352_v12 }
 0x427   : > { %8836 = vmatpush1.bf16.msra.mxu1 %v13355_v20  ;;  %8796 = vmatprep.subr.bf16.mxu0 %v13360_v26 }
 0x428   : > { %8837 = vmatprep.subr.bf16.mxu1 %v13363_v42  ;;  %v13430_v42 = vld [vmem:[%s13844_s11 + $0x20c8] ss:$16 sps:$4 sm:$0xff]  }
 0x42a   : > { %8797 = vmatpush1.bf16.msra.mxu0 %v13358_v43  ;;  %v13433_v43 = vld [vmem:[%s13844_s11 + $0x22c8] ss:$16 sps:$4 sm:$0xff]  }
 0x42b   : > { %8838 = vmatpush1.bf16.msra.mxu1 %v13361_v45  ;;  %8798 = vmatprep.subr.bf16.mxu0 %v13366_v55 }
 0x42c   : > { %8839 = vmatprep.subr.bf16.mxu1 %v13369_v60  ;;  %v13438_v60 = vld [vmem:[%s13844_s11 + $0x20ac] ss:$16 sps:$4 sm:$0xff]  }
 0x42e   : > { %8799 = vmatpush1.bf16.msra.mxu0 %v13364_v8  ;;  %v13441_v8 = vld [vmem:[%s13844_s11 + $0x22ac] ss:$16 sps:$4 sm:$0xff]  }
 0x42f   : > { %8840 = vmatpush1.bf16.msra.mxu1 %v13367_v61  ;;  %8800 = vmatprep.subr.bf16.mxu0 %v13372_v1 }
 0x430   : > { %8841 = vmatprep.subr.bf16.mxu1 %v13375_v17  ;;  %v13436_v17 = vld [vmem:[%s13844_s11 + $0x20a8] ss:$16 sps:$4 sm:$0xff]  }
 0x432   : > { %8801 = vmatpush1.bf16.msra.mxu0 %v13370_v48  ;;  %v13439_v48 = vld [vmem:[%s13844_s11 + $0x22a8] ss:$16 sps:$4 sm:$0xff]  }
 0x433   : > { %8842 = vmatpush1.bf16.msra.mxu1 %v13373_v10  ;;  %8802 = vmatprep.subr.bf16.mxu0 %v13378_v59 }
 0x434   : > { %8843 = vmatprep.subr.bf16.mxu1 %v13381_v37  ;;  %v13445_v37 = vld [vmem:[%s13844_s11 + $0x2288] ss:$16 sps:$4 sm:$0xff]  }
 0x436   : > { %8803 = vmatpush2.bf16.msra.mxu0 %v13376_v36  ;;  %v13450_v36 = vld [vmem:[%s13844_s11 + $0x206c] ss:$16 sps:$4 sm:$0xff]  }
 0x437   : > { %8844 = vmatpush2.bf16.msra.mxu1 %v13379_v54  ;;  %8804 = vmatprep.subr.bf16.mxu0 %v13384_v50  ;;  %v13453_v54 = vld [vmem:[%s13844_s11 + $0x226c] ss:$16 sps:$4 sm:$0xff]   ;;  %v13448_v50 = vld [vmem:[%s13844_s11 + $0x2068] ss:$16 sps:$4 sm:$0xff]  }
 0x438   : > { %8845 = vmatprep.subr.bf16.mxu1 %v13387_v2  ;;  %v13451_v2 = vld [vmem:[%s13844_s11 + $0x2268] ss:$16 sps:$4 sm:$0xff]  }
 0x43a   : > { %8805 = vmatpush2.bf16.msra.mxu0 %v13382_v25  ;;  %v13456_v25 = vld [vmem:[%s13844_s11 + $0x204c] ss:$16 sps:$4 sm:$0xff]  }
 0x43b   : > { %8846 = vmatpush2.bf16.msra.mxu1 %v13385_v34  ;;  %8806 = vmatprep.subr.bf16.mxu0 %v13390_v24  ;;  %v13459_v34 = vld [vmem:[%s13844_s11 + $0x224c] ss:$16 sps:$4 sm:$0xff]   ;;  %v13454_v24 = vld [vmem:[%s13844_s11 + $0x2048] ss:$16 sps:$4 sm:$0xff]  }
 0x43c   : > { %8847 = vmatprep.subr.bf16.mxu1 %v13393_v35  ;;  %v13457_v35 = vld [vmem:[%s13844_s11 + $0x2248] ss:$16 sps:$4 sm:$0xff]  }
 0x43e   : > { %8807 = vmatpush2.bf16.msra.mxu0 %v13388_v38  ;;  %v13462_v38 = vld [vmem:[%s13844_s11 + $0x202c] ss:$16 sps:$4 sm:$0xff]  }
 0x43f   : > { %8848 = vmatpush2.bf16.msra.mxu1 %v13391_v14  ;;  %8808 = vmatprep.subr.bf16.mxu0 %v13396_v19  ;;  %v13465_v14 = vld [vmem:[%s13844_s11 + $0x222c] ss:$16 sps:$4 sm:$0xff]   ;;  %v13460_v19 = vld [vmem:[%s13844_s11 + $0x2028] ss:$16 sps:$4 sm:$0xff]  }
 0x440   : > { %8849 = vmatprep.subr.bf16.mxu1 %v13399_v57  ;;  %v13463_v57 = vld [vmem:[%s13844_s11 + $0x2228] ss:$16 sps:$4 sm:$0xff]  }
 0x442   : > { %8809 = vmatpush2.bf16.msra.mxu0 %v13394_v47  ;;  %v13468_v47 = vld [vmem:[%s13844_s11 + $0x200c] ss:$16 sps:$4 sm:$0xff]  }
 0x443   : > { %8850 = vmatpush2.bf16.msra.mxu1 %v13397_v39  ;;  %8810 = vmatprep.subr.bf16.mxu0 %v13402_v51  ;;  %v13471_v39 = vld [vmem:[%s13844_s11 + $0x220c] ss:$16 sps:$4 sm:$0xff]   ;;  %v13466_v51 = vld [vmem:[%s13844_s11 + $0x2008] ss:$16 sps:$4 sm:$0xff]  }
 0x444   : > { %8851 = vmatprep.subr.bf16.mxu1 %v13405_v4  ;;  %v13469_v4 = vld [vmem:[%s13844_s11 + $0x2208] ss:$16 sps:$4 sm:$0xff]  }
 0x446   : > { %8811 = vmatpush2.bf16.msra.mxu0 %v13400_v5  ;;  %v13474_v5 = vld [vmem:[%s13844_s11 + $0x21ec] ss:$16 sps:$4 sm:$0xff]  }
 0x447   : > { %8852 = vmatpush2.bf16.msra.mxu1 %v13403_v18  ;;  %8812 = vmatprep.subr.bf16.mxu0 %v13408_v6  ;;  %v13477_v18 = vld [vmem:[%s13844_s11 + $0x23ec] ss:$16 sps:$4 sm:$0xff]   ;;  %v13472_v6 = vld [vmem:[%s13844_s11 + $0x21e8] ss:$16 sps:$4 sm:$0xff]  }
 0x448   : > { %8853 = vmatprep.subr.bf16.mxu1 %v13411_v53  ;;  %v13475_v53 = vld [vmem:[%s13844_s11 + $0x23e8] ss:$16 sps:$4 sm:$0xff]  }
 0x44a   : > { %8813 = vmatpush2.bf16.msra.mxu0 %v13406_v0  ;;  %v13480_v0 = vld [vmem:[%s13844_s11 + $0x21cc] ss:$16 sps:$4 sm:$0xff]  }
 0x44b   : > { %8854 = vmatpush2.bf16.msra.mxu1 %v13409_v27  ;;  %8814 = vmatprep.subr.bf16.mxu0 %v13414_v15  ;;  %v13483_v27 = vld [vmem:[%s13844_s11 + $0x23cc] ss:$16 sps:$4 sm:$0xff]   ;;  %v13478_v15 = vld [vmem:[%s13844_s11 + $0x21c8] ss:$16 sps:$4 sm:$0xff]  }
 0x44c   : > { %8855 = vmatprep.subr.bf16.mxu1 %v13417_v40  ;;  %v13481_v40 = vld [vmem:[%s13844_s11 + $0x23c8] ss:$16 sps:$4 sm:$0xff]  }
 0x44e   : > { %8815 = vmatpush2.bf16.msra.mxu0 %v13412_v63  ;;  %v13486_v63 = vld [vmem:[%s13844_s11 + $0x21ac] ss:$16 sps:$4 sm:$0xff]  }
 0x44f   : > { %8856 = vmatpush2.bf16.msra.mxu1 %v13415_v22  ;;  %8816 = vmatprep.subr.bf16.mxu0 %v13420_v31  ;;  %v13489_v22 = vld [vmem:[%s13844_s11 + $0x23ac] ss:$16 sps:$4 sm:$0xff]   ;;  %v13484_v31 = vld [vmem:[%s13844_s11 + $0x21a8] ss:$16 sps:$4 sm:$0xff]  }
 0x450   : > { %8857 = vmatprep.subr.bf16.mxu1 %v13423_v13  ;;  %v13487_v13 = vld [vmem:[%s13844_s11 + $0x23a8] ss:$16 sps:$4 sm:$0xff]  }
 0x452   : > { %8817 = vmatpush2.bf16.msra.mxu0 %v13418_v21  ;;  %v13492_v21 = vld [vmem:[%s13844_s11 + $0x218c] ss:$16 sps:$4 sm:$0xff]  }
 0x453   : > { %8858 = vmatpush2.bf16.msra.mxu1 %v13421_v58  ;;  %8868 = vmatprep.subr.bf16.mxu0 %v13426_v52  ;;  %v13495_v58 = vld [vmem:[%s13844_s11 + $0x238c] ss:$16 sps:$4 sm:$0xff]   ;;  %v13490_v52 = vld [vmem:[%s13844_s11 + $0x2188] ss:$16 sps:$4 sm:$0xff]  }
 0x454   : > { %8909 = vmatprep.subr.bf16.mxu1 %v13429_v46  ;;  %v13493_v46 = vld [vmem:[%s13844_s11 + $0x2388] ss:$16 sps:$4 sm:$0xff]  }
 0x455   : > { %v8574_v12 = vpop.f32.mrf.mxu0  ;;  %8819 = vmatmul.mubr.bf16.vlgmr.msra.gmra.mxu0 %v14587_v16 }
 0x456   : > { %v8615_v20 = vpop.f32.mrf.mxu1  ;;  %8860 = vmatmul.mubr.bf16.vlgmr.msra.gmra.mxu1 %v14600_v29  ;;  %v8575_v26 = vadd.f32 %v8574_v12, %v15215_v23  ;;  %8869 = vmatpush1.bf16.msra.mxu0 %v13424_v28  ;;  %v13498_v28 = vld [vmem:[%s13844_s11 + $0x216c] ss:$16 sps:$4 sm:$0xff]  }
 0x457   : > { %8910 = vmatpush1.bf16.msra.mxu1 %v13427_v49  ;;  %v8576_v45 = vpop.f32.mrf.mxu0  ;;  %8870 = vmatprep.subr.bf16.mxu0 %v13432_v56  ;;  %v13501_v49 = vld [vmem:[%s13844_s11 + $0x236c] ss:$16 sps:$4 sm:$0xff]   ;;  %v13496_v56 = vld [vmem:[%s13844_s11 + $0x2168] ss:$16 sps:$4 sm:$0xff]  }
 0x458   : > { %v8617_v55 = vpop.f32.mrf.mxu1  ;;  %8911 = vmatprep.subr.bf16.mxu1 %v13435_v62  ;;  %v15289_v61 = vadd.f32 %v8615_v20, %v8575_v26  ;;  %v8577_v16 = vadd.f32 %v8576_v45, %v15220_v33  ;;  %8900 = vmatprep.mubr.bf16.mxu0 %v14596_v30  ;;  %v13444_v30 = vld [vmem:[%s13844_s11 + $0x208c] ss:$16 sps:$4 sm:$0xff]   ;;  %v13442_v33 = vld [vmem:[%s13844_s11 + $0x2088] ss:$16 sps:$4 sm:$0xff]  }
 0x459   : > { %8941 = vmatprep.mubr.bf16.mxu1 %v14608_v7  ;;  %v8578_v29 = vpop.f32.mrf.mxu0  ;;  %v13447_v7 = vld [vmem:[%s13844_s11 + $0x228c] ss:$16 sps:$4 sm:$0xff]   ;;  %v13499_v62 = vld [vmem:[%s13844_s11 + $0x2368] ss:$16 sps:$4 sm:$0xff]  }
 0x45a   : > { %v8619_v23 = vpop.f32.mrf.mxu1  ;;  %v15294_v1 = vadd.f32 %v8617_v55, %v8577_v16  ;;  %8871 = vmatpush1.bf16.msra.mxu0 %v13430_v42  ;;  %v13504_v12 = vld [vmem:[%s13844_s11 + $0x214c] ss:$16 sps:$4 sm:$0xff]   ;;  %v13502_v26 = vld [vmem:[%s13844_s11 + $0x2148] ss:$16 sps:$4 sm:$0xff]  }
 0x45b   : > { %8912 = vmatpush1.bf16.msra.mxu1 %v13433_v43  ;;  %v8579_v10 = vpop.f32.mrf.mxu0  ;;  %8872 = vmatprep.subr.bf16.mxu0 %v13438_v60  ;;  %v13507_v20 = vld [vmem:[%s13844_s11 + $0x234c] ss:$16 sps:$4 sm:$0xff]   ;;  %v13505_v42 = vld [vmem:[%s13844_s11 + $0x2348] ss:$16 sps:$4 sm:$0xff]  }
 0x45c   : > { %v8620_v59 = vpop.f32.mrf.mxu1  ;;  %8913 = vmatprep.subr.bf16.mxu1 %v13441_v8  ;;  %v13510_v43 = vld [vmem:[%s13844_s11 + $0x212c] ss:$16 sps:$4 sm:$0xff]   ;;  %v13508_v55 = vld [vmem:[%s13844_s11 + $0x2128] ss:$16 sps:$4 sm:$0xff]  }
 0x45d   : > { %v13513_v45 = vld [vmem:[%s13844_s11 + $0x232c] ss:$16 sps:$4 sm:$0xff]   ;;  %v13511_v60 = vld [vmem:[%s13844_s11 + $0x2328] ss:$16 sps:$4 sm:$0xff]  }
 0x45e   : > { %8873 = vmatpush1.bf16.msra.mxu0 %v13436_v17  ;;  %v13516_v8 = vld [vmem:[%s13844_s11 + $0x210c] ss:$16 sps:$4 sm:$0xff]   ;;  %v13514_v29 = vld [vmem:[%s13844_s11 + $0x2108] ss:$16 sps:$4 sm:$0xff]  }
 0x45f   : > { %8914 = vmatpush1.bf16.msra.mxu1 %v13439_v48  ;;  %8874 = vmatprep.subr.bf16.mxu0 %v13444_v30  ;;  %v13519_v16 = vld [vmem:[%s13844_s11 + $0x230c] ss:$16 sps:$4 sm:$0xff]   ;;  %v13517_v23 = vld [vmem:[%s13844_s11 + $0x2308] ss:$16 sps:$4 sm:$0xff]  }
 0x460   : > { %8915 = vmatprep.subr.bf16.mxu1 %v13447_v7 }
 0x462   : > { %8875 = vmatpush1.bf16.msra.mxu0 %v13442_v33 }
 0x463   : > { %8916 = vmatpush1.bf16.msra.mxu1 %v13445_v37  ;;  %8876 = vmatprep.subr.bf16.mxu0 %v13450_v36 }
 0x464   : > { %8917 = vmatprep.subr.bf16.mxu1 %v13453_v54 }
 0x466   : > { %8877 = vmatpush1.bf16.msra.mxu0 %v13448_v50 }
 0x467   : > { %8918 = vmatpush1.bf16.msra.mxu1 %v13451_v2  ;;  %8878 = vmatprep.subr.bf16.mxu0 %v13456_v25 }
 0x468   : > { %8919 = vmatprep.subr.bf16.mxu1 %v13459_v34 }
 0x46a   : > { %8879 = vmatpush1.bf16.msra.mxu0 %v13454_v24 }
 0x46b   : > { %8920 = vmatpush1.bf16.msra.mxu1 %v13457_v35  ;;  %8880 = vmatprep.subr.bf16.mxu0 %v13462_v38 }
 0x46c   : > { %8921 = vmatprep.subr.bf16.mxu1 %v13465_v14 }
 0x46e   : > { %8881 = vmatpush1.bf16.msra.mxu0 %v13460_v19 }
 0x46f   : > { %8922 = vmatpush1.bf16.msra.mxu1 %v13463_v57  ;;  %8882 = vmatprep.subr.bf16.mxu0 %v13468_v47 }
 0x470   : > { %8923 = vmatprep.subr.bf16.mxu1 %v13471_v39 }
 0x472   : > { %8883 = vmatpush1.bf16.msra.mxu0 %v13466_v51 }
 0x473   : > { %8924 = vmatpush1.bf16.msra.mxu1 %v13469_v4  ;;  %8884 = vmatprep.subr.bf16.mxu0 %v13474_v5 }
 0x474   : > { %8925 = vmatprep.subr.bf16.mxu1 %v13477_v18 }
 0x476   : > { %8885 = vmatpush2.bf16.msra.mxu0 %v13472_v6 }
 0x477   : > { %8926 = vmatpush2.bf16.msra.mxu1 %v13475_v53  ;;  %8886 = vmatprep.subr.bf16.mxu0 %v13480_v0 }
 0x478   : > { %8927 = vmatprep.subr.bf16.mxu1 %v13483_v27 }
 0x47a   : > { %8887 = vmatpush2.bf16.msra.mxu0 %v13478_v15  ;;  %v13782_v15 = vmov 1983009808  }
 0x47b   : > { %8928 = vmatpush2.bf16.msra.mxu1 %v13481_v40  ;;  %8888 = vmatprep.subr.bf16.mxu0 %v13486_v63  ;;  %v8957_v40 = vunpack.c.l.s4 %v13782_v15 }
 0x47c   : > { %8929 = vmatprep.subr.bf16.mxu1 %v13489_v22 }
 0x47e   : > { %8889 = vmatpush2.bf16.msra.mxu0 %v13484_v31 }
 0x47f   : > { %8930 = vmatpush2.bf16.msra.mxu1 %v13487_v13  ;;  %8890 = vmatprep.subr.bf16.mxu0 %v13492_v21  ;;  %v8958_v13 = vunpack.c.0.s8 %v8957_v40 }
 0x480   : > { %8931 = vmatprep.subr.bf16.mxu1 %v13495_v58 }
 0x482   : > { %8891 = vmatpush2.bf16.msra.mxu0 %v13490_v52 }
 0x483   : > { %8932 = vmatpush2.bf16.msra.mxu1 %v13493_v46  ;;  %8892 = vmatprep.subr.bf16.mxu0 %v13498_v28 }
 0x484   : > { %8933 = vmatprep.subr.bf16.mxu1 %v13501_v49 }
 0x486   : > { %8893 = vmatpush2.bf16.msra.mxu0 %v13496_v56 }
 0x487   : > { %8934 = vmatpush2.bf16.msra.mxu1 %v13499_v62  ;;  %8894 = vmatprep.subr.bf16.mxu0 %v13504_v12  ;;  %v15355_v62 = vsub.s32 %v8958_v13, %v13886_v44 }
 0x488   : > { %8935 = vmatprep.subr.bf16.mxu1 %v13507_v20 }
 0x48a   : > { %8895 = vmatpush2.bf16.msra.mxu0 %v13502_v26 }
 0x48b   : > { %8936 = vmatpush2.bf16.msra.mxu1 %v13505_v42  ;;  %8896 = vmatprep.subr.bf16.mxu0 %v13510_v43 }
 0x48c   : > { %8937 = vmatprep.subr.bf16.mxu1 %v13513_v45  ;;  %v8962_v45 = vrot.slane %v8954_v3, %v15355_v62 }
 0x48e   : > { %8897 = vmatpush2.bf16.msra.mxu0 %v13508_v55 }
 0x48f   : > { %8938 = vmatpush2.bf16.msra.mxu1 %v13511_v60  ;;  %8898 = vmatprep.subr.bf16.mxu0 %v13516_v8  ;;  %v295_v60 = vld [vmem:[#allocation2] sm:$0xff] }
 0x490   : > { %8939 = vmatprep.subr.bf16.mxu1 %v13519_v16 }
 0x492   : > { %8899 = vmatpush2.bf16.msra.mxu0 %v13514_v29 }
 0x493   : > { %8940 = vmatpush2.bf16.msra.mxu1 %v13517_v23 }
 0x495   : > { %v8656_v17 = vpop.f32.mrf.mxu0  ;;  %8901 = vmatmul.mubr.bf16.vlgmr.msra.gmra.mxu0 %v14676_v41 }
 0x496   : > { %v8697_v48 = vpop.f32.mrf.mxu1  ;;  %8942 = vmatmul.mubr.bf16.vlgmr.msra.gmra.mxu1 %v14686_v32  ;;  %v8657_v10 = vadd.f32 %v8656_v17, %v15289_v61 }
 0x497   : > { %v8658_v59 = vpop.f32.mrf.mxu0 }
 0x498   : > { %v8699_v30 = vpop.f32.mrf.mxu1  ;;  %v8698_v7 = vadd.f32 %v8697_v48, %v8657_v10  ;;  %v8659_v33 = vadd.f32 %v8658_v59, %v15294_v1 }
 0x499   : > { %v8660_v37 = vpop.f32.mrf.mxu0 }
 0x49a   : > { %v8701_v36 = vpop.f32.mrf.mxu1  ;;  %v8700_v54 = vadd.f32 %v8699_v30, %v8659_v33 }
 0x49b   : > { %v8661_v50 = vpop.f32.mrf.mxu0 }
 0x49c   : > { %v8702_v2 = vpop.f32.mrf.mxu1 }
 0x4d5   : > { %v8738_v25 = vpop.f32.mrf.mxu0 }
 0x4d6   : > { %v8779_v34 = vpop.f32.mrf.mxu1  ;;  %v8739_v24 = vadd.f32 %v8738_v25, %v8698_v7 }
 0x4d7   : > { %v8740_v35 = vpop.f32.mrf.mxu0 }
 0x4d8   : > { %v8781_v38 = vpop.f32.mrf.mxu1  ;;  %v8780_v41 = vadd.f32 %v8779_v34, %v8739_v24  ;;  %v8741_v14 = vadd.f32 %v8740_v35, %v8700_v54 }
 0x4d9   : > { %v8742_v32 = vpop.f32.mrf.mxu0 }
 0x4da   : > { %v8783_v19 = vpop.f32.mrf.mxu1  ;;  %v8782_v61 = vadd.f32 %v8781_v38, %v8741_v14 }
 0x4db   : > { %v8743_v57 = vpop.f32.mrf.mxu0 }
 0x4dc   : > { %v8784_v47 = vpop.f32.mrf.mxu1 }
 0x515   : > { %v8820_v39 = vpop.f32.mrf.mxu0 }
 0x516   : > { %v8861_v51 = vpop.f32.mrf.mxu1  ;;  %v8821_v1 = vadd.f32 %v8820_v39, %v8780_v41 }
 0x517   : > { %v8822_v4 = vpop.f32.mrf.mxu0 }
 0x518   : > { %v8863_v5 = vpop.f32.mrf.mxu1  ;;  %v8862_v18 = vadd.f32 %v8861_v51, %v8821_v1  ;;  %v8823_v63 = vadd.f32 %v8822_v4, %v8782_v61 }
 0x519   : > { %v8824_v6 = vpop.f32.mrf.mxu0 }
 0x51a   : > { %v8865_v53 = vpop.f32.mrf.mxu1  ;;  %v8864_v21 = vadd.f32 %v8863_v5, %v8823_v63 }
 0x51b   : > { %v8825_v0 = vpop.f32.mrf.mxu0 }
 0x51c   : > { %v8866_v27 = vpop.f32.mrf.mxu1 }
 0x555   : > { %v8902_v22 = vpop.f32.mrf.mxu0 }
 0x556   : > { %v8943_v31 = vpop.f32.mrf.mxu1  ;;  %v8903_v58 = vadd.f32 %v8902_v22, %v8862_v18 }
 0x557   : > { %v8904_v52 = vpop.f32.mrf.mxu0 }
 0x558   : > { %v8945_v46 = vpop.f32.mrf.mxu1  ;;  %v8905_v28 = vadd.f32 %v8904_v52, %v8864_v21  ;;  %v8944_v12 = vadd.f32 %v8943_v31, %v8903_v58 }
 0x559   : > { %v8906_v49 = vpop.f32.mrf.mxu0 }
 0x55a   : > { %v8947_v56 = vpop.f32.mrf.mxu1  ;;  %v8946_v20 = vadd.f32 %v8945_v46, %v8905_v28 }
 0x55b   : > { %v8907_v26 = vpop.f32.mrf.mxu0 }
 0x55c   : > { %v8948_v42 = vpop.f32.mrf.mxu1  ;;  %v8955_v43 = vcombine.low %v8944_v12, %v8946_v20 }
 0x55e   : > { %v8969_v55 = vrot.slane %v8955_v43, %v15355_v62 }
 0x560   : > { %v8970_v8 = vcombine.low %v8962_v45, %v8969_v55  ;;  %8977 = sbr.rel (%p11559_p6) target bundleno = 1912 (0x778), region = 56 }
 0x562   : > { %v8972_v16 = vadd.f32 %v8970_v8, %v295_v60 }
 0x564   : > { %8973 = vst [vmem:[#allocation2] sm:$0xff] %v8972_v16 }
 0x565   : > { %v13520_v29 = vld [vmem:[%s15902_s3 + $0xe4] ss:$16 sps:$4 sm:$0xff]   ;;  %v13524_v11 = vld [vmem:[%s15902_s3 + $0xe0] ss:$16 sps:$4 sm:$0xff]   ;;  %v8983_v13 = vsub.s32 0, %v13886_v44  ;;  %v8987_v58 = vsub.s32 1, %v13886_v44 }
 0x566   : > { %v13522_v23 = vld [vmem:[%s15902_s3 + $0x2e4] ss:$16 sps:$4 sm:$0xff]   ;;  %9832 = vmatprep.subr.bf16.mxu0 %v13520_v29  ;;  %v13525_v9 = vld [vmem:[%s15902_s3 + $0x2e0] ss:$16 sps:$4 sm:$0xff]   ;;  %v8991_v52 = vsub.s32 2, %v13886_v44  ;;  %v8995_v28 = vsub.s32 3, %v13886_v44 }
 0x567   : > { %9873 = vmatprep.subr.bf16.mxu1 %v13522_v23  ;;  %v13526_v3 = vld [vmem:[%s15902_s3 + $0xc4] ss:$16 sps:$4 sm:$0xff]   ;;  %9833 = vmatpush1.bf16.msra.mxu0 %v13524_v11  ;;  %v13530_v48 = vld [vmem:[%s15902_s3 + $0xc0] ss:$16 sps:$4 sm:$0xff]  }
 0x568   : > { %9874 = vmatpush1.bf16.msra.mxu1 %v13525_v9  ;;  %v13528_v17 = vld [vmem:[%s15902_s3 + $0x2c4] ss:$16 sps:$4 sm:$0xff]   ;;  %9834 = vmatprep.subr.bf16.mxu0 %v13526_v3  ;;  %v13531_v10 = vld [vmem:[%s15902_s3 + $0x2c0] ss:$16 sps:$4 sm:$0xff]  }
 0x569   : > { %9875 = vmatprep.subr.bf16.mxu1 %v13528_v17  ;;  %v13532_v59 = vld [vmem:[%s15902_s3 + $0xa4] ss:$16 sps:$4 sm:$0xff]   ;;  %v13536_v7 = vld [vmem:[%s15902_s3 + $0xa0] ss:$16 sps:$4 sm:$0xff]  }
 0x56a   : > { %v13534_v30 = vld [vmem:[%s15902_s3 + $0x2a4] ss:$16 sps:$4 sm:$0xff]   ;;  %v13537_v33 = vld [vmem:[%s15902_s3 + $0x2a0] ss:$16 sps:$4 sm:$0xff]  }
 0x56b   : > { %9835 = vmatpush1.bf16.msra.mxu0 %v13530_v48  ;;  %v13538_v37 = vld [vmem:[%s15902_s3 + $0x84] ss:$16 sps:$4 sm:$0xff]   ;;  %v13542_v54 = vld [vmem:[%s15902_s3 + $0x80] ss:$16 sps:$4 sm:$0xff]  }
 0x56c   : > { %9876 = vmatpush1.bf16.msra.mxu1 %v13531_v10  ;;  %9836 = vmatprep.subr.bf16.mxu0 %v13532_v59  ;;  %v13540_v36 = vld [vmem:[%s15902_s3 + $0x284] ss:$16 sps:$4 sm:$0xff]   ;;  %v13543_v50 = vld [vmem:[%s15902_s3 + $0x280] ss:$16 sps:$4 sm:$0xff]  }
 0x56d   : > { %9877 = vmatprep.subr.bf16.mxu1 %v13534_v30  ;;  %v13544_v2 = vld [vmem:[%s15902_s3 + $0x64] ss:$16 sps:$4 sm:$0xff]   ;;  %v13548_v34 = vld [vmem:[%s15902_s3 + $0x60] ss:$16 sps:$4 sm:$0xff]  }
 0x56e   : > { %v13546_v25 = vld [vmem:[%s15902_s3 + $0x264] ss:$16 sps:$4 sm:$0xff]   ;;  %v13549_v24 = vld [vmem:[%s15902_s3 + $0x260] ss:$16 sps:$4 sm:$0xff]  }
 0x56f   : > { %9837 = vmatpush1.bf16.msra.mxu0 %v13536_v7  ;;  %v13550_v35 = vld [vmem:[%s15902_s3 + $0x44] ss:$16 sps:$4 sm:$0xff]   ;;  %v13554_v41 = vld [vmem:[%s15902_s3 + $0x40] ss:$16 sps:$4 sm:$0xff]  }
 0x570   : > { %9878 = vmatpush1.bf16.msra.mxu1 %v13537_v33  ;;  %9838 = vmatprep.subr.bf16.mxu0 %v13538_v37  ;;  %v13552_v38 = vld [vmem:[%s15902_s3 + $0x244] ss:$16 sps:$4 sm:$0xff]   ;;  %v13555_v14 = vld [vmem:[%s15902_s3 + $0x240] ss:$16 sps:$4 sm:$0xff]  }
 0x571   : > { %9879 = vmatprep.subr.bf16.mxu1 %v13540_v36  ;;  %v13556_v32 = vld [vmem:[%s15902_s3 + $0x24] ss:$16 sps:$4 sm:$0xff]   ;;  %v13560_v61 = vld [vmem:[%s15902_s3 + $0x20] ss:$16 sps:$4 sm:$0xff]  }
 0x572   : > { %v13558_v19 = vld [vmem:[%s15902_s3 + $0x224] ss:$16 sps:$4 sm:$0xff]   ;;  %v13561_v57 = vld [vmem:[%s15902_s3 + $0x220] ss:$16 sps:$4 sm:$0xff]  }
 0x573   : > { %9839 = vmatpush1.bf16.msra.mxu0 %v13542_v54  ;;  %v13562_v47 = vld [vmem:[%s15902_s3 + $0x4] ss:$16 sps:$4 sm:$0xff]   ;;  %v13566_v51 = vld [vmem:[%s15902_s3] ss:$16 sps:$4 sm:$0xff]  }
 0x574   : > { %9880 = vmatpush1.bf16.msra.mxu1 %v13543_v50  ;;  %9840 = vmatprep.subr.bf16.mxu0 %v13544_v2  ;;  %v13564_v39 = vld [vmem:[%s15902_s3 + $0x204] ss:$16 sps:$4 sm:$0xff]   ;;  %v13567_v1 = vld [vmem:[%s15902_s3 + $0x200] ss:$16 sps:$4 sm:$0xff]  }
 0x575   : > { %9881 = vmatprep.subr.bf16.mxu1 %v13546_v25  ;;  %v13568_v4 = vld [vmem:[%s15902_s3 + $0x1e4] ss:$16 sps:$4 sm:$0xff]   ;;  %v13572_v18 = vld [vmem:[%s15902_s3 + $0x1e0] ss:$16 sps:$4 sm:$0xff]  }
 0x576   : > { %v13570_v5 = vld [vmem:[%s15902_s3 + $0x3e4] ss:$16 sps:$4 sm:$0xff]   ;;  %v13573_v6 = vld [vmem:[%s15902_s3 + $0x3e0] ss:$16 sps:$4 sm:$0xff]  }
 0x577   : > { %9841 = vmatpush1.bf16.msra.mxu0 %v13548_v34  ;;  %v13574_v53 = vld [vmem:[%s15902_s3 + $0x1c4] ss:$16 sps:$4 sm:$0xff]   ;;  %v13578_v27 = vld [vmem:[%s15902_s3 + $0x1c0] ss:$16 sps:$4 sm:$0xff]  }
 0x578   : > { %9882 = vmatpush1.bf16.msra.mxu1 %v13549_v24  ;;  %9842 = vmatprep.subr.bf16.mxu0 %v13550_v35  ;;  %v13576_v0 = vld [vmem:[%s15902_s3 + $0x3c4] ss:$16 sps:$4 sm:$0xff]   ;;  %v13579_v15 = vld [vmem:[%s15902_s3 + $0x3c0] ss:$16 sps:$4 sm:$0xff]  }
 0x579   : > { %9883 = vmatprep.subr.bf16.mxu1 %v13552_v38  ;;  %v13580_v40 = vld [vmem:[%s15902_s3 + $0x1a4] ss:$16 sps:$4 sm:$0xff]   ;;  %v13584_v22 = vld [vmem:[%s15902_s3 + $0x1a0] ss:$16 sps:$4 sm:$0xff]  }
 0x57a   : > { %v13582_v63 = vld [vmem:[%s15902_s3 + $0x3a4] ss:$16 sps:$4 sm:$0xff]   ;;  %v13585_v31 = vld [vmem:[%s15902_s3 + $0x3a0] ss:$16 sps:$4 sm:$0xff]  }
 0x57b   : > { %9843 = vmatpush1.bf16.msra.mxu0 %v13554_v41  ;;  %v13586_v21 = vld [vmem:[%s15902_s3 + $0x184] ss:$16 sps:$4 sm:$0xff]   ;;  %v8979_v49 = vld [vmem:[%s15901_s2] sm:$0xf] }
 0x57c   : > { %9884 = vmatpush1.bf16.msra.mxu1 %v13555_v14  ;;  %9844 = vmatprep.subr.bf16.mxu0 %v13556_v32  ;;  %v13588_v46 = vld [vmem:[%s15902_s3 + $0x384] ss:$16 sps:$4 sm:$0xff]   ;;  %v13590_v56 = vld [vmem:[%s15902_s3 + $0x180] ss:$16 sps:$4 sm:$0xff]   ;;  %v8984_v20 = vrot.slane %v8979_v49, %v8983_v13  ;;  %v8988_v26 = vrot.slane %v8979_v49, %v8987_v58  ;;  %v8992_v42 = vrot.slane %v8979_v49, %v8991_v52 }
 0x57d   : > { %9885 = vmatprep.subr.bf16.mxu1 %v13558_v19  ;;  %v13591_v12 = vld [vmem:[%s15902_s3 + $0x380] ss:$16 sps:$4 sm:$0xff]   ;;  %v13592_v43 = vld [vmem:[%s15902_s3 + $0x164] ss:$16 sps:$4 sm:$0xff]   ;;  %v8996_v55 = vrot.slane %v8979_v49, %v8995_v28  ;;  %v13618_v19 = vld [vmem:[%s15902_s3 + $0xec] ss:$16 sps:$4 sm:$0xff]  }
 0x57e   : > { %v13594_v45 = vld [vmem:[%s15902_s3 + $0x364] ss:$16 sps:$4 sm:$0xff]   ;;  %v8997_v60 = vcombine.low %v8984_v20, %v8988_v26  ;;  %v13596_v16 = vld [vmem:[%s15902_s3 + $0x160] ss:$16 sps:$4 sm:$0xff]   ;;  %v13648_v49 = vld [vmem:[%s15902_s3 + $0x4c] ss:$16 sps:$4 sm:$0xff]  }
 0x57f   : > { %9845 = vmatpush1.bf16.msra.mxu0 %v13560_v61  ;;  %v8998_v8 = vcombine.low %v8992_v42, %v8996_v55  ;;  %v13597_v29 = vld [vmem:[%s15902_s3 + $0x360] ss:$16 sps:$4 sm:$0xff]   ;;  %v13598_v11 = vld [vmem:[%s15902_s3 + $0x144] ss:$16 sps:$4 sm:$0xff]   ;;  %v13649_v20 = vld [vmem:[%s15902_s3 + $0x248] ss:$16 sps:$4 sm:$0xff]  }
 0x580   : > { %9886 = vmatpush1.bf16.msra.mxu1 %v13561_v57  ;;  %9846 = vmatprep.subr.bf16.mxu0 %v13562_v47  ;;  %v9005_v23 = vrot.slane %v8997_v60, %v15355_v62  ;;  %v13600_v9 = vld [vmem:[%s15902_s3 + $0x344] ss:$16 sps:$4 sm:$0xff]   ;;  %v13602_v10 = vld [vmem:[%s15902_s3 + $0x140] ss:$16 sps:$4 sm:$0xff]   ;;  %v13616_v47 = vld [vmem:[%s15902_s3 + $0xe8] ss:$16 sps:$4 sm:$0xff]  }
 0x581   : > { %9887 = vmatprep.subr.bf16.mxu1 %v13564_v39  ;;  %v9012_v3 = vrot.slane %v8998_v8, %v15355_v62  ;;  %v8978_v17 = vld [vmem:[#allocation2] sm:$0xff]  ;;  %v13619_v39 = vld [vmem:[%s15902_s3 + $0x2e8] ss:$16 sps:$4 sm:$0xff]   ;;  %v13654_v26 = vld [vmem:[%s15902_s3 + $0x2c] ss:$16 sps:$4 sm:$0xff]  }
 0x582   : > { %v13603_v59 = vld [vmem:[%s15902_s3 + $0x340] ss:$16 sps:$4 sm:$0xff]   ;;  %v13604_v30 = vld [vmem:[%s15902_s3 + $0x124] ss:$16 sps:$4 sm:$0xff]   ;;  %v13657_v42 = vld [vmem:[%s15902_s3 + $0x22c] ss:$16 sps:$4 sm:$0xff]  }
 0x583   : > { %9847 = vmatpush1.bf16.msra.mxu0 %v13566_v51  ;;  %v9013_v48 = vcombine.low %v9005_v23, %v9012_v3  ;;  %v13606_v7 = vld [vmem:[%s15902_s3 + $0x324] ss:$16 sps:$4 sm:$0xff]   ;;  %v13608_v54 = vld [vmem:[%s15902_s3 + $0x120] ss:$16 sps:$4 sm:$0xff]   ;;  %v13624_v51 = vld [vmem:[%s15902_s3 + $0xcc] ss:$16 sps:$4 sm:$0xff]  }
 0x584   : > { %9888 = vmatpush1.bf16.msra.mxu1 %v13567_v1  ;;  %9848 = vmatprep.subr.bf16.mxu0 %v13568_v4  ;;  %v13609_v50 = vld [vmem:[%s15902_s3 + $0x320] ss:$16 sps:$4 sm:$0xff]   ;;  %v13610_v2 = vld [vmem:[%s15902_s3 + $0x104] ss:$16 sps:$4 sm:$0xff]   ;;  %v13627_v1 = vld [vmem:[%s15902_s3 + $0x2cc] ss:$16 sps:$4 sm:$0xff]  }
 0x585   : > { %9889 = vmatprep.subr.bf16.mxu1 %v13570_v5  ;;  %v9015_v33 = vadd.f32 %v9013_v48, %v8978_v17  ;;  %v13612_v25 = vld [vmem:[%s15902_s3 + $0x304] ss:$16 sps:$4 sm:$0xff]   ;;  %v13614_v41 = vld [vmem:[%s15902_s3 + $0x100] ss:$16 sps:$4 sm:$0xff]   ;;  %v13622_v4 = vld [vmem:[%s15902_s3 + $0xc8] ss:$16 sps:$4 sm:$0xff]  }
 0x586   : > { %v13615_v14 = vld [vmem:[%s15902_s3 + $0x300] ss:$16 sps:$4 sm:$0xff]   ;;  %v13625_v5 = vld [vmem:[%s15902_s3 + $0x2c8] ss:$16 sps:$4 sm:$0xff]   ;;  %v13660_v55 = vld [vmem:[%s15902_s3 + $0xc] ss:$16 sps:$4 sm:$0xff]  }
 0x587   : > { %9849 = vmatpush2.bf16.msra.mxu0 %v13572_v18  ;;  %v9024_v37 = vrot.slane %v9015_v33, %v15355_v62  ;;  %v9017_v36 = vcombine.high %v9015_v33, %v9015_v33  ;;  %v13630_v18 = vld [vmem:[%s15902_s3 + $0xac] ss:$16 sps:$4 sm:$0xff]   ;;  %v13658_v8 = vld [vmem:[%s15902_s3 + $0x8] ss:$16 sps:$4 sm:$0xff]  }
 0x588   : > { %9890 = vmatpush2.bf16.msra.mxu1 %v13573_v6  ;;  %9850 = vmatprep.subr.bf16.mxu0 %v13574_v53  ;;  %v13633_v6 = vld [vmem:[%s15902_s3 + $0x2ac] ss:$16 sps:$4 sm:$0xff]   ;;  %v13628_v53 = vld [vmem:[%s15902_s3 + $0xa8] ss:$16 sps:$4 sm:$0xff]  }
 0x589   : > { %9891 = vmatprep.subr.bf16.mxu1 %v13576_v0  ;;  %v9032_v34 = vcombine.high %v9024_v37, %v9024_v37  ;;  %v9031_v24 = vrot.slane %v9017_v36, %v15355_v62  ;;  %v13621_v62 = vld [vmem:[%s15902_s3 + $0x2ec] ss:$16 sps:$4 sm:$0xff]   ;;  %v15580_v61 = vpack.c.bf16 %v9024_v37, %v9024_v37  ;;  %v13631_v0 = vld [vmem:[%s15902_s3 + $0x2a8] ss:$16 sps:$4 sm:$0xff]  }
 0x58a   : > { %v13663_v60 = vld [vmem:[%s15902_s3 + $0x20c] ss:$16 sps:$4 sm:$0xff]   ;;  %v13670_v48 = vld [vmem:[%s15902_s3 + $0x1c8] ss:$16 sps:$4 sm:$0xff]  }
 0x58b   : > { %9851 = vmatpush2.bf16.msra.mxu0 %v13578_v27  ;;  %v9039_v35 = vpack.c.bf16 %v9032_v34, %v9032_v34  ;;  %v9033_v38 = vcombine.high %v9031_v24, %v9031_v24  ;;  %v15582_v57 = vpack.c.bf16 %v9031_v24, %v9031_v24  ;;  %v13636_v27 = vld [vmem:[%s15902_s3 + $0x8c] ss:$16 sps:$4 sm:$0xff]   ;;  %v13679_v33 = vld [vmem:[%s15902_s3 + $0x3a8] ss:$16 sps:$4 sm:$0xff]  }
 0x58c   : > { %9892 = vmatpush2.bf16.msra.mxu1 %v13579_v15  ;;  %9852 = vmatprep.subr.bf16.mxu0 %v13580_v40  ;;  %v13639_v15 = vld [vmem:[%s15902_s3 + $0x28c] ss:$16 sps:$4 sm:$0xff]   ;;  %v13634_v40 = vld [vmem:[%s15902_s3 + $0x88] ss:$16 sps:$4 sm:$0xff]  }
 0x58d   : > { %9893 = vmatprep.subr.bf16.mxu1 %v13582_v63  ;;  %v9041_v32 = vpack.c.bf16 %v9033_v38, %v9033_v38  ;;  %9864 = vmatprep.mubr.bf16.mxu0 %v9039_v35  ;;  %v13637_v63 = vld [vmem:[%s15902_s3 + $0x288] ss:$16 sps:$4 sm:$0xff]   ;;  %v13669_v23 = vld [vmem:[%s15902_s3 + $0x3ec] ss:$16 sps:$4 sm:$0xff]  }
 0x58e   : > { %v13672_v3 = vld [vmem:[%s15902_s3 + $0x1cc] ss:$16 sps:$4 sm:$0xff]   ;;  %v13688_v34 = vld [vmem:[%s15902_s3 + $0x168] ss:$16 sps:$4 sm:$0xff]  }
 0x58f   : > { %9853 = vmatpush2.bf16.msra.mxu0 %v13584_v22  ;;  %9905 = vmatprep.mubr.bf16.mxu1 %v9041_v32  ;;  %v13642_v22 = vld [vmem:[%s15902_s3 + $0x6c] ss:$16 sps:$4 sm:$0xff]   ;;  %v13691_v24 = vld [vmem:[%s15902_s3 + $0x368] ss:$16 sps:$4 sm:$0xff]  }
 0x590   : > { %9894 = vmatpush2.bf16.msra.mxu1 %v13585_v31  ;;  %9854 = vmatprep.subr.bf16.mxu0 %v13586_v21  ;;  %v13645_v31 = vld [vmem:[%s15902_s3 + $0x26c] ss:$16 sps:$4 sm:$0xff]   ;;  %v13640_v21 = vld [vmem:[%s15902_s3 + $0x68] ss:$16 sps:$4 sm:$0xff]  }
 0x591   : > { %9895 = vmatprep.subr.bf16.mxu1 %v13588_v46  ;;  %v13643_v46 = vld [vmem:[%s15902_s3 + $0x268] ss:$16 sps:$4 sm:$0xff]   ;;  %v13675_v17 = vld [vmem:[%s15902_s3 + $0x3cc] ss:$16 sps:$4 sm:$0xff]  }
 0x592   : > { %v13684_v37 = vld [vmem:[%s15902_s3 + $0x18c] ss:$16 sps:$4 sm:$0xff]  }
 0x593   : > { %9855 = vmatpush2.bf16.msra.mxu0 %v13590_v56  ;;  %v13651_v56 = vld [vmem:[%s15902_s3 + $0x24c] ss:$16 sps:$4 sm:$0xff]  }
 0x594   : > { %9896 = vmatpush2.bf16.msra.mxu1 %v13591_v12  ;;  %9856 = vmatprep.subr.bf16.mxu0 %v13592_v43  ;;  %v13646_v12 = vld [vmem:[%s15902_s3 + $0x48] ss:$16 sps:$4 sm:$0xff]   ;;  %v13687_v36 = vld [vmem:[%s15902_s3 + $0x38c] ss:$16 sps:$4 sm:$0xff]  }
 0x595   : > { %9897 = vmatprep.subr.bf16.mxu1 %v13594_v45  ;;  %v13652_v43 = vld [vmem:[%s15902_s3 + $0x28] ss:$16 sps:$4 sm:$0xff]   ;;  %v13699_v38 = vld [vmem:[%s15902_s3 + $0x34c] ss:$16 sps:$4 sm:$0xff]  }
 0x596   : > { %v13655_v45 = vld [vmem:[%s15902_s3 + $0x228] ss:$16 sps:$4 sm:$0xff]  }
 0x597   : > { %9857 = vmatpush2.bf16.msra.mxu0 %v13596_v16  ;;  %v13661_v16 = vld [vmem:[%s15902_s3 + $0x208] ss:$16 sps:$4 sm:$0xff]  }
 0x598   : > { %9898 = vmatpush2.bf16.msra.mxu1 %v13597_v29  ;;  %9858 = vmatprep.subr.bf16.mxu0 %v13598_v11  ;;  %v13666_v29 = vld [vmem:[%s15902_s3 + $0x1ec] ss:$16 sps:$4 sm:$0xff]   ;;  %v13664_v11 = vld [vmem:[%s15902_s3 + $0x1e8] ss:$16 sps:$4 sm:$0xff]  }
 0x599   : > { %9899 = vmatprep.subr.bf16.mxu1 %v13600_v9  ;;  %v13667_v9 = vld [vmem:[%s15902_s3 + $0x3e8] ss:$16 sps:$4 sm:$0xff]  }
 0x59b   : > { %9859 = vmatpush2.bf16.msra.mxu0 %v13602_v10  ;;  %v13673_v10 = vld [vmem:[%s15902_s3 + $0x3c8] ss:$16 sps:$4 sm:$0xff]  }
 0x59c   : > { %9900 = vmatpush2.bf16.msra.mxu1 %v13603_v59  ;;  %9860 = vmatprep.subr.bf16.mxu0 %v13604_v30  ;;  %v13678_v59 = vld [vmem:[%s15902_s3 + $0x1ac] ss:$16 sps:$4 sm:$0xff]  }
 0x59d   : > { %9901 = vmatprep.subr.bf16.mxu1 %v13606_v7  ;;  %v13681_v30 = vld [vmem:[%s15902_s3 + $0x3ac] ss:$16 sps:$4 sm:$0xff]   ;;  %v13676_v7 = vld [vmem:[%s15902_s3 + $0x1a8] ss:$16 sps:$4 sm:$0xff]  }
 0x59f   : > { %9861 = vmatpush2.bf16.msra.mxu0 %v13608_v54  ;;  %v13682_v54 = vld [vmem:[%s15902_s3 + $0x188] ss:$16 sps:$4 sm:$0xff]  }
 0x5a0   : > { %9902 = vmatpush2.bf16.msra.mxu1 %v13609_v50  ;;  %9862 = vmatprep.subr.bf16.mxu0 %v13610_v2  ;;  %v13685_v50 = vld [vmem:[%s15902_s3 + $0x388] ss:$16 sps:$4 sm:$0xff]   ;;  %v13690_v2 = vld [vmem:[%s15902_s3 + $0x16c] ss:$16 sps:$4 sm:$0xff]  }
 0x5a1   : > { %9903 = vmatprep.subr.bf16.mxu1 %v13612_v25  ;;  %v13693_v25 = vld [vmem:[%s15902_s3 + $0x36c] ss:$16 sps:$4 sm:$0xff]  }
 0x5a3   : > { %9863 = vmatpush2.bf16.msra.mxu0 %v13614_v41  ;;  %v13694_v41 = vld [vmem:[%s15902_s3 + $0x148] ss:$16 sps:$4 sm:$0xff]  }
 0x5a4   : > { %9904 = vmatpush2.bf16.msra.mxu1 %v13615_v14  ;;  %9914 = vmatprep.subr.bf16.mxu0 %v13618_v19  ;;  %v13697_v14 = vld [vmem:[%s15902_s3 + $0x348] ss:$16 sps:$4 sm:$0xff]   ;;  %v13705_v19 = vld [vmem:[%s15902_s3 + $0x32c] ss:$16 sps:$4 sm:$0xff]  }
 0x5a5   : > { %9955 = vmatprep.subr.bf16.mxu1 %v13621_v62  ;;  %v13700_v62 = vld [vmem:[%s15902_s3 + $0x128] ss:$16 sps:$4 sm:$0xff]  }
 0x5a6   : > { %9865 = vmatmul.mubr.bf16.vlgmr.msra.gmra.mxu0 %v15580_v61 }
 0x5a7   : > { %9906 = vmatmul.mubr.bf16.vlgmr.msra.gmra.mxu1 %v15582_v57  ;;  %9915 = vmatpush1.bf16.msra.mxu0 %v13616_v47  ;;  %v13703_v47 = vld [vmem:[%s15902_s3 + $0x328] ss:$16 sps:$4 sm:$0xff]  }
 0x5a8   : > { %9956 = vmatpush1.bf16.msra.mxu1 %v13619_v39  ;;  %9916 = vmatprep.subr.bf16.mxu0 %v13624_v51  ;;  %v13708_v39 = vld [vmem:[%s15902_s3 + $0x10c] ss:$16 sps:$4 sm:$0xff]  }
 0x5a9   : > { %9957 = vmatprep.subr.bf16.mxu1 %v13627_v1  ;;  %9946 = vmatprep.mubr.bf16.mxu0 %v9039_v35  ;;  %v13696_v35 = vld [vmem:[%s15902_s3 + $0x14c] ss:$16 sps:$4 sm:$0xff]   ;;  %v13706_v1 = vld [vmem:[%s15902_s3 + $0x108] ss:$16 sps:$4 sm:$0xff]  }
 0x5aa   : > { %9987 = vmatprep.mubr.bf16.mxu1 %v9041_v32  ;;  %v13702_v32 = vld [vmem:[%s15902_s3 + $0x12c] ss:$16 sps:$4 sm:$0xff]  }
 0x5ab   : > { %9917 = vmatpush1.bf16.msra.mxu0 %v13622_v4  ;;  %v13711_v51 = vld [vmem:[%s15902_s3 + $0x30c] ss:$16 sps:$4 sm:$0xff]   ;;  %v13709_v4 = vld [vmem:[%s15902_s3 + $0x308] ss:$16 sps:$4 sm:$0xff]  }
 0x5ac   : > { %9958 = vmatpush1.bf16.msra.mxu1 %v13625_v5  ;;  %9918 = vmatprep.subr.bf16.mxu0 %v13630_v18  ;;  %v13712_v5 = vld [vmem:[%s15904_s5 + $0x78] sm:$0xff]  }
 0x5ad   : > { %9959 = vmatprep.subr.bf16.mxu1 %v13633_v6  ;;  %v13713_v18 = vld [vmem:[%s15904_s5 + $0x38] sm:$0xff]   ;;  %v13714_v6 = vld [vmem:[%s15904_s5 + $0x70] sm:$0xff]  }
 0x5af   : > { %9919 = vmatpush1.bf16.msra.mxu0 %v13628_v53  ;;  %v13715_v53 = vld [vmem:[%s15904_s5 + $0x30] sm:$0xff]  }
 0x5b0   : > { %9960 = vmatpush1.bf16.msra.mxu1 %v13631_v0  ;;  %9920 = vmatprep.subr.bf16.mxu0 %v13636_v27  ;;  %v13716_v0 = vld [vmem:[%s15904_s5 + $0x68] sm:$0xff]  }
 0x5b1   : > { %9961 = vmatprep.subr.bf16.mxu1 %v13639_v15  ;;  %v13717_v27 = vld [vmem:[%s15904_s5 + $0x28] sm:$0xff]   ;;  %v13720_v15 = vld [vmem:[%s15904_s5 + $0x58] sm:$0xff]  }
 0x5b3   : > { %9921 = vmatpush1.bf16.msra.mxu0 %v13634_v40  ;;  %v13728_v40 = vld [vmem:[%s15904_s5 + $0xf8] sm:$0xff]  }
 0x5b4   : > { %9962 = vmatpush1.bf16.msra.mxu1 %v13637_v63  ;;  %9922 = vmatprep.subr.bf16.mxu0 %v13642_v22  ;;  %v13729_v63 = vld [vmem:[%s15904_s5 + $0xb8] sm:$0xff]   ;;  %v13730_v22 = vld [vmem:[%s15904_s5 + $0xf0] sm:$0xff]  }
 0x5b5   : > { %9963 = vmatprep.subr.bf16.mxu1 %v13645_v31  ;;  %v13721_v31 = vld [vmem:[%s15904_s5 + $0x18] sm:$0xff]  }
 0x5b7   : > { %9923 = vmatpush1.bf16.msra.mxu0 %v13640_v21  ;;  %v13731_v21 = vld [vmem:[%s15904_s5 + $0xb0] sm:$0xff]  }
 0x5b8   : > { %9964 = vmatpush1.bf16.msra.mxu1 %v13643_v46  ;;  %9924 = vmatprep.subr.bf16.mxu0 %v13648_v49  ;;  %v13722_v46 = vld [vmem:[%s15904_s5 + $0x50] sm:$0xff]   ;;  %v13732_v49 = vld [vmem:[%s15904_s5 + $0xe8] sm:$0xff]  }
 0x5b9   : > { %9965 = vmatprep.subr.bf16.mxu1 %v13651_v56  ;;  %v13723_v56 = vld [vmem:[%s15904_s5 + $0x10] sm:$0xff]  }
 0x5bb   : > { %9925 = vmatpush1.bf16.msra.mxu0 %v13646_v12  ;;  %v13733_v12 = vld [vmem:[%s15904_s5 + $0xa8] sm:$0xff]  }
 0x5bc   : > { %9966 = vmatpush1.bf16.msra.mxu1 %v13649_v20  ;;  %9926 = vmatprep.subr.bf16.mxu0 %v13654_v26  ;;  %v13724_v20 = vld [vmem:[%s15904_s5 + $0x48] sm:$0xff]   ;;  %v13734_v26 = vld [vmem:[%s15904_s5 + $0xe0] sm:$0xff]  }
 0x5bd   : > { %9967 = vmatprep.subr.bf16.mxu1 %v13657_v42  ;;  %v13725_v42 = vld [vmem:[%s15904_s5 + $0x8] sm:$0xff]  }
 0x5bf   : > { %9927 = vmatpush1.bf16.msra.mxu0 %v13652_v43  ;;  %v13735_v43 = vld [vmem:[%s15904_s5 + $0xa0] sm:$0xff]  }
 0x5c0   : > { %9968 = vmatpush1.bf16.msra.mxu1 %v13655_v45  ;;  %9928 = vmatprep.subr.bf16.mxu0 %v13660_v55  ;;  %v13726_v45 = vld [vmem:[%s15904_s5 + $0x40] sm:$0xff]   ;;  %v13736_v55 = vld [vmem:[%s15904_s5 + $0xd8] sm:$0xff]  }
 0x5c1   : > { %9969 = vmatprep.subr.bf16.mxu1 %v13663_v60  ;;  %v13727_v60 = vld [vmem:[%s15904_s5] sm:$0xff]  }
 0x5c3   : > { %9929 = vmatpush1.bf16.msra.mxu0 %v13658_v8  ;;  %v13737_v8 = vld [vmem:[%s15904_s5 + $0x98] sm:$0xff]  }
 0x5c4   : > { %9970 = vmatpush1.bf16.msra.mxu1 %v13661_v16  ;;  %9930 = vmatprep.subr.bf16.mxu0 %v13666_v29  ;;  %v13738_v16 = vld [vmem:[%s15904_s5 + $0xd0] sm:$0xff]  }
 0x5c5   : > { %9971 = vmatprep.subr.bf16.mxu1 %v13669_v23  ;;  %v13739_v29 = vld [vmem:[%s15904_s5 + $0x90] sm:$0xff]   ;;  %v13740_v23 = vld [vmem:[%s15904_s5 + $0xc8] sm:$0xff]  }
 0x5c7   : > { %9931 = vmatpush2.bf16.msra.mxu0 %v13664_v11  ;;  %v13741_v11 = vld [vmem:[%s15904_s5 + $0x88] sm:$0xff]  }
 0x5c8   : > { %9972 = vmatpush2.bf16.msra.mxu1 %v13667_v9  ;;  %9932 = vmatprep.subr.bf16.mxu0 %v13672_v3  ;;  %v13742_v9 = vld [vmem:[%s15904_s5 + $0xc0] sm:$0xff]  }
 0x5c9   : > { %9973 = vmatprep.subr.bf16.mxu1 %v13675_v17  ;;  %v13743_v3 = vld [vmem:[%s15904_s5 + $0x80] sm:$0xff]  }
 0x5ca   : > { %v9170_v17 = vld [vmem:[%s15903_s4] sm:$0xf] }
 0x5cb   : > { %9933 = vmatpush2.bf16.msra.mxu0 %v13670_v48  ;;  %v9175_v48 = vrot.slane %v9170_v17, %v8983_v13  ;;  %v9183_v13 = vrot.slane %v9170_v17, %v8991_v52 }
 0x5cc   : > { %9974 = vmatpush2.bf16.msra.mxu1 %v13673_v10  ;;  %9934 = vmatprep.subr.bf16.mxu0 %v13678_v59  ;;  %v9179_v10 = vrot.slane %v9170_v17, %v8987_v58  ;;  %v9187_v58 = vrot.slane %v9170_v17, %v8995_v28 }
 0x5cd   : > { %9975 = vmatprep.subr.bf16.mxu1 %v13681_v30 }
 0x5cf   : > { %9935 = vmatpush2.bf16.msra.mxu0 %v13676_v7 }
 0x5d0   : > { %9976 = vmatpush2.bf16.msra.mxu1 %v13679_v33  ;;  %9936 = vmatprep.subr.bf16.mxu0 %v13684_v37 }
 0x5d1   : > { %9977 = vmatprep.subr.bf16.mxu1 %v13687_v36 }
 0x5d3   : > { %9937 = vmatpush2.bf16.msra.mxu0 %v13682_v54 }
 0x5d4   : > { %9978 = vmatpush2.bf16.msra.mxu1 %v13685_v50  ;;  %9938 = vmatprep.subr.bf16.mxu0 %v13690_v2 }
 0x5d5   : > { %9979 = vmatprep.subr.bf16.mxu1 %v13693_v25 }
 0x5d7   : > { %9939 = vmatpush2.bf16.msra.mxu0 %v13688_v34 }
 0x5d8   : > { %9980 = vmatpush2.bf16.msra.mxu1 %v13691_v24  ;;  %9940 = vmatprep.subr.bf16.mxu0 %v13696_v35 }
 0x5d9   : > { %9981 = vmatprep.subr.bf16.mxu1 %v13699_v38 }
 0x5db   : > { %9941 = vmatpush2.bf16.msra.mxu0 %v13694_v41 }
 0x5dc   : > { %9982 = vmatpush2.bf16.msra.mxu1 %v13697_v14  ;;  %9942 = vmatprep.subr.bf16.mxu0 %v13702_v32 }
 0x5dd   : > { %9983 = vmatprep.subr.bf16.mxu1 %v13705_v19 }
 0x5df   : > { %9943 = vmatpush2.bf16.msra.mxu0 %v13700_v62 }
 0x5e0   : > { %9984 = vmatpush2.bf16.msra.mxu1 %v13703_v47  ;;  %9944 = vmatprep.subr.bf16.mxu0 %v13708_v39 }
 0x5e1   : > { %9985 = vmatprep.subr.bf16.mxu1 %v13711_v51 }
 0x5e3   : > { %9945 = vmatpush2.bf16.msra.mxu0 %v13706_v1 }
 0x5e4   : > { %9986 = vmatpush2.bf16.msra.mxu1 %v13709_v4  ;;  %11726 = vmatprep.subr.bf16.mxu0 %v13712_v5 }
 0x5e5   : > { %11748 = vmatprep.subr.bf16.mxu1 %v13728_v40 }
 0x5e6   : > { %9947 = vmatmul.mubr.bf16.vlgmr.msra.gmra.mxu0 %v15580_v61  ;;  %v13718_v61 = vld [vmem:[%s15904_s5 + $0x60] sm:$0xff]  }
 0x5e7   : > { %9988 = vmatmul.mubr.bf16.vlgmr.msra.gmra.mxu1 %v15582_v57  ;;  %11727 = vmatpush3.bf16.msra.mxu0 %v13713_v18  ;;  %v13719_v57 = vld [vmem:[%s15904_s5 + $0x20] sm:$0xff]  }
 0x5e8   : > { %11728 = vmatprep.subr.bf16.mxu0 %v13714_v6  ;;  %11749 = vmatpush3.bf16.msra.mxu1 %v13729_v63 }
 0x5e9   : > { %11750 = vmatprep.subr.bf16.mxu1 %v13730_v22 }
 0x5eb   : > { %11729 = vmatpush3.bf16.msra.mxu0 %v13715_v53 }
 0x5ec   : > { %11730 = vmatprep.subr.bf16.mxu0 %v13716_v0  ;;  %11751 = vmatpush3.bf16.msra.mxu1 %v13731_v21 }
 0x5ed   : > { %11752 = vmatprep.subr.bf16.mxu1 %v13732_v49 }
 0x5ef   : > { %11731 = vmatpush3.bf16.msra.mxu0 %v13717_v27 }
 0x5f0   : > { %11732 = vmatprep.subr.bf16.mxu0 %v13718_v61  ;;  %11753 = vmatpush3.bf16.msra.mxu1 %v13733_v12  ;;  %v11688_v61 = vld [vmem:[%s15905_s6] ss:$0 sm:$0xff] }
 0x5f1   : > { %11754 = vmatprep.subr.bf16.mxu1 %v13734_v26 }
 0x5f3   : > { %11733 = vmatpush3.bf16.msra.mxu0 %v13719_v57 }
 0x5f4   : > { %11734 = vmatprep.subr.bf16.mxu0 %v13720_v15  ;;  %11755 = vmatpush3.bf16.msra.mxu1 %v13735_v43 }
 0x5f5   : > { %11756 = vmatprep.subr.bf16.mxu1 %v13736_v55 }
 0x5f7   : > { %11735 = vmatpush3.bf16.msra.mxu0 %v13721_v31 }
 0x5f8   : > { %11736 = vmatprep.subr.bf16.mxu0 %v13722_v46  ;;  %11757 = vmatpush3.bf16.msra.mxu1 %v13737_v8 }
 0x5f9   : > { %11758 = vmatprep.subr.bf16.mxu1 %v13738_v16 }
 0x5fb   : > { %11737 = vmatpush3.bf16.msra.mxu0 %v13723_v56 }
 0x5fc   : > { %11738 = vmatprep.subr.bf16.mxu0 %v13724_v20  ;;  %11759 = vmatpush3.bf16.msra.mxu1 %v13739_v29 }
 0x5fd   : > { %11760 = vmatprep.subr.bf16.mxu1 %v13740_v23 }
 0x5ff   : > { %11739 = vmatpush3.bf16.msra.mxu0 %v13725_v42 }
 0x600   : > { %11740 = vmatprep.subr.bf16.mxu0 %v13726_v45  ;;  %11761 = vmatpush3.bf16.msra.mxu1 %v13741_v11 }
 0x601   : > { %11762 = vmatprep.subr.bf16.mxu1 %v13742_v9 }
 0x603   : > { %11741 = vmatpush3.bf16.msra.mxu0 %v13727_v60 }
 0x604   : > { %11763 = vmatpush3.bf16.msra.mxu1 %v13743_v3 }
 0x666   : > { %v9866_v59 = vpop.f32.mrf.mxu0 }
 0x667   : > { %v9907_v30 = vpop.f32.mrf.mxu1  ;;  %v9867_v7 = vadd.f32 %v9866_v59, %v9175_v48 }
 0x668   : > { %v9868_v33 = vpop.f32.mrf.mxu0 }
 0x669   : > { %v9909_v37 = vpop.f32.mrf.mxu1  ;;  %v9869_v36 = vadd.f32 %v9868_v33, %v9179_v10  ;;  %v9908_v54 = vadd.f32 %v9907_v30, %v9867_v7 }
 0x66a   : > { %v9870_v50 = vpop.f32.mrf.mxu0 }
 0x66b   : > { %v9911_v2 = vpop.f32.mrf.mxu1  ;;  %v9910_v25 = vadd.f32 %v9909_v37, %v9869_v36  ;;  %v9996_v38 = vpack.c.bf16 %v9908_v54, %v9908_v54 }
 0x66c   : > { %v9871_v34 = vpop.f32.mrf.mxu0 }
 0x66d   : > { %v9912_v24 = vpop.f32.mrf.mxu1  ;;  %v9997_v35 = vpack.c.bf16 %v9910_v25, %v9910_v25 }
 0x66f   : > { %10295 = vmatprep.mubr.bf16.mxu0 %v9997_v35 }
 0x670   : > { %10296 = vmatmul.mubr.bf16.vlgmr.msra.gmra.mxu0 %v9996_v38 }
 0x6a6   : > { %v9948_v41 = vpop.f32.mrf.mxu0 }
 0x6a7   : > { %v9989_v14 = vpop.f32.mrf.mxu1  ;;  %v9949_v32 = vadd.f32 %v9948_v41, %v9183_v13 }
 0x6a8   : > { %v9950_v19 = vpop.f32.mrf.mxu0 }
 0x6a9   : > { %v9991_v62 = vpop.f32.mrf.mxu1  ;;  %v9951_v47 = vadd.f32 %v9950_v19, %v9187_v58  ;;  %v9990_v39 = vadd.f32 %v9989_v14, %v9949_v32 }
 0x6aa   : > { %v9952_v51 = vpop.f32.mrf.mxu0 }
 0x6ab   : > { %v9993_v1 = vpop.f32.mrf.mxu1  ;;  %v9992_v4 = vadd.f32 %v9991_v62, %v9951_v47  ;;  %v9998_v53 = vpack.c.bf16 %v9990_v39, %v9990_v39 }
 0x6ac   : > { %v9953_v5 = vpop.f32.mrf.mxu0 }
 0x6ad   : > { %v9994_v18 = vpop.f32.mrf.mxu1  ;;  %v9999_v6 = vpack.c.bf16 %v9992_v4, %v9992_v4 }
 0x6af   : > { %10335 = vmatprep.mubr.bf16.mxu1 %v9999_v6 }
 0x6b0   : > { %10336 = vmatmul.mubr.bf16.vlgmr.msra.gmra.mxu1 %v9998_v53 }
 0x730   : > { %v11742_v52 = vpop.f32.mrf.mxu0 }
 0x732   : > { %v11743_v0 = vpop.f32.mrf.mxu0 }
 0x733   : > { %v11744_v27 = vadd.f32 %v11743_v0, %v11742_v52 }
 0x734   : > { %v11745_v44 = vpop.f32.mrf.mxu0 }
 0x735   : > { %v10298_v40 = vadd.f32 %v11744_v27, %v11688_v61 }
 0x736   : > { %v11746_v28 = vpop.f32.mrf.mxu0 }
 0x770   : > { %v11764_v57 = vpop.f32.mrf.mxu1 }
 0x772   : > { %v11765_v15 = vpop.f32.mrf.mxu1 }
 0x773   : > { %v11766_v63 = vadd.f32 %v11765_v15, %v11764_v57 }
 0x774   : > { %v11767_v22 = vpop.f32.mrf.mxu1 }
 0x775   : > { %v10338_v31 = vadd.f32 %v11766_v63, %v10298_v40 }
 0x776   : > { %v11768_v21 = vpop.f32.mrf.mxu1 }
 0x777   : > { %10343 = vst [vmem:[#allocation3] sm:$0x3] %v10338_v31 }
 0x778 PF: > { %p11774_p7 = scmp.eq.s32.totalorder %s13830_s25, 1  ;;  %s13783_s23 = smov [#allocation3]  }
 0x779   : > { %s10351_s26 = sshll.u32 %s13783_s23, 4  ;;  %s10352_s26 = int_to_ptr.vmem [resolvable:$true] %s10351_s26 }
 0x77a   : > { %s13744_s27 = scalar_lea.vmem %s10352_s26, 32  ;;  %p13751_p11 = scmp.lt.s32.totalorder %s10352_s26, %s10352_s26 }
 0x77b   : > { %p13745_p8 = scmp.ne.s32.totalorder %s10352_s26, %s13744_s27  ;;  %p13752_p12 = scmp.lt.s32.totalorder %s13744_s27, %s13744_s27 }
 0x77d   : > { %p13746_p9 = pnand %p13745_p8, %p11774_p7  ;;  %p13753_p13 = por %p13752_p12, %p13751_p11 }
 0x77f   : > { %p13747_p10 = pneg %p13746_p9 }
 0x781   : > { %p13754_p0 = pnand %p13753_p13, %p13747_p10 }
 0x783   : > { %13757 = shalt.err (!%p13754_p0)
}
 0x784   : > { %11771 = dma.vmem_to_hbm [thread:$0]  (%p11774_p7), %s10352_s26, 32, %s15906_s7, [#allocation4]  }
 0x785   : > { %13773 = dma.done.wait (%p11774_p7), [#allocation4], 32  }
 0x786   : > { %13775 = vsyncadd (%p11774_p7), [#allocation4], 4294967264 }
 0x787 PF: > { %s18_s24 = sadd.s32 1, %s13778_s24  }
 0x788   : > { %p15_p1 = scmp.ge.s32.totalorder %s18_s24, 4  }
 0x78a   :  { %17 = sbr.rel (!%p15_p1) target bundleno = 1 (0x1), region = 86 }
 0x78f   :  { %10364 = vsyncpa [#allocation4], 1 }
 0x790   :  { %10366 = vsyncpa [#allocation4 + $0x1], 1 }

</bundles_post_ra>
